<compile_context>
chip_gen: v7x
topology: tpu7x:2x2x1
jax: 0.10.0
libtpu: 0.0.40
codegen_flags: <defaults>
</compile_context>

<pallas_src>
import functools
import math

import jax
import jax.numpy as jnp
import numpy as np
from jax import lax
from jax.experimental import pallas as pl
from jax.experimental.pallas import tpu as pltpu


# ----------------------------------------------------------------------------
# Generic fused kernel: (bf16 x bf16 -> f32) matmul + bias + BN + activation
# ----------------------------------------------------------------------------
def _fused_kernel(*refs, use_bn, grouped, act, eps=1e-5):
    if grouped:
        x_ref, w_ref, b_ref, g_ref, be_ref, gs_ref, o_ref = refs
    elif use_bn:
        x_ref, w_ref, b_ref, g_ref, be_ref, o_ref = refs
    else:
        x_ref, w_ref, b_ref, o_ref = refs

    k = pl.program_id(1)

    @pl.when(k == 0)
    def _():
        o_ref[...] = jnp.zeros_like(o_ref)

    # Accumulate directly into the (f32, K-resident) output block.
    o_ref[...] += jnp.dot(x_ref[...], w_ref[...],
                          preferred_element_type=jnp.float32)

    @pl.when(k == pl.num_programs(1) - 1)
    def _():
        z = o_ref[...] + b_ref[...]
        if use_bn:
            if grouped:
                # BatchNorm2d on a (B*H, W*Cout) slab: stats per channel co,
                # pooled over rows and the W groups packed along the lanes.
                co = gs_ref.shape[1]
                groups = z.shape[1] // co
                inv_cnt = 1.0 / (z.shape[0] * groups)
                zg = jnp.dot(z, gs_ref[...], preferred_element_type=jnp.float32)
                mean_c = jnp.sum(zg, axis=0, keepdims=True) * inv_cnt   # (1, co)
                mean = jnp.concatenate([mean_c] * groups, axis=1)       # (1, N)
                zc = z - mean
                vg = jnp.dot(zc * zc, gs_ref[...],
                             preferred_element_type=jnp.float32)
                var_c = jnp.sum(vg, axis=0, keepdims=True) * inv_cnt
                var = jnp.concatenate([var_c] * groups, axis=1)
                z = zc * lax.rsqrt(var + eps)
            else:
                # BatchNorm1d (per-column stats over the batch rows).
                mean = jnp.mean(z, axis=0, keepdims=True)
                var = jnp.mean((z - mean) ** 2, axis=0, keepdims=True)
                z = (z - mean) * lax.rsqrt(var + eps)
            z = z * g_ref[...] + be_ref[...]
        if act == "relu":
            z = jnp.maximum(z, 0.0)
        elif act == "tanh":
            z = jnp.tanh(z)
        o_ref[...] = z.astype(o_ref.dtype)


def fused_matmul(x, w, b, gamma=None, beta=None, gsum=None, *, act,
                 tn=None, tk=None):
    M, K = x.shape
    K2, N = w.shape
    assert K == K2
    tn = N if tn is None else tn
    tk = K if tk is None else tk
    assert N % tn == 0 and K % tk == 0
    nj, nk = N // tn, K // tk
    use_bn = gamma is not None
    grouped = gsum is not None
    if grouped:
        assert use_bn and nj == 1  # grouped BN needs every column in one block

    inputs = [x, w, b]
    in_specs = [
        pl.BlockSpec((M, tk), lambda j, k: (0, k)),    # activations / lhs
        pl.BlockSpec((tk, tn), lambda j, k: (k, j)),   # (banded) weight
    ]
    if b.shape[0] == 1:                                # per-column bias
        in_specs.append(pl.BlockSpec((1, tn), lambda j, k: (0, j)))
    else:                                              # per-row bias (dc2^T)
        in_specs.append(pl.BlockSpec(b.shape, lambda j, k: (0, 0)))
    if use_bn:
        inputs += [gamma, beta]
        in_specs += [pl.BlockSpec((1, tn), lambda j, k: (0, j)),
                     pl.BlockSpec((1, tn), lambda j, k: (0, j))]
    if grouped:
        inputs.append(gsum)
        in_specs.append(pl.BlockSpec(gsum.shape, lambda j, k: (0, 0)))

    return pl.pallas_call(
        functools.partial(_fused_kernel, use_bn=use_bn, grouped=grouped,
                          act=act),
        out_shape=jax.ShapeDtypeStruct((M, N), jnp.float32),
        grid_spec=pltpu.PrefetchScalarGridSpec(
            num_scalar_prefetch=0,
            grid=(nj, nk),
            in_specs=in_specs,
            out_specs=pl.BlockSpec((M, tn), lambda j, k: (0, j)),
        ),
        compiler_params=pltpu.CompilerParams(
            dimension_semantics=("parallel", "arbitrary")),
    )(*inputs)


# ----------------------------------------------------------------------------
# ConvTranspose2d(4, 2, 1) lowering helpers (no 16x im2col expansion)
# ----------------------------------------------------------------------------
_K, _S, _P = 4, 2, 1


def _convT_geom(w_in, c_in):
    pad = _K - 1 - _P
    wp = _S * w_in - (_S - 1) + 2 * pad
    mult = 128 // math.gcd(c_in, 128)
    return ((wp + mult - 1) // mult) * mult   # lane-pad so Wpt*C % 128 == 0


def _convT_lhs(x_nhwc):
    """Padded/dilated input with the 4 kh-shifted views concatenated along the
    contraction axis -> (B*Hout, 4*Wpt*C).  Only ~4x the raw input size."""
    B, H, W, C = x_nhwc.shape
    pad = _K - 1 - _P
    hout, wout = _S * H, _S * W
    wp = _S * W - (_S - 1) + 2 * pad
    wpt = _convT_geom(W, C)
    xd = jnp.zeros((B, _S * H - (_S - 1), _S * W - (_S - 1), C), x_nhwc.dtype)
    xd = xd.at[:, ::_S, ::_S, :].set(x_nhwc)
    xp = jnp.pad(xd, ((0, 0), (pad, pad), (pad, pad + (wpt - wp)), (0, 0)))
    parts = [xp[:, kh:kh + hout, :, :].reshape(B * hout, wpt * C)
             for kh in range(_K)]
    return jnp.concatenate(parts, axis=1), (hout, wout, wpt)


def _banded_convT_weight(w_pt, w_in):
    """Fold the 4 kw taps and the W_out position of ConvTranspose2d(4,2,1)
    into one banded matrix (4*Wpt*Cin, Wout*Cout).  Precomputed once."""
    w_np = np.asarray(w_pt)                                   # (Cin, Cout, 4, 4)
    c_in, c_out = w_np.shape[0], w_np.shape[1]
    wf = np.transpose(w_np[:, :, ::-1, ::-1], (2, 3, 0, 1))   # (kh, kw, Cin, Cout)
    wout = _S * w_in
    wpt = _convT_geom(w_in, c_in)
    band = np.zeros((_K * wpt * c_in, wout * c_out), np.float32)
    for kh in range(_K):
        for kw in range(_K):
            for wo in range(wout):
                wi = wo + kw
                r0 = kh * wpt * c_in + wi * c_in
                band[r0:r0 + c_in, wo * c_out:(wo + 1) * c_out] = wf[kh, kw]
    return band


# ----------------------------------------------------------------------------
# Parameter preparation (hoisted out of the forward pass)
# ----------------------------------------------------------------------------
def prepare_params(params, *, input_size, output_dim):
    bf = jnp.bfloat16
    s4 = input_size // 4
    h1 = input_size // 2          # deconv1 output spatial
    h2 = input_size               # deconv2 output spatial

    band1 = _banded_convT_weight(params["dc1_w"], s4)   # (4*Wpt1*128, h1*64)
    band2 = _banded_convT_weight(params["dc2_w"], h1)   # (4*Wpt2*64,  h2*Co)
    gsum1 = np.tile(np.eye(64, dtype=np.float32), (h1, 1))   # (h1*64, 64)

    return {
        "fc1_w": params["fc1_w"].astype(bf), "fc1_b": params["fc1_b"],
        "bn1_g": params["bn1_g"], "bn1_b": params["bn1_b"],
        "fc2_w": params["fc2_w"].astype(bf), "fc2_b": params["fc2_b"],
        "bn2_g": params["bn2_g"], "bn2_b": params["bn2_b"],
        "dc1_wband": jnp.asarray(band1, bf),
        "dc1_b": jnp.tile(params["dc1_b"], (1, h1)),
        "bn3_g": jnp.tile(params["bn3_g"], (1, h1)),
        "bn3_b": jnp.tile(params["bn3_b"], (1, h1)),
        "dc1_gsum": jnp.asarray(gsum1, jnp.float32),
        "dc2_wband_t": jnp.asarray(band2.T, bf),
        "dc2_b_t": jnp.tile(params["dc2_b"], (h2, 1)).reshape(h2 * output_dim, 1),
    }


# ----------------------------------------------------------------------------
# Full generator forward
# ----------------------------------------------------------------------------
def generator_forward(z, prep, *, input_size, output_dim):
    B = z.shape[0]
    s4 = input_size // 4
    bf = jnp.bfloat16

    # fc: Linear -> BN1d -> ReLU -> Linear -> BN1d -> ReLU
    h = fused_matmul(z.astype(bf), prep["fc1_w"], prep["fc1_b"],
                     prep["bn1_g"], prep["bn1_b"], act="relu")
    h = fused_matmul(h.astype(bf), prep["fc2_w"], prep["fc2_b"],
                     prep["bn2_g"], prep["bn2_b"], act="relu",
                     tn=1024, tk=512)

    # x.view(-1, 128, s/4, s/4)  (NCHW) -> NHWC for the deconv path.
    x = jnp.transpose(h.reshape(B, 128, s4, s4), (0, 2, 3, 1))

    # ConvTranspose2d(128, 64, 4, 2, 1) -> BN2d -> ReLU, lane-dense slab out.
    lhs1, (h1, w1, wpt1) = _convT_lhs(x.astype(bf))
    y_slab = fused_matmul(lhs1, prep["dc1_wband"], prep["dc1_b"],
                          prep["bn3_g"], prep["bn3_b"],
                          gsum=prep["dc1_gsum"], act="relu", tk=wpt1 * 128)
    y = y_slab.reshape(B, h1, w1, 64)

    # ConvTranspose2d(64, output_dim, 4, 2, 1) -> Tanh, computed transposed so
    # the output tile is (W2*Cout, B*H2) = lane-dense even with output_dim=1.
    lhs2, (h2, w2, wpt2) = _convT_lhs(y.astype(bf))
    out_t = fused_matmul(prep["dc2_wband_t"], lhs2.T, prep["dc2_b_t"],
                         act="tanh", tk=wpt2 * 64)
    out = out_t.reshape(w2, output_dim, B, h2)
    return jnp.transpose(out, (2, 1, 3, 0))        # NCHW, like PyTorch


# ----------------------------------------------------------------------------
# Deterministic synthetic parameter init (DCGAN-style: N(0, 0.02))
# ----------------------------------------------------------------------------
def init_params(key, input_dim, output_dim, input_size):
    s4 = input_size // 4
    fc2_out = 128 * s4 * s4
    ks = jax.random.split(key, 8)
    n = lambda k, shape: 0.02 * jax.random.normal(k, shape, jnp.float32)
    return {
        "fc1_w": n(ks[0], (input_dim, 1024)),
        "fc1_b": jnp.zeros((1, 1024), jnp.float32),
        "bn1_g": 1.0 + n(ks[1], (1, 1024)),
        "bn1_b": jnp.zeros((1, 1024), jnp.float32),
        "fc2_w": n(ks[2], (1024, fc2_out)),
        "fc2_b": jnp.zeros((1, fc2_out), jnp.float32),
        "bn2_g": 1.0 + n(ks[3], (1, fc2_out)),
        "bn2_b": jnp.zeros((1, fc2_out), jnp.float32),
        "dc1_w": n(ks[4], (128, 64, 4, 4)),
        "dc1_b": jnp.zeros((1, 64), jnp.float32),
        "bn3_g": 1.0 + n(ks[5], (1, 64)),
        "bn3_b": jnp.zeros((1, 64), jnp.float32),
        "dc2_w": n(ks[6], (64, output_dim, 4, 4)),
        "dc2_b": jnp.zeros((1, output_dim), jnp.float32),
    }


# ----------------------------------------------------------------------------
# Pure-JAX f32 reference (for correctness check)
# ----------------------------------------------------------------------------
def ref_forward(z, params, input_size, output_dim):
    eps = 1e-5
    hp = lax.Precision.HIGHEST

    def bn(x, g, b, axes):
        m = x.mean(axes, keepdims=True)
        v = ((x - m) ** 2).mean(axes, keepdims=True)
        return (x - m) / jnp.sqrt(v + eps) * g + b

    def convT(x, w, b):
        rhs = jnp.transpose(w[:, :, ::-1, ::-1], (2, 3, 0, 1))  # HWIO
        y = lax.conv_general_dilated(
            x, rhs, window_strides=(1, 1), padding=[(2, 2), (2, 2)],
            lhs_dilation=(2, 2), dimension_numbers=("NHWC", "HWIO", "NHWC"),
            precision=hp)
        return y + b

    h = jnp.dot(z, params["fc1_w"], precision=hp) + params["fc1_b"]
    h = jnp.maximum(bn(h, params["bn1_g"], params["bn1_b"], 0), 0.0)
    h = jnp.dot(h, params["fc2_w"], precision=hp) + params["fc2_b"]
    h = jnp.maximum(bn(h, params["bn2_g"], params["bn2_b"], 0), 0.0)
    B = z.shape[0]
    s4 = input_size // 4
    x = h.reshape(B, 128, s4, s4).transpose(0, 2, 3, 1)
    y = convT(x, params["dc1_w"], params["dc1_b"].reshape(1, 1, 1, -1))
    y = jnp.maximum(bn(y, params["bn3_g"].reshape(1, 1, 1, -1),
                       params["bn3_b"].reshape(1, 1, 1, -1), (0, 1, 2)), 0.0)
    o = jnp.tanh(convT(y, params["dc2_w"], params["dc2_b"].reshape(1, 1, 1, -1)))
    return jnp.transpose(o, (0, 3, 1, 2))


if __name__ == "__main__":
    INPUT_DIM, OUTPUT_DIM, INPUT_SIZE, BATCH = 32, 1, 16, 8

    key = jax.random.PRNGKey(0)
    params = init_params(key, INPUT_DIM, OUTPUT_DIM, INPUT_SIZE)
    prep = prepare_params(params, input_size=INPUT_SIZE, output_dim=OUTPUT_DIM)
    z = jax.random.normal(jax.random.fold_in(key, 123),
                          (BATCH, INPUT_DIM), jnp.float32)

    fwd = jax.jit(functools.partial(generator_forward,
                                    input_size=INPUT_SIZE,
                                    output_dim=OUTPUT_DIM))
    out = jax.block_until_ready(fwd(z, prep))

    assert out.shape == (BATCH, OUTPUT_DIM, INPUT_SIZE, INPUT_SIZE)
    ref = ref_forward(z, params, INPUT_SIZE, OUTPUT_DIM)
    # bf16 matmul operands (per perf review), f32 accumulation/BN/tanh -> a
    # slightly wider tolerance than the pure-f32 version.
    np.testing.assert_allclose(np.asarray(out), np.asarray(ref),
                               rtol=3e-2, atol=3e-2)
    print("KERNEL_OK")
</pallas_src>

<mosaic_0001>
module attributes {stable_mosaic.version = 11 : i64} {
  func.func @_fused_kernel(%arg0: i32, %arg1: i32, %arg2: memref<8x32xbf16, #tpu.memory_space<vmem>>, %arg3: memref<32x1024xbf16, #tpu.memory_space<vmem>>, %arg4: memref<1x1024xf32, #tpu.memory_space<vmem>>, %arg5: memref<1x1024xf32, #tpu.memory_space<vmem>>, %arg6: memref<1x1024xf32, #tpu.memory_space<vmem>>, %arg7: memref<8x1024xf32, #tpu.memory_space<vmem>>) attributes {dimension_semantics = [#tpu.dimension_semantics<parallel>, #tpu.dimension_semantics<arbitrary>], iteration_bounds = array<i64: 1, 1>, scalar_prefetch = 0 : i64, scratch_operands = 0 : i64, tpu.core_type = #tpu.core_type<tc>, window_params = [{transform_indices = @transform_0, window_bounds = array<i64: 8, 32>}, {transform_indices = @transform_1, window_bounds = array<i64: 32, 1024>}, {transform_indices = @transform_2, window_bounds = array<i64: 1, 1024>}, {transform_indices = @transform_3, window_bounds = array<i64: 1, 1024>}, {transform_indices = @transform_4, window_bounds = array<i64: 1, 1024>}, {transform_indices = @transform_5, window_bounds = array<i64: 8, 1024>}]} {
    %c0_i32 = arith.constant 0 : i32
    %0 = arith.cmpi eq, %arg1, %c0_i32 : i32
    %1 = arith.extui %0 : i1 to i32
    %c0_i32_0 = arith.constant 0 : i32
    %2 = arith.cmpi ne, %1, %c0_i32_0 : i32
    scf.if %2 {
      %cst_10 = arith.constant 0.000000e+00 : f32
      %12 = vector.broadcast %cst_10 : f32 to vector<8x1024xf32>
      %c0_11 = arith.constant 0 : index
      %c0_12 = arith.constant 0 : index
      %13 = vector.load %arg7[%c0_11, %c0_12] : memref<8x1024xf32, #tpu.memory_space<vmem>>, vector<8x1024xf32>
      tpu.vector_store %arg7[%c0_11, %c0_12], %12 {strides = array<i32>} : memref<8x1024xf32, #tpu.memory_space<vmem>>, vector<8x1024xf32>,
    } else {
    }
    %c0 = arith.constant 0 : index
    %c0_1 = arith.constant 0 : index
    %3 = vector.load %arg7[%c0, %c0_1] : memref<8x1024xf32, #tpu.memory_space<vmem>>, vector<8x1024xf32>
    %c0_2 = arith.constant 0 : index
    %c0_3 = arith.constant 0 : index
    %4 = vector.load %arg2[%c0_2, %c0_3] : memref<8x32xbf16, #tpu.memory_space<vmem>>, vector<8x32xbf16>
    %c0_4 = arith.constant 0 : index
    %c0_5 = arith.constant 0 : index
    %5 = vector.load %arg3[%c0_4, %c0_5] : memref<32x1024xbf16, #tpu.memory_space<vmem>>, vector<32x1024xbf16>
    %cst = arith.constant dense<0.000000e+00> : vector<8x1024xf32>
    %6 = tpu.matmul %4, %5, %cst {dimension_numbers = #tpu.dot_dimension_numbers<[1], [0], [0], [1], [0, 0, 1, 1], [], []>} : vector<8x32xbf16>, vector<32x1024xbf16>, vector<8x1024xf32> -> vector<8x1024xf32>
    %7 = arith.addf %3, %6 : vector<8x1024xf32>
    %c0_6 = arith.constant 0 : index
    %c0_7 = arith.constant 0 : index
    %8 = vector.load %arg7[%c0_6, %c0_7] : memref<8x1024xf32, #tpu.memory_space<vmem>>, vector<8x1024xf32>
    tpu.vector_store %arg7[%c0_6, %c0_7], %7 {strides = array<i32>} : memref<8x1024xf32, #tpu.memory_space<vmem>>, vector<8x1024xf32>,
    %c0_i32_8 = arith.constant 0 : i32
    %9 = arith.cmpi eq, %arg1, %c0_i32_8 : i32
    %10 = arith.extui %9 : i1 to i32
    %c0_i32_9 = arith.constant 0 : i32
    %11 = arith.cmpi ne, %10, %c0_i32_9 : i32
    scf.if %11 {
      %c0_10 = arith.constant 0 : index
      %c0_11 = arith.constant 0 : index
      %12 = vector.load %arg7[%c0_10, %c0_11] : memref<8x1024xf32, #tpu.memory_space<vmem>>, vector<8x1024xf32>
      %c0_12 = arith.constant 0 : index
      %c0_13 = arith.constant 0 : index
      %13 = vector.load %arg4[%c0_12, %c0_13] : memref<1x1024xf32, #tpu.memory_space<vmem>>, vector<1x1024xf32>
      %14 = vector.broadcast %13 : vector<1x1024xf32> to vector<8x1024xf32>
      %15 = arith.addf %12, %14 : vector<8x1024xf32>
      %cst_14 = arith.constant dense<0.000000e+00> : vector<1024xf32>
      %16 = vector.multi_reduction <add>, %15, %cst_14 [0] : vector<8x1024xf32> to vector<1024xf32>
      %17 = vector.shape_cast %16 : vector<1024xf32> to vector<1x1024xf32>
      %cst_15 = arith.constant 8.000000e+00 : f32
      %18 = vector.broadcast %cst_15 : f32 to vector<1x1024xf32>
      %19 = arith.divf %17, %18 : vector<1x1024xf32>
      %20 = vector.broadcast %19 : vector<1x1024xf32> to vector<8x1024xf32>
      %21 = arith.subf %15, %20 : vector<8x1024xf32>
      %22 = arith.mulf %21, %21 : vector<8x1024xf32>
      %cst_16 = arith.constant dense<0.000000e+00> : vector<1024xf32>
      %23 = vector.multi_reduction <add>, %22, %cst_16 [0] : vector<8x1024xf32> to vector<1024xf32>
      %24 = vector.shape_cast %23 : vector<1024xf32> to vector<1x1024xf32>
      %cst_17 = arith.constant 8.000000e+00 : f32
      %25 = vector.broadcast %cst_17 : f32 to vector<1x1024xf32>
      %26 = arith.divf %24, %25 : vector<1x1024xf32>
      %27 = vector.broadcast %19 : vector<1x1024xf32> to vector<8x1024xf32>
      %28 = arith.subf %15, %27 : vector<8x1024xf32>
      %cst_18 = arith.constant 9.99999974E-6 : f32
      %29 = vector.broadcast %cst_18 : f32 to vector<1x1024xf32>
      %30 = arith.addf %26, %29 : vector<1x1024xf32>
      %31 = math.rsqrt %30 : vector<1x1024xf32>
      %32 = vector.broadcast %31 : vector<1x1024xf32> to vector<8x1024xf32>
      %33 = arith.mulf %28, %32 : vector<8x1024xf32>
      %c0_19 = arith.constant 0 : index
      %c0_20 = arith.constant 0 : index
      %34 = vector.load %arg5[%c0_19, %c0_20] : memref<1x1024xf32, #tpu.memory_space<vmem>>, vector<1x1024xf32>
      %35 = vector.broadcast %34 : vector<1x1024xf32> to vector<8x1024xf32>
      %36 = arith.mulf %33, %35 : vector<8x1024xf32>
      %c0_21 = arith.constant 0 : index
      %c0_22 = arith.constant 0 : index
      %37 = vector.load %arg6[%c0_21, %c0_22] : memref<1x1024xf32, #tpu.memory_space<vmem>>, vector<1x1024xf32>
      %38 = vector.broadcast %37 : vector<1x1024xf32> to vector<8x1024xf32>
      %39 = arith.addf %36, %38 : vector<8x1024xf32>
      %cst_23 = arith.constant 0.000000e+00 : f32
      %40 = vector.broadcast %cst_23 : f32 to vector<8x1024xf32>
      %41 = arith.maximumf %39, %40 : vector<8x1024xf32>
      %c0_24 = arith.constant 0 : index
      %c0_25 = arith.constant 0 : index
      %42 = vector.load %arg7[%c0_24, %c0_25] : memref<8x1024xf32, #tpu.memory_space<vmem>>, vector<8x1024xf32>
      tpu.vector_store %arg7[%c0_24, %c0_25], %41 {strides = array<i32>} : memref<8x1024xf32, #tpu.memory_space<vmem>>, vector<8x1024xf32>,
    } else {
    }
    return
  }
  func.func @transform_0(%arg0: i32, %arg1: i32) -> (i32, i32) {
    %c0_i32 = arith.constant 0 : i32
    %c0_i32_0 = arith.constant 0 : i32
    return %c0_i32, %arg1 : i32, i32
  }
  func.func @transform_1(%arg0: i32, %arg1: i32) -> (i32, i32) {
    %c0_i32 = arith.constant 0 : i32
    return %arg1, %arg0 : i32, i32
  }
  func.func @transform_2(%arg0: i32, %arg1: i32) -> (i32, i32) {
    %c0_i32 = arith.constant 0 : i32
    %c0_i32_0 = arith.constant 0 : i32
    return %c0_i32, %arg0 : i32, i32
  }
  func.func @transform_3(%arg0: i32, %arg1: i32) -> (i32, i32) {
    %c0_i32 = arith.constant 0 : i32
    %c0_i32_0 = arith.constant 0 : i32
    return %c0_i32, %arg0 : i32, i32
  }
  func.func @transform_4(%arg0: i32, %arg1: i32) -> (i32, i32) {
    %c0_i32 = arith.constant 0 : i32
    %c0_i32_0 = arith.constant 0 : i32
    return %c0_i32, %arg0 : i32, i32
  }
  func.func @transform_5(%arg0: i32, %arg1: i32) -> (i32, i32) {
    %c0_i32 = arith.constant 0 : i32
    %c0_i32_0 = arith.constant 0 : i32
    return %c0_i32, %arg0 : i32, i32
  }
}

module attributes {stable_mosaic.version = 11 : i64} {
  func.func @_fused_kernel(%arg0: i32, %arg1: i32, %arg2: memref<8x512xbf16, #tpu.memory_space<vmem>>, %arg3: memref<512x1024xbf16, #tpu.memory_space<vmem>>, %arg4: memref<1x1024xf32, #tpu.memory_space<vmem>>, %arg5: memref<1x1024xf32, #tpu.memory_space<vmem>>, %arg6: memref<1x1024xf32, #tpu.memory_space<vmem>>, %arg7: memref<8x1024xf32, #tpu.memory_space<vmem>>) attributes {dimension_semantics = [#tpu.dimension_semantics<parallel>, #tpu.dimension_semantics<arbitrary>], iteration_bounds = array<i64: 2, 2>, scalar_prefetch = 0 : i64, scratch_operands = 0 : i64, tpu.core_type = #tpu.core_type<tc>, window_params = [{transform_indices = @transform_0, window_bounds = array<i64: 8, 512>}, {transform_indices = @transform_1, window_bounds = array<i64: 512, 1024>}, {transform_indices = @transform_2, window_bounds = array<i64: 1, 1024>}, {transform_indices = @transform_3, window_bounds = array<i64: 1, 1024>}, {transform_indices = @transform_4, window_bounds = array<i64: 1, 1024>}, {transform_indices = @transform_5, window_bounds = array<i64: 8, 1024>}]} {
    %c0_i32 = arith.constant 0 : i32
    %0 = arith.cmpi eq, %arg1, %c0_i32 : i32
    %1 = arith.extui %0 : i1 to i32
    %c0_i32_0 = arith.constant 0 : i32
    %2 = arith.cmpi ne, %1, %c0_i32_0 : i32
    scf.if %2 {
      %cst_9 = arith.constant 0.000000e+00 : f32
      %12 = vector.broadcast %cst_9 : f32 to vector<8x1024xf32>
      %c0_10 = arith.constant 0 : index
      %c0_11 = arith.constant 0 : index
      %13 = vector.load %arg7[%c0_10, %c0_11] : memref<8x1024xf32, #tpu.memory_space<vmem>>, vector<8x1024xf32>
      tpu.vector_store %arg7[%c0_10, %c0_11], %12 {strides = array<i32>} : memref<8x1024xf32, #tpu.memory_space<vmem>>, vector<8x1024xf32>,
    } else {
    }
    %c0 = arith.constant 0 : index
    %c0_1 = arith.constant 0 : index
    %3 = vector.load %arg7[%c0, %c0_1] : memref<8x1024xf32, #tpu.memory_space<vmem>>, vector<8x1024xf32>
    %c0_2 = arith.constant 0 : index
    %c0_3 = arith.constant 0 : index
    %4 = vector.load %arg2[%c0_2, %c0_3] : memref<8x512xbf16, #tpu.memory_space<vmem>>, vector<8x512xbf16>
    %c0_4 = arith.constant 0 : index
    %c0_5 = arith.constant 0 : index
    %5 = vector.load %arg3[%c0_4, %c0_5] : memref<512x1024xbf16, #tpu.memory_space<vmem>>, vector<512x1024xbf16>
    %cst = arith.constant dense<0.000000e+00> : vector<8x1024xf32>
    %6 = tpu.matmul %4, %5, %cst {dimension_numbers = #tpu.dot_dimension_numbers<[1], [0], [0], [1], [0, 0, 1, 1], [], []>} : vector<8x512xbf16>, vector<512x1024xbf16>, vector<8x1024xf32> -> vector<8x1024xf32>
    %7 = arith.addf %3, %6 : vector<8x1024xf32>
    %c0_6 = arith.constant 0 : index
    %c0_7 = arith.constant 0 : index
    %8 = vector.load %arg7[%c0_6, %c0_7] : memref<8x1024xf32, #tpu.memory_space<vmem>>, vector<8x1024xf32>
    tpu.vector_store %arg7[%c0_6, %c0_7], %7 {strides = array<i32>} : memref<8x1024xf32, #tpu.memory_space<vmem>>, vector<8x1024xf32>,
    %c1_i32 = arith.constant 1 : i32
    %9 = arith.cmpi eq, %arg1, %c1_i32 : i32
    %10 = arith.extui %9 : i1 to i32
    %c0_i32_8 = arith.constant 0 : i32
    %11 = arith.cmpi ne, %10, %c0_i32_8 : i32
    scf.if %11 {
      %c0_9 = arith.constant 0 : index
      %c0_10 = arith.constant 0 : index
      %12 = vector.load %arg7[%c0_9, %c0_10] : memref<8x1024xf32, #tpu.memory_space<vmem>>, vector<8x1024xf32>
      %c0_11 = arith.constant 0 : index
      %c0_12 = arith.constant 0 : index
      %13 = vector.load %arg4[%c0_11, %c0_12] : memref<1x1024xf32, #tpu.memory_space<vmem>>, vector<1x1024xf32>
      %14 = vector.broadcast %13 : vector<1x1024xf32> to vector<8x1024xf32>
      %15 = arith.addf %12, %14 : vector<8x1024xf32>
      %cst_13 = arith.constant dense<0.000000e+00> : vector<1024xf32>
      %16 = vector.multi_reduction <add>, %15, %cst_13 [0] : vector<8x1024xf32> to vector<1024xf32>
      %17 = vector.shape_cast %16 : vector<1024xf32> to vector<1x1024xf32>
      %cst_14 = arith.constant 8.000000e+00 : f32
      %18 = vector.broadcast %cst_14 : f32 to vector<1x1024xf32>
      %19 = arith.divf %17, %18 : vector<1x1024xf32>
      %20 = vector.broadcast %19 : vector<1x1024xf32> to vector<8x1024xf32>
      %21 = arith.subf %15, %20 : vector<8x1024xf32>
      %22 = arith.mulf %21, %21 : vector<8x1024xf32>
      %cst_15 = arith.constant dense<0.000000e+00> : vector<1024xf32>
      %23 = vector.multi_reduction <add>, %22, %cst_15 [0] : vector<8x1024xf32> to vector<1024xf32>
      %24 = vector.shape_cast %23 : vector<1024xf32> to vector<1x1024xf32>
      %cst_16 = arith.constant 8.000000e+00 : f32
      %25 = vector.broadcast %cst_16 : f32 to vector<1x1024xf32>
      %26 = arith.divf %24, %25 : vector<1x1024xf32>
      %27 = vector.broadcast %19 : vector<1x1024xf32> to vector<8x1024xf32>
      %28 = arith.subf %15, %27 : vector<8x1024xf32>
      %cst_17 = arith.constant 9.99999974E-6 : f32
      %29 = vector.broadcast %cst_17 : f32 to vector<1x1024xf32>
      %30 = arith.addf %26, %29 : vector<1x1024xf32>
      %31 = math.rsqrt %30 : vector<1x1024xf32>
      %32 = vector.broadcast %31 : vector<1x1024xf32> to vector<8x1024xf32>
      %33 = arith.mulf %28, %32 : vector<8x1024xf32>
      %c0_18 = arith.constant 0 : index
      %c0_19 = arith.constant 0 : index
      %34 = vector.load %arg5[%c0_18, %c0_19] : memref<1x1024xf32, #tpu.memory_space<vmem>>, vector<1x1024xf32>
      %35 = vector.broadcast %34 : vector<1x1024xf32> to vector<8x1024xf32>
      %36 = arith.mulf %33, %35 : vector<8x1024xf32>
      %c0_20 = arith.constant 0 : index
      %c0_21 = arith.constant 0 : index
      %37 = vector.load %arg6[%c0_20, %c0_21] : memref<1x1024xf32, #tpu.memory_space<vmem>>, vector<1x1024xf32>
      %38 = vector.broadcast %37 : vector<1x1024xf32> to vector<8x1024xf32>
      %39 = arith.addf %36, %38 : vector<8x1024xf32>
      %cst_22 = arith.constant 0.000000e+00 : f32
      %40 = vector.broadcast %cst_22 : f32 to vector<8x1024xf32>
      %41 = arith.maximumf %39, %40 : vector<8x1024xf32>
      %c0_23 = arith.constant 0 : index
      %c0_24 = arith.constant 0 : index
      %42 = vector.load %arg7[%c0_23, %c0_24] : memref<8x1024xf32, #tpu.memory_space<vmem>>, vector<8x1024xf32>
      tpu.vector_store %arg7[%c0_23, %c0_24], %41 {strides = array<i32>} : memref<8x1024xf32, #tpu.memory_space<vmem>>, vector<8x1024xf32>,
    } else {
    }
    return
  }
  func.func @transform_0(%arg0: i32, %arg1: i32) -> (i32, i32) {
    %c0_i32 = arith.constant 0 : i32
    %c0_i32_0 = arith.constant 0 : i32
    return %c0_i32, %arg1 : i32, i32
  }
  func.func @transform_1(%arg0: i32, %arg1: i32) -> (i32, i32) {
    %c0_i32 = arith.constant 0 : i32
    return %arg1, %arg0 : i32, i32
  }
  func.func @transform_2(%arg0: i32, %arg1: i32) -> (i32, i32) {
    %c0_i32 = arith.constant 0 : i32
    %c0_i32_0 = arith.constant 0 : i32
    return %c0_i32, %arg0 : i32, i32
  }
  func.func @transform_3(%arg0: i32, %arg1: i32) -> (i32, i32) {
    %c0_i32 = arith.constant 0 : i32
    %c0_i32_0 = arith.constant 0 : i32
    return %c0_i32, %arg0 : i32, i32
  }
  func.func @transform_4(%arg0: i32, %arg1: i32) -> (i32, i32) {
    %c0_i32 = arith.constant 0 : i32
    %c0_i32_0 = arith.constant 0 : i32
    return %c0_i32, %arg0 : i32, i32
  }
  func.func @transform_5(%arg0: i32, %arg1: i32) -> (i32, i32) {
    %c0_i32 = arith.constant 0 : i32
    %c0_i32_0 = arith.constant 0 : i32
    return %c0_i32, %arg0 : i32, i32
  }
}

module attributes {stable_mosaic.version = 11 : i64} {
  func.func @_fused_kernel(%arg0: i32, %arg1: i32, %arg2: memref<64x1408xbf16, #tpu.memory_space<vmem>>, %arg3: memref<1408x512xbf16, #tpu.memory_space<vmem>>, %arg4: memref<1x512xf32, #tpu.memory_space<vmem>>, %arg5: memref<1x512xf32, #tpu.memory_space<vmem>>, %arg6: memref<1x512xf32, #tpu.memory_space<vmem>>, %arg7: memref<512x64xf32, #tpu.memory_space<vmem>>, %arg8: memref<64x512xf32, #tpu.memory_space<vmem>>) attributes {dimension_semantics = [#tpu.dimension_semantics<parallel>, #tpu.dimension_semantics<arbitrary>], iteration_bounds = array<i64: 1, 4>, scalar_prefetch = 0 : i64, scratch_operands = 0 : i64, tpu.core_type = #tpu.core_type<tc>, window_params = [{transform_indices = @transform_0, window_bounds = array<i64: 64, 1408>}, {transform_indices = @transform_1, window_bounds = array<i64: 1408, 512>}, {transform_indices = @transform_2, window_bounds = array<i64: 1, 512>}, {transform_indices = @transform_3, window_bounds = array<i64: 1, 512>}, {transform_indices = @transform_4, window_bounds = array<i64: 1, 512>}, {pipeline_mode = #tpu.pipeline_mode<synchronous>, transform_indices = @transform_5, window_bounds = array<i64: 512, 64>}, {transform_indices = @transform_6, window_bounds = array<i64: 64, 512>}]} {
    %c0_i32 = arith.constant 0 : i32
    %0 = arith.cmpi eq, %arg1, %c0_i32 : i32
    %1 = arith.extui %0 : i1 to i32
    %c0_i32_0 = arith.constant 0 : i32
    %2 = arith.cmpi ne, %1, %c0_i32_0 : i32
    scf.if %2 {
      %cst_9 = arith.constant 0.000000e+00 : f32
      %12 = vector.broadcast %cst_9 : f32 to vector<64x512xf32>
      %c0_10 = arith.constant 0 : index
      %c0_11 = arith.constant 0 : index
      %13 = vector.load %arg8[%c0_10, %c0_11] : memref<64x512xf32, #tpu.memory_space<vmem>>, vector<64x512xf32>
      tpu.vector_store %arg8[%c0_10, %c0_11], %12 {strides = array<i32>} : memref<64x512xf32, #tpu.memory_space<vmem>>, vector<64x512xf32>,
    } else {
    }
    %c0 = arith.constant 0 : index
    %c0_1 = arith.constant 0 : index
    %3 = vector.load %arg8[%c0, %c0_1] : memref<64x512xf32, #tpu.memory_space<vmem>>, vector<64x512xf32>
    %c0_2 = arith.constant 0 : index
    %c0_3 = arith.constant 0 : index
    %4 = vector.load %arg2[%c0_2, %c0_3] : memref<64x1408xbf16, #tpu.memory_space<vmem>>, vector<64x1408xbf16>
    %c0_4 = arith.constant 0 : index
    %c0_5 = arith.constant 0 : index
    %5 = vector.load %arg3[%c0_4, %c0_5] : memref<1408x512xbf16, #tpu.memory_space<vmem>>, vector<1408x512xbf16>
    %cst = arith.constant dense<0.000000e+00> : vector<64x512xf32>
    %6 = tpu.matmul %4, %5, %cst {dimension_numbers = #tpu.dot_dimension_numbers<[1], [0], [0], [1], [0, 0, 1, 1], [], []>} : vector<64x1408xbf16>, vector<1408x512xbf16>, vector<64x512xf32> -> vector<64x512xf32>
    %7 = arith.addf %3, %6 : vector<64x512xf32>
    %c0_6 = arith.constant 0 : index
    %c0_7 = arith.constant 0 : index
    %8 = vector.load %arg8[%c0_6, %c0_7] : memref<64x512xf32, #tpu.memory_space<vmem>>, vector<64x512xf32>
    tpu.vector_store %arg8[%c0_6, %c0_7], %7 {strides = array<i32>} : memref<64x512xf32, #tpu.memory_space<vmem>>, vector<64x512xf32>,
    %c3_i32 = arith.constant 3 : i32
    %9 = arith.cmpi eq, %arg1, %c3_i32 : i32
    %10 = arith.extui %9 : i1 to i32
    %c0_i32_8 = arith.constant 0 : i32
    %11 = arith.cmpi ne, %10, %c0_i32_8 : i32
    scf.if %11 {
      %c0_9 = arith.constant 0 : index
      %c0_10 = arith.constant 0 : index
      %12 = vector.load %arg8[%c0_9, %c0_10] : memref<64x512xf32, #tpu.memory_space<vmem>>, vector<64x512xf32>
      %c0_11 = arith.constant 0 : index
      %c0_12 = arith.constant 0 : index
      %13 = vector.load %arg4[%c0_11, %c0_12] : memref<1x512xf32, #tpu.memory_space<vmem>>, vector<1x512xf32>
      %14 = vector.broadcast %13 : vector<1x512xf32> to vector<64x512xf32>
      %15 = arith.addf %12, %14 : vector<64x512xf32>
      %c0_13 = arith.constant 0 : index
      %c0_14 = arith.constant 0 : index
      %16 = vector.load %arg7[%c0_13, %c0_14] : memref<512x64xf32, #tpu.memory_space<vmem>>, vector<512x64xf32>
      %cst_15 = arith.constant dense<0.000000e+00> : vector<64x64xf32>
      %17 = tpu.matmul %15, %16, %cst_15 {dimension_numbers = #tpu.dot_dimension_numbers<[1], [0], [0], [1], [0, 0, 1, 1], [], []>} : vector<64x512xf32>, vector<512x64xf32>, vector<64x64xf32> -> vector<64x64xf32>
      %cst_16 = arith.constant dense<0.000000e+00> : vector<64xf32>
      %18 = vector.multi_reduction <add>, %17, %cst_16 [0] : vector<64x64xf32> to vector<64xf32>
      %19 = vector.shape_cast %18 : vector<64xf32> to vector<1x64xf32>
      %cst_17 = arith.constant 0.001953125 : f32
      %20 = vector.broadcast %cst_17 : f32 to vector<1x64xf32>
      %21 = arith.mulf %19, %20 : vector<1x64xf32>
      %22 = tpu.concatenate %21, %21, %21, %21, %21, %21, %21, %21 in 1 : vector<1x64xf32>, vector<1x64xf32>, vector<1x64xf32>, vector<1x64xf32>, vector<1x64xf32>, vector<1x64xf32>, vector<1x64xf32>, vector<1x64xf32> -> vector<1x512xf32>
      %23 = vector.broadcast %22 : vector<1x512xf32> to vector<64x512xf32>
      %24 = arith.subf %15, %23 : vector<64x512xf32>
      %25 = arith.mulf %24, %24 : vector<64x512xf32>
      %c0_18 = arith.constant 0 : index
      %c0_19 = arith.constant 0 : index
      %26 = vector.load %arg7[%c0_18, %c0_19] : memref<512x64xf32, #tpu.memory_space<vmem>>, vector<512x64xf32>
      %cst_20 = arith.constant dense<0.000000e+00> : vector<64x64xf32>
      %27 = tpu.matmul %25, %26, %cst_20 {dimension_numbers = #tpu.dot_dimension_numbers<[1], [0], [0], [1], [0, 0, 1, 1], [], []>} : vector<64x512xf32>, vector<512x64xf32>, vector<64x64xf32> -> vector<64x64xf32>
      %cst_21 = arith.constant dense<0.000000e+00> : vector<64xf32>
      %28 = vector.multi_reduction <add>, %27, %cst_21 [0] : vector<64x64xf32> to vector<64xf32>
      %29 = vector.shape_cast %28 : vector<64xf32> to vector<1x64xf32>
      %cst_22 = arith.constant 0.001953125 : f32
      %30 = vector.broadcast %cst_22 : f32 to vector<1x64xf32>
      %31 = arith.mulf %29, %30 : vector<1x64xf32>
      %32 = tpu.concatenate %31, %31, %31, %31, %31, %31, %31, %31 in 1 : vector<1x64xf32>, vector<1x64xf32>, vector<1x64xf32>, vector<1x64xf32>, vector<1x64xf32>, vector<1x64xf32>, vector<1x64xf32>, vector<1x64xf32> -> vector<1x512xf32>
      %cst_23 = arith.constant 9.99999974E-6 : f32
      %33 = vector.broadcast %cst_23 : f32 to vector<1x512xf32>
      %34 = arith.addf %32, %33 : vector<1x512xf32>
      %35 = math.rsqrt %34 : vector<1x512xf32>
      %36 = vector.broadcast %35 : vector<1x512xf32> to vector<64x512xf32>
      %37 = arith.mulf %24, %36 : vector<64x512xf32>
      %c0_24 = arith.constant 0 : index
      %c0_25 = arith.constant 0 : index
      %38 = vector.load %arg5[%c0_24, %c0_25] : memref<1x512xf32, #tpu.memory_space<vmem>>, vector<1x512xf32>
      %39 = vector.broadcast %38 : vector<1x512xf32> to vector<64x512xf32>
      %40 = arith.mulf %37, %39 : vector<64x512xf32>
      %c0_26 = arith.constant 0 : index
      %c0_27 = arith.constant 0 : index
      %41 = vector.load %arg6[%c0_26, %c0_27] : memref<1x512xf32, #tpu.memory_space<vmem>>, vector<1x512xf32>
      %42 = vector.broadcast %41 : vector<1x512xf32> to vector<64x512xf32>
      %43 = arith.addf %40, %42 : vector<64x512xf32>
      %cst_28 = arith.constant 0.000000e+00 : f32
      %44 = vector.broadcast %cst_28 : f32 to vector<64x512xf32>
      %45 = arith.maximumf %43, %44 : vector<64x512xf32>
      %c0_29 = arith.constant 0 : index
      %c0_30 = arith.constant 0 : index
      %46 = vector.load %arg8[%c0_29, %c0_30] : memref<64x512xf32, #tpu.memory_space<vmem>>, vector<64x512xf32>
      tpu.vector_store %arg8[%c0_29, %c0_30], %45 {strides = array<i32>} : memref<64x512xf32, #tpu.memory_space<vmem>>, vector<64x512xf32>,
    } else {
    }
    return
  }
  func.func @transform_0(%arg0: i32, %arg1: i32) -> (i32, i32) {
    %c0_i32 = arith.constant 0 : i32
    %c0_i32_0 = arith.constant 0 : i32
    return %c0_i32, %arg1 : i32, i32
  }
  func.func @transform_1(%arg0: i32, %arg1: i32) -> (i32, i32) {
    %c0_i32 = arith.constant 0 : i32
    return %arg1, %arg0 : i32, i32
  }
  func.func @transform_2(%arg0: i32, %arg1: i32) -> (i32, i32) {
    %c0_i32 = arith.constant 0 : i32
    %c0_i32_0 = arith.constant 0 : i32
    return %c0_i32, %arg0 : i32, i32
  }
  func.func @transform_3(%arg0: i32, %arg1: i32) -> (i32, i32) {
    %c0_i32 = arith.constant 0 : i32
    %c0_i32_0 = arith.constant 0 : i32
    return %c0_i32, %arg0 : i32, i32
  }
  func.func @transform_4(%arg0: i32, %arg1: i32) -> (i32, i32) {
    %c0_i32 = arith.constant 0 : i32
    %c0_i32_0 = arith.constant 0 : i32
    return %c0_i32, %arg0 : i32, i32
  }
  func.func @transform_5(%arg0: i32, %arg1: i32) -> (i32, i32) {
    %c0_i32 = arith.constant 0 : i32
    %c0_i32_0 = arith.constant 0 : i32
    %c0_i32_1 = arith.constant 0 : i32
    return %c0_i32, %c0_i32_0 : i32, i32
  }
  func.func @transform_6(%arg0: i32, %arg1: i32) -> (i32, i32) {
    %c0_i32 = arith.constant 0 : i32
    %c0_i32_0 = arith.constant 0 : i32
    return %c0_i32, %arg0 : i32, i32
  }
}

module attributes {stable_mosaic.version = 11 : i64} {
  func.func @_fused_kernel(%arg0: i32, %arg1: i32, %arg2: memref<16x1280xbf16, #tpu.memory_space<vmem>>, %arg3: memref<1280x128xbf16, #tpu.memory_space<vmem>>, %arg4: memref<16x1xf32, #tpu.memory_space<vmem>>, %arg5: memref<16x128xf32, #tpu.memory_space<vmem>>) attributes {dimension_semantics = [#tpu.dimension_semantics<parallel>, #tpu.dimension_semantics<arbitrary>], iteration_bounds = array<i64: 1, 4>, scalar_prefetch = 0 : i64, scratch_operands = 0 : i64, tpu.core_type = #tpu.core_type<tc>, window_params = [{transform_indices = @transform_0, window_bounds = array<i64: 16, 1280>}, {transform_indices = @transform_1, window_bounds = array<i64: 1280, 128>}, {pipeline_mode = #tpu.pipeline_mode<synchronous>, transform_indices = @transform_2, window_bounds = array<i64: 16, 1>}, {transform_indices = @transform_3, window_bounds = array<i64: 16, 128>}]} {
    %c0_i32 = arith.constant 0 : i32
    %0 = arith.cmpi eq, %arg1, %c0_i32 : i32
    %1 = arith.extui %0 : i1 to i32
    %c0_i32_0 = arith.constant 0 : i32
    %2 = arith.cmpi ne, %1, %c0_i32_0 : i32
    scf.if %2 {
      %cst_9 = arith.constant 0.000000e+00 : f32
      %12 = vector.broadcast %cst_9 : f32 to vector<16x128xf32>
      %c0_10 = arith.constant 0 : index
      %c0_11 = arith.constant 0 : index
      %13 = vector.load %arg5[%c0_10, %c0_11] : memref<16x128xf32, #tpu.memory_space<vmem>>, vector<16x128xf32>
      tpu.vector_store %arg5[%c0_10, %c0_11], %12 {strides = array<i32>} : memref<16x128xf32, #tpu.memory_space<vmem>>, vector<16x128xf32>,
    } else {
    }
    %c0 = arith.constant 0 : index
    %c0_1 = arith.constant 0 : index
    %3 = vector.load %arg5[%c0, %c0_1] : memref<16x128xf32, #tpu.memory_space<vmem>>, vector<16x128xf32>
    %c0_2 = arith.constant 0 : index
    %c0_3 = arith.constant 0 : index
    %4 = vector.load %arg2[%c0_2, %c0_3] : memref<16x1280xbf16, #tpu.memory_space<vmem>>, vector<16x1280xbf16>
    %c0_4 = arith.constant 0 : index
    %c0_5 = arith.constant 0 : index
    %5 = vector.load %arg3[%c0_4, %c0_5] : memref<1280x128xbf16, #tpu.memory_space<vmem>>, vector<1280x128xbf16>
    %cst = arith.constant dense<0.000000e+00> : vector<16x128xf32>
    %6 = tpu.matmul %4, %5, %cst {dimension_numbers = #tpu.dot_dimension_numbers<[1], [0], [0], [1], [0, 0, 1, 1], [], []>} : vector<16x1280xbf16>, vector<1280x128xbf16>, vector<16x128xf32> -> vector<16x128xf32>
    %7 = arith.addf %3, %6 : vector<16x128xf32>
    %c0_6 = arith.constant 0 : index
    %c0_7 = arith.constant 0 : index
    %8 = vector.load %arg5[%c0_6, %c0_7] : memref<16x128xf32, #tpu.memory_space<vmem>>, vector<16x128xf32>
    tpu.vector_store %arg5[%c0_6, %c0_7], %7 {strides = array<i32>} : memref<16x128xf32, #tpu.memory_space<vmem>>, vector<16x128xf32>,
    %c3_i32 = arith.constant 3 : i32
    %9 = arith.cmpi eq, %arg1, %c3_i32 : i32
    %10 = arith.extui %9 : i1 to i32
    %c0_i32_8 = arith.constant 0 : i32
    %11 = arith.cmpi ne, %10, %c0_i32_8 : i32
    scf.if %11 {
      %c0_9 = arith.constant 0 : index
      %c0_10 = arith.constant 0 : index
      %12 = vector.load %arg5[%c0_9, %c0_10] : memref<16x128xf32, #tpu.memory_space<vmem>>, vector<16x128xf32>
      %c0_11 = arith.constant 0 : index
      %c0_12 = arith.constant 0 : index
      %13 = vector.load %arg4[%c0_11, %c0_12] : memref<16x1xf32, #tpu.memory_space<vmem>>, vector<16x1xf32>
      %14 = vector.broadcast %13 : vector<16x1xf32> to vector<16x128xf32>
      %15 = arith.addf %12, %14 : vector<16x128xf32>
      %16 = math.tanh %15 : vector<16x128xf32>
      %c0_13 = arith.constant 0 : index
      %c0_14 = arith.constant 0 : index
      %17 = vector.load %arg5[%c0_13, %c0_14] : memref<16x128xf32, #tpu.memory_space<vmem>>, vector<16x128xf32>
      tpu.vector_store %arg5[%c0_13, %c0_14], %16 {strides = array<i32>} : memref<16x128xf32, #tpu.memory_space<vmem>>, vector<16x128xf32>,
    } else {
    }
    return
  }
  func.func @transform_0(%arg0: i32, %arg1: i32) -> (i32, i32) {
    %c0_i32 = arith.constant 0 : i32
    %c0_i32_0 = arith.constant 0 : i32
    return %c0_i32, %arg1 : i32, i32
  }
  func.func @transform_1(%arg0: i32, %arg1: i32) -> (i32, i32) {
    %c0_i32 = arith.constant 0 : i32
    return %arg1, %arg0 : i32, i32
  }
  func.func @transform_2(%arg0: i32, %arg1: i32) -> (i32, i32) {
    %c0_i32 = arith.constant 0 : i32
    %c0_i32_0 = arith.constant 0 : i32
    %c0_i32_1 = arith.constant 0 : i32
    return %c0_i32, %c0_i32_0 : i32, i32
  }
  func.func @transform_3(%arg0: i32, %arg1: i32) -> (i32, i32) {
    %c0_i32 = arith.constant 0 : i32
    %c0_i32_0 = arith.constant 0 : i32
    return %c0_i32, %arg0 : i32, i32
  }
}

</mosaic_0001>

<bundles_post_ra>
// kernel: generator_forward.4
= control target key start
LH: loop header
LB: loop body
LE: loop exit
PB: predicated region body
PF: predicated region fallthrough
CT: control target
= control target key end

     0   :  { %10 = vsyncpa [#allocation3], 0  ;;  %s1109_s0 = inlined_call_operand.vmem [shape: bf16[8,32], index: 0, kind: input, shape index: {}]   ;;  %s1110_s1 = inlined_call_operand.hbm [shape: bf16[32,1024], index: 1, kind: input, shape index: {}]   ;;  %s1111_s2 = inlined_call_operand.hbm [shape: f32[1,1024], index: 2, kind: input, shape index: {}]   ;;  %s1112_s3 = inlined_call_operand.hbm [shape: f32[1,1024], index: 3, kind: input, shape index: {}]   ;;  %s1113_s4 = inlined_call_operand.hbm [shape: f32[1,1024], index: 4, kind: input, shape index: {}]   ;;  %s1114_s5 = inlined_call_operand.vmem [shape: f32[8,1024], index: 5, kind: output, shape index: {}]  }
   0x1   :  { %11 = vsyncpa [#allocation5], 0 }
   0x2   :  { %12 = vsyncpa [#allocation8], 0  ;;  %s846_s18 = smov [#allocation4]   ;;  %s847_s20 = smov [#allocation2]  }
   0x3   :  { %s33_s19 = sshll.u32 %s846_s18, 4  ;;  %s20_s21 = sshll.u32 %s847_s20, 4  ;;  %s34_s19 = int_to_ptr.vmem [resolvable:$true] %s33_s19  ;;  %s883_s21 = int_to_ptr.vmem [resolvable:$true] %s20_s21 }
   0x4   :  { %s752_s24 = scalar_lea.hbm %s1111_s2, 128 }
   0x5   :  { %p753_p0 = scmp.ne.s32.totalorder %s1111_s2, %s752_s24  ;;  %p756_p1 = scmp.lt.u32.totalorder %s752_s24, %s1111_s2 }
   0x7   :  { %p758_p2 = pnand %p756_p1, %p753_p0 }
   0x9   :  { %761 = shalt.err (!%p758_p2)
}
   0xa   :  { %s762_s29 = scalar_lea.vmem %s34_s19, 128  ;;  %p767_p4 = scmp.lt.s32.totalorder %s34_s19, %s34_s19 }
   0xb   :  { %p763_p3 = scmp.ne.s32.totalorder %s34_s19, %s762_s29  ;;  %p768_p5 = scmp.lt.s32.totalorder %s762_s29, %s762_s29 }
   0xd   :  { %p769_p6 = por %p768_p5, %p767_p4 }
   0xf   :  { %p770_p7 = pnand %p769_p6, %p763_p3 }
  0x11   :  { %773 = shalt.err (!%p770_p7)
}
  0x12   :  { %36 = dma.hbm_to_vmem [thread:$0]  %s1111_s2, 128, %s34_s19, [#allocation5]  }
  0x13   :  { %s774_s9 = scalar_lea.hbm %s1110_s1, 2048 }
  0x14   :  { %p775_p8 = scmp.ne.s32.totalorder %s1110_s1, %s774_s9  ;;  %p778_p9 = scmp.lt.u32.totalorder %s774_s9, %s1110_s1 }
  0x16   :  { %p780_p10 = pnand %p778_p9, %p775_p8 }
  0x18   :  { %783 = shalt.err (!%p780_p10)
}
  0x19   :  { %s784_s14 = scalar_lea.vmem %s883_s21, 2048  ;;  %p789_p12 = scmp.lt.s32.totalorder %s883_s21, %s883_s21 }
  0x1a   :  { %p785_p11 = scmp.ne.s32.totalorder %s883_s21, %s784_s14  ;;  %p790_p13 = scmp.lt.s32.totalorder %s784_s14, %s784_s14 }
  0x1c   :  { %p791_p0 = por %p790_p13, %p789_p12 }
  0x1e   :  { %p792_p1 = pnand %p791_p0, %p785_p11 }
  0x20   :  { %795 = shalt.err (!%p792_p1)
}
  0x21   :  { %s848_s2 = smov 512   ;;  %s849_s15 = smov 32  }
  0x22   :  { %26 = dma.hbm_to_vmem [thread:$0]  %s1110_s1, 2048, %s883_s21, [#allocation3], %s848_s2, %s848_s2, %s849_s15  }
  0x23   :  { %s850_s18 = smov [#allocation6]   ;;  %s851_s20 = smov [#allocation7]  }
  0x24   :  { %s43_s19 = sshll.u32 %s850_s18, 4  ;;  %s53_s22 = sshll.u32 %s851_s20, 4  ;;  %s44_s19 = int_to_ptr.vmem [resolvable:$true] %s43_s19  ;;  %s54_s22 = int_to_ptr.vmem [resolvable:$true] %s53_s22 }
  0x25   :  { %s796_s25 = scalar_lea.hbm %s1112_s3, 128 }
  0x26   :  { %p797_p2 = scmp.ne.s32.totalorder %s1112_s3, %s796_s25  ;;  %p800_p3 = scmp.lt.u32.totalorder %s796_s25, %s1112_s3 }
  0x28   :  { %p802_p4 = pnand %p800_p3, %p797_p2 }
  0x2a   :  { %805 = shalt.err (!%p802_p4)
}
  0x2b   :  { %s806_s1 = scalar_lea.vmem %s44_s19, 128  ;;  %p811_p6 = scmp.lt.s32.totalorder %s44_s19, %s44_s19 }
  0x2c   :  { %p807_p5 = scmp.ne.s32.totalorder %s44_s19, %s806_s1  ;;  %p812_p7 = scmp.lt.s32.totalorder %s806_s1, %s806_s1 }
  0x2e   :  { %p813_p8 = por %p812_p7, %p811_p6 }
  0x30   :  { %p814_p9 = pnand %p813_p8, %p807_p5 }
  0x32   :  { %817 = shalt.err (!%p814_p9)
}
  0x33   :  { %46 = dma.hbm_to_vmem [thread:$0]  %s1112_s3, 128, %s44_s19, [#allocation5]  }
  0x34   :  { %s818_s8 = scalar_lea.hbm %s1113_s4, 128 }
  0x35   :  { %p819_p10 = scmp.ne.s32.totalorder %s1113_s4, %s818_s8  ;;  %p822_p11 = scmp.lt.u32.totalorder %s818_s8, %s1113_s4 }
  0x37   :  { %p824_p12 = pnand %p822_p11, %p819_p10 }
  0x39   :  { %827 = shalt.err (!%p824_p12)
}
  0x3a   :  { %s828_s13 = scalar_lea.vmem %s54_s22, 128  ;;  %p833_p0 = scmp.lt.s32.totalorder %s54_s22, %s54_s22 }
  0x3b   :  { %p829_p13 = scmp.ne.s32.totalorder %s54_s22, %s828_s13  ;;  %p834_p1 = scmp.lt.s32.totalorder %s828_s13, %s828_s13 }
  0x3d   :  { %p835_p2 = por %p834_p1, %p833_p0 }
  0x3f   :  { %p836_p3 = pnand %p835_p2, %p829_p13 }
  0x41   :  { %839 = shalt.err (!%p836_p3)
}
  0x42   :  { %56 = dma.hbm_to_vmem [thread:$0]  %s1113_s4, 128, %s54_s22, [#allocation8]  }
  0x43   :  { %840 = dma.done.wait [#allocation3], 2048  }
  0x44   :  { %841 = vsyncadd [#allocation3], 4294965248 }
  0x45   :  { %842 = dma.done.wait [#allocation5], 256  }
  0x46   :  { %843 = vsyncadd [#allocation5], 4294967040 }
  0x47   :  { %844 = dma.done.wait [#allocation8], 128  }
  0x48   :  { %845 = vsyncadd [#allocation8], 4294967168  ;;  %v852_v0 = vmov 0   ;;  %v91_v1 = vld [vmem:[#allocation2] sm:$0xff]  ;;  %v92_v3 = vld [vmem:[#allocation2 + $0x8] sm:$0xff]  ;;  %vm187_vm0 = vcmask 261120   ;;  %v384_v34 = vlaneseq }
  0x49   :  { %223 = vmatprep.mubr.bf16.mxu0 %v852_v0  ;;  %264 = vmatprep.mubr.bf16.mxu1 %v852_v0  ;;  %v95_v2 = vld [vmem:[#allocation2 + $0x20] sm:$0xff]  ;;  %v96_v5 = vld [vmem:[#allocation2 + $0x28] sm:$0xff]  ;;  %v93_v15 = vld [vmem:[#allocation2 + $0x10] sm:$0xff] }
  0x4a   :  { %v709_v4 = vcombine.high %v91_v1, %v95_v2  ;;  %v708_v6 = vcombine.low %v91_v1, %v95_v2  ;;  %v99_v7 = vld [vmem:[#allocation2 + $0x40] sm:$0xff]  ;;  %v711_v9 = vcombine.high %v92_v3, %v96_v5  ;;  %v710_v10 = vcombine.low %v92_v3, %v96_v5  ;;  %v100_v12 = vld [vmem:[#allocation2 + $0x48] sm:$0xff]  ;;  %v97_v16 = vld [vmem:[#allocation2 + $0x30] sm:$0xff] }
  0x4b   :  { %v103_v8 = vld [vmem:[#allocation2 + $0x60] sm:$0xff]  ;;  %v104_v13 = vld [vmem:[#allocation2 + $0x68] sm:$0xff]  ;;  %v94_v17 = vld [vmem:[#allocation2 + $0x18] sm:$0xff]  ;;  %v713_v21 = vcombine.high %v93_v15, %v97_v16  ;;  %v712_v28 = vcombine.low %v93_v15, %v97_v16  ;;  %v385_v35 = vshrl.u32 %v384_v34, 7 }
  0x4c   :  { %v717_v11 = vcombine.high %v99_v7, %v103_v8  ;;  %191 = vmatprep.subr.bf16.mxu0 %v709_v4  ;;  %v719_v14 = vcombine.high %v100_v12, %v104_v13  ;;  %232 = vmatprep.subr.bf16.mxu1 %v711_v9  ;;  %v716_v18 = vcombine.low %v99_v7, %v103_v8  ;;  %v98_v19 = vld [vmem:[#allocation2 + $0x38] sm:$0xff]  ;;  %v101_v23 = vld [vmem:[#allocation2 + $0x50] sm:$0xff]  ;;  %v90_v27 = vld [vmem:[%s1109_s0] sm:$0xf] }
  0x4d   :  { %192 = vmatpush1.bf16.msra.mxu0 %v708_v6  ;;  %233 = vmatpush1.bf16.msra.mxu1 %v710_v10  ;;  %v718_v20 = vcombine.low %v100_v12, %v104_v13  ;;  %v715_v22 = vcombine.high %v94_v17, %v98_v19  ;;  %v105_v24 = vld [vmem:[#allocation2 + $0x70] sm:$0xff]  ;;  %v102_v25 = vld [vmem:[#allocation2 + $0x58] sm:$0xff]  ;;  %v714_v29 = vcombine.low %v94_v17, %v98_v19  ;;  %v945_v36 = vsub.s32 0, %v385_v35  ;;  %v382_v37 = vld [vmem:[#allocation4] sm:$0xff] }
  0x4e   :  { %193 = vmatprep.subr.bf16.mxu0 %v717_v11  ;;  %234 = vmatprep.subr.bf16.mxu1 %v719_v14  ;;  %v106_v26 = vld [vmem:[#allocation2 + $0x78] sm:$0xff]  ;;  %v721_v30 = vcombine.high %v101_v23, %v105_v24  ;;  %v720_v32 = vcombine.low %v101_v23, %v105_v24  ;;  %v947_v38 = vsub.s32 2, %v385_v35  ;;  %v949_v39 = vsub.s32 1, %v385_v35 }
  0x4f   :  { %v723_v31 = vcombine.high %v102_v25, %v106_v26  ;;  %v722_v33 = vcombine.low %v102_v25, %v106_v26  ;;  %v951_v40 = vsub.s32 3, %v385_v35  ;;  %v387_v41 = vrot.slane %v382_v37, %v945_v36 }
  0x50   :  { %v395_v43 = vrot.slane %v382_v37, %v947_v38  ;;  %v391_v44 = vrot.slane %v382_v37, %v949_v39  ;;  %v959_v53 = vsub.s32 4, %v385_v35  ;;  %v965_v57 = vsub.s32 6, %v385_v35 }
  0x51   :  { %194 = vmatpush1.bf16.msra.mxu0 %v716_v18  ;;  %235 = vmatpush1.bf16.msra.mxu1 %v718_v20  ;;  %v399_v47 = vrot.slane %v382_v37, %v951_v40  ;;  %v967_v58 = vsub.s32 5, %v385_v35  ;;  %v972_v61 = vsub.s32 7, %v385_v35 }
  0x52   :  { %273 = vmatprep.subr.bf16.mxu0 %v713_v21  ;;  %314 = vmatprep.subr.bf16.mxu1 %v715_v22  ;;  %v403_v2 = vrot.slane %v382_v37, %v959_v53  ;;  %v411_v6 = vrot.slane %v382_v37, %v965_v57 }
  0x53   :  { %v407_v7 = vrot.slane %v382_v37, %v967_v58  ;;  %v415_v12 = vrot.slane %v382_v37, %v972_v61 }
  0x54   :  { %724 = vmatmul.mubr.msk.bf16.vlgmr.msra.gmra.mrb[0].mxu0 %vm187_vm0, %v90_v27  ;;  %725 = vmatmul.mubr.msk.bf16.vlgmr.msra.gmra.mrb[0].mxu1 %vm187_vm0, %v90_v27 }
  0x55   :  { %274 = vmatpush1.bf16.msra.mxu0 %v712_v28  ;;  %315 = vmatpush1.bf16.msra.mxu1 %v714_v29 }
  0x56   :  { %275 = vmatprep.subr.bf16.mxu0 %v721_v30  ;;  %316 = vmatprep.subr.bf16.mxu1 %v723_v31 }
  0x57   :  { %305 = vmatprep.mubr.bf16.mxu0 %v852_v0  ;;  %346 = vmatprep.mubr.bf16.mxu1 %v852_v0 }
  0x59   :  { %276 = vmatpush1.bf16.msra.mxu0 %v720_v32  ;;  %317 = vmatpush1.bf16.msra.mxu1 %v722_v33 }
  0x5c   :  { %726 = vmatmul.mubr.msk.bf16.vlgmr.msra.gmra.mrb[4].mxu0 %vm187_vm0, %v90_v27  ;;  %727 = vmatmul.mubr.msk.bf16.vlgmr.msra.gmra.mrb[4].mxu1 %vm187_vm0, %v90_v27 }
 0x127   :  { %v225_v42 = vpop.f32.mrb[0].mxu0  ;;  %v266_v45 = vpop.f32.mrb[0].mxu1 }
 0x128   :  { %v227_v46 = vpop.f32.mrb[1].mxu0  ;;  %v268_v48 = vpop.f32.mrb[1].mxu1  ;;  %v957_v50 = vadd.f32 %v387_v41, %v225_v42  ;;  %v961_v54 = vadd.f32 %v395_v43, %v266_v45 }
 0x129   :  { %v229_v49 = vpop.f32.mrb[2].mxu0  ;;  %v270_v51 = vpop.f32.mrb[2].mxu1  ;;  %v963_v55 = vadd.f32 %v391_v44, %v227_v46  ;;  %v970_v60 = vadd.f32 %v399_v47, %v268_v48 }
 0x12a   :  { %v230_v52 = vpop.f32.mrb[3].mxu0  ;;  %v271_v56 = vpop.f32.mrb[3].mxu1  ;;  %v432_v59 = vrot.slane %v957_v50, 4  ;;  %v444_v62 = vrot.slane %v961_v54, 4 }
 0x12b   :  { %v438_v63 = vrot.slane %v963_v55, 4  ;;  %v450_v1 = vrot.slane %v970_v60, 4 }
 0x12c   :  { %v433_v0 = vadd.f32 %v432_v59, %v957_v50  ;;  %v445_v3 = vadd.f32 %v444_v62, %v961_v54 }
 0x12d   :  { %v439_v4 = vadd.f32 %v438_v63, %v963_v55  ;;  %v451_v9 = vadd.f32 %v450_v1, %v970_v60 }
 0x12e   :  { %v434_v8 = vrot.slane %v433_v0, 2  ;;  %v446_v13 = vrot.slane %v445_v3, 2 }
 0x12f   :  { %v307_v5 = vpop.f32.mrb[4].mxu0  ;;  %v348_v10 = vpop.f32.mrb[4].mxu1  ;;  %v440_v14 = vrot.slane %v439_v4, 2  ;;  %v452_v18 = vrot.slane %v451_v9, 2 }
 0x130   :  { %v309_v11 = vpop.f32.mrb[5].mxu0  ;;  %v350_v15 = vpop.f32.mrb[5].mxu1  ;;  %v435_v17 = vadd.f32 %v434_v8, %v433_v0  ;;  %v985_v19 = vadd.f32 %v403_v2, %v307_v5  ;;  %v447_v22 = vadd.f32 %v446_v13, %v445_v3  ;;  %v987_v24 = vadd.f32 %v411_v6, %v348_v10 }
 0x131   :  { %v311_v16 = vpop.f32.mrb[6].mxu0  ;;  %v352_v20 = vpop.f32.mrb[6].mxu1  ;;  %v441_v23 = vadd.f32 %v440_v14, %v439_v4  ;;  %v989_v25 = vadd.f32 %v407_v7, %v309_v11  ;;  %v453_v28 = vadd.f32 %v452_v18, %v451_v9  ;;  %v992_v30 = vadd.f32 %v415_v12, %v350_v15 }
 0x132   :  { %v312_v21 = vpop.f32.mrb[7].mxu0  ;;  %v353_v26 = vpop.f32.mrb[7].mxu1  ;;  %v436_v27 = vrot.slane %v435_v17, 1  ;;  %v456_v29 = vrot.slane %v985_v19, 4  ;;  %v448_v31 = vrot.slane %v447_v22, 1  ;;  %v468_v33 = vrot.slane %v987_v24, 4 }
 0x133   :  { %v442_v32 = vrot.slane %v441_v23, 1  ;;  %v462_v34 = vrot.slane %v989_v25, 4  ;;  %v454_v37 = vrot.slane %v453_v28, 1  ;;  %v474_v42 = vrot.slane %v992_v30, 4 }
 0x134   :  { %v437_v35 = vadd.f32 %v436_v27, %v435_v17  ;;  %v457_v41 = vadd.f32 %v456_v29, %v985_v19  ;;  %v449_v43 = vadd.f32 %v448_v31, %v447_v22  ;;  %v469_v45 = vadd.f32 %v468_v33, %v987_v24 }
 0x135   :  { %v443_v44 = vadd.f32 %v442_v32, %v441_v23  ;;  %v463_v46 = vadd.f32 %v462_v34, %v989_v25  ;;  %v455_v48 = vadd.f32 %v454_v37, %v453_v28  ;;  %v475_v51 = vadd.f32 %v474_v42, %v992_v30 }
 0x136   :  { %v481_v47 = vmul.f32 0.125, %v437_v35  ;;  %v458_v49 = vrot.slane %v457_v41, 2  ;;  %v483_v52 = vmul.f32 0.125, %v449_v43  ;;  %v470_v59 = vrot.slane %v469_v45, 2 }
 0x137   :  { %v482_v56 = vmul.f32 0.125, %v443_v44  ;;  %v464_v62 = vrot.slane %v463_v46, 2  ;;  %v484_v0 = vmul.f32 0.125, %v455_v48  ;;  %v476_v2 = vrot.slane %v475_v51, 2 }
 0x138   :  { %v1002_v63 = vsub.f32 %v957_v50, %v481_v47  ;;  %v459_v1 = vadd.f32 %v458_v49, %v457_v41  ;;  %v1005_v3 = vsub.f32 %v961_v54, %v483_v52  ;;  %v471_v5 = vadd.f32 %v470_v59, %v469_v45 }
 0x139   :  { %v1008_v4 = vsub.f32 %v963_v55, %v482_v56  ;;  %v465_v6 = vadd.f32 %v464_v62, %v463_v46  ;;  %v1013_v8 = vsub.f32 %v970_v60, %v484_v0  ;;  %v477_v50 = vadd.f32 %v476_v2, %v475_v51 }
 0x13a   :  { %v497_v7 = vmul.f32 %v1002_v63, %v1002_v63  ;;  %v460_v9 = vrot.slane %v459_v1, 1  ;;  %v499_v10 = vmul.f32 %v1005_v3, %v1005_v3  ;;  %v472_v11 = vrot.slane %v471_v5, 1 }
 0x13b   :  { %v498_v54 = vmul.f32 %v1008_v4, %v1008_v4  ;;  %v466_v12 = vrot.slane %v465_v6, 1  ;;  %v500_v13 = vmul.f32 %v1013_v8, %v1013_v8  ;;  %v478_v15 = vrot.slane %v477_v50, 1 }
 0x13c   :  { %v505_v55 = vrot.slane %v497_v7, 4  ;;  %v461_v14 = vadd.f32 %v460_v9, %v459_v1  ;;  %v517_v16 = vrot.slane %v499_v10, 4  ;;  %v473_v60 = vadd.f32 %v472_v11, %v471_v5 }
 0x13d   :  { %v511_v17 = vrot.slane %v498_v54, 4  ;;  %v467_v18 = vadd.f32 %v466_v12, %v465_v6  ;;  %v523_v21 = vrot.slane %v500_v13, 4  ;;  %v479_v23 = vadd.f32 %v478_v15, %v477_v50 }
 0x13e   :  { %v506_v20 = vadd.f32 %v505_v55, %v497_v7  ;;  %v485_v22 = vmul.f32 0.125, %v461_v14  ;;  %v518_v26 = vadd.f32 %v517_v16, %v499_v10  ;;  %v487_v28 = vmul.f32 0.125, %v473_v60 }
 0x13f   :  { %v512_v27 = vadd.f32 %v511_v17, %v498_v54  ;;  %v486_v29 = vmul.f32 0.125, %v467_v18  ;;  %v524_v32 = vadd.f32 %v523_v21, %v500_v13  ;;  %v488_v34 = vmul.f32 0.125, %v479_v23 }
 0x140   :  { %v507_v31 = vrot.slane %v506_v20, 2  ;;  %v1022_v33 = vsub.f32 %v985_v19, %v485_v22  ;;  %v519_v35 = vrot.slane %v518_v26, 2  ;;  %v1025_v41 = vsub.f32 %v987_v24, %v487_v28 }
 0x141   :  { %v513_v37 = vrot.slane %v512_v27, 2  ;;  %v1028_v42 = vsub.f32 %v989_v25, %v486_v29  ;;  %v525_v44 = vrot.slane %v524_v32, 2  ;;  %v1033_v46 = vsub.f32 %v992_v30, %v488_v34 }
 0x142   :  { %v508_v43 = vadd.f32 %v507_v31, %v506_v20  ;;  %v501_v45 = vmul.f32 %v1022_v33, %v1022_v33  ;;  %v520_v47 = vadd.f32 %v519_v35, %v518_v26  ;;  %v503_v48 = vmul.f32 %v1025_v41, %v1025_v41 }
 0x143   :  { %v514_v19 = vadd.f32 %v513_v37, %v512_v27  ;;  %v502_v24 = vmul.f32 %v1028_v42, %v1028_v42  ;;  %v526_v51 = vadd.f32 %v525_v44, %v524_v32  ;;  %v504_v52 = vmul.f32 %v1033_v46, %v1033_v46 }
 0x144   :  { %v509_v49 = vrot.slane %v508_v43, 1  ;;  %v529_v25 = vrot.slane %v501_v45, 4  ;;  %v521_v56 = vrot.slane %v520_v47, 1  ;;  %v541_v62 = vrot.slane %v503_v48, 4 }
 0x145   :  { %v515_v59 = vrot.slane %v514_v19, 1  ;;  %v535_v0 = vrot.slane %v502_v24, 4  ;;  %v527_v1 = vrot.slane %v526_v51, 1  ;;  %v547_v5 = vrot.slane %v504_v52, 4 }
 0x146   :  { %v510_v30 = vadd.f32 %v509_v49, %v508_v43  ;;  %v530_v2 = vadd.f32 %v529_v25, %v501_v45  ;;  %v522_v6 = vadd.f32 %v521_v56, %v520_v47  ;;  %v542_v9 = vadd.f32 %v541_v62, %v503_v48  ;;  %v1043_v25 = vld [vmem:[#allocation7] sm:$0xff] }
 0x147   :  { %v516_v7 = vadd.f32 %v515_v59, %v514_v19  ;;  %v536_v50 = vadd.f32 %v535_v0, %v502_v24  ;;  %v528_v54 = vadd.f32 %v527_v1, %v526_v51  ;;  %v548_v12 = vadd.f32 %v547_v5, %v504_v52  ;;  %v1041_v19 = vld [vmem:[#allocation6] sm:$0xff] }
 0x148   :  { %v553_v10 = vmul.f32 0.125, %v510_v30  ;;  %v531_v11 = vrot.slane %v530_v2, 2  ;;  %v555_v55 = vmul.f32 0.125, %v522_v6  ;;  %v543_v14 = vrot.slane %v542_v9, 2 }
 0x149   :  { %v554_v13 = vmul.f32 0.125, %v516_v7  ;;  %v537_v15 = vrot.slane %v536_v50, 2  ;;  %v556_v17 = vmul.f32 0.125, %v528_v54  ;;  %v549_v18 = vrot.slane %v548_v12, 2 }
 0x14a   :  { %v561_v16 = vadd.f32 1e-05, %v553_v10  ;;  %v532_v60 = vadd.f32 %v531_v11, %v530_v2  ;;  %v563_v20 = vadd.f32 1e-05, %v555_v55  ;;  %v544_v22 = vadd.f32 %v543_v14, %v542_v9 }
 0x14b   :  { %v562_v21 = vadd.f32 1e-05, %v554_v13  ;;  %v538_v23 = vadd.f32 %v537_v15, %v536_v50  ;;  %v564_v26 = vadd.f32 1e-05, %v556_v17  ;;  %v550_v28 = vadd.f32 %v549_v18, %v548_v12 }
 0x14c   :  { %736 = vrsqrt.f32 %v561_v16  ;;  %v533_v27 = vrot.slane %v532_v60, 1  ;;  %v545_v29 = vrot.slane %v544_v22, 1  ;;  %v590_v56 = vrot.slane %v1041_v19, %v945_v36 }
 0x14d   :  { %738 = vrsqrt.f32 %v563_v20  ;;  %v539_v31 = vrot.slane %v538_v23, 1  ;;  %v551_v34 = vrot.slane %v550_v28, 1  ;;  %v598_v62 = vrot.slane %v1041_v19, %v947_v38 }
 0x14e   :  { %740 = vrsqrt.f32 %v562_v21  ;;  %v534_v32 = vadd.f32 %v533_v27, %v532_v60  ;;  %v546_v35 = vadd.f32 %v545_v29, %v544_v22  ;;  %v640_v1 = vrot.slane %v1043_v25, %v945_v36 }
 0x14f   :  { %742 = vrsqrt.f32 %v564_v26  ;;  %v540_v37 = vadd.f32 %v539_v31, %v538_v23  ;;  %v552_v44 = vadd.f32 %v551_v34, %v550_v28  ;;  %v594_v2 = vrot.slane %v1041_v19, %v949_v39 }
 0x150   :  { %v557_v43 = vmul.f32 0.125, %v534_v32  ;;  %v559_v45 = vmul.f32 0.125, %v546_v35  ;;  %v648_v7 = vrot.slane %v1043_v25, %v947_v38  ;;  %v602_v9 = vrot.slane %v1041_v19, %v951_v40 }
 0x151   :  { %v558_v47 = vmul.f32 0.125, %v540_v37  ;;  %v560_v24 = vmul.f32 0.125, %v552_v44  ;;  %v644_v36 = vrot.slane %v1043_v25, %v949_v39  ;;  %v652_v12 = vrot.slane %v1043_v25, %v951_v40 }
 0x152   :  { %v565_v48 = vadd.f32 1e-05, %v557_v43  ;;  %v567_v49 = vadd.f32 1e-05, %v559_v45  ;;  %v606_v16 = vrot.slane %v1041_v19, %v959_v53  ;;  %v614_v39 = vrot.slane %v1041_v19, %v965_v57 }
 0x153   :  { %v566_v51 = vadd.f32 1e-05, %v558_v47  ;;  %v568_v52 = vadd.f32 1e-05, %v560_v24  ;;  %v656_v20 = vrot.slane %v1043_v25, %v959_v53  ;;  %v610_v21 = vrot.slane %v1041_v19, %v967_v58 }
 0x154   :  { %744 = vrsqrt.f32 %v565_v48  ;;  %v664_v27 = vrot.slane %v1043_v25, %v965_v57  ;;  %v660_v31 = vrot.slane %v1043_v25, %v967_v58  ;;  %v668_v32 = vrot.slane %v1043_v25, %v972_v61 }
 0x155   :  { %746 = vrsqrt.f32 %v567_v49 }
 0x156   :  { %v737_v59 = vpop.eup %736  ;;  %748 = vrsqrt.f32 %v566_v51 }
 0x157   :  { %v739_v0 = vpop.eup %738  ;;  %v577_v30 = vmul.f32 %v737_v59, %v1002_v63  ;;  %750 = vrsqrt.f32 %v568_v52 }
 0x158   :  { %v741_v5 = vpop.eup %740  ;;  %v579_v6 = vmul.f32 %v739_v0, %v1005_v3 }
 0x159   :  { %v743_v50 = vpop.eup %742  ;;  %v627_v10 = vmul.f32 %v590_v56, %v577_v30  ;;  %v578_v63 = vmul.f32 %v741_v5, %v1008_v4 }
 0x15a   :  { %v629_v54 = vmul.f32 %v598_v62, %v579_v6  ;;  %v580_v11 = vmul.f32 %v743_v50, %v1013_v8 }
 0x15b   :  { %v677_v3 = vadd.f32 %v640_v1, %v627_v10  ;;  %v628_v55 = vmul.f32 %v594_v2, %v578_v63 }
 0x15c   :  { %v679_v13 = vadd.f32 %v648_v7, %v629_v54  ;;  %v630_v38 = vmul.f32 %v602_v9, %v580_v11 }
 0x15d   :  { %v685_v14 = vmax.f32 %v677_v3, 0.0  ;;  %v678_v15 = vadd.f32 %v644_v36, %v628_v55 }
 0x15e   :  { %v745_v17 = vpop.eup %744  ;;  %v687_v4 = vmax.f32 %v679_v13, 0.0  ;;  %v680_v60 = vadd.f32 %v652_v12, %v630_v38 }
 0x15f   :  { %v747_v18 = vpop.eup %746  ;;  %693 = vst [vmem:[%s1114_s5] sm:$0xff] %v685_v14  ;;  %v686_v40 = vmax.f32 %v678_v15, 0.0  ;;  %v581_v8 = vmul.f32 %v745_v17, %v1022_v33  ;;  %v618_v33 = vrot.slane %v1041_v19, %v972_v61 }
 0x160   :  { %v749_v22 = vpop.eup %748  ;;  %695 = vst [vmem:[%s1114_s5 + $0x10] sm:$0xff] %v687_v4  ;;  %v688_v23 = vmax.f32 %v680_v60, 0.0  ;;  %v583_v26 = vmul.f32 %v747_v18, %v1025_v41 }
 0x161   :  { %v751_v28 = vpop.eup %750  ;;  %694 = vst [vmem:[%s1114_s5 + $0x8] sm:$0xff] %v686_v40  ;;  %v631_v53 = vmul.f32 %v606_v16, %v581_v8  ;;  %v582_v29 = vmul.f32 %v749_v22, %v1028_v42 }
 0x162   :  { %696 = vst [vmem:[%s1114_s5 + $0x18] sm:$0xff] %v688_v23  ;;  %v633_v41 = vmul.f32 %v614_v39, %v583_v26  ;;  %v584_v57 = vmul.f32 %v751_v28, %v1033_v46 }
 0x163   :  { %v681_v34 = vadd.f32 %v656_v20, %v631_v53  ;;  %v632_v35 = vmul.f32 %v610_v21, %v582_v29 }
 0x164   :  { %v683_v37 = vadd.f32 %v664_v27, %v633_v41  ;;  %v634_v43 = vmul.f32 %v618_v33, %v584_v57 }
 0x165   :  { %v689_v44 = vmax.f32 %v681_v34, 0.0  ;;  %v682_v45 = vadd.f32 %v660_v31, %v632_v35 }
 0x166   :  { %v691_v42 = vmax.f32 %v683_v37, 0.0  ;;  %v684_v47 = vadd.f32 %v668_v32, %v634_v43 }
 0x167   :  { %697 = vst [vmem:[%s1114_s5 + $0x20] sm:$0xff] %v689_v44  ;;  %v690_v58 = vmax.f32 %v682_v45, 0.0 }
 0x168   :  { %699 = vst [vmem:[%s1114_s5 + $0x30] sm:$0xff] %v691_v42  ;;  %v692_v46 = vmax.f32 %v684_v47, 0.0 }
 0x169   :  { %698 = vst [vmem:[%s1114_s5 + $0x28] sm:$0xff] %v690_v58 }
 0x16a   :  { %700 = vst [vmem:[%s1114_s5 + $0x38] sm:$0xff] %v692_v46 }
 0x16b   :  { %705 = vsyncpa [#allocation3], 1 }
 0x16c   :  { %706 = vsyncpa [#allocation5], 1 }
 0x16d   :  { %707 = vsyncpa [#allocation8], 1 }

// kernel: generator_forward.5
= control target key start
LH: loop header
LB: loop body
LE: loop exit
PB: predicated region body
PF: predicated region fallthrough
CT: control target
= control target key end

     0   :  { %s4308_s0 = inlined_call_operand.vmem [shape: bf16[8,1024], index: 0, kind: input, shape index: {}]   ;;  %s4309_s1 = inlined_call_operand.hbm [shape: bf16[1024,2048], index: 1, kind: input, shape index: {}]   ;;  %s4310_s2 = inlined_call_operand.hbm [shape: f32[1,2048], index: 2, kind: input, shape index: {}]   ;;  %s4311_s3 = inlined_call_operand.hbm [shape: f32[1,2048], index: 3, kind: input, shape index: {}]   ;;  %s4312_s4 = inlined_call_operand.hbm [shape: f32[1,2048], index: 4, kind: input, shape index: {}]   ;;  %s4313_s5 = inlined_call_operand.vmem [shape: f32[8,2048], index: 5, kind: output, shape index: {}]  }
   0x1   :  { %4325 = sst [smem:[#allocation19_spill]] %s4308_s0 }
   0x2   :  { %4326 = sst [smem:[#allocation20_spill]] %s4310_s2 }
   0x3   :  { %4327 = sst [smem:[#allocation21_spill]] %s4313_s5 }
   0x4   :  { %10 = vsyncpa [#allocation3], 0 }
   0x5   :  { %12 = vsyncpa [#allocation3 + $0x1], 0 }
   0x6   :  { %13 = vsyncpa [#allocation5], 0 }
   0x7   :  { %15 = vsyncpa [#allocation5 + $0x1], 0 }
   0x8   :  { %16 = vsyncpa [#allocation8], 0 }
   0x9   :  { %18 = vsyncpa [#allocation8 + $0x1], 0  ;;  %s3495_s18 = smov 0   ;;  %s3497_s19 = smov 0  }
   0xa   :  { %s3499_s20 = smov 0   ;;  %s3501_s21 = smov 0  }
   0xb   :  { %s3503_s22 = smov 0   ;;  %s3505_s23 = smov 0  }
   0xc   :  { %s3507_s24 = smov 0   ;;  %s3509_s25 = smov 0  }
   0xd   :  { %s3511_s26 = smov 0   ;;  %s3513_s27 = smov 0  }
   0xe   :  { %s3515_s28 = smov 0  }
   0xf LB: > { %4328 = sst [smem:[#allocation12_spill]] %s3439_s24  ;;  %s4314_s29 = sadd.s32 4294967295, %s3455_s28   ;;  %s3455_s28 = sphi %s3515_s28, %s24_s28   ;;  %s3451_s27 = sphi %s3513_s27, %s4364_s27   ;;  %s3447_s26 = sphi %s3511_s26, %s4372_s26   ;;  %s3443_s25 = sphi %s3509_s25, %s4362_s25   ;;  %s3439_s24 = sphi %s3507_s24, %s4371_s24   ;;  %s3435_s23 = sphi %s3505_s23, %s4370_s23   ;;  %s3431_s22 = sphi %s3503_s22, %s4369_s22   ;;  %s3427_s21 = sphi %s3501_s21, %s4368_s21   ;;  %s3423_s20 = sphi %s3499_s20, %s4367_s20   ;;  %s3419_s19 = sphi %s3497_s19, %s4366_s19   ;;  %s3415_s18 = sphi %s3495_s18, %s4365_s18  }
  0x10   : > { %4329 = sst [smem:[#allocation13_spill]] %s3443_s25  ;;  %s33_s30 = sadd.s32 1, %s3447_s26 }
  0x11   : > { %4330 = sst [smem:[#allocation14_spill]] %s3451_s27  ;;  %p34_p0 = scmp.ge.s32.totalorder %s33_s30, 2 }
  0x12   : > { %s36_s6 = sadd.s32 1, %s3451_s27  ;;  %s71_s7 = sadd.s32 1, %s3435_s23 }
  0x13   : > { %p78_p1 = scmp.ne.s32.totalorder %s3435_s23, %s3431_s22  ;;  %s4374_s30 = smov (%p34_p0, %s33_s30), 0 }
  0x14   : > { %4331 = sst [smem:[#allocation15_spill]] %s4374_s30  ;;  %s4376_s6 = smov (!%p34_p0, %s36_s6), %s3451_s27 }
  0x15   : > { %s66_s8 = ssub.s32 %s3447_s26, %s4374_s30  ;;  %p79_p2 = scmp.eq.s32.totalorder %s3455_s28, 0 }
  0x16   : > { %p38_p3 = scmp.ge.s32.totalorder %s4376_s6, 2  ;;  %p84_p4 = scmp.ne.s32.totalorder %s3431_s22, %s3427_s21 }
  0x17   : > { %p3563_p5 = por %p79_p2, %p78_p1  ;;  %p3569_p6 = scmp.eq.s32.totalorder %s4314_s29, 0 }
  0x18   : > { %s4378_s6 = smov (%p38_p3, %s4376_s6), 0  ;;  %s97_s12 = sadd.s32 1, %s3423_s20 }
  0x19   : > { %4334 = sst [smem:[#allocation16_spill]] %s4378_s6  ;;  %p3577_p7 = por %p3569_p6, %p84_p4 }
  0x1a   : > { %s67_s13 = ssub.s32 %s3451_s27, %s4378_s6  ;;  %p104_p8 = scmp.ne.s32.totalorder %s3423_s20, %s3419_s19 }
  0x1b   : > { %s4335_s11 = scalar_select %p3577_p7, 1, 0 }
  0x1c   : > { %s68_s14 = sor.u32 %s67_s13, %s66_s8  ;;  %p95_p9 = scmp.eq.s32.totalorder %s67_s13, 0 }
  0x1d   : > { %p69_p10 = scmp.eq.s32.totalorder %s68_s14, 0  ;;  %p3588_p11 = por %p104_p8, %p79_p2 }
  0x1e   : > { %s3593_s16 = scalar_select %p95_p9, %s3423_s20, %s97_s12  }
  0x1f   : > { %s3596_s17 = scalar_select %p69_p10, %s3435_s23, %s71_s7  }
  0x20   : > { %4337 = sst [smem:[#allocation17_spill]] %s3593_s16  ;;  %p110_p12 = scmp.ne.s32.totalorder %s3419_s19, %s3415_s18 }
  0x21   : > { %4338 = sst [smem:[#allocation18_spill]] %s3596_s17  ;;  %p3124_p13 = scmp.lt.s32.totalorder %s3455_s28, 4 }
  0x22   : > { %s245_s21 = sand.u32 1, %s3455_s28   ;;  %p3604_p0 = por %p110_p12, %p3569_p6 }
  0x23   : > { %p3610_p1 = pnand %p3124_p13, %p3563_p5  ;;  %s4316_s14 = sand.u32 1, %s3423_s20  }
  0x24   : > { %s4339_s8 = scalar_select %p3604_p0, 1, 0 }
  0x25   : > { %s4340_s13 = scalar_select %p3610_p1, 1, 0 }
  0x26   : > { %s3617_s12 = sshll.u32 %s4316_s14, 3  ;;  %s3620_s7 = sshll.u32 %s3451_s27, 7 }
  0x27   : > { %s4341_s2 = sld [smem:[#allocation20_spill]]  ;;  %s249_s9 = scalar_lea.vmem [#allocation4], %s3617_s12 }
  0x28   : > { %s257_s6 = sshll.u32 %s249_s9, 4  ;;  %p3633_p2 = pnand %p3124_p13, %p3588_p11  ;;  %s3629_s6 = int_to_ptr.vmem [resolvable:$true] %s257_s6 }
  0x29   : > { %s3639_s30 = scalar_lea.sflag [#allocation5], %s245_s21 }
  0x2a   : > { %s4342_s14 = scalar_select %p3633_p2, 1, 0 }
  0x2b   : > { %p3645_p6 = pneg %p3633_p2 }
  0x2d   : > { %s3626_s10 = scalar_lea.hbm %s4341_s2, %s3620_s7  ;;  %s3242_s17 = scalar_lea.hbm %s4341_s2, 256 }
  0x2e   : > { %s3237_s29 = scalar_lea.hbm %s3626_s10, 128  ;;  %p3243_p10 = scmp.lt.u32.totalorder %s3626_s10, %s4341_s2 }
  0x2f   : > { %p3238_p5 = scmp.ne.s32.totalorder %s3626_s10, %s3237_s29  ;;  %p3244_p11 = scmp.lt.u32.totalorder %s3242_s17, %s3237_s29 }
  0x30   : > { %p3246_p13 = scmp.lt.u32.totalorder %s3237_s29, %s3626_s10 }
  0x31   : > { %p3240_p8 = pnand %p3645_p6, %p3238_p5  ;;  %p3245_p12 = por %p3244_p11, %p3243_p10 }
  0x33   : > { %p3241_p9 = pneg %p3240_p8  ;;  %p3247_p3 = por %p3246_p13, %p3245_p12 }
  0x35   : > { %p3248_p4 = pnand %p3247_p3, %p3241_p9 }
  0x37   : > { %3251 = shalt.err (!%p3248_p4)
}
  0x38   : > { %s3252_s21 = scalar_lea.vmem %s3629_s6, 128  ;;  %s3457_s15 = smov [#allocation4]  }
  0x39   : > { %p3253_p5 = scmp.ne.s32.totalorder %s3629_s6, %s3252_s21  ;;  %s3257_s9 = sshll.u32 %s3457_s15, 4  ;;  %s3258_s9 = int_to_ptr.vmem [resolvable:$false] %s3257_s9 }
  0x3a   : > { %s3259_s5 = scalar_lea.vmem %s3258_s9, 256  ;;  %p3260_p7 = scmp.lt.s32.totalorder %s3629_s6, %s3258_s9 }
  0x3b   : > { %p3255_p8 = pnand %p3253_p5, %p3645_p6  ;;  %p3261_p1 = scmp.lt.s32.totalorder %s3259_s5, %s3252_s21 }
  0x3d   : > { %p3256_p0 = pneg %p3255_p8  ;;  %p3262_p10 = por %p3261_p1, %p3260_p7 }
  0x3f   : > { %p3263_p11 = pnand %p3262_p10, %p3256_p0 }
  0x41   : > { %3266 = shalt.err (!%p3263_p11)
}
  0x42   : > { %3117 = dma.hbm_to_vmem [thread:$0]  (!%p3633_p2), %s3626_s10, 128, %s3629_s6, %s3639_s30  }
  0x43   : > { %p4344_p3 = scmp.lt.s32.totalorder %s3455_s28, 5  ;;  %p4345_p4 = scmp.ge.s32.totalorder %s3455_s28, 1 }
  0x44   : > { %s221_s17 = sand.u32 1, %s3435_s23   ;;  %s2814_s29 = sshll.u32 %s3451_s27, 3 }
  0x45   : > { %p3673_p9 = pnand %p4345_p4, %p4344_p3  ;;  %s2812_s21 = sshll.u32 %s221_s17, 11 }
  0x46   : > { %s3099_s15 = sshll.u32 %s3447_s26, 10  ;;  %s225_s5 = scalar_lea.vmem [#allocation2], %s2812_s21 }
  0x47   : > { %s4346_s16 = scalar_select %p3673_p9, 1, 0 }
  0x48   : > { %s232_s9 = sadd.s32 %s3099_s15, %s2814_s29  ;;  %s235_s2 = sshll.u32 %s225_s5, 4  ;;  %s3680_s2 = int_to_ptr.vmem [resolvable:$true] %s235_s2 }
  0x49   : > { %s2816_s0 = sshll.u32 %s232_s9, 6  ;;  %s3687_s10 = scalar_lea.sflag [#allocation3], %s221_s17 }
  0x4a   : > { %s3685_s6 = scalar_lea.hbm %s4309_s1, %s2816_s0  ;;  %p4347_p0 = scmp.ne.s32.totalorder %s4340_s13, 0 }
  0x4b   : > { %s3267_s27 = scalar_lea.hbm %s3685_s6, 32768  ;;  %s3272_s24 = scalar_lea.hbm %s4309_s1, 131072 }
  0x4c   : > { %p3268_p7 = scmp.ne.s32.totalorder %s3685_s6, %s3267_s27  ;;  %p3269_p1 = pneg %p4347_p0 }
  0x4d   : > { %p3273_p5 = scmp.lt.u32.totalorder %s3685_s6, %s4309_s1  ;;  %p3274_p8 = scmp.lt.u32.totalorder %s3272_s24, %s3267_s27 }
  0x4e   : > { %p3270_p12 = pnand %p3269_p1, %p3268_p7  ;;  %p3276_p11 = scmp.lt.u32.totalorder %s3267_s27, %s3685_s6 }
  0x4f   : > { %p3275_p10 = por %p3274_p8, %p3273_p5 }
  0x50   : > { %p3271_p13 = pneg %p3270_p12 }
  0x51   : > { %p3277_p3 = por %p3276_p11, %p3275_p10 }
  0x53   : > { %p3278_p4 = pnand %p3277_p3, %p3271_p13 }
  0x55   : > { %3281 = shalt.err (!%p3278_p4)
}
  0x56   : > { %s3282_s17 = scalar_lea.vmem %s3680_s2, 32768  ;;  %s3458_s15 = smov [#allocation2]  }
  0x57   : > { %p3283_p7 = scmp.ne.s32.totalorder %s3680_s2, %s3282_s17  ;;  %s3287_s9 = sshll.u32 %s3458_s15, 4  ;;  %s3288_s9 = int_to_ptr.vmem [resolvable:$false] %s3287_s9 }
  0x58   : > { %s3289_s5 = scalar_lea.vmem %s3288_s9, 65536  ;;  %p3290_p2 = scmp.lt.s32.totalorder %s3680_s2, %s3288_s9 }
  0x59   : > { %p3285_p12 = pnand %p3283_p7, %p3269_p1  ;;  %p3291_p5 = scmp.lt.s32.totalorder %s3289_s5, %s3282_s17 }
  0x5b   : > { %p3286_p9 = pneg %p3285_p12  ;;  %p3292_p8 = por %p3291_p5, %p3290_p2 }
  0x5d   : > { %p3293_p10 = pnand %p3292_p8, %p3286_p9 }
  0x5f   : > { %3296 = shalt.err (!%p3293_p10)
}
  0x60   : > { %s3459_s27 = smov 1024   ;;  %s3460_s29 = smov 512  }
  0x61   : > { %s3461_s21 = smov 32   ;;  %s3719_s25 = scalar_lea.hbm %s4311_s3, %s3620_s7 }
  0x62   : > { %3114 = dma.hbm_to_vmem [thread:$0]  (!%p4347_p0), %s3685_s6, 32768, %s3680_s2, %s3687_s10, %s3459_s27, %s3460_s29, %s3461_s21  }
  0x63   : > { %s268_s17 = scalar_lea.vmem [#allocation6], %s3617_s12  ;;  %s3297_s9 = scalar_lea.hbm %s3719_s25, 128 }
  0x64   : > { %s276_s15 = sshll.u32 %s268_s17, 4  ;;  %p3298_p2 = scmp.ne.s32.totalorder %s3719_s25, %s3297_s9  ;;  %s277_s15 = int_to_ptr.vmem [resolvable:$true] %s276_s15 }
  0x65   : > { %s3302_s2 = scalar_lea.hbm %s4311_s3, 256  ;;  %p3303_p0 = scmp.lt.u32.totalorder %s3719_s25, %s4311_s3 }
  0x66   : > { %p3300_p9 = pnand %p3298_p2, %p3645_p6  ;;  %p3304_p13 = scmp.lt.u32.totalorder %s3302_s2, %s3297_s9 }
  0x67   : > { %p3306_p3 = scmp.lt.u32.totalorder %s3297_s9, %s3719_s25 }
  0x68   : > { %p3301_p1 = pneg %p3300_p9  ;;  %p3305_p11 = por %p3304_p13, %p3303_p0 }
  0x6a   : > { %p3307_p4 = por %p3306_p3, %p3305_p11 }
  0x6c   : > { %p3308_p7 = pnand %p3307_p4, %p3301_p1 }
  0x6e   : > { %3311 = shalt.err (!%p3308_p7)
}
  0x6f   : > { %s3312_s27 = scalar_lea.vmem %s277_s15, 128  ;;  %s3462_s29 = smov [#allocation6]  }
  0x70   : > { %p3313_p12 = scmp.ne.s32.totalorder %s277_s15, %s3312_s27  ;;  %s3317_s21 = sshll.u32 %s3462_s29, 4  ;;  %s3318_s21 = int_to_ptr.vmem [resolvable:$false] %s3317_s21 }
  0x71   : > { %s3319_s24 = scalar_lea.vmem %s3318_s21, 256  ;;  %p3320_p10 = scmp.lt.s32.totalorder %s277_s15, %s3318_s21 }
  0x72   : > { %p3315_p5 = pnand %p3313_p12, %p3645_p6  ;;  %p3321_p2 = scmp.lt.s32.totalorder %s3319_s24, %s3312_s27 }
  0x74   : > { %p3316_p8 = pneg %p3315_p5  ;;  %p3322_p9 = por %p3321_p2, %p3320_p10 }
  0x76   : > { %p3323_p0 = pnand %p3322_p9, %p3316_p8 }
  0x78   : > { %3326 = shalt.err (!%p3323_p0)
}
  0x79   : > { %p4348_p13 = scmp.ne.s32.totalorder %s4342_s14, 0  ;;  %s3744_s9 = scalar_lea.hbm %s4312_s4, %s3620_s7 }
  0x7a   : > { %s287_s5 = scalar_lea.vmem [#allocation7], %s3617_s12  ;;  %s4349_s2 = sand.u32 1, %s3423_s20  }
  0x7b   : > { %3120 = dma.hbm_to_vmem [thread:$0]  (!%p4348_p13), %s3719_s25, 128, %s277_s15, %s3639_s30  }
  0x7c   : > { %s295_s13 = sshll.u32 %s287_s5, 4  ;;  %s284_s6 = scalar_lea.sflag [#allocation8], %s4349_s2  ;;  %s296_s13 = int_to_ptr.vmem [resolvable:$true] %s295_s13 }
  0x7d   : > { %s3327_s10 = scalar_lea.hbm %s3744_s9, 128  ;;  %s3332_s15 = scalar_lea.hbm %s4312_s4, 256 }
  0x7e   : > { %p3328_p1 = scmp.ne.s32.totalorder %s3744_s9, %s3327_s10  ;;  %p3333_p4 = scmp.lt.u32.totalorder %s3744_s9, %s4312_s4 }
  0x7f   : > { %p3334_p7 = scmp.lt.u32.totalorder %s3332_s15, %s3327_s10  ;;  %p3336_p5 = scmp.lt.u32.totalorder %s3327_s10, %s3744_s9 }
  0x80   : > { %p3330_p11 = pnand %p3328_p1, %p3645_p6 }
  0x81   : > { %p3335_p12 = por %p3334_p7, %p3333_p4 }
  0x82   : > { %p3331_p3 = pneg %p3330_p11 }
  0x83   : > { %p3337_p8 = por %p3336_p5, %p3335_p12 }
  0x85   : > { %p3338_p10 = pnand %p3337_p8, %p3331_p3 }
  0x87   : > { %3341 = shalt.err (!%p3338_p10)
}
  0x88   : > { %s3342_s12 = scalar_lea.vmem %s296_s13, 128  ;;  %s3463_s29 = smov [#allocation7]  }
  0x89   : > { %p3343_p2 = scmp.ne.s32.totalorder %s296_s13, %s3342_s12  ;;  %s3347_s21 = sshll.u32 %s3463_s29, 4  ;;  %s3348_s21 = int_to_ptr.vmem [resolvable:$false] %s3347_s21 }
  0x8a   : > { %s3349_s24 = scalar_lea.vmem %s3348_s21, 256  ;;  %p3350_p1 = scmp.lt.s32.totalorder %s296_s13, %s3348_s21 }
  0x8b   : > { %p3345_p9 = pnand %p3343_p2, %p3645_p6  ;;  %p3351_p11 = scmp.lt.s32.totalorder %s3349_s24, %s3342_s12 }
  0x8d   : > { %p3346_p0 = pneg %p3345_p9  ;;  %p3352_p13 = por %p3351_p11, %p3350_p1 }
  0x8f   : > { %p3353_p4 = pnand %p3352_p13, %p3346_p0 }
  0x91   : > { %3356 = shalt.err (!%p3353_p4)
}
  0x92   : > { %p4350_p7 = scmp.ne.s32.totalorder %s4342_s14, 0  ;;  %p4351_p3 = scmp.ne.s32.totalorder %s4346_s16, 0 }
  0x93   : > { %s306_s18 = sand.u32 (!%p4351_p3), 1, %s3431_s22   ;;  %p4352_p6 = scmp.ne.s32.totalorder (!%p4351_p3), %s4335_s11, 0 }
  0x94   : > { %3123 = dma.hbm_to_vmem [thread:$0]  (!%p4350_p7), %s3744_s9, 128, %s296_s13, %s284_s6  }
  0x95   : > { %304 = sbr.rel (%p4351_p3) target bundleno = 729 (0x2d9), region = 40  ;;  %s2827_s0 = sshll.u32 (!%p4351_p3), %s306_s18, 11 }
  0x96   : > { %s307_s17 = scalar_lea.sflag (!%p4351_p3), [#allocation3], %s306_s18  ;;  %s3769_s5 = scalar_lea.vmem (!%p4351_p3), [#allocation2], %s2827_s0 }
  0x9c   : > { %3402 = dma.done.wait (%p4352_p6), %s307_s17, 32768  }
  0x9d   : > { %3404 = vsyncadd (%p4352_p6), %s307_s17, 4294934528  ;;  %s4353_s2 = sadd.s32 4294967295, %s3455_s28   ;;  %s317_s9 = sand.u32 1, %s3419_s19  }
  0x9e   : > { %s315_s14 = sand.u32 1, %s4353_s2   ;;  %s3778_s16 = sshll.u32 %s317_s9, 3 }
  0x9f   : > { %s316_s13 = scalar_lea.sflag [#allocation5], %s315_s14  ;;  %s319_s6 = scalar_lea.vmem [#allocation4], %s3778_s16 }
  0xa0   : > { %p4354_p13 = scmp.ne.s32.totalorder %s4339_s8, 0 }
  0xa2   : > { %3406 = dma.done.wait (%p4354_p13), %s316_s13, 256  }
  0xa3   : > { %3408 = vsyncadd (%p4354_p13), %s316_s13, 4294967040  ;;  %s328_s11 = scalar_lea.vmem [#allocation6], %s3778_s16  ;;  %s334_s10 = scalar_lea.sflag [#allocation8], %s317_s9 }
  0xa4   : > { %s337_s30 = scalar_lea.vmem [#allocation7], %s3778_s16 }
  0xa5   : > { %3410 = dma.done.wait (%p4354_p13), %s334_s10, 128  }
  0xa6   : > { %3412 = vsyncadd (%p4354_p13), %s334_s10, 4294967168  ;;  %s4355_s25 = sld [smem:[#allocation12_spill]]  ;;  %s4356_s15 = sld [smem:[#allocation13_spill]] }
  0xa7   : > { %s4357_s24 = sld [smem:[#allocation19_spill]]  ;;  %s4358_s14 = sld [smem:[#allocation21_spill]] }
  0xac   : > { %s2831_s7 = sshll.u32 %s4355_s25, 2  ;;  %s2833_s27 = sshll.u32 %s4356_s15, 3 }
  0xad   : > { %p385_p12 = scmp.lt.s32.totalorder %s2831_s7, 7  ;;  %p396_p5 = scmp.lt.s32.totalorder %s2833_s27, 15 }
  0xae   : > { %p2835_p8 = scmp.ne.s32.totalorder %s4355_s25, 0 }
  0xaf   : > { %s4380_s7 = smov (!%p385_p12, %s2831_s7), 7  ;;  %s4382_s27 = smov (!%p396_p5, %s2833_s27), 15 }
  0xb0   : > { %s2832_s12 = sshll.u32 %s4380_s7, 2  ;;  %s2834_s0 = sshll.u32 %s4382_s27, 3  ;;  %v3464_v0 = vmov (!%p2835_p8), 0.0  }
  0xb1   : > { %s3796_s18 = scalar_lea.vmem %s4357_s24, %s2832_s12  ;;  %s3801_s8 = scalar_lea.vmem %s4358_s14, %s2834_s0 }
  0xb2   : > { %404 = sbr.rel (%p2835_p8) target bundleno = 185 (0xb9), region = 60  ;;  %405 = vst [vmem:[%s3801_s8] sm:$0xff] (!%p2835_p8), %v3464_v0  ;;  %406 = vst [vmem:[%s3801_s8 + $0x8] sm:$0xff] (!%p2835_p8), %v3464_v0 }
  0xb3   : > { %407 = vst [vmem:[%s3801_s8 + $0x10] sm:$0xff] (!%p2835_p8), %v3464_v0  ;;  %408 = vst [vmem:[%s3801_s8 + $0x18] sm:$0xff] (!%p2835_p8), %v3464_v0 }
  0xb4   : > { %409 = vst [vmem:[%s3801_s8 + $0x20] sm:$0xff] (!%p2835_p8), %v3464_v0  ;;  %410 = vst [vmem:[%s3801_s8 + $0x28] sm:$0xff] (!%p2835_p8), %v3464_v0 }
  0xb5   : > { %411 = vst [vmem:[%s3801_s8 + $0x30] sm:$0xff] (!%p2835_p8), %v3464_v0  ;;  %412 = vst [vmem:[%s3801_s8 + $0x38] sm:$0xff] (!%p2835_p8), %v3464_v0 }
  0xb9 PF: > { %v423_v1 = vld [vmem:[%s3769_s5] sm:$0xff]  ;;  %v3844_v55 = vld [vmem:[%s3796_s18 + $0x8] sm:$0xff] }
  0xba   : > { %v427_v2 = vld [vmem:[%s3769_s5 + $0x20] sm:$0xff]  ;;  %v3854_v60 = vcombine.high %v3844_v55, %v3844_v55 }
  0xbb   : > { %v551_v3 = vld [vmem:[%s3769_s5 + $0x400] sm:$0xff]  ;;  %v2841_v4 = vcombine.high %v423_v1, %v427_v2  ;;  %v2840_v6 = vcombine.low %v423_v1, %v427_v2 }
  0xbc   : > { %v555_v5 = vld [vmem:[%s3769_s5 + $0x420] sm:$0xff]  ;;  %2046 = vmatprep.mubr.bf16.mxu1 %v3854_v60 }
  0xbd   : > { %v431_v7 = vld [vmem:[%s3769_s5 + $0x40] sm:$0xff]  ;;  %v2969_v9 = vcombine.high %v551_v3, %v555_v5  ;;  %v2968_v10 = vcombine.low %v551_v3, %v555_v5  ;;  %1973 = vmatprep.subr.bf16.mxu0 %v2841_v4 }
  0xbe   : > { %v435_v8 = vld [vmem:[%s3769_s5 + $0x60] sm:$0xff]  ;;  %1974 = vmatpush1.bf16.msra.mxu0 %v2840_v6 }
  0xbf   : > { %v2849_v11 = vcombine.high %v431_v7, %v435_v8  ;;  %v559_v12 = vld [vmem:[%s3769_s5 + $0x440] sm:$0xff]  ;;  %2014 = vmatprep.subr.bf16.mxu1 %v2969_v9  ;;  %v2848_v19 = vcombine.low %v431_v7, %v435_v8 }
  0xc0   : > { %v563_v13 = vld [vmem:[%s3769_s5 + $0x460] sm:$0xff]  ;;  %2015 = vmatpush1.bf16.msra.mxu1 %v2968_v10 }
  0xc1   : > { %v439_v14 = vld [vmem:[%s3769_s5 + $0x80] sm:$0xff]  ;;  %v2977_v15 = vcombine.high %v559_v12, %v563_v13  ;;  %1975 = vmatprep.subr.bf16.mxu0 %v2849_v11  ;;  %v2976_v20 = vcombine.low %v559_v12, %v563_v13 }
  0xc2   : > { %v443_v16 = vld [vmem:[%s3769_s5 + $0xa0] sm:$0xff]  ;;  %1976 = vmatpush1.bf16.msra.mxu0 %v2848_v19 }
  0xc3   : > { %v567_v17 = vld [vmem:[%s3769_s5 + $0x480] sm:$0xff]  ;;  %v2857_v21 = vcombine.high %v439_v14, %v443_v16  ;;  %2016 = vmatprep.subr.bf16.mxu1 %v2977_v15  ;;  %v2856_v27 = vcombine.low %v439_v14, %v443_v16 }
  0xc4   : > { %v571_v18 = vld [vmem:[%s3769_s5 + $0x4a0] sm:$0xff]  ;;  %2017 = vmatpush1.bf16.msra.mxu1 %v2976_v20 }
  0xc5   : > { %v2985_v22 = vcombine.high %v567_v17, %v571_v18  ;;  %v447_v23 = vld [vmem:[%s3769_s5 + $0xc0] sm:$0xff]  ;;  %1977 = vmatprep.subr.bf16.mxu0 %v2857_v21  ;;  %v2984_v28 = vcombine.low %v567_v17, %v571_v18 }
  0xc6   : > { %v451_v24 = vld [vmem:[%s3769_s5 + $0xe0] sm:$0xff]  ;;  %1978 = vmatpush1.bf16.msra.mxu0 %v2856_v27 }
  0xc7   : > { %v575_v25 = vld [vmem:[%s3769_s5 + $0x4c0] sm:$0xff]  ;;  %v2865_v29 = vcombine.high %v447_v23, %v451_v24  ;;  %2018 = vmatprep.subr.bf16.mxu1 %v2985_v22  ;;  %v2864_v35 = vcombine.low %v447_v23, %v451_v24 }
  0xc8   : > { %v579_v26 = vld [vmem:[%s3769_s5 + $0x4e0] sm:$0xff]  ;;  %2019 = vmatpush1.bf16.msra.mxu1 %v2984_v28 }
  0xc9   : > { %v2993_v30 = vcombine.high %v575_v25, %v579_v26  ;;  %v455_v31 = vld [vmem:[%s3769_s5 + $0x100] sm:$0xff]  ;;  %1979 = vmatprep.subr.bf16.mxu0 %v2865_v29  ;;  %v2992_v36 = vcombine.low %v575_v25, %v579_v26 }
  0xca   : > { %v459_v32 = vld [vmem:[%s3769_s5 + $0x120] sm:$0xff]  ;;  %1980 = vmatpush1.bf16.msra.mxu0 %v2864_v35 }
  0xcb   : > { %v583_v33 = vld [vmem:[%s3769_s5 + $0x500] sm:$0xff]  ;;  %v2873_v37 = vcombine.high %v455_v31, %v459_v32  ;;  %2020 = vmatprep.subr.bf16.mxu1 %v2993_v30  ;;  %v2872_v43 = vcombine.low %v455_v31, %v459_v32 }
  0xcc   : > { %v587_v34 = vld [vmem:[%s3769_s5 + $0x520] sm:$0xff]  ;;  %2021 = vmatpush1.bf16.msra.mxu1 %v2992_v36 }
  0xcd   : > { %v3001_v38 = vcombine.high %v583_v33, %v587_v34  ;;  %v463_v39 = vld [vmem:[%s3769_s5 + $0x140] sm:$0xff]  ;;  %1981 = vmatprep.subr.bf16.mxu0 %v2873_v37  ;;  %v3000_v44 = vcombine.low %v583_v33, %v587_v34 }
  0xce   : > { %v467_v40 = vld [vmem:[%s3769_s5 + $0x160] sm:$0xff]  ;;  %1982 = vmatpush1.bf16.msra.mxu0 %v2872_v43 }
  0xcf   : > { %v591_v41 = vld [vmem:[%s3769_s5 + $0x540] sm:$0xff]  ;;  %v2881_v45 = vcombine.high %v463_v39, %v467_v40  ;;  %2022 = vmatprep.subr.bf16.mxu1 %v3001_v38  ;;  %v2880_v51 = vcombine.low %v463_v39, %v467_v40 }
  0xd0   : > { %v595_v42 = vld [vmem:[%s3769_s5 + $0x560] sm:$0xff]  ;;  %2023 = vmatpush1.bf16.msra.mxu1 %v3000_v44 }
  0xd1   : > { %v3009_v46 = vcombine.high %v591_v41, %v595_v42  ;;  %v471_v47 = vld [vmem:[%s3769_s5 + $0x180] sm:$0xff]  ;;  %1983 = vmatprep.subr.bf16.mxu0 %v2881_v45  ;;  %v3008_v52 = vcombine.low %v591_v41, %v595_v42 }
  0xd2   : > { %v475_v48 = vld [vmem:[%s3769_s5 + $0x1a0] sm:$0xff]  ;;  %1984 = vmatpush1.bf16.msra.mxu0 %v2880_v51 }
  0xd3   : > { %v599_v49 = vld [vmem:[%s3769_s5 + $0x580] sm:$0xff]  ;;  %v2889_v53 = vcombine.high %v471_v47, %v475_v48  ;;  %2024 = vmatprep.subr.bf16.mxu1 %v3009_v46  ;;  %v2888_v63 = vcombine.low %v471_v47, %v475_v48 }
  0xd4   : > { %v603_v50 = vld [vmem:[%s3769_s5 + $0x5a0] sm:$0xff]  ;;  %2025 = vmatpush1.bf16.msra.mxu1 %v3008_v52 }
  0xd5   : > { %v3841_v54 = vld [vmem:[%s3796_s18] sm:$0xff]  ;;  %v3017_v56 = vcombine.high %v599_v49, %v603_v50  ;;  %1985 = vmatprep.subr.bf16.mxu0 %v2889_v53  ;;  %v3016_v0 = vcombine.low %v599_v49, %v603_v50 }
  0xd6   : > { %v479_v57 = vld [vmem:[%s3769_s5 + $0x1c0] sm:$0xff]  ;;  %v3850_v59 = vcombine.high %v3841_v54, %v3841_v54  ;;  %1986 = vmatpush1.bf16.msra.mxu0 %v2888_v63 }
  0xd7   : > { %v483_v58 = vld [vmem:[%s3769_s5 + $0x1e0] sm:$0xff]  ;;  %2026 = vmatprep.subr.bf16.mxu1 %v3017_v56 }
  0xd8   : > { %v607_v61 = vld [vmem:[%s3769_s5 + $0x5c0] sm:$0xff]  ;;  %2005 = vmatprep.mubr.bf16.mxu0 %v3850_v59  ;;  %v2897_v1 = vcombine.high %v479_v57, %v483_v58  ;;  %v2896_v7 = vcombine.low %v479_v57, %v483_v58  ;;  %2027 = vmatpush1.bf16.msra.mxu1 %v3016_v0 }
  0xd9   : > { %v611_v62 = vld [vmem:[%s3769_s5 + $0x5e0] sm:$0xff] }
  0xda   : > { %v3025_v2 = vcombine.high %v607_v61, %v611_v62  ;;  %v487_v3 = vld [vmem:[%s3769_s5 + $0x200] sm:$0xff]  ;;  %1987 = vmatprep.subr.bf16.mxu0 %v2897_v1  ;;  %v3024_v8 = vcombine.low %v607_v61, %v611_v62 }
  0xdb   : > { %v491_v4 = vld [vmem:[%s3769_s5 + $0x220] sm:$0xff]  ;;  %1988 = vmatpush1.bf16.msra.mxu0 %v2896_v7  ;;  %v424_v7 = vld [vmem:[%s3769_s5 + $0x8] sm:$0xff] }
  0xdc   : > { %v615_v5 = vld [vmem:[%s3769_s5 + $0x600] sm:$0xff]  ;;  %v2905_v9 = vcombine.high %v487_v3, %v491_v4  ;;  %2028 = vmatprep.subr.bf16.mxu1 %v3025_v2  ;;  %v2904_v15 = vcombine.low %v487_v3, %v491_v4 }
  0xdd   : > { %v619_v6 = vld [vmem:[%s3769_s5 + $0x620] sm:$0xff]  ;;  %2029 = vmatpush1.bf16.msra.mxu1 %v3024_v8  ;;  %v428_v8 = vld [vmem:[%s3769_s5 + $0x28] sm:$0xff] }
  0xde   : > { %v3033_v10 = vcombine.high %v615_v5, %v619_v6  ;;  %v495_v11 = vld [vmem:[%s3769_s5 + $0x240] sm:$0xff]  ;;  %1989 = vmatprep.subr.bf16.mxu0 %v2905_v9  ;;  %v3032_v16 = vcombine.low %v615_v5, %v619_v6  ;;  %v552_v9 = vld [vmem:[%s3769_s5 + $0x408] sm:$0xff] }
  0xdf   : > { %v499_v12 = vld [vmem:[%s3769_s5 + $0x260] sm:$0xff]  ;;  %1990 = vmatpush1.bf16.msra.mxu0 %v2904_v15  ;;  %v432_v15 = vld [vmem:[%s3769_s5 + $0x48] sm:$0xff] }
  0xe0   : > { %v623_v13 = vld [vmem:[%s3769_s5 + $0x640] sm:$0xff]  ;;  %v2913_v17 = vcombine.high %v495_v11, %v499_v12  ;;  %2030 = vmatprep.subr.bf16.mxu1 %v3033_v10  ;;  %v2912_v23 = vcombine.low %v495_v11, %v499_v12  ;;  %v556_v10 = vld [vmem:[%s3769_s5 + $0x428] sm:$0xff] }
  0xe1   : > { %v627_v14 = vld [vmem:[%s3769_s5 + $0x660] sm:$0xff]  ;;  %2031 = vmatpush1.bf16.msra.mxu1 %v3032_v16  ;;  %v436_v16 = vld [vmem:[%s3769_s5 + $0x68] sm:$0xff] }
  0xe2   : > { %v3041_v18 = vcombine.high %v623_v13, %v627_v14  ;;  %v503_v19 = vld [vmem:[%s3769_s5 + $0x280] sm:$0xff]  ;;  %1991 = vmatprep.subr.bf16.mxu0 %v2913_v17  ;;  %v3040_v24 = vcombine.low %v623_v13, %v627_v14  ;;  %v2843_v13 = vcombine.high %v424_v7, %v428_v8  ;;  %v2971_v14 = vcombine.high %v552_v9, %v556_v10 }
  0xe3   : > { %v507_v20 = vld [vmem:[%s3769_s5 + $0x2a0] sm:$0xff]  ;;  %1992 = vmatpush1.bf16.msra.mxu0 %v2912_v23  ;;  %v3900_v17 = vcombine.low %v3841_v54, %v3841_v54  ;;  %v2851_v23 = vcombine.high %v432_v15, %v436_v16  ;;  %v444_v54 = vld [vmem:[%s3769_s5 + $0xa8] sm:$0xff] }
  0xe4   : > { %v631_v21 = vld [vmem:[%s3769_s5 + $0x680] sm:$0xff]  ;;  %v2921_v25 = vcombine.high %v503_v19, %v507_v20  ;;  %2032 = vmatprep.subr.bf16.mxu1 %v3041_v18  ;;  %v2920_v31 = vcombine.low %v503_v19, %v507_v20  ;;  %v560_v18 = vld [vmem:[%s3769_s5 + $0x448] sm:$0xff]  ;;  %v3906_v20 = vcombine.low %v3844_v55, %v3844_v55  ;;  %v2850_v55 = vcombine.low %v432_v15, %v436_v16 }
  0xe5   : > { %v635_v22 = vld [vmem:[%s3769_s5 + $0x6a0] sm:$0xff]  ;;  %2033 = vmatpush1.bf16.msra.mxu1 %v3040_v24  ;;  %v564_v19 = vld [vmem:[%s3769_s5 + $0x468] sm:$0xff] }
  0xe6   : > { %v3049_v26 = vcombine.high %v631_v21, %v635_v22  ;;  %v511_v27 = vld [vmem:[%s3769_s5 + $0x2c0] sm:$0xff]  ;;  %1993 = vmatprep.subr.bf16.mxu0 %v2921_v25  ;;  %v3048_v32 = vcombine.low %v631_v21, %v635_v22  ;;  %v2842_v21 = vcombine.low %v424_v7, %v428_v8  ;;  %v2970_v22 = vcombine.low %v552_v9, %v556_v10  ;;  %v440_v25 = vld [vmem:[%s3769_s5 + $0x88] sm:$0xff] }
  0xe7   : > { %v515_v28 = vld [vmem:[%s3769_s5 + $0x2e0] sm:$0xff]  ;;  %1994 = vmatpush1.bf16.msra.mxu0 %v2920_v31  ;;  %v2979_v24 = vcombine.high %v560_v18, %v564_v19  ;;  %v448_v31 = vld [vmem:[%s3769_s5 + $0xc8] sm:$0xff] }
  0xe8   : > { %v639_v29 = vld [vmem:[%s3769_s5 + $0x6c0] sm:$0xff]  ;;  %v2929_v33 = vcombine.high %v511_v27, %v515_v28  ;;  %2034 = vmatprep.subr.bf16.mxu1 %v3049_v26  ;;  %v2928_v39 = vcombine.low %v511_v27, %v515_v28  ;;  %v568_v26 = vld [vmem:[%s3769_s5 + $0x488] sm:$0xff]  ;;  %v2978_v28 = vcombine.low %v560_v18, %v564_v19 }
  0xe9   : > { %v643_v30 = vld [vmem:[%s3769_s5 + $0x6e0] sm:$0xff]  ;;  %2035 = vmatpush1.bf16.msra.mxu1 %v3048_v32  ;;  %v572_v27 = vld [vmem:[%s3769_s5 + $0x4a8] sm:$0xff] }
  0xea   : > { %v3057_v34 = vcombine.high %v639_v29, %v643_v30  ;;  %v519_v35 = vld [vmem:[%s3769_s5 + $0x300] sm:$0xff]  ;;  %1995 = vmatprep.subr.bf16.mxu0 %v2929_v33  ;;  %v3056_v40 = vcombine.low %v639_v29, %v643_v30  ;;  %v2859_v29 = vcombine.high %v440_v25, %v444_v54  ;;  %v2987_v30 = vcombine.high %v568_v26, %v572_v27  ;;  %v452_v32 = vld [vmem:[%s3769_s5 + $0xe8] sm:$0xff] }
  0xeb   : > { %v523_v36 = vld [vmem:[%s3769_s5 + $0x320] sm:$0xff]  ;;  %1996 = vmatpush1.bf16.msra.mxu0 %v2928_v39  ;;  %v576_v33 = vld [vmem:[%s3769_s5 + $0x4c8] sm:$0xff] }
  0xec   : > { %v647_v37 = vld [vmem:[%s3769_s5 + $0x700] sm:$0xff]  ;;  %v2937_v41 = vcombine.high %v519_v35, %v523_v36  ;;  %2036 = vmatprep.subr.bf16.mxu1 %v3057_v34  ;;  %v2936_v47 = vcombine.low %v519_v35, %v523_v36  ;;  %v580_v34 = vld [vmem:[%s3769_s5 + $0x4e8] sm:$0xff]  ;;  %v2858_v35 = vcombine.low %v440_v25, %v444_v54  ;;  %v2986_v36 = vcombine.low %v568_v26, %v572_v27 }
  0xed   : > { %v651_v38 = vld [vmem:[%s3769_s5 + $0x720] sm:$0xff]  ;;  %2037 = vmatpush1.bf16.msra.mxu1 %v3056_v40  ;;  %v456_v39 = vld [vmem:[%s3769_s5 + $0x108] sm:$0xff] }
  0xee   : > { %v3065_v42 = vcombine.high %v647_v37, %v651_v38  ;;  %v527_v43 = vld [vmem:[%s3769_s5 + $0x340] sm:$0xff]  ;;  %1997 = vmatprep.subr.bf16.mxu0 %v2937_v41  ;;  %v3064_v48 = vcombine.low %v647_v37, %v651_v38  ;;  %v2867_v37 = vcombine.high %v448_v31, %v452_v32  ;;  %v2995_v38 = vcombine.high %v576_v33, %v580_v34  ;;  %v460_v40 = vld [vmem:[%s3769_s5 + $0x128] sm:$0xff] }
  0xef   : > { %v531_v44 = vld [vmem:[%s3769_s5 + $0x360] sm:$0xff]  ;;  %1998 = vmatpush1.bf16.msra.mxu0 %v2936_v47  ;;  %v584_v41 = vld [vmem:[%s3769_s5 + $0x508] sm:$0xff] }
  0xf0   : > { %v655_v45 = vld [vmem:[%s3769_s5 + $0x740] sm:$0xff]  ;;  %v2945_v49 = vcombine.high %v527_v43, %v531_v44  ;;  %2038 = vmatprep.subr.bf16.mxu1 %v3065_v42  ;;  %v2944_v57 = vcombine.low %v527_v43, %v531_v44  ;;  %v588_v42 = vld [vmem:[%s3769_s5 + $0x528] sm:$0xff]  ;;  %v2866_v43 = vcombine.low %v448_v31, %v452_v32  ;;  %v2994_v44 = vcombine.low %v576_v33, %v580_v34 }
  0xf1   : > { %v659_v46 = vld [vmem:[%s3769_s5 + $0x760] sm:$0xff]  ;;  %2039 = vmatpush1.bf16.msra.mxu1 %v3064_v48  ;;  %v464_v47 = vld [vmem:[%s3769_s5 + $0x148] sm:$0xff] }
  0xf2   : > { %v3073_v50 = vcombine.high %v655_v45, %v659_v46  ;;  %v535_v51 = vld [vmem:[%s3769_s5 + $0x380] sm:$0xff]  ;;  %1999 = vmatprep.subr.bf16.mxu0 %v2945_v49  ;;  %v3072_v58 = vcombine.low %v655_v45, %v659_v46  ;;  %v2875_v45 = vcombine.high %v456_v39, %v460_v40  ;;  %v3003_v46 = vcombine.high %v584_v41, %v588_v42  ;;  %v468_v48 = vld [vmem:[%s3769_s5 + $0x168] sm:$0xff] }
  0xf3   : > { %v539_v52 = vld [vmem:[%s3769_s5 + $0x3a0] sm:$0xff]  ;;  %2000 = vmatpush1.bf16.msra.mxu0 %v2944_v57  ;;  %v592_v49 = vld [vmem:[%s3769_s5 + $0x548] sm:$0xff] }
  0xf4   : > { %v663_v53 = vld [vmem:[%s3769_s5 + $0x780] sm:$0xff]  ;;  %v2953_v61 = vcombine.high %v535_v51, %v539_v52  ;;  %2040 = vmatprep.subr.bf16.mxu1 %v3073_v50  ;;  %v2952_v3 = vcombine.low %v535_v51, %v539_v52  ;;  %v596_v50 = vld [vmem:[%s3769_s5 + $0x568] sm:$0xff]  ;;  %v2874_v51 = vcombine.low %v456_v39, %v460_v40  ;;  %v3002_v52 = vcombine.low %v584_v41, %v588_v42 }
  0xf5   : > { %v667_v56 = vld [vmem:[%s3769_s5 + $0x7a0] sm:$0xff]  ;;  %2041 = vmatpush1.bf16.msra.mxu1 %v3072_v58  ;;  %v472_v57 = vld [vmem:[%s3769_s5 + $0x188] sm:$0xff] }
  0xf6   : > { %v3081_v62 = vcombine.high %v663_v53, %v667_v56  ;;  %v543_v63 = vld [vmem:[%s3769_s5 + $0x3c0] sm:$0xff]  ;;  %2001 = vmatprep.subr.bf16.mxu0 %v2953_v61  ;;  %v3080_v4 = vcombine.low %v663_v53, %v667_v56  ;;  %v2883_v53 = vcombine.high %v464_v47, %v468_v48  ;;  %v3011_v56 = vcombine.high %v592_v49, %v596_v50  ;;  %v476_v58 = vld [vmem:[%s3769_s5 + $0x1a8] sm:$0xff] }
  0xf7   : > { %v547_v0 = vld [vmem:[%s3769_s5 + $0x3e0] sm:$0xff]  ;;  %2002 = vmatpush1.bf16.msra.mxu0 %v2952_v3  ;;  %v600_v61 = vld [vmem:[%s3769_s5 + $0x588] sm:$0xff]  ;;  %v2890_v7 = vcombine.low %v472_v57, %v476_v58 }
  0xf8   : > { %v671_v1 = vld [vmem:[%s3769_s5 + $0x7c0] sm:$0xff]  ;;  %v2961_v5 = vcombine.high %v543_v63, %v547_v0  ;;  %2042 = vmatprep.subr.bf16.mxu1 %v3081_v62  ;;  %v2960_v11 = vcombine.low %v543_v63, %v547_v0  ;;  %v604_v62 = vld [vmem:[%s3769_s5 + $0x5a8] sm:$0xff]  ;;  %v2882_v63 = vcombine.low %v464_v47, %v468_v48  ;;  %v3010_v0 = vcombine.low %v592_v49, %v596_v50 }
  0xf9   : > { %v675_v2 = vld [vmem:[%s3769_s5 + $0x7e0] sm:$0xff]  ;;  %2043 = vmatpush1.bf16.msra.mxu1 %v3080_v4  ;;  %v480_v3 = vld [vmem:[%s3769_s5 + $0x1c8] sm:$0xff]  ;;  %v3018_v8 = vcombine.low %v600_v61, %v604_v62 }
  0xfa   : > { %v3089_v6 = vcombine.high %v671_v1, %v675_v2  ;;  %2003 = vmatprep.subr.bf16.mxu0 %v2961_v5  ;;  %v3088_v12 = vcombine.low %v671_v1, %v675_v2  ;;  %v2891_v1 = vcombine.high %v472_v57, %v476_v58  ;;  %v3019_v2 = vcombine.high %v600_v61, %v604_v62  ;;  %v484_v4 = vld [vmem:[%s3769_s5 + $0x1e8] sm:$0xff] }
  0xfb   : > { %2004 = vmatpush1.bf16.msra.mxu0 %v2960_v11  ;;  %v608_v5 = vld [vmem:[%s3769_s5 + $0x5c8] sm:$0xff]  ;;  %v2899_v9 = vcombine.high %v480_v3, %v484_v4  ;;  %v2898_v15 = vcombine.low %v480_v3, %v484_v4 }
  0xfc   : > { %2044 = vmatprep.subr.bf16.mxu1 %v3089_v6  ;;  %2055 = vmatprep.subr.bf16.mxu0 %v2843_v13  ;;  %v612_v6 = vld [vmem:[%s3769_s5 + $0x5e8] sm:$0xff] }
  0xfd   : > { %2045 = vmatpush1.bf16.msra.mxu1 %v3088_v12  ;;  %v3027_v10 = vcombine.high %v608_v5, %v612_v6  ;;  %v488_v11 = vld [vmem:[%s3769_s5 + $0x208] sm:$0xff]  ;;  %v3026_v16 = vcombine.low %v608_v5, %v612_v6 }
  0xfe   : > { %2096 = vmatprep.subr.bf16.mxu1 %v2971_v14  ;;  %2006 = vmatmul.mubr.bf16.vlgmr.msra.gmra.mrb[0].mxu0 %v3900_v17  ;;  %v492_v12 = vld [vmem:[%s3769_s5 + $0x228] sm:$0xff] }
  0xff   : > { %2056 = vmatpush1.bf16.msra.mxu0 %v2842_v21  ;;  %2087 = vmatprep.mubr.bf16.mxu0 %v3850_v59  ;;  %v616_v13 = vld [vmem:[%s3769_s5 + $0x608] sm:$0xff]  ;;  %v2907_v18 = vcombine.high %v488_v11, %v492_v12  ;;  %v2906_v25 = vcombine.low %v488_v11, %v492_v12 }
 0x100   : > { %2047 = vmatmul.mubr.bf16.vlgmr.msra.gmra.mrb[0].mxu1 %v3906_v20  ;;  %2057 = vmatprep.subr.bf16.mxu0 %v2851_v23  ;;  %v620_v14 = vld [vmem:[%s3769_s5 + $0x628] sm:$0xff] }
 0x101   : > { %2097 = vmatpush1.bf16.msra.mxu1 %v2970_v22  ;;  %2128 = vmatprep.mubr.bf16.mxu1 %v3854_v60  ;;  %v3035_v19 = vcombine.high %v616_v13, %v620_v14  ;;  %v496_v21 = vld [vmem:[%s3769_s5 + $0x248] sm:$0xff]  ;;  %v3034_v54 = vcombine.low %v616_v13, %v620_v14 }
 0x102   : > { %2098 = vmatprep.subr.bf16.mxu1 %v2979_v24  ;;  %v500_v22 = vld [vmem:[%s3769_s5 + $0x268] sm:$0xff] }
 0x103   : > { %2058 = vmatpush1.bf16.msra.mxu0 %v2850_v55  ;;  %v624_v23 = vld [vmem:[%s3769_s5 + $0x648] sm:$0xff]  ;;  %v2915_v26 = vcombine.high %v496_v21, %v500_v22  ;;  %v2914_v31 = vcombine.low %v496_v21, %v500_v22 }
 0x104   : > { %2059 = vmatprep.subr.bf16.mxu0 %v2859_v29  ;;  %v628_v24 = vld [vmem:[%s3769_s5 + $0x668] sm:$0xff] }
 0x105   : > { %2099 = vmatpush1.bf16.msra.mxu1 %v2978_v28  ;;  %v3043_v27 = vcombine.high %v624_v23, %v628_v24  ;;  %v504_v55 = vld [vmem:[%s3769_s5 + $0x288] sm:$0xff]  ;;  %v3042_v32 = vcombine.low %v624_v23, %v628_v24 }
 0x106   : > { %2100 = vmatprep.subr.bf16.mxu1 %v2987_v30  ;;  %v508_v28 = vld [vmem:[%s3769_s5 + $0x2a8] sm:$0xff] }
 0x107   : > { %2060 = vmatpush1.bf16.msra.mxu0 %v2858_v35  ;;  %v632_v29 = vld [vmem:[%s3769_s5 + $0x688] sm:$0xff]  ;;  %v2923_v33 = vcombine.high %v504_v55, %v508_v28  ;;  %v2922_v39 = vcombine.low %v504_v55, %v508_v28 }
 0x108   : > { %2061 = vmatprep.subr.bf16.mxu0 %v2867_v37  ;;  %v636_v30 = vld [vmem:[%s3769_s5 + $0x6a8] sm:$0xff] }
 0x109   : > { %2101 = vmatpush1.bf16.msra.mxu1 %v2986_v36  ;;  %v3051_v34 = vcombine.high %v632_v29, %v636_v30  ;;  %v512_v35 = vld [vmem:[%s3769_s5 + $0x2c8] sm:$0xff]  ;;  %v3050_v40 = vcombine.low %v632_v29, %v636_v30 }
 0x10a   : > { %2102 = vmatprep.subr.bf16.mxu1 %v2995_v38  ;;  %v516_v36 = vld [vmem:[%s3769_s5 + $0x2e8] sm:$0xff] }
 0x10b   : > { %2062 = vmatpush1.bf16.msra.mxu0 %v2866_v43  ;;  %v640_v37 = vld [vmem:[%s3769_s5 + $0x6c8] sm:$0xff]  ;;  %v2931_v41 = vcombine.high %v512_v35, %v516_v36  ;;  %v2930_v47 = vcombine.low %v512_v35, %v516_v36 }
 0x10c   : > { %2063 = vmatprep.subr.bf16.mxu0 %v2875_v45  ;;  %v644_v38 = vld [vmem:[%s3769_s5 + $0x6e8] sm:$0xff] }
 0x10d   : > { %2103 = vmatpush1.bf16.msra.mxu1 %v2994_v44  ;;  %v3059_v42 = vcombine.high %v640_v37, %v644_v38  ;;  %v520_v43 = vld [vmem:[%s3769_s5 + $0x308] sm:$0xff]  ;;  %v3058_v48 = vcombine.low %v640_v37, %v644_v38 }
 0x10e   : > { %2104 = vmatprep.subr.bf16.mxu1 %v3003_v46  ;;  %v524_v44 = vld [vmem:[%s3769_s5 + $0x328] sm:$0xff] }
 0x10f   : > { %2064 = vmatpush1.bf16.msra.mxu0 %v2874_v51  ;;  %v648_v45 = vld [vmem:[%s3769_s5 + $0x708] sm:$0xff]  ;;  %v2939_v49 = vcombine.high %v520_v43, %v524_v44  ;;  %v2938_v57 = vcombine.low %v520_v43, %v524_v44 }
 0x110   : > { %2065 = vmatprep.subr.bf16.mxu0 %v2883_v53  ;;  %v652_v46 = vld [vmem:[%s3769_s5 + $0x728] sm:$0xff] }
 0x111   : > { %2105 = vmatpush1.bf16.msra.mxu1 %v3002_v52  ;;  %v3067_v50 = vcombine.high %v648_v45, %v652_v46  ;;  %v528_v51 = vld [vmem:[%s3769_s5 + $0x348] sm:$0xff]  ;;  %v3066_v58 = vcombine.low %v648_v45, %v652_v46 }
 0x112   : > { %2106 = vmatprep.subr.bf16.mxu1 %v3011_v56  ;;  %v532_v52 = vld [vmem:[%s3769_s5 + $0x368] sm:$0xff] }
 0x113   : > { %2066 = vmatpush1.bf16.msra.mxu0 %v2882_v63  ;;  %v656_v53 = vld [vmem:[%s3769_s5 + $0x748] sm:$0xff]  ;;  %v2947_v61 = vcombine.high %v528_v51, %v532_v52  ;;  %v2946_v3 = vcombine.low %v528_v51, %v532_v52 }
 0x114   : > { %2067 = vmatprep.subr.bf16.mxu0 %v2891_v1  ;;  %v660_v56 = vld [vmem:[%s3769_s5 + $0x768] sm:$0xff] }
 0x115   : > { %2107 = vmatpush1.bf16.msra.mxu1 %v3010_v0  ;;  %v3075_v62 = vcombine.high %v656_v53, %v660_v56  ;;  %v536_v63 = vld [vmem:[%s3769_s5 + $0x388] sm:$0xff]  ;;  %v3074_v4 = vcombine.low %v656_v53, %v660_v56 }
 0x116   : > { %2108 = vmatprep.subr.bf16.mxu1 %v3019_v2  ;;  %v540_v0 = vld [vmem:[%s3769_s5 + $0x3a8] sm:$0xff] }
 0x117   : > { %2068 = vmatpush1.bf16.msra.mxu0 %v2890_v7  ;;  %v664_v1 = vld [vmem:[%s3769_s5 + $0x788] sm:$0xff]  ;;  %v2955_v5 = vcombine.high %v536_v63, %v540_v0  ;;  %v2954_v11 = vcombine.low %v536_v63, %v540_v0 }
 0x118   : > { %2069 = vmatprep.subr.bf16.mxu0 %v2899_v9  ;;  %v668_v2 = vld [vmem:[%s3769_s5 + $0x7a8] sm:$0xff] }
 0x119   : > { %2109 = vmatpush1.bf16.msra.mxu1 %v3018_v8  ;;  %v3083_v6 = vcombine.high %v664_v1, %v668_v2  ;;  %v544_v7 = vld [vmem:[%s3769_s5 + $0x3c8] sm:$0xff]  ;;  %v3082_v12 = vcombine.low %v664_v1, %v668_v2 }
 0x11a   : > { %2110 = vmatprep.subr.bf16.mxu1 %v3027_v10  ;;  %v548_v8 = vld [vmem:[%s3769_s5 + $0x3e8] sm:$0xff] }
 0x11b   : > { %2070 = vmatpush1.bf16.msra.mxu0 %v2898_v15  ;;  %v672_v9 = vld [vmem:[%s3769_s5 + $0x7c8] sm:$0xff]  ;;  %v2963_v13 = vcombine.high %v544_v7, %v548_v8  ;;  %v425_v15 = vld [vmem:[%s3769_s5 + $0x10] sm:$0xff]  ;;  %v2962_v21 = vcombine.low %v544_v7, %v548_v8 }
 0x11c   : > { %2071 = vmatprep.subr.bf16.mxu0 %v2907_v18  ;;  %v676_v10 = vld [vmem:[%s3769_s5 + $0x7e8] sm:$0xff]  ;;  %v553_v18 = vld [vmem:[%s3769_s5 + $0x410] sm:$0xff] }
 0x11d   : > { %2111 = vmatpush1.bf16.msra.mxu1 %v3026_v16  ;;  %v3091_v14 = vcombine.high %v672_v9, %v676_v10  ;;  %v429_v16 = vld [vmem:[%s3769_s5 + $0x30] sm:$0xff]  ;;  %v3090_v22 = vcombine.low %v672_v9, %v676_v10 }
 0x11e   : > { %2112 = vmatprep.subr.bf16.mxu1 %v3035_v19  ;;  %v557_v19 = vld [vmem:[%s3769_s5 + $0x430] sm:$0xff]  ;;  %v2845_v23 = vcombine.high %v425_v15, %v429_v16  ;;  %v2844_v55 = vcombine.low %v425_v15, %v429_v16 }
 0x11f   : > { %2072 = vmatpush1.bf16.msra.mxu0 %v2906_v25  ;;  %v2973_v24 = vcombine.high %v553_v18, %v557_v19  ;;  %v433_v25 = vld [vmem:[%s3769_s5 + $0x50] sm:$0xff]  ;;  %v2972_v28 = vcombine.low %v553_v18, %v557_v19 }
 0x120   : > { %2073 = vmatprep.subr.bf16.mxu0 %v2915_v26  ;;  %v561_v26 = vld [vmem:[%s3769_s5 + $0x450] sm:$0xff] }
 0x121   : > { %2113 = vmatpush1.bf16.msra.mxu1 %v3034_v54  ;;  %v437_v54 = vld [vmem:[%s3769_s5 + $0x70] sm:$0xff] }
 0x122   : > { %2114 = vmatprep.subr.bf16.mxu1 %v3043_v27  ;;  %v565_v27 = vld [vmem:[%s3769_s5 + $0x470] sm:$0xff]  ;;  %v2853_v29 = vcombine.high %v433_v25, %v437_v54  ;;  %v2852_v35 = vcombine.low %v433_v25, %v437_v54 }
 0x123   : > { %2074 = vmatpush1.bf16.msra.mxu0 %v2914_v31  ;;  %v2981_v30 = vcombine.high %v561_v26, %v565_v27  ;;  %v441_v31 = vld [vmem:[%s3769_s5 + $0x90] sm:$0xff]  ;;  %v2980_v36 = vcombine.low %v561_v26, %v565_v27 }
 0x124   : > { %2075 = vmatprep.subr.bf16.mxu0 %v2923_v33  ;;  %v569_v33 = vld [vmem:[%s3769_s5 + $0x490] sm:$0xff] }
 0x125   : > { %2115 = vmatpush1.bf16.msra.mxu1 %v3042_v32  ;;  %v445_v32 = vld [vmem:[%s3769_s5 + $0xb0] sm:$0xff] }
 0x126   : > { %2116 = vmatprep.subr.bf16.mxu1 %v3051_v34  ;;  %v573_v34 = vld [vmem:[%s3769_s5 + $0x4b0] sm:$0xff]  ;;  %v2861_v37 = vcombine.high %v441_v31, %v445_v32  ;;  %v2860_v43 = vcombine.low %v441_v31, %v445_v32 }
 0x127   : > { %2076 = vmatpush1.bf16.msra.mxu0 %v2922_v39  ;;  %v2989_v38 = vcombine.high %v569_v33, %v573_v34  ;;  %v449_v39 = vld [vmem:[%s3769_s5 + $0xd0] sm:$0xff]  ;;  %v2988_v44 = vcombine.low %v569_v33, %v573_v34 }
 0x128   : > { %2077 = vmatprep.subr.bf16.mxu0 %v2931_v41  ;;  %v577_v41 = vld [vmem:[%s3769_s5 + $0x4d0] sm:$0xff] }
 0x129   : > { %2117 = vmatpush1.bf16.msra.mxu1 %v3050_v40  ;;  %v453_v40 = vld [vmem:[%s3769_s5 + $0xf0] sm:$0xff] }
 0x12a   : > { %2118 = vmatprep.subr.bf16.mxu1 %v3059_v42  ;;  %v581_v42 = vld [vmem:[%s3769_s5 + $0x4f0] sm:$0xff]  ;;  %v2869_v45 = vcombine.high %v449_v39, %v453_v40  ;;  %v2868_v51 = vcombine.low %v449_v39, %v453_v40 }
 0x12b   : > { %2078 = vmatpush1.bf16.msra.mxu0 %v2930_v47  ;;  %v2997_v46 = vcombine.high %v577_v41, %v581_v42  ;;  %v457_v47 = vld [vmem:[%s3769_s5 + $0x110] sm:$0xff]  ;;  %v2996_v52 = vcombine.low %v577_v41, %v581_v42 }
 0x12c   : > { %2079 = vmatprep.subr.bf16.mxu0 %v2939_v49  ;;  %v585_v49 = vld [vmem:[%s3769_s5 + $0x510] sm:$0xff] }
 0x12d   : > { %2119 = vmatpush1.bf16.msra.mxu1 %v3058_v48  ;;  %v461_v48 = vld [vmem:[%s3769_s5 + $0x130] sm:$0xff] }
 0x12e   : > { %2120 = vmatprep.subr.bf16.mxu1 %v3067_v50  ;;  %v589_v50 = vld [vmem:[%s3769_s5 + $0x530] sm:$0xff]  ;;  %v2877_v53 = vcombine.high %v457_v47, %v461_v48  ;;  %v2876_v63 = vcombine.low %v457_v47, %v461_v48 }
 0x12f   : > { %2080 = vmatpush1.bf16.msra.mxu0 %v2938_v57  ;;  %v3005_v56 = vcombine.high %v585_v49, %v589_v50  ;;  %v465_v57 = vld [vmem:[%s3769_s5 + $0x150] sm:$0xff]  ;;  %v3004_v0 = vcombine.low %v585_v49, %v589_v50 }
 0x130   : > { %2081 = vmatprep.subr.bf16.mxu0 %v2947_v61  ;;  %v593_v61 = vld [vmem:[%s3769_s5 + $0x550] sm:$0xff] }
 0x131   : > { %2121 = vmatpush1.bf16.msra.mxu1 %v3066_v58  ;;  %v469_v58 = vld [vmem:[%s3769_s5 + $0x170] sm:$0xff] }
 0x132   : > { %2122 = vmatprep.subr.bf16.mxu1 %v3075_v62  ;;  %v597_v62 = vld [vmem:[%s3769_s5 + $0x570] sm:$0xff]  ;;  %v2885_v1 = vcombine.high %v465_v57, %v469_v58  ;;  %v2884_v7 = vcombine.low %v465_v57, %v469_v58 }
 0x133   : > { %2082 = vmatpush1.bf16.msra.mxu0 %v2946_v3  ;;  %v3013_v2 = vcombine.high %v593_v61, %v597_v62  ;;  %v473_v3 = vld [vmem:[%s3769_s5 + $0x190] sm:$0xff]  ;;  %v3012_v8 = vcombine.low %v593_v61, %v597_v62 }
 0x134   : > { %2083 = vmatprep.subr.bf16.mxu0 %v2955_v5  ;;  %v601_v5 = vld [vmem:[%s3769_s5 + $0x590] sm:$0xff] }
 0x135   : > { %2123 = vmatpush1.bf16.msra.mxu1 %v3074_v4  ;;  %v477_v4 = vld [vmem:[%s3769_s5 + $0x1b0] sm:$0xff] }
 0x136   : > { %2124 = vmatprep.subr.bf16.mxu1 %v3083_v6  ;;  %v605_v6 = vld [vmem:[%s3769_s5 + $0x5b0] sm:$0xff]  ;;  %v2893_v9 = vcombine.high %v473_v3, %v477_v4  ;;  %v2892_v15 = vcombine.low %v473_v3, %v477_v4 }
 0x137   : > { %2084 = vmatpush1.bf16.msra.mxu0 %v2954_v11  ;;  %v3021_v10 = vcombine.high %v601_v5, %v605_v6  ;;  %v481_v11 = vld [vmem:[%s3769_s5 + $0x1d0] sm:$0xff]  ;;  %v3020_v16 = vcombine.low %v601_v5, %v605_v6 }
 0x138   : > { %2085 = vmatprep.subr.bf16.mxu0 %v2963_v13  ;;  %v609_v13 = vld [vmem:[%s3769_s5 + $0x5d0] sm:$0xff] }
 0x139   : > { %2125 = vmatpush1.bf16.msra.mxu1 %v3082_v12  ;;  %v485_v12 = vld [vmem:[%s3769_s5 + $0x1f0] sm:$0xff] }
 0x13a   : > { %2126 = vmatprep.subr.bf16.mxu1 %v3091_v14  ;;  %v613_v14 = vld [vmem:[%s3769_s5 + $0x5f0] sm:$0xff]  ;;  %v2901_v18 = vcombine.high %v481_v11, %v485_v12  ;;  %v2900_v25 = vcombine.low %v481_v11, %v485_v12 }
 0x13b   : > { %2086 = vmatpush1.bf16.msra.mxu0 %v2962_v21  ;;  %v3029_v19 = vcombine.high %v609_v13, %v613_v14  ;;  %v489_v21 = vld [vmem:[%s3769_s5 + $0x210] sm:$0xff]  ;;  %v3028_v54 = vcombine.low %v609_v13, %v613_v14 }
 0x13c   : > { %2137 = vmatprep.subr.bf16.mxu0 %v2845_v23  ;;  %v617_v23 = vld [vmem:[%s3769_s5 + $0x610] sm:$0xff] }
 0x13d   : > { %2127 = vmatpush1.bf16.msra.mxu1 %v3090_v22  ;;  %v493_v22 = vld [vmem:[%s3769_s5 + $0x230] sm:$0xff] }
 0x13e   : > { %2178 = vmatprep.subr.bf16.mxu1 %v2973_v24  ;;  %2088 = vmatmul.mubr.bf16.vlgmr.msra.gmra.mrb[4].mxu0 %v3900_v17  ;;  %v621_v24 = vld [vmem:[%s3769_s5 + $0x630] sm:$0xff]  ;;  %v2909_v26 = vcombine.high %v489_v21, %v493_v22  ;;  %v2908_v31 = vcombine.low %v489_v21, %v493_v22 }
 0x13f   : > { %2138 = vmatpush1.bf16.msra.mxu0 %v2844_v55  ;;  %2169 = vmatprep.mubr.bf16.mxu0 %v3850_v59  ;;  %v3037_v27 = vcombine.high %v617_v23, %v621_v24  ;;  %v497_v55 = vld [vmem:[%s3769_s5 + $0x250] sm:$0xff]  ;;  %v3036_v32 = vcombine.low %v617_v23, %v621_v24 }
 0x140   : > { %2129 = vmatmul.mubr.bf16.vlgmr.msra.gmra.mrb[4].mxu1 %v3906_v20  ;;  %2139 = vmatprep.subr.bf16.mxu0 %v2853_v29  ;;  %v625_v29 = vld [vmem:[%s3769_s5 + $0x650] sm:$0xff] }
 0x141   : > { %2179 = vmatpush1.bf16.msra.mxu1 %v2972_v28  ;;  %2210 = vmatprep.mubr.bf16.mxu1 %v3854_v60  ;;  %v501_v28 = vld [vmem:[%s3769_s5 + $0x270] sm:$0xff] }
 0x142   : > { %2180 = vmatprep.subr.bf16.mxu1 %v2981_v30  ;;  %v629_v30 = vld [vmem:[%s3769_s5 + $0x670] sm:$0xff]  ;;  %v2917_v33 = vcombine.high %v497_v55, %v501_v28  ;;  %v2916_v39 = vcombine.low %v497_v55, %v501_v28 }
 0x143   : > { %2140 = vmatpush1.bf16.msra.mxu0 %v2852_v35  ;;  %v3045_v34 = vcombine.high %v625_v29, %v629_v30  ;;  %v505_v35 = vld [vmem:[%s3769_s5 + $0x290] sm:$0xff]  ;;  %v3044_v40 = vcombine.low %v625_v29, %v629_v30 }
 0x144   : > { %2141 = vmatprep.subr.bf16.mxu0 %v2861_v37  ;;  %v633_v37 = vld [vmem:[%s3769_s5 + $0x690] sm:$0xff] }
 0x145   : > { %2181 = vmatpush1.bf16.msra.mxu1 %v2980_v36  ;;  %v509_v36 = vld [vmem:[%s3769_s5 + $0x2b0] sm:$0xff] }
 0x146   : > { %2182 = vmatprep.subr.bf16.mxu1 %v2989_v38  ;;  %v637_v38 = vld [vmem:[%s3769_s5 + $0x6b0] sm:$0xff]  ;;  %v2925_v41 = vcombine.high %v505_v35, %v509_v36  ;;  %v2924_v47 = vcombine.low %v505_v35, %v509_v36 }
 0x147   : > { %2142 = vmatpush1.bf16.msra.mxu0 %v2860_v43  ;;  %v3053_v42 = vcombine.high %v633_v37, %v637_v38  ;;  %v513_v43 = vld [vmem:[%s3769_s5 + $0x2d0] sm:$0xff]  ;;  %v3052_v48 = vcombine.low %v633_v37, %v637_v38 }
 0x148   : > { %2143 = vmatprep.subr.bf16.mxu0 %v2869_v45  ;;  %v641_v45 = vld [vmem:[%s3769_s5 + $0x6d0] sm:$0xff] }
 0x149   : > { %2183 = vmatpush1.bf16.msra.mxu1 %v2988_v44  ;;  %v517_v44 = vld [vmem:[%s3769_s5 + $0x2f0] sm:$0xff] }
 0x14a   : > { %2184 = vmatprep.subr.bf16.mxu1 %v2997_v46  ;;  %v645_v46 = vld [vmem:[%s3769_s5 + $0x6f0] sm:$0xff]  ;;  %v2933_v49 = vcombine.high %v513_v43, %v517_v44  ;;  %v2932_v57 = vcombine.low %v513_v43, %v517_v44 }
 0x14b   : > { %2144 = vmatpush1.bf16.msra.mxu0 %v2868_v51  ;;  %v3061_v50 = vcombine.high %v641_v45, %v645_v46  ;;  %v521_v51 = vld [vmem:[%s3769_s5 + $0x310] sm:$0xff]  ;;  %v3060_v58 = vcombine.low %v641_v45, %v645_v46 }
 0x14c   : > { %2145 = vmatprep.subr.bf16.mxu0 %v2877_v53  ;;  %v649_v53 = vld [vmem:[%s3769_s5 + $0x710] sm:$0xff] }
 0x14d   : > { %2185 = vmatpush1.bf16.msra.mxu1 %v2996_v52  ;;  %v525_v52 = vld [vmem:[%s3769_s5 + $0x330] sm:$0xff] }
 0x14e   : > { %2186 = vmatprep.subr.bf16.mxu1 %v3005_v56  ;;  %v653_v56 = vld [vmem:[%s3769_s5 + $0x730] sm:$0xff]  ;;  %v2941_v61 = vcombine.high %v521_v51, %v525_v52  ;;  %v2940_v3 = vcombine.low %v521_v51, %v525_v52 }
 0x14f   : > { %2146 = vmatpush1.bf16.msra.mxu0 %v2876_v63  ;;  %v3069_v62 = vcombine.high %v649_v53, %v653_v56  ;;  %v529_v63 = vld [vmem:[%s3769_s5 + $0x350] sm:$0xff]  ;;  %v3068_v4 = vcombine.low %v649_v53, %v653_v56 }
 0x150   : > { %2147 = vmatprep.subr.bf16.mxu0 %v2885_v1  ;;  %v657_v1 = vld [vmem:[%s3769_s5 + $0x750] sm:$0xff] }
 0x151   : > { %2187 = vmatpush1.bf16.msra.mxu1 %v3004_v0  ;;  %v533_v0 = vld [vmem:[%s3769_s5 + $0x370] sm:$0xff] }
 0x152   : > { %2188 = vmatprep.subr.bf16.mxu1 %v3013_v2  ;;  %v661_v2 = vld [vmem:[%s3769_s5 + $0x770] sm:$0xff]  ;;  %v2949_v5 = vcombine.high %v529_v63, %v533_v0  ;;  %v2948_v11 = vcombine.low %v529_v63, %v533_v0 }
 0x153   : > { %2148 = vmatpush1.bf16.msra.mxu0 %v2884_v7  ;;  %v3077_v6 = vcombine.high %v657_v1, %v661_v2  ;;  %v537_v7 = vld [vmem:[%s3769_s5 + $0x390] sm:$0xff]  ;;  %v3076_v12 = vcombine.low %v657_v1, %v661_v2  ;;  %v466_v1 = vld [vmem:[%s3769_s5 + $0x158] sm:$0xff] }
 0x154   : > { %2149 = vmatprep.subr.bf16.mxu0 %v2893_v9  ;;  %v665_v9 = vld [vmem:[%s3769_s5 + $0x790] sm:$0xff]  ;;  %v470_v2 = vld [vmem:[%s3769_s5 + $0x178] sm:$0xff] }
 0x155   : > { %2189 = vmatpush1.bf16.msra.mxu1 %v3012_v8  ;;  %v541_v8 = vld [vmem:[%s3769_s5 + $0x3b0] sm:$0xff] }
 0x156   : > { %2190 = vmatprep.subr.bf16.mxu1 %v3021_v10  ;;  %v669_v10 = vld [vmem:[%s3769_s5 + $0x7b0] sm:$0xff]  ;;  %v2957_v13 = vcombine.high %v537_v7, %v541_v8  ;;  %v2956_v21 = vcombine.low %v537_v7, %v541_v8  ;;  %v2887_v7 = vcombine.high %v466_v1, %v470_v2 }
 0x157   : > { %2150 = vmatpush1.bf16.msra.mxu0 %v2892_v15  ;;  %v3085_v14 = vcombine.high %v665_v9, %v669_v10  ;;  %v545_v15 = vld [vmem:[%s3769_s5 + $0x3d0] sm:$0xff]  ;;  %v3084_v22 = vcombine.low %v665_v9, %v669_v10  ;;  %v474_v9 = vld [vmem:[%s3769_s5 + $0x198] sm:$0xff] }
 0x158   : > { %2151 = vmatprep.subr.bf16.mxu0 %v2901_v18  ;;  %v673_v18 = vld [vmem:[%s3769_s5 + $0x7d0] sm:$0xff]  ;;  %v478_v10 = vld [vmem:[%s3769_s5 + $0x1b8] sm:$0xff] }
 0x159   : > { %2191 = vmatpush1.bf16.msra.mxu1 %v3020_v16  ;;  %v549_v16 = vld [vmem:[%s3769_s5 + $0x3f0] sm:$0xff] }
 0x15a   : > { %2192 = vmatprep.subr.bf16.mxu1 %v3029_v19  ;;  %v677_v19 = vld [vmem:[%s3769_s5 + $0x7f0] sm:$0xff]  ;;  %v2965_v23 = vcombine.high %v545_v15, %v549_v16  ;;  %v2964_v55 = vcombine.low %v545_v15, %v549_v16  ;;  %v2895_v15 = vcombine.high %v474_v9, %v478_v10 }
 0x15b   : > { %2152 = vmatpush1.bf16.msra.mxu0 %v2900_v25  ;;  %v3093_v24 = vcombine.high %v673_v18, %v677_v19  ;;  %v426_v25 = vld [vmem:[%s3769_s5 + $0x18] sm:$0xff]  ;;  %v3092_v28 = vcombine.low %v673_v18, %v677_v19 }
 0x15c   : > { %2153 = vmatprep.subr.bf16.mxu0 %v2909_v26  ;;  %v554_v26 = vld [vmem:[%s3769_s5 + $0x418] sm:$0xff] }
 0x15d   : > { %2193 = vmatpush1.bf16.msra.mxu1 %v3028_v54  ;;  %v430_v54 = vld [vmem:[%s3769_s5 + $0x38] sm:$0xff] }
 0x15e   : > { %2194 = vmatprep.subr.bf16.mxu1 %v3037_v27  ;;  %v558_v27 = vld [vmem:[%s3769_s5 + $0x438] sm:$0xff]  ;;  %v2847_v29 = vcombine.high %v426_v25, %v430_v54  ;;  %v2846_v35 = vcombine.low %v426_v25, %v430_v54 }
 0x15f   : > { %2154 = vmatpush1.bf16.msra.mxu0 %v2908_v31  ;;  %v2975_v30 = vcombine.high %v554_v26, %v558_v27  ;;  %v434_v31 = vld [vmem:[%s3769_s5 + $0x58] sm:$0xff]  ;;  %v2974_v36 = vcombine.low %v554_v26, %v558_v27 }
 0x160   : > { %2155 = vmatprep.subr.bf16.mxu0 %v2917_v33  ;;  %v562_v33 = vld [vmem:[%s3769_s5 + $0x458] sm:$0xff] }
 0x161   : > { %2195 = vmatpush1.bf16.msra.mxu1 %v3036_v32  ;;  %v438_v32 = vld [vmem:[%s3769_s5 + $0x78] sm:$0xff] }
 0x162   : > { %2196 = vmatprep.subr.bf16.mxu1 %v3045_v34  ;;  %v566_v34 = vld [vmem:[%s3769_s5 + $0x478] sm:$0xff]  ;;  %v2855_v37 = vcombine.high %v434_v31, %v438_v32  ;;  %v2854_v43 = vcombine.low %v434_v31, %v438_v32 }
 0x163   : > { %2156 = vmatpush1.bf16.msra.mxu0 %v2916_v39  ;;  %v2983_v38 = vcombine.high %v562_v33, %v566_v34  ;;  %v442_v39 = vld [vmem:[%s3769_s5 + $0x98] sm:$0xff]  ;;  %v2982_v44 = vcombine.low %v562_v33, %v566_v34 }
 0x164   : > { %2157 = vmatprep.subr.bf16.mxu0 %v2925_v41  ;;  %v570_v41 = vld [vmem:[%s3769_s5 + $0x498] sm:$0xff] }
 0x165   : > { %2197 = vmatpush1.bf16.msra.mxu1 %v3044_v40  ;;  %v446_v40 = vld [vmem:[%s3769_s5 + $0xb8] sm:$0xff] }
 0x166   : > { %2198 = vmatprep.subr.bf16.mxu1 %v3053_v42  ;;  %v574_v42 = vld [vmem:[%s3769_s5 + $0x4b8] sm:$0xff]  ;;  %v2863_v45 = vcombine.high %v442_v39, %v446_v40  ;;  %v2862_v51 = vcombine.low %v442_v39, %v446_v40 }
 0x167   : > { %2158 = vmatpush1.bf16.msra.mxu0 %v2924_v47  ;;  %v2991_v46 = vcombine.high %v570_v41, %v574_v42  ;;  %v450_v47 = vld [vmem:[%s3769_s5 + $0xd8] sm:$0xff]  ;;  %v2990_v52 = vcombine.low %v570_v41, %v574_v42 }
 0x168   : > { %2159 = vmatprep.subr.bf16.mxu0 %v2933_v49  ;;  %v578_v49 = vld [vmem:[%s3769_s5 + $0x4d8] sm:$0xff] }
 0x169   : > { %2199 = vmatpush1.bf16.msra.mxu1 %v3052_v48  ;;  %v454_v48 = vld [vmem:[%s3769_s5 + $0xf8] sm:$0xff] }
 0x16a   : > { %2200 = vmatprep.subr.bf16.mxu1 %v3061_v50  ;;  %v582_v50 = vld [vmem:[%s3769_s5 + $0x4f8] sm:$0xff]  ;;  %v2871_v53 = vcombine.high %v450_v47, %v454_v48 }
 0x16b   : > { %2160 = vmatpush1.bf16.msra.mxu0 %v2932_v57  ;;  %v2999_v56 = vcombine.high %v578_v49, %v582_v50  ;;  %v458_v57 = vld [vmem:[%s3769_s5 + $0x118] sm:$0xff] }
 0x16c   : > { %2161 = vmatprep.subr.bf16.mxu0 %v2941_v61  ;;  %v586_v61 = vld [vmem:[%s3769_s5 + $0x518] sm:$0xff] }
 0x16d   : > { %2201 = vmatpush1.bf16.msra.mxu1 %v3060_v58  ;;  %v462_v58 = vld [vmem:[%s3769_s5 + $0x138] sm:$0xff] }
 0x16e   : > { %2202 = vmatprep.subr.bf16.mxu1 %v3069_v62  ;;  %v2870_v62 = vcombine.low %v450_v47, %v454_v48  ;;  %v2879_v63 = vcombine.high %v458_v57, %v462_v58  ;;  %v482_v18 = vld [vmem:[%s3769_s5 + $0x1d8] sm:$0xff] }
 0x16f   : > { %2162 = vmatpush1.bf16.msra.mxu0 %v2940_v3  ;;  %v594_v3 = vld [vmem:[%s3769_s5 + $0x558] sm:$0xff] }
 0x170   : > { %2163 = vmatprep.subr.bf16.mxu0 %v2949_v5  ;;  %v2878_v5 = vcombine.low %v458_v57, %v462_v58  ;;  %v486_v19 = vld [vmem:[%s3769_s5 + $0x1f8] sm:$0xff] }
 0x171   : > { %2203 = vmatpush1.bf16.msra.mxu1 %v3068_v4  ;;  %v598_v4 = vld [vmem:[%s3769_s5 + $0x578] sm:$0xff]  ;;  %v2903_v25 = vcombine.high %v482_v18, %v486_v19 }
 0x172   : > { %2204 = vmatprep.subr.bf16.mxu1 %v3077_v6  ;;  %v3015_v8 = vcombine.high %v594_v3, %v598_v4  ;;  %v490_v26 = vld [vmem:[%s3769_s5 + $0x218] sm:$0xff] }
 0x173   : > { %2164 = vmatpush1.bf16.msra.mxu0 %v2948_v11  ;;  %v602_v11 = vld [vmem:[%s3769_s5 + $0x598] sm:$0xff] }
 0x174   : > { %2165 = vmatprep.subr.bf16.mxu0 %v2957_v13  ;;  %v2886_v13 = vcombine.low %v466_v1, %v470_v2  ;;  %v494_v27 = vld [vmem:[%s3769_s5 + $0x238] sm:$0xff] }
 0x175   : > { %2205 = vmatpush1.bf16.msra.mxu1 %v3076_v12  ;;  %v606_v12 = vld [vmem:[%s3769_s5 + $0x5b8] sm:$0xff]  ;;  %v2911_v31 = vcombine.high %v490_v26, %v494_v27 }
 0x176   : > { %2206 = vmatprep.subr.bf16.mxu1 %v3085_v14  ;;  %v3014_v14 = vcombine.low %v594_v3, %v598_v4  ;;  %v3023_v16 = vcombine.high %v602_v11, %v606_v12  ;;  %v498_v33 = vld [vmem:[%s3769_s5 + $0x258] sm:$0xff] }
 0x177   : > { %2166 = vmatpush1.bf16.msra.mxu0 %v2956_v21  ;;  %v610_v21 = vld [vmem:[%s3769_s5 + $0x5d8] sm:$0xff] }
 0x178   : > { %2167 = vmatprep.subr.bf16.mxu0 %v2965_v23  ;;  %v2894_v23 = vcombine.low %v474_v9, %v478_v10  ;;  %v502_v34 = vld [vmem:[%s3769_s5 + $0x278] sm:$0xff] }
 0x179   : > { %2207 = vmatpush1.bf16.msra.mxu1 %v3084_v22  ;;  %v614_v22 = vld [vmem:[%s3769_s5 + $0x5f8] sm:$0xff]  ;;  %v2919_v39 = vcombine.high %v498_v33, %v502_v34 }
 0x17a   : > { %2208 = vmatprep.subr.bf16.mxu1 %v3093_v24  ;;  %v3022_v24 = vcombine.low %v602_v11, %v606_v12  ;;  %v3031_v54 = vcombine.high %v610_v21, %v614_v22  ;;  %v506_v41 = vld [vmem:[%s3769_s5 + $0x298] sm:$0xff] }
 0x17b   : > { %2168 = vmatpush1.bf16.msra.mxu0 %v2964_v55  ;;  %v618_v55 = vld [vmem:[%s3769_s5 + $0x618] sm:$0xff] }
 0x17c   : > { %2219 = vmatprep.subr.bf16.mxu0 %v2847_v29  ;;  %v2902_v29 = vcombine.low %v482_v18, %v486_v19  ;;  %v510_v42 = vld [vmem:[%s3769_s5 + $0x2b8] sm:$0xff] }
 0x17d   : > { %2209 = vmatpush1.bf16.msra.mxu1 %v3092_v28  ;;  %v622_v28 = vld [vmem:[%s3769_s5 + $0x638] sm:$0xff]  ;;  %v2927_v47 = vcombine.high %v506_v41, %v510_v42 }
 0x17e   : > { %2260 = vmatprep.subr.bf16.mxu1 %v2975_v30  ;;  %2170 = vmatmul.mubr.bf16.vlgmr.msra.gmra.mrb[8].mxu0 %v3900_v17  ;;  %v3030_v30 = vcombine.low %v610_v21, %v614_v22  ;;  %v3039_v32 = vcombine.high %v618_v55, %v622_v28  ;;  %v530_v3 = vld [vmem:[%s3769_s5 + $0x358] sm:$0xff] }
 0x17f   : > { %2220 = vmatpush1.bf16.msra.mxu0 %v2846_v35  ;;  %2251 = vmatprep.mubr.bf16.mxu0 %v3850_v59  ;;  %v590_v59 = vld [vmem:[%s3769_s5 + $0x538] sm:$0xff] }
 0x180   : > { %2211 = vmatmul.mubr.bf16.vlgmr.msra.gmra.mrb[8].mxu1 %v3906_v20  ;;  %2221 = vmatprep.subr.bf16.mxu0 %v2855_v37  ;;  %v3007_v0 = vcombine.high %v586_v61, %v590_v59  ;;  %v3006_v6 = vcombine.low %v586_v61, %v590_v59  ;;  %v626_v35 = vld [vmem:[%s3769_s5 + $0x658] sm:$0xff]  ;;  %v2910_v37 = vcombine.low %v490_v26, %v494_v27 }
 0x181   : > { %2261 = vmatpush1.bf16.msra.mxu1 %v2974_v36  ;;  %2292 = vmatprep.mubr.bf16.mxu1 %v3854_v60  ;;  %v2998_v60 = vcombine.low %v578_v49, %v582_v50  ;;  %v630_v36 = vld [vmem:[%s3769_s5 + $0x678] sm:$0xff] }
 0x182   : > { %2262 = vmatprep.subr.bf16.mxu1 %v2983_v38  ;;  %v3038_v38 = vcombine.low %v618_v55, %v622_v28  ;;  %v3047_v40 = vcombine.high %v626_v35, %v630_v36  ;;  %v514_v49 = vld [vmem:[%s3769_s5 + $0x2d8] sm:$0xff] }
 0x183   : > { %2222 = vmatpush1.bf16.msra.mxu0 %v2854_v43  ;;  %v634_v43 = vld [vmem:[%s3769_s5 + $0x698] sm:$0xff] }
 0x184   : > { %2223 = vmatprep.subr.bf16.mxu0 %v2863_v45  ;;  %v2918_v45 = vcombine.low %v498_v33, %v502_v34  ;;  %v518_v50 = vld [vmem:[%s3769_s5 + $0x2f8] sm:$0xff]  ;;  %v414_v34 = vld [vmem:[%s3801_s8 + $0x8] sm:$0xff] }
 0x185   : > { %2263 = vmatpush1.bf16.msra.mxu1 %v2982_v44  ;;  %v638_v44 = vld [vmem:[%s3769_s5 + $0x6b8] sm:$0xff]  ;;  %v2935_v57 = vcombine.high %v514_v49, %v518_v50 }
 0x186   : > { %2264 = vmatprep.subr.bf16.mxu1 %v2991_v46  ;;  %v3046_v46 = vcombine.low %v626_v35, %v630_v36  ;;  %v3055_v48 = vcombine.high %v634_v43, %v638_v44  ;;  %v522_v61 = vld [vmem:[%s3769_s5 + $0x318] sm:$0xff] }
 0x187   : > { %2224 = vmatpush1.bf16.msra.mxu0 %v2862_v51  ;;  %v642_v51 = vld [vmem:[%s3769_s5 + $0x6d8] sm:$0xff] }
 0x188   : > { %2225 = vmatprep.subr.bf16.mxu0 %v2871_v53  ;;  %v2926_v53 = vcombine.low %v506_v41, %v510_v42  ;;  %v526_v59 = vld [vmem:[%s3769_s5 + $0x338] sm:$0xff]  ;;  %v415_v42 = vld [vmem:[%s3801_s8 + $0x10] sm:$0xff] }
 0x189   : > { %2265 = vmatpush1.bf16.msra.mxu1 %v2990_v52  ;;  %v646_v52 = vld [vmem:[%s3769_s5 + $0x6f8] sm:$0xff]  ;;  %v2943_v1 = vcombine.high %v522_v61, %v526_v59 }
 0x18a   : > { %2266 = vmatprep.subr.bf16.mxu1 %v2999_v56  ;;  %v3054_v56 = vcombine.low %v634_v43, %v638_v44  ;;  %v3063_v58 = vcombine.high %v642_v51, %v646_v52  ;;  %v534_v4 = vld [vmem:[%s3769_s5 + $0x378] sm:$0xff] }
 0x18b   : > { %2226 = vmatpush1.bf16.msra.mxu0 %v2870_v62  ;;  %v650_v62 = vld [vmem:[%s3769_s5 + $0x718] sm:$0xff]  ;;  %v2951_v9 = vcombine.high %v530_v3, %v534_v4 }
 0x18c   : > { %2227 = vmatprep.subr.bf16.mxu0 %v2879_v63  ;;  %v2934_v63 = vcombine.low %v514_v49, %v518_v50  ;;  %v538_v11 = vld [vmem:[%s3769_s5 + $0x398] sm:$0xff] }
 0x18d   : > { %2267 = vmatpush1.bf16.msra.mxu1 %v2998_v60  ;;  %v654_v60 = vld [vmem:[%s3769_s5 + $0x738] sm:$0xff] }
 0x18e   : > { %2268 = vmatprep.subr.bf16.mxu1 %v3007_v0  ;;  %v3062_v0 = vcombine.low %v642_v51, %v646_v52  ;;  %v3071_v2 = vcombine.high %v650_v62, %v654_v60  ;;  %v542_v12 = vld [vmem:[%s3769_s5 + $0x3b8] sm:$0xff] }
 0x18f   : > { %2228 = vmatpush1.bf16.msra.mxu0 %v2878_v5  ;;  %v658_v5 = vld [vmem:[%s3769_s5 + $0x758] sm:$0xff]  ;;  %v2959_v18 = vcombine.high %v538_v11, %v542_v12 }
 0x190   : > { %2229 = vmatprep.subr.bf16.mxu0 %v2887_v7  ;;  %v2942_v7 = vcombine.low %v522_v61, %v526_v59  ;;  %v546_v21 = vld [vmem:[%s3769_s5 + $0x3d8] sm:$0xff] }
 0x191   : > { %2269 = vmatpush1.bf16.msra.mxu1 %v3006_v6  ;;  %v662_v6 = vld [vmem:[%s3769_s5 + $0x778] sm:$0xff] }
 0x192   : > { %2270 = vmatprep.subr.bf16.mxu1 %v3015_v8  ;;  %v3070_v8 = vcombine.low %v650_v62, %v654_v60  ;;  %v3079_v10 = vcombine.high %v658_v5, %v662_v6  ;;  %v550_v22 = vld [vmem:[%s3769_s5 + $0x3f8] sm:$0xff]  ;;  %v418_v60 = vld [vmem:[%s3801_s8 + $0x28] sm:$0xff] }
 0x193   : > { %2230 = vmatpush1.bf16.msra.mxu0 %v2886_v13  ;;  %v666_v13 = vld [vmem:[%s3769_s5 + $0x798] sm:$0xff]  ;;  %v2967_v26 = vcombine.high %v546_v21, %v550_v22  ;;  %v2966_v55 = vcombine.low %v546_v21, %v550_v22 }
 0x194   : > { %2231 = vmatprep.subr.bf16.mxu0 %v2895_v15  ;;  %v2950_v15 = vcombine.low %v530_v3, %v534_v4 }
 0x195   : > { %2271 = vmatpush1.bf16.msra.mxu1 %v3014_v14  ;;  %v670_v14 = vld [vmem:[%s3769_s5 + $0x7b8] sm:$0xff] }
 0x196   : > { %2272 = vmatprep.subr.bf16.mxu1 %v3023_v16  ;;  %v3078_v16 = vcombine.low %v658_v5, %v662_v6  ;;  %v3087_v19 = vcombine.high %v666_v13, %v670_v14 }
 0x197   : > { %2232 = vmatpush1.bf16.msra.mxu0 %v2894_v23  ;;  %v674_v23 = vld [vmem:[%s3769_s5 + $0x7d8] sm:$0xff] }
 0x198   : > { %2233 = vmatprep.subr.bf16.mxu0 %v2903_v25  ;;  %v2958_v25 = vcombine.low %v538_v11, %v542_v12  ;;  %v420_v12 = vld [vmem:[%s3801_s8 + $0x38] sm:$0xff] }
 0x199   : > { %2273 = vmatpush1.bf16.msra.mxu1 %v3022_v24  ;;  %v678_v24 = vld [vmem:[%s3769_s5 + $0x7f8] sm:$0xff]  ;;  %s4359_s5 = sld [smem:[#allocation12_spill]] }
 0x19a   : > { %2274 = vmatprep.subr.bf16.mxu1 %v3031_v54  ;;  %v3086_v54 = vcombine.low %v666_v13, %v670_v14  ;;  %v3095_v27 = vcombine.high %v674_v23, %v678_v24  ;;  %v3094_v28 = vcombine.low %v674_v23, %v678_v24 }
 0x19b   : > { %2234 = vmatpush1.bf16.msra.mxu0 %v2902_v29 }
 0x19c   : > { %2235 = vmatprep.subr.bf16.mxu0 %v2911_v31 }
 0x19d   : > { %2275 = vmatpush1.bf16.msra.mxu1 %v3030_v30  ;;  %v413_v30 = vld [vmem:[%s3801_s8] sm:$0xff] }
 0x19e   : > { %2276 = vmatprep.subr.bf16.mxu1 %v3039_v32 }
 0x19f   : > { %2236 = vmatpush1.bf16.msra.mxu0 %v2910_v37  ;;  %p3096_p10 = scmp.ne.s32.totalorder %s4359_s5, 1 }
 0x1a0   : > { %2237 = vmatprep.subr.bf16.mxu0 %v2919_v39  ;;  %v2331_v23 = vlaneseq (!%p3096_p10) }
 0x1a1   : > { %2277 = vmatpush1.bf16.msra.mxu1 %v3038_v38 }
 0x1a2   : > { %2278 = vmatprep.subr.bf16.mxu1 %v3047_v40  ;;  %v2332_v24 = vshrl.u32 (!%p3096_p10), %v2331_v23, 7 }
 0x1a3   : > { %2238 = vmatpush1.bf16.msra.mxu0 %v2918_v45 }
 0x1a4   : > { %2239 = vmatprep.subr.bf16.mxu0 %v2927_v47 }
 0x1a5   : > { %2279 = vmatpush1.bf16.msra.mxu1 %v3046_v46  ;;  %v416_v46 = vld [vmem:[%s3801_s8 + $0x18] sm:$0xff] }
 0x1a6   : > { %2280 = vmatprep.subr.bf16.mxu1 %v3055_v48 }
 0x1a7   : > { %2240 = vmatpush1.bf16.msra.mxu0 %v2926_v53 }
 0x1a8   : > { %2241 = vmatprep.subr.bf16.mxu0 %v2935_v57 }
 0x1a9   : > { %2281 = vmatpush1.bf16.msra.mxu1 %v3054_v56 }
 0x1aa   : > { %2282 = vmatprep.subr.bf16.mxu1 %v3063_v58  ;;  %v417_v58 = vld [vmem:[%s3801_s8 + $0x20] sm:$0xff] }
 0x1ab   : > { %2242 = vmatpush1.bf16.msra.mxu0 %v2934_v63 }
 0x1ac   : > { %2243 = vmatprep.subr.bf16.mxu0 %v2943_v1 }
 0x1ad   : > { %2283 = vmatpush1.bf16.msra.mxu1 %v3062_v0 }
 0x1ae   : > { %2284 = vmatprep.subr.bf16.mxu1 %v3071_v2 }
 0x1af   : > { %2244 = vmatpush1.bf16.msra.mxu0 %v2942_v7 }
 0x1b0   : > { %2245 = vmatprep.subr.bf16.mxu0 %v2951_v9 }
 0x1b1   : > { %2285 = vmatpush1.bf16.msra.mxu1 %v3070_v8  ;;  %v419_v8 = vld [vmem:[%s3801_s8 + $0x30] sm:$0xff] }
 0x1b2   : > { %2286 = vmatprep.subr.bf16.mxu1 %v3079_v10 }
 0x1b3   : > { %2246 = vmatpush1.bf16.msra.mxu0 %v2950_v15 }
 0x1b4   : > { %2247 = vmatprep.subr.bf16.mxu0 %v2959_v18 }
 0x1b5   : > { %2287 = vmatpush1.bf16.msra.mxu1 %v3078_v16 }
 0x1b6   : > { %2288 = vmatprep.subr.bf16.mxu1 %v3087_v19 }
 0x1b7   : > { %2248 = vmatpush1.bf16.msra.mxu0 %v2958_v25  ;;  %v4125_v25 = vld [vmem:[%s319_s6] sm:$0xff] (!%p3096_p10) }
 0x1b8   : > { %2249 = vmatprep.subr.bf16.mxu0 %v2967_v26  ;;  %v4129_v26 = vsub.s32 (!%p3096_p10), 1, %v2332_v24 }
 0x1b9   : > { %2289 = vmatpush1.bf16.msra.mxu1 %v3086_v54  ;;  %v4127_v54 = vsub.s32 (!%p3096_p10), 0, %v2332_v24 }
 0x1ba   : > { %2290 = vmatprep.subr.bf16.mxu1 %v3095_v27  ;;  %v4131_v27 = vsub.s32 (!%p3096_p10), 2, %v2332_v24 }
 0x1bb   : > { %2250 = vmatpush1.bf16.msra.mxu0 %v2966_v55  ;;  %v4133_v55 = vsub.s32 (!%p3096_p10), 3, %v2332_v24 }
 0x1bd   : > { %2291 = vmatpush1.bf16.msra.mxu1 %v3094_v28 }
 0x1be   : > { %2252 = vmatmul.mubr.bf16.vlgmr.msra.gmra.mrb[12].mxu0 %v3900_v17 }
 0x1c0   : > { %2293 = vmatmul.mubr.bf16.vlgmr.msra.gmra.mrb[12].mxu1 %v3906_v20 }
 0x1d1   : > { %v2007_v29 = vpop.f32.mrb[0].mxu0 }
 0x1d2   : > { %v2009_v32 = vpop.f32.mrb[1].mxu0 }
 0x1d3   : > { %v2048_v31 = vpop.f32.mrb[0].mxu1  ;;  %v2011_v36 = vpop.f32.mrb[2].mxu0 }
 0x1d4   : > { %v2049_v33 = vadd.f32 %v2048_v31, %v2007_v29  ;;  %v2050_v35 = vpop.f32.mrb[1].mxu1  ;;  %v2012_v39 = vpop.f32.mrb[3].mxu0  ;;  %v2334_v31 = vrot.slane (!%p3096_p10), %v4125_v25, %v4127_v54  ;;  %v4147_v36 = vsub.s32 (!%p3096_p10), 5, %v2332_v24 }
 0x1d5   : > { %v2051_v37 = vadd.f32 %v2050_v35, %v2009_v32  ;;  %v2052_v38 = vpop.f32.mrb[2].mxu1  ;;  %v2338_v32 = vrot.slane (!%p3096_p10), %v4125_v25, %v4129_v26  ;;  %v2346_v39 = vrot.slane (!%p3096_p10), %v4125_v25, %v4133_v55 }
 0x1d6   : > { %v2301_v40 = vadd.f32 %v2049_v33, %v413_v30  ;;  %v2053_v41 = vpop.f32.mrb[3].mxu1  ;;  %v4137_v30 = vsub.s32 (!%p3096_p10), 4, %v2332_v24 }
 0x1d7   : > { %v2302_v17 = vadd.f32 %v2051_v37, %v414_v34  ;;  %v2342_v34 = vrot.slane (!%p3096_p10), %v4125_v25, %v4131_v27 }
 0x1d8   : > { %2309 = vst [vmem:[%s3801_s8] sm:$0xff] %v2301_v40 }
 0x1d9   : > { %2310 = vst [vmem:[%s3801_s8 + $0x8] sm:$0xff] %v2302_v17  ;;  %v2350_v17 = vrot.slane (!%p3096_p10), %v4125_v25, %v4137_v30 }
 0x1df   : > { %v2321_v28 = vld [vmem:[%s3801_s8] sm:$0xff] (!%p3096_p10) }
 0x1e0   : > { %v2322_v29 = vld [vmem:[%s3801_s8 + $0x8] sm:$0xff] (!%p3096_p10)  ;;  %v2371_v37 = vadd.f32 (!%p3096_p10), %v2334_v31, %v2321_v28 }
 0x1e1   : > { %v2372_v38 = vadd.f32 (!%p3096_p10), %v2338_v32, %v2322_v29 }
 0x211   : > { %v2089_v20 = vpop.f32.mrb[4].mxu0 }
 0x212   : > { %v2091_v44 = vpop.f32.mrb[5].mxu0 }
 0x213   : > { %v2130_v43 = vpop.f32.mrb[4].mxu1  ;;  %v2093_v48 = vpop.f32.mrb[6].mxu0 }
 0x214   : > { %v2131_v45 = vadd.f32 %v2130_v43, %v2089_v20  ;;  %v2132_v47 = vpop.f32.mrb[5].mxu1  ;;  %v2094_v51 = vpop.f32.mrb[7].mxu0  ;;  %v2379_v20 = vrot.slane (!%p3096_p10), %v2371_v37, 4  ;;  %v2354_v48 = vrot.slane (!%p3096_p10), %v4125_v25, %v4147_v36 }
 0x215   : > { %v2133_v49 = vadd.f32 %v2132_v47, %v2091_v44  ;;  %v2134_v50 = vpop.f32.mrb[6].mxu1 }
 0x216   : > { %v2303_v52 = vadd.f32 %v2131_v45, %v415_v42  ;;  %v2135_v53 = vpop.f32.mrb[7].mxu1  ;;  %v2385_v42 = vrot.slane (!%p3096_p10), %v2372_v38, 4  ;;  %v4157_v45 = vsub.s32 (!%p3096_p10), 6, %v2332_v24 }
 0x217   : > { %v2304_v56 = vadd.f32 %v2133_v49, %v416_v46  ;;  %v2380_v49 = vadd.f32 (!%p3096_p10), %v2379_v20, %v2371_v37 }
 0x218   : > { %2311 = vst [vmem:[%s3801_s8 + $0x10] sm:$0xff] %v2303_v52  ;;  %v2386_v50 = vadd.f32 (!%p3096_p10), %v2385_v42, %v2372_v38 }
 0x219   : > { %2312 = vst [vmem:[%s3801_s8 + $0x18] sm:$0xff] %v2304_v56 }
 0x21f   : > { %v2323_v33 = vld [vmem:[%s3801_s8 + $0x10] sm:$0xff] (!%p3096_p10) }
 0x220   : > { %v2324_v35 = vld [vmem:[%s3801_s8 + $0x18] sm:$0xff] (!%p3096_p10)  ;;  %v2373_v41 = vadd.f32 (!%p3096_p10), %v2342_v34, %v2323_v33 }
 0x221   : > { %v4154_v43 = vadd.f32 (!%p3096_p10), %v2346_v39, %v2324_v35 }
 0x222   : > { %v2391_v46 = vrot.slane (!%p3096_p10), %v2373_v41, 4 }
 0x223   : > { %v2397_v51 = vrot.slane (!%p3096_p10), %v4154_v43, 4 }
 0x224   : > { %v2392_v52 = vadd.f32 (!%p3096_p10), %v2391_v46, %v2373_v41 }
 0x251   : > { %v2171_v57 = vpop.f32.mrb[8].mxu0 }
 0x252   : > { %v2173_v59 = vpop.f32.mrb[9].mxu0 }
 0x253   : > { %v2212_v61 = vpop.f32.mrb[8].mxu1  ;;  %v2175_v0 = vpop.f32.mrb[10].mxu0 }
 0x254   : > { %v2213_v62 = vadd.f32 %v2212_v61, %v2171_v57  ;;  %v2214_v63 = vpop.f32.mrb[9].mxu1  ;;  %v2176_v3 = vpop.f32.mrb[11].mxu0  ;;  %v2387_v61 = vrot.slane (!%p3096_p10), %v2386_v50, 2 }
 0x255   : > { %v2215_v1 = vadd.f32 %v2214_v63, %v2173_v59  ;;  %v2216_v2 = vpop.f32.mrb[10].mxu1  ;;  %v2398_v59 = vadd.f32 (!%p3096_p10), %v2397_v51, %v4154_v43 }
 0x256   : > { %v2305_v4 = vadd.f32 %v2213_v62, %v417_v58  ;;  %v2217_v5 = vpop.f32.mrb[11].mxu1  ;;  %v2381_v58 = vrot.slane (!%p3096_p10), %v2380_v49, 2  ;;  %v2358_v62 = vrot.slane (!%p3096_p10), %v4125_v25, %v4157_v45  ;;  %v2388_v3 = vadd.f32 (!%p3096_p10), %v2387_v61, %v2386_v50 }
 0x257   : > { %v2306_v6 = vadd.f32 %v2215_v1, %v418_v60  ;;  %v2393_v60 = vrot.slane (!%p3096_p10), %v2392_v52, 2  ;;  %v4169_v1 = vsub.s32 (!%p3096_p10), 7, %v2332_v24 }
 0x258   : > { %2313 = vst [vmem:[%s3801_s8 + $0x20] sm:$0xff] %v2305_v4  ;;  %v2382_v2 = vadd.f32 (!%p3096_p10), %v2381_v58, %v2380_v49  ;;  %v2399_v4 = vrot.slane (!%p3096_p10), %v2398_v59, 2 }
 0x259   : > { %2314 = vst [vmem:[%s3801_s8 + $0x28] sm:$0xff] %v2306_v6  ;;  %v2394_v6 = vadd.f32 (!%p3096_p10), %v2393_v60, %v2392_v52 }
 0x25f   : > { %v2325_v40 = vld [vmem:[%s3801_s8 + $0x20] sm:$0xff] (!%p3096_p10) }
 0x260   : > { %v2326_v44 = vld [vmem:[%s3801_s8 + $0x28] sm:$0xff] (!%p3096_p10)  ;;  %v2375_v47 = vadd.f32 (!%p3096_p10), %v2350_v17, %v2325_v40 }
 0x261   : > { %v4162_v56 = vadd.f32 (!%p3096_p10), %v2354_v48, %v2326_v44 }
 0x262   : > { %v2403_v53 = vrot.slane (!%p3096_p10), %v2375_v47, 4 }
 0x263   : > { %v2409_v0 = vrot.slane (!%p3096_p10), %v4162_v56, 4 }
 0x264   : > { %v2404_v63 = vadd.f32 (!%p3096_p10), %v2403_v53, %v2375_v47 }
 0x291   : > { %v2253_v7 = vpop.f32.mrb[12].mxu0 }
 0x292   : > { %v2255_v10 = vpop.f32.mrb[13].mxu0 }
 0x293   : > { %v2294_v9 = vpop.f32.mrb[12].mxu1  ;;  %v2257_v14 = vpop.f32.mrb[14].mxu0  ;;  %2320 = sbr.rel (%p3096_p10) target bundleno = 729 (0x2d9), region = 64 }
 0x294   : > { %v2295_v11 = vadd.f32 %v2294_v9, %v2253_v7  ;;  %v2296_v13 = vpop.f32.mrb[13].mxu1  ;;  %v2258_v18 = vpop.f32.mrb[15].mxu0  ;;  %v2405_v7 = vrot.slane (!%p3096_p10), %v2404_v63, 2  ;;  %v2383_v9 = vrot.slane (!%p3096_p10), %v2382_v2, 1  ;;  %v2395_v14 = vrot.slane (!%p3096_p10), %v2394_v6, 1 }
 0x295   : > { %v2297_v15 = vadd.f32 %v2296_v13, %v2255_v10  ;;  %v2298_v16 = vpop.f32.mrb[14].mxu1  ;;  %v2389_v10 = vrot.slane (!%p3096_p10), %v2388_v3, 1  ;;  %v2362_v18 = vrot.slane (!%p3096_p10), %v4125_v25, %v4169_v1 }
 0x296   : > { %v2307_v19 = vadd.f32 %v2295_v11, %v419_v8  ;;  %v2299_v21 = vpop.f32.mrb[15].mxu1  ;;  %v2410_v8 = vadd.f32 (!%p3096_p10), %v2409_v0, %v4162_v56  ;;  %v2400_v11 = vadd.f32 (!%p3096_p10), %v2399_v4, %v2398_v59  ;;  %v2396_v24 = vadd.f32 (!%p3096_p10), %v2395_v14, %v2394_v6 }
 0x297   : > { %v2308_v22 = vadd.f32 %v2297_v15, %v420_v12  ;;  %v2406_v15 = vadd.f32 (!%p3096_p10), %v2405_v7, %v2404_v63  ;;  %v2390_v21 = vadd.f32 (!%p3096_p10), %v2389_v10, %v2388_v3 }
 0x298   : > { %2315 = vst [vmem:[%s3801_s8 + $0x30] sm:$0xff] %v2307_v19  ;;  %v2411_v16 = vrot.slane (!%p3096_p10), %v2410_v8, 2  ;;  %v2384_v19 = vadd.f32 (!%p3096_p10), %v2383_v9, %v2382_v2  ;;  %v2430_v39 = vmul.f32 (!%p3096_p10), 0.125, %v2396_v24 }
 0x299   : > { %2316 = vst [vmem:[%s3801_s8 + $0x38] sm:$0xff] %v2308_v22  ;;  %v2401_v22 = vrot.slane (!%p3096_p10), %v2400_v11, 1  ;;  %v2407_v28 = vrot.slane (!%p3096_p10), %v2406_v15, 1  ;;  %v2429_v33 = vmul.f32 (!%p3096_p10), 0.125, %v2390_v21 }
 0x29a   : > { %v2412_v29 = vadd.f32 %v2411_v16, %v2410_v8  ;;  %v2428_v32 = vmul.f32 0.125, %v2384_v19  ;;  %v4186_v48 = vsub.f32 %v2373_v41, %v2430_v39 }
 0x29b   : > { %v2402_v34 = vadd.f32 %v2401_v22, %v2400_v11  ;;  %v2408_v40 = vadd.f32 %v2407_v28, %v2406_v15  ;;  %v4184_v42 = vsub.f32 %v2372_v38, %v2429_v33 }
 0x29c   : > { %v2413_v17 = vrot.slane %v2412_v29, 1  ;;  %v4182_v25 = vsub.f32 %v2371_v37, %v2428_v32  ;;  %v2446_v38 = vmul.f32 %v4186_v48, %v4186_v48 }
 0x29d   : > { %v2431_v44 = vmul.f32 0.125, %v2402_v34  ;;  %v2432_v49 = vmul.f32 0.125, %v2408_v40  ;;  %v2445_v53 = vmul.f32 %v4184_v42, %v4184_v42 }
 0x29e   : > { %v2414_v50 = vadd.f32 %v2413_v17, %v2412_v29  ;;  %v2444_v52 = vmul.f32 %v4182_v25, %v4182_v25  ;;  %v2464_v0 = vrot.slane %v2446_v38, 4 }
 0x29f   : > { %v2327_v57 = vld [vmem:[%s3801_s8 + $0x30] sm:$0xff]  ;;  %v4198_v58 = vsub.f32 %v2375_v47, %v2432_v49 }
 0x2a0   : > { %v4171_v5 = vadd.f32 %v2358_v62, %v2327_v57  ;;  %v2328_v13 = vld [vmem:[%s3801_s8 + $0x38] sm:$0xff]  ;;  %v4194_v57 = vsub.f32 %v4154_v43, %v2431_v44  ;;  %v2433_v41 = vmul.f32 0.125, %v2414_v50  ;;  %v2452_v59 = vrot.slane %v2444_v52, 4 }
 0x2a1   : > { %v4179_v31 = vadd.f32 %v2362_v18, %v2328_v13  ;;  %v2458_v62 = vrot.slane %v2445_v53, 4  ;;  %v2448_v2 = vmul.f32 %v4198_v58, %v4198_v58  ;;  %v2465_v8 = vadd.f32 %v2464_v0, %v2446_v38 }
 0x2a2   : > { %v2415_v12 = vrot.slane %v4171_v5, 4  ;;  %v2447_v60 = vmul.f32 %v4194_v57, %v4194_v57  ;;  %v4205_v43 = vsub.f32 %v4162_v56, %v2433_v41  ;;  %v2453_v4 = vadd.f32 %v2452_v59, %v2444_v52 }
 0x2a3   : > { %v2421_v20 = vrot.slane %v4179_v31, 4  ;;  %v2459_v6 = vadd.f32 %v2458_v62, %v2445_v53  ;;  %v2476_v9 = vrot.slane %v2448_v2, 4  ;;  %v2466_v16 = vrot.slane %v2465_v8, 2 }
 0x2a4   : > { %v2416_v23 = vadd.f32 %v2415_v12, %v4171_v5  ;;  %v2470_v47 = vrot.slane %v2447_v60, 4  ;;  %v2449_v10 = vmul.f32 %v4205_v43, %v4205_v43  ;;  %v2454_v12 = vrot.slane %v2453_v4, 2 }
 0x2a5   : > { %v2422_v51 = vadd.f32 %v2421_v20, %v4179_v31  ;;  %v2460_v13 = vrot.slane %v2459_v6, 2  ;;  %v2477_v56 = vadd.f32 %v2476_v9, %v2448_v2  ;;  %v2467_v28 = vadd.f32 %v2466_v16, %v2465_v8 }
 0x2a6   : > { %v2417_v35 = vrot.slane %v2416_v23, 2  ;;  %v2471_v14 = vadd.f32 %v2470_v47, %v2447_v60  ;;  %v2482_v18 = vrot.slane %v2449_v10, 4  ;;  %v2455_v21 = vadd.f32 %v2454_v12, %v2453_v4 }
 0x2a7   : > { %v2423_v61 = vrot.slane %v2422_v51, 2  ;;  %v2461_v22 = vadd.f32 %v2460_v13, %v2459_v6  ;;  %v2478_v29 = vrot.slane %v2477_v56, 2 }
 0x2a8   : > { %v2418_v46 = vadd.f32 %v2417_v35, %v2416_v23  ;;  %v2472_v23 = vrot.slane %v2471_v14, 2  ;;  %v2483_v32 = vadd.f32 %v2482_v18, %v2449_v10  ;;  %v2456_v34 = vrot.slane %v2455_v21, 1 }
 0x2a9   : > { %v2424_v3 = vadd.f32 %v2423_v61, %v2422_v51  ;;  %v2462_v35 = vrot.slane %v2461_v22, 1  ;;  %v2479_v17 = vadd.f32 %v2478_v29, %v2477_v56 }
 0x2aa   : > { %v2419_v37 = vrot.slane %v2418_v46, 1  ;;  %v2473_v39 = vadd.f32 %v2472_v23, %v2471_v14  ;;  %v2484_v20 = vrot.slane %v2483_v32, 2 }
 0x2ab   : > { %v2425_v11 = vrot.slane %v2424_v3, 1  ;;  %v2463_v49 = vadd.f32 %v2462_v35, %v2461_v22  ;;  %v2480_v53 = vrot.slane %v2479_v17, 1  ;;  %v4221_v22 = vld [vmem:[%s328_s11] sm:$0xff] }
 0x2ac   : > { %v2420_v63 = vadd.f32 %v2419_v37, %v2418_v46  ;;  %v2457_v46 = vadd.f32 %v2456_v34, %v2455_v21  ;;  %v2474_v50 = vrot.slane %v2473_v39, 1  ;;  %v2485_v37 = vadd.f32 %v2484_v20, %v2483_v32 }
 0x2ad   : > { %v2426_v19 = vadd.f32 %v2425_v11, %v2424_v3  ;;  %v2501_v61 = vmul.f32 0.125, %v2463_v49  ;;  %v2537_v29 = vrot.slane %v4221_v22, %v4127_v54  ;;  %v2541_v34 = vrot.slane %v4221_v22, %v4129_v26 }
 0x2ae   : > { %v2434_v7 = vmul.f32 0.125, %v2420_v63  ;;  %v2500_v41 = vmul.f32 0.125, %v2457_v46  ;;  %v2475_v59 = vadd.f32 %v2474_v50, %v2473_v39  ;;  %v2481_v63 = vadd.f32 %v2480_v53, %v2479_v17 }
 0x2af   : > { %v2435_v33 = vmul.f32 0.125, %v2426_v19  ;;  %v2486_v0 = vrot.slane %v2485_v37, 1  ;;  %v2509_v3 = vadd.f32 1e-05, %v2501_v61  ;;  %v2553_v53 = vrot.slane %v4221_v22, %v4137_v30 }
 0x2b0   : > { %v4210_v15 = vsub.f32 %v4171_v5, %v2434_v7  ;;  %v2468_v5 = vrot.slane %v2467_v28, 1  ;;  %v2503_v4 = vmul.f32 0.125, %v2475_v59  ;;  %v2504_v7 = vmul.f32 0.125, %v2481_v63 }
 0x2b1   : > { %v4215_v44 = vsub.f32 %v4179_v31, %v2435_v33  ;;  %v2508_v31 = vadd.f32 1e-05, %v2500_v41  ;;  %v2487_v8 = vadd.f32 %v2486_v0, %v2485_v37 }
 0x2b2   : > { %v2450_v24 = vmul.f32 %v4210_v15, %v4210_v15  ;;  %v2469_v52 = vadd.f32 %v2468_v5, %v2467_v28  ;;  %v2511_v10 = vadd.f32 1e-05, %v2503_v4  ;;  %v2512_v12 = vadd.f32 1e-05, %v2504_v7  ;;  %v4225_v28 = vld [vmem:[%s337_s30] sm:$0xff] }
 0x2b3   : > { %v2451_v38 = vmul.f32 %v4215_v44, %v4215_v44  ;;  %3221 = vrsqrt.f32 %v2508_v31  ;;  %v2505_v13 = vmul.f32 0.125, %v2487_v8  ;;  %v2545_v5 = vrot.slane %v4221_v22, %v4131_v27 }
 0x2b4   : > { %v2488_v40 = vrot.slane %v2450_v24, 4  ;;  %v2502_v60 = vmul.f32 0.125, %v2469_v52  ;;  %3223 = vrsqrt.f32 %v2509_v3  ;;  %v2591_v49 = vrot.slane %v4225_v28, %v4129_v26 }
 0x2b5   : > { %v2494_v2 = vrot.slane %v2451_v38, 4  ;;  %v2513_v56 = vadd.f32 1e-05, %v2505_v13  ;;  %v2595_v50 = vrot.slane %v4225_v28, %v4131_v27  ;;  %v2599_v26 = vrot.slane %v4225_v28, %v4133_v55 }
 0x2b6   : > { %v2489_v51 = vadd.f32 %v2488_v40, %v2450_v24  ;;  %v2510_v47 = vadd.f32 1e-05, %v2502_v60  ;;  %v2587_v40 = vrot.slane %v4225_v28, %v4127_v54  ;;  %v2557_v27 = vrot.slane %v4221_v22, %v4147_v36 }
 0x2b7   : > { %v2495_v9 = vadd.f32 %v2494_v2, %v2451_v38  ;;  %v2561_v3 = vrot.slane %v4221_v22, %v4157_v45  ;;  %v2565_v13 = vrot.slane %v4221_v22, %v4169_v1 }
 0x2b8   : > { %v2490_v62 = vrot.slane %v2489_v51, 2  ;;  %3225 = vrsqrt.f32 %v2510_v47 }
 0x2b9   : > { %v2496_v14 = vrot.slane %v2495_v9, 2  ;;  %3227 = vrsqrt.f32 %v2511_v10 }
 0x2ba   : > { %v2491_v6 = vadd.f32 %v2490_v62, %v2489_v51  ;;  %3229 = vrsqrt.f32 %v2512_v12  ;;  %v2549_v51 = vrot.slane %v4221_v22, %v4133_v55  ;;  %v2603_v62 = vrot.slane %v4225_v28, %v4137_v30 }
 0x2bb   : > { %v2497_v18 = vadd.f32 %v2496_v14, %v2495_v9  ;;  %3231 = vrsqrt.f32 %v2513_v56  ;;  %v2607_v55 = vrot.slane %v4225_v28, %v4147_v36  ;;  %v2611_v36 = vrot.slane %v4225_v28, %v4157_v45 }
 0x2bc   : > { %v2492_v11 = vrot.slane %v2491_v6, 1  ;;  %v2615_v45 = vrot.slane %v4225_v28, %v4169_v1 }
 0x2bd   : > { %v2498_v21 = vrot.slane %v2497_v18, 1  ;;  %v3222_v33 = vpop.eup %3221 }
 0x2be   : > { %v2493_v16 = vadd.f32 %v2492_v11, %v2491_v6  ;;  %v3224_v35 = vpop.eup %3223  ;;  %v2524_v39 = vmul.f32 %v3222_v33, %v4182_v25 }
 0x2bf   : > { %v2499_v24 = vadd.f32 %v2498_v21, %v2497_v18  ;;  %v2525_v46 = vmul.f32 %v3224_v35, %v4184_v42 }
 0x2c0   : > { %v2506_v19 = vmul.f32 0.125, %v2493_v16  ;;  %v2574_v52 = vmul.f32 %v2537_v29, %v2524_v39 }
 0x2c1   : > { %v2507_v32 = vmul.f32 0.125, %v2499_v24  ;;  %v2575_v38 = vmul.f32 %v2541_v34, %v2525_v46 }
 0x2c2   : > { %v2514_v23 = vadd.f32 1e-05, %v2506_v19  ;;  %v3226_v20 = vpop.eup %3225  ;;  %v2624_v61 = vadd.f32 %v2587_v40, %v2574_v52 }
 0x2c3   : > { %v2515_v17 = vadd.f32 1e-05, %v2507_v32  ;;  %v3228_v25 = vpop.eup %3227  ;;  %v2526_v54 = vmul.f32 %v3226_v20, %v4186_v48  ;;  %v2625_v60 = vadd.f32 %v2591_v49, %v2575_v38 }
 0x2c4   : > { %3233 = vrsqrt.f32 %v2514_v23  ;;  %v3230_v37 = vpop.eup %3229  ;;  %v2527_v42 = vmul.f32 %v3228_v25, %v4194_v57  ;;  %v2632_v0 = vmax.f32 %v2624_v61, 0.0 }
 0x2c5   : > { %3235 = vrsqrt.f32 %v2515_v17  ;;  %v3232_v41 = vpop.eup %3231  ;;  %v2576_v59 = vmul.f32 %v2545_v5, %v2526_v54  ;;  %v2528_v48 = vmul.f32 %v3230_v37, %v4198_v58  ;;  %v2633_v4 = vmax.f32 %v2625_v60, 0.0 }
 0x2c6   : > { %v2577_v63 = vmul.f32 %v2549_v51, %v2527_v42  ;;  %v2529_v57 = vmul.f32 %v3232_v41, %v4205_v43  ;;  %2640 = vst [vmem:[%s3801_s8] sm:$0xff] %v2632_v0 }
 0x2c7   : > { %v2626_v2 = vadd.f32 %v2595_v50, %v2576_v59  ;;  %v2578_v31 = vmul.f32 %v2553_v53, %v2528_v48  ;;  %2641 = vst [vmem:[%s3801_s8 + $0x8] sm:$0xff] %v2633_v4 }
 0x2c8   : > { %v2627_v6 = vadd.f32 %v2599_v26, %v2577_v63  ;;  %v2579_v30 = vmul.f32 %v2557_v27, %v2529_v57 }
 0x2c9   : > { %v2634_v47 = vmax.f32 %v2626_v2, 0.0  ;;  %v2628_v43 = vadd.f32 %v2603_v62, %v2578_v31 }
 0x2ca   : > { %v2635_v8 = vmax.f32 %v2627_v6, 0.0  ;;  %v2629_v9 = vadd.f32 %v2607_v55, %v2579_v30 }
 0x2cb   : > { %2642 = vst [vmem:[%s3801_s8 + $0x10] sm:$0xff] %v2634_v47  ;;  %v2636_v10 = vmax.f32 %v2628_v43, 0.0 }
 0x2cc   : > { %2643 = vst [vmem:[%s3801_s8 + $0x18] sm:$0xff] %v2635_v8  ;;  %v2637_v12 = vmax.f32 %v2629_v9, 0.0 }
 0x2cd   : > { %2644 = vst [vmem:[%s3801_s8 + $0x20] sm:$0xff] %v2636_v10 }
 0x2ce   : > { %v3234_v58 = vpop.eup %3233  ;;  %2645 = vst [vmem:[%s3801_s8 + $0x28] sm:$0xff] %v2637_v12 }
 0x2cf   : > { %v2530_v7 = vmul.f32 %v3234_v58, %v4210_v15  ;;  %v3236_v14 = vpop.eup %3235 }
 0x2d0   : > { %v2531_v15 = vmul.f32 %v3236_v14, %v4215_v44 }
 0x2d1   : > { %v2580_v11 = vmul.f32 %v2561_v3, %v2530_v7 }
 0x2d2   : > { %v2581_v18 = vmul.f32 %v2565_v13, %v2531_v15 }
 0x2d3   : > { %v2630_v16 = vadd.f32 %v2611_v36, %v2580_v11 }
 0x2d4   : > { %v2631_v19 = vadd.f32 %v2615_v45, %v2581_v18 }
 0x2d5   : > { %v2638_v56 = vmax.f32 %v2630_v16, 0.0 }
 0x2d6   : > { %v2639_v21 = vmax.f32 %v2631_v19, 0.0 }
 0x2d7   : > { %2646 = vst [vmem:[%s3801_s8 + $0x30] sm:$0xff] %v2638_v56 }
 0x2d8   : > { %2647 = vst [vmem:[%s3801_s8 + $0x38] sm:$0xff] %v2639_v21 }
 0x2d9 PF: > { %s24_s28 = sadd.s32 1, %s3455_s28   ;;  %s4360_s9 = sld [smem:[#allocation17_spill]] }
 0x2da   : > { %p21_p2 = scmp.ge.s32.totalorder %s24_s28, 6   ;;  %s4361_s16 = sld [smem:[#allocation18_spill]] }
 0x2db   : > { %s4362_s25 = sld [smem:[#allocation14_spill]]  ;;  %s4363_s13 = sld [smem:[#allocation15_spill]] }
 0x2dc   : > { %s4364_s27 = sld [smem:[#allocation16_spill]]  ;;  %s4365_s18 = smov %s3419_s19 }
 0x2dd   : > { %s4366_s19 = smov %s3423_s20  ;;  %s4368_s21 = smov %s3431_s22 }
 0x2de   : > { %s4369_s22 = smov %s3435_s23  ;;  %s4371_s24 = smov %s3447_s26 }
 0x2df   : > { %s4367_s20 = smov %s4360_s9  ;;  %23 = sbr.rel (!%p21_p2) target bundleno = 15 (0xf), region = 128 }
 0x2e0   : > { %s4370_s23 = smov %s4361_s16 }
 0x2e1   : > { %s4372_s26 = smov %s4363_s13 }
 0x2e6   :  { %2670 = vsyncpa [#allocation3], 1 }
 0x2e7   :  { %2672 = vsyncpa [#allocation3 + $0x1], 1 }
 0x2e8   :  { %2673 = vsyncpa [#allocation5], 1 }
 0x2e9   :  { %2675 = vsyncpa [#allocation5 + $0x1], 1 }
 0x2ea   :  { %2676 = vsyncpa [#allocation8], 1 }
 0x2eb   :  { %2678 = vsyncpa [#allocation8 + $0x1], 1 }

// kernel: generator_forward.6
= control target key start
LH: loop header
LB: loop body
LE: loop exit
PB: predicated region body
PF: predicated region fallthrough
CT: control target
= control target key end

     0   :  { %s6572_s21 = smov 0   ;;  %s6574_s22 = smov 0   ;;  %s8468_s0 = inlined_call_operand.vmem [shape: bf16[64,5632], index: 0, kind: input, shape index: {}]   ;;  %s8469_s1 = inlined_call_operand.vmem [shape: bf16[5632,512], index: 1, kind: input, shape index: {}]   ;;  %s8470_s2 = inlined_call_operand.vmem [shape: f32[1,512], index: 2, kind: input, shape index: {}]   ;;  %s8471_s3 = inlined_call_operand.vmem [shape: f32[1,512], index: 3, kind: input, shape index: {}]   ;;  %s8472_s4 = inlined_call_operand.vmem [shape: f32[1,512], index: 4, kind: input, shape index: {}]   ;;  %s8473_s5 = inlined_call_operand.vmem [shape: f32[512,64], index: 5, kind: input, shape index: {}]   ;;  %s8474_s6 = inlined_call_operand.vmem [shape: f32[64,512], index: 6, kind: output, shape index: {}]  }
   0x1   :  { %s6576_s23 = smov 0   ;;  %s6578_s24 = smov 0  }
   0x2   :  { %s6580_s25 = smov 0  }
   0x3 LB: > { %s25_s26 = sadd.s32 1, %s6528_s24  ;;  %p42_p1 = scmp.ne.s32.totalorder %s6520_s22, %s6516_s21  ;;  %s6532_s25 = sphi %s6580_s25, %s16_s25   ;;  %s6528_s24 = sphi %s6578_s24, %s8478_s24   ;;  %s6524_s23 = sphi %s6576_s23, %s8477_s23   ;;  %s6520_s22 = sphi %s6574_s22, %s8476_s22   ;;  %s6516_s21 = sphi %s6572_s21, %s8475_s21  }
   0x4   : > { %p26_p0 = scmp.ge.s32.totalorder %s25_s26, 4  ;;  %p43_p2 = scmp.eq.s32.totalorder %s6532_s25, 0 }
   0x5   : > { %s35_s28 = sadd.s32 1, %s6520_s22  ;;  %p4918_p5 = scmp.ge.s32.totalorder %s6532_s25, 4 }
   0x6   : > { %s8480_s26 = smov (%p26_p0, %s25_s26), 0  ;;  %p44_p3 = por %p43_p2, %p42_p1 }
   0x7   : > { %s32_s27 = ssub.s32 %s6528_s24, %s8480_s26  ;;  %248 = sbr.rel (%p4918_p5) target bundleno = 44 (0x2c), region = 32 }
   0x8   : > { %p33_p4 = scmp.eq.s32.totalorder %s32_s27, 0 }
   0xa   : > { %s6607_s29 = scalar_select %p33_p4, %s6520_s22, %s35_s28  }
   0xe   : > { %251 = sbr.rel (!%p44_p3) target bundleno = 44 (0x2c), region = 36  ;;  %s253_s30 = sand.u32 (%p44_p3), 1, %s6520_s22  }
   0xf   : > { %s5341_s7 = smul.u32 (%p44_p3), 44, %s6528_s24 }
  0x10   : > { %s5855_s8 = smul.u32 (%p44_p3), 352, %s253_s30 }
  0x11   : > { %s6615_s11 = scalar_lea.vmem (%p44_p3), %s8468_s0, %s5341_s7 }
  0x12   : > { %v273_v0 = vld [vmem:[%s6615_s11] sm:$0xff] (%p44_p3)  ;;  %v275_v1 = vld [vmem:[%s6615_s11 + $0x8] sm:$0xff] (%p44_p3)  ;;  %v277_v2 = vld [vmem:[%s6615_s11 + $0x10] sm:$0xff] (%p44_p3)  ;;  %s6620_s12 = scalar_lea.vmem (%p44_p3), [#allocation2], %s5855_s8 }
  0x13   : > { %274 = vst [vmem:[%s6620_s12] sm:$0xff] (%p44_p3), %v273_v0  ;;  %276 = vst [vmem:[%s6620_s12 + $0x8] sm:$0xff] (%p44_p3), %v275_v1  ;;  %v279_v3 = vld [vmem:[%s6615_s11 + $0x18] sm:$0xff] (%p44_p3)  ;;  %v281_v4 = vld [vmem:[%s6615_s11 + $0x20] sm:$0xff] (%p44_p3) }
  0x14   : > { %278 = vst [vmem:[%s6620_s12 + $0x10] sm:$0xff] (%p44_p3), %v277_v2  ;;  %v283_v5 = vld [vmem:[%s6615_s11 + $0xb0] sm:$0xff] (%p44_p3)  ;;  %280 = vst [vmem:[%s6620_s12 + $0x18] sm:$0xff] (%p44_p3), %v279_v3  ;;  %v285_v6 = vld [vmem:[%s6615_s11 + $0xb8] sm:$0xff] (%p44_p3) }
  0x15   : > { %282 = vst [vmem:[%s6620_s12 + $0x20] sm:$0xff] %v281_v4  ;;  %284 = vst [vmem:[%s6620_s12 + $0x2c] sm:$0xff] %v283_v5  ;;  %v287_v7 = vld [vmem:[%s6615_s11 + $0xc0] sm:$0xff]  ;;  %v289_v8 = vld [vmem:[%s6615_s11 + $0xc8] sm:$0xff] }
  0x16   : > { %286 = vst [vmem:[%s6620_s12 + $0x34] sm:$0xff] %v285_v6  ;;  %288 = vst [vmem:[%s6620_s12 + $0x3c] sm:$0xff] %v287_v7  ;;  %v291_v9 = vld [vmem:[%s6615_s11 + $0xd0] sm:$0xff]  ;;  %v293_v10 = vld [vmem:[%s6615_s11 + $0x160] sm:$0xff] }
  0x17   : > { %290 = vst [vmem:[%s6620_s12 + $0x44] sm:$0xff] %v289_v8  ;;  %v295_v11 = vld [vmem:[%s6615_s11 + $0x168] sm:$0xff]  ;;  %292 = vst [vmem:[%s6620_s12 + $0x4c] sm:$0xff] %v291_v9  ;;  %v297_v12 = vld [vmem:[%s6615_s11 + $0x170] sm:$0xff] }
  0x18   : > { %294 = vst [vmem:[%s6620_s12 + $0x58] sm:$0xff] %v293_v10  ;;  %296 = vst [vmem:[%s6620_s12 + $0x60] sm:$0xff] %v295_v11  ;;  %v299_v13 = vld [vmem:[%s6615_s11 + $0x178] sm:$0xff]  ;;  %v301_v14 = vld [vmem:[%s6615_s11 + $0x180] sm:$0xff] }
  0x19   : > { %298 = vst [vmem:[%s6620_s12 + $0x68] sm:$0xff] %v297_v12  ;;  %300 = vst [vmem:[%s6620_s12 + $0x70] sm:$0xff] %v299_v13  ;;  %v303_v15 = vld [vmem:[%s6615_s11 + $0x210] sm:$0xff]  ;;  %v305_v16 = vld [vmem:[%s6615_s11 + $0x218] sm:$0xff] }
  0x1a   : > { %302 = vst [vmem:[%s6620_s12 + $0x78] sm:$0xff] %v301_v14  ;;  %v307_v17 = vld [vmem:[%s6615_s11 + $0x220] sm:$0xff]  ;;  %304 = vst [vmem:[%s6620_s12 + $0x84] sm:$0xff] %v303_v15  ;;  %v309_v18 = vld [vmem:[%s6615_s11 + $0x228] sm:$0xff] }
  0x1b   : > { %306 = vst [vmem:[%s6620_s12 + $0x8c] sm:$0xff] %v305_v16  ;;  %308 = vst [vmem:[%s6620_s12 + $0x94] sm:$0xff] %v307_v17  ;;  %v311_v19 = vld [vmem:[%s6615_s11 + $0x230] sm:$0xff]  ;;  %v313_v20 = vld [vmem:[%s6615_s11 + $0x2c0] sm:$0xff] }
  0x1c   : > { %310 = vst [vmem:[%s6620_s12 + $0x9c] sm:$0xff] %v309_v18  ;;  %312 = vst [vmem:[%s6620_s12 + $0xa4] sm:$0xff] %v311_v19  ;;  %v315_v21 = vld [vmem:[%s6615_s11 + $0x2c8] sm:$0xff]  ;;  %v317_v22 = vld [vmem:[%s6615_s11 + $0x2d0] sm:$0xff] }
  0x1d   : > { %314 = vst [vmem:[%s6620_s12 + $0xb0] sm:$0xff] %v313_v20  ;;  %v319_v23 = vld [vmem:[%s6615_s11 + $0x2d8] sm:$0xff]  ;;  %316 = vst [vmem:[%s6620_s12 + $0xb8] sm:$0xff] %v315_v21  ;;  %v321_v24 = vld [vmem:[%s6615_s11 + $0x2e0] sm:$0xff] }
  0x1e   : > { %318 = vst [vmem:[%s6620_s12 + $0xc0] sm:$0xff] %v317_v22  ;;  %320 = vst [vmem:[%s6620_s12 + $0xc8] sm:$0xff] %v319_v23  ;;  %v323_v25 = vld [vmem:[%s6615_s11 + $0x370] sm:$0xff]  ;;  %v325_v26 = vld [vmem:[%s6615_s11 + $0x378] sm:$0xff] }
  0x1f   : > { %322 = vst [vmem:[%s6620_s12 + $0xd0] sm:$0xff] %v321_v24  ;;  %324 = vst [vmem:[%s6620_s12 + $0xdc] sm:$0xff] %v323_v25  ;;  %v327_v27 = vld [vmem:[%s6615_s11 + $0x380] sm:$0xff]  ;;  %v329_v28 = vld [vmem:[%s6615_s11 + $0x388] sm:$0xff] }
  0x20   : > { %326 = vst [vmem:[%s6620_s12 + $0xe4] sm:$0xff] %v325_v26  ;;  %v331_v29 = vld [vmem:[%s6615_s11 + $0x390] sm:$0xff]  ;;  %328 = vst [vmem:[%s6620_s12 + $0xec] sm:$0xff] %v327_v27  ;;  %v333_v30 = vld [vmem:[%s6615_s11 + $0x420] sm:$0xff] }
  0x21   : > { %330 = vst [vmem:[%s6620_s12 + $0xf4] sm:$0xff] %v329_v28  ;;  %332 = vst [vmem:[%s6620_s12 + $0xfc] sm:$0xff] %v331_v29  ;;  %v335_v31 = vld [vmem:[%s6615_s11 + $0x428] sm:$0xff]  ;;  %v337_v32 = vld [vmem:[%s6615_s11 + $0x430] sm:$0xff] }
  0x22   : > { %334 = vst [vmem:[%s6620_s12 + $0x108] sm:$0xff] %v333_v30  ;;  %336 = vst [vmem:[%s6620_s12 + $0x110] sm:$0xff] %v335_v31  ;;  %v339_v33 = vld [vmem:[%s6615_s11 + $0x438] sm:$0xff]  ;;  %v341_v34 = vld [vmem:[%s6615_s11 + $0x440] sm:$0xff] }
  0x23   : > { %338 = vst [vmem:[%s6620_s12 + $0x118] sm:$0xff] %v337_v32  ;;  %v343_v35 = vld [vmem:[%s6615_s11 + $0x4d0] sm:$0xff]  ;;  %340 = vst [vmem:[%s6620_s12 + $0x120] sm:$0xff] %v339_v33  ;;  %v345_v36 = vld [vmem:[%s6615_s11 + $0x4d8] sm:$0xff] }
  0x24   : > { %342 = vst [vmem:[%s6620_s12 + $0x128] sm:$0xff] %v341_v34  ;;  %344 = vst [vmem:[%s6620_s12 + $0x134] sm:$0xff] %v343_v35  ;;  %v347_v37 = vld [vmem:[%s6615_s11 + $0x4e0] sm:$0xff]  ;;  %v349_v38 = vld [vmem:[%s6615_s11 + $0x4e8] sm:$0xff] }
  0x25   : > { %346 = vst [vmem:[%s6620_s12 + $0x13c] sm:$0xff] %v345_v36  ;;  %348 = vst [vmem:[%s6620_s12 + $0x144] sm:$0xff] %v347_v37  ;;  %v351_v39 = vld [vmem:[%s6615_s11 + $0x4f0] sm:$0xff]  ;;  %v4920_v40 = vld [vmem:[%s6615_s11 + $0x28] sm:$0xf] }
  0x26   : > { %350 = vst [vmem:[%s6620_s12 + $0x14c] sm:$0xff] %v349_v38  ;;  %v4922_v41 = vld [vmem:[%s6615_s11 + $0xd8] sm:$0xf]  ;;  %352 = vst [vmem:[%s6620_s12 + $0x154] sm:$0xff] %v351_v39  ;;  %v4924_v42 = vld [vmem:[%s6615_s11 + $0x188] sm:$0xf] }
  0x27   : > { %4921 = vst [vmem:[%s6620_s12 + $0x28] sm:$0xf] %v4920_v40  ;;  %4923 = vst [vmem:[%s6620_s12 + $0x54] sm:$0xf] %v4922_v41  ;;  %v4926_v43 = vld [vmem:[%s6615_s11 + $0x238] sm:$0xf] }
  0x28   : > { %v4928_v44 = vld [vmem:[%s6615_s11 + $0x2e8] sm:$0xf]  ;;  %4925 = vst [vmem:[%s6620_s12 + $0x80] sm:$0xf] %v4924_v42  ;;  %4927 = vst [vmem:[%s6620_s12 + $0xac] sm:$0xf] %v4926_v43 }
  0x29   : > { %4929 = vst [vmem:[%s6620_s12 + $0xd8] sm:$0xf] %v4928_v44  ;;  %v4930_v45 = vld [vmem:[%s6615_s11 + $0x398] sm:$0xf]  ;;  %v4932_v46 = vld [vmem:[%s6615_s11 + $0x448] sm:$0xf] }
  0x2a   : > { %v4934_v47 = vld [vmem:[%s6615_s11 + $0x4f8] sm:$0xf]  ;;  %4931 = vst [vmem:[%s6620_s12 + $0x104] sm:$0xf] %v4930_v45  ;;  %4933 = vst [vmem:[%s6620_s12 + $0x130] sm:$0xf] %v4932_v46 }
  0x2b   : > { %4935 = vst [vmem:[%s6620_s12 + $0x15c] sm:$0xf] %v4934_v47 }
  0x2c PF: > { %p4936_p6 = scmp.ge.s32.totalorder %s6532_s25, 1  ;;  %p395_p7 = scmp.lt.s32.totalorder %s6532_s25, 5 }
  0x2e   : > { %p396_p8 = pnand %p4936_p6, %p395_p7 }
  0x2f   : > { %s402_s13 = sand.u32 (!%p396_p8), 1, %s6516_s21   ;;  %s454_s14 = smul.u32 (!%p396_p8), 176, %s6524_s23 }
  0x30   : > { %399 = sbr.rel (%p396_p8) target bundleno = 1506 (0x5e2), region = 66  ;;  %p4939_p10 = scmp.ne.s32.totalorder (!%p396_p8), %s6524_s23, 0 }
  0x31   : > { %s5856_s15 = smul.u32 (!%p396_p8), 352, %s402_s13  ;;  %p456_p9 = scmp.lt.s32.totalorder (!%p396_p8), %s454_s14, 703 }
  0x33   : > { %s6724_s20 = scalar_lea.vmem (!%p396_p8), [#allocation2], %s5856_s15 }
  0x37   : > { %s8482_s14 = smov (!%p456_p9, %s454_s14), 703  ;;  %491 = sbr.rel (%p4939_p10) target bundleno = 73 (0x49), region = 74 }
  0x38   : > { %s5342_s16 = sshll.u32 %s8482_s14, 4  ;;  %v6534_v48 = vmov (!%p4939_p10), 0.0  }
  0x39   : > { %s6722_s19 = scalar_lea.vmem %s8469_s1, %s5342_s16  ;;  %492 = vst [vmem:[%s8474_s6] sm:$0xff] (!%p4939_p10), %v6534_v48  ;;  %493 = vst [vmem:[%s8474_s6 + $0x8] sm:$0xff] (!%p4939_p10), %v6534_v48 }
  0x3a   : > { %494 = vst [vmem:[%s8474_s6 + $0x10] sm:$0xff] (!%p4939_p10), %v6534_v48  ;;  %495 = vst [vmem:[%s8474_s6 + $0x18] sm:$0xff] (!%p4939_p10), %v6534_v48 }
  0x3b   : > { %496 = vst [vmem:[%s8474_s6 + $0x20] sm:$0xff] (!%p4939_p10), %v6534_v48  ;;  %497 = vst [vmem:[%s8474_s6 + $0x28] sm:$0xff] (!%p4939_p10), %v6534_v48 }
  0x3c   : > { %498 = vst [vmem:[%s8474_s6 + $0x30] sm:$0xff] (!%p4939_p10), %v6534_v48  ;;  %499 = vst [vmem:[%s8474_s6 + $0x38] sm:$0xff] (!%p4939_p10), %v6534_v48 }
  0x3d   : > { %500 = vst [vmem:[%s8474_s6 + $0x40] sm:$0xff] (!%p4939_p10), %v6534_v48  ;;  %501 = vst [vmem:[%s8474_s6 + $0x48] sm:$0xff] (!%p4939_p10), %v6534_v48 }
  0x3e   : > { %502 = vst [vmem:[%s8474_s6 + $0x50] sm:$0xff] %v6534_v48  ;;  %503 = vst [vmem:[%s8474_s6 + $0x58] sm:$0xff] %v6534_v48 }
  0x3f   : > { %504 = vst [vmem:[%s8474_s6 + $0x60] sm:$0xff] %v6534_v48  ;;  %505 = vst [vmem:[%s8474_s6 + $0x68] sm:$0xff] %v6534_v48 }
  0x40   : > { %506 = vst [vmem:[%s8474_s6 + $0x70] sm:$0xff] %v6534_v48  ;;  %507 = vst [vmem:[%s8474_s6 + $0x78] sm:$0xff] %v6534_v48 }
  0x41   : > { %508 = vst [vmem:[%s8474_s6 + $0x80] sm:$0xff] %v6534_v48  ;;  %509 = vst [vmem:[%s8474_s6 + $0x88] sm:$0xff] %v6534_v48 }
  0x42   : > { %510 = vst [vmem:[%s8474_s6 + $0x90] sm:$0xff] %v6534_v48  ;;  %511 = vst [vmem:[%s8474_s6 + $0x98] sm:$0xff] %v6534_v48 }
  0x43   : > { %512 = vst [vmem:[%s8474_s6 + $0xa0] sm:$0xff] %v6534_v48  ;;  %513 = vst [vmem:[%s8474_s6 + $0xa8] sm:$0xff] %v6534_v48 }
  0x44   : > { %514 = vst [vmem:[%s8474_s6 + $0xb0] sm:$0xff] %v6534_v48  ;;  %515 = vst [vmem:[%s8474_s6 + $0xb8] sm:$0xff] %v6534_v48 }
  0x45   : > { %516 = vst [vmem:[%s8474_s6 + $0xc0] sm:$0xff] %v6534_v48  ;;  %517 = vst [vmem:[%s8474_s6 + $0xc8] sm:$0xff] %v6534_v48 }
  0x46   : > { %518 = vst [vmem:[%s8474_s6 + $0xd0] sm:$0xff] %v6534_v48  ;;  %519 = vst [vmem:[%s8474_s6 + $0xd8] sm:$0xff] %v6534_v48 }
  0x47   : > { %520 = vst [vmem:[%s8474_s6 + $0xe0] sm:$0xff] %v6534_v48  ;;  %521 = vst [vmem:[%s8474_s6 + $0xe8] sm:$0xff] %v6534_v48 }
  0x48   : > { %522 = vst [vmem:[%s8474_s6 + $0xf0] sm:$0xff] %v6534_v48  ;;  %523 = vst [vmem:[%s8474_s6 + $0xf8] sm:$0xff] %v6534_v48 }
  0x49 PF: > { %v5900_v49 = vld [vmem:[%s6722_s19 + $0x4] ss:$16 sps:$4 sm:$0xff]   ;;  %v5902_v50 = vld [vmem:[%s6722_s19 + $0xc] ss:$16 sps:$4 sm:$0xff]   ;;  %v5904_v51 = vld [vmem:[%s6722_s19] ss:$16 sps:$4 sm:$0xff]  }
  0x4a   : > { %2940 = vmatprep.subr.bf16.mxu0 %v5900_v49  ;;  %v5905_v52 = vld [vmem:[%s6722_s19 + $0x8] ss:$16 sps:$4 sm:$0xff]   ;;  %3378 = vmatprep.subr.bf16.mxu1 %v5902_v50  ;;  %v5906_v53 = vld [vmem:[%s6722_s19 + $0x24] ss:$16 sps:$4 sm:$0xff]   ;;  %v5908_v54 = vld [vmem:[%s6722_s19 + $0x2c] ss:$16 sps:$4 sm:$0xff]  }
  0x4b   : > { %2941 = vmatpush1.bf16.msra.mxu0 %v5904_v51  ;;  %3379 = vmatpush1.bf16.msra.mxu1 %v5905_v52  ;;  %v5910_v55 = vld [vmem:[%s6722_s19 + $0x20] ss:$16 sps:$4 sm:$0xff]   ;;  %v5911_v56 = vld [vmem:[%s6722_s19 + $0x28] ss:$16 sps:$4 sm:$0xff]   ;;  %v5912_v57 = vld [vmem:[%s6722_s19 + $0x44] ss:$16 sps:$4 sm:$0xff]  }
  0x4c   : > { %2942 = vmatprep.subr.bf16.mxu0 %v5906_v53  ;;  %3380 = vmatprep.subr.bf16.mxu1 %v5908_v54  ;;  %v5914_v58 = vld [vmem:[%s6722_s19 + $0x4c] ss:$16 sps:$4 sm:$0xff]   ;;  %v5916_v59 = vld [vmem:[%s6722_s19 + $0x40] ss:$16 sps:$4 sm:$0xff]   ;;  %v5917_v60 = vld [vmem:[%s6722_s19 + $0x48] ss:$16 sps:$4 sm:$0xff]  }
  0x4d   : > { %v5918_v61 = vld [vmem:[%s6722_s19 + $0x64] ss:$16 sps:$4 sm:$0xff]   ;;  %v5920_v62 = vld [vmem:[%s6722_s19 + $0x6c] ss:$16 sps:$4 sm:$0xff]   ;;  %v5922_v63 = vld [vmem:[%s6722_s19 + $0x60] ss:$16 sps:$4 sm:$0xff]  }
  0x4e   : > { %v5923_v0 = vld [vmem:[%s6722_s19 + $0x68] ss:$16 sps:$4 sm:$0xff]   ;;  %v5924_v1 = vld [vmem:[%s6722_s19 + $0x84] ss:$16 sps:$4 sm:$0xff]   ;;  %v5926_v2 = vld [vmem:[%s6722_s19 + $0x8c] ss:$16 sps:$4 sm:$0xff]  }
  0x4f   : > { %2943 = vmatpush1.bf16.msra.mxu0 %v5910_v55  ;;  %3381 = vmatpush1.bf16.msra.mxu1 %v5911_v56  ;;  %v5928_v3 = vld [vmem:[%s6722_s19 + $0x80] ss:$16 sps:$4 sm:$0xff]   ;;  %v5929_v4 = vld [vmem:[%s6722_s19 + $0x88] ss:$16 sps:$4 sm:$0xff]   ;;  %v5930_v5 = vld [vmem:[%s6722_s19 + $0xa4] ss:$16 sps:$4 sm:$0xff]  }
  0x50   : > { %2944 = vmatprep.subr.bf16.mxu0 %v5912_v57  ;;  %3382 = vmatprep.subr.bf16.mxu1 %v5914_v58  ;;  %v5932_v6 = vld [vmem:[%s6722_s19 + $0xac] ss:$16 sps:$4 sm:$0xff]   ;;  %v5934_v7 = vld [vmem:[%s6722_s19 + $0xa0] ss:$16 sps:$4 sm:$0xff]   ;;  %v5935_v8 = vld [vmem:[%s6722_s19 + $0xa8] ss:$16 sps:$4 sm:$0xff]  }
  0x51   : > { %v5936_v9 = vld [vmem:[%s6722_s19 + $0xc4] ss:$16 sps:$4 sm:$0xff]   ;;  %v5938_v10 = vld [vmem:[%s6722_s19 + $0xcc] ss:$16 sps:$4 sm:$0xff]   ;;  %v5940_v11 = vld [vmem:[%s6722_s19 + $0xc0] ss:$16 sps:$4 sm:$0xff]  }
  0x52   : > { %v5941_v12 = vld [vmem:[%s6722_s19 + $0xc8] ss:$16 sps:$4 sm:$0xff]   ;;  %v5942_v13 = vld [vmem:[%s6722_s19 + $0xe4] ss:$16 sps:$4 sm:$0xff]   ;;  %v5944_v14 = vld [vmem:[%s6722_s19 + $0xec] ss:$16 sps:$4 sm:$0xff]  }
  0x53   : > { %2945 = vmatpush1.bf16.msra.mxu0 %v5916_v59  ;;  %3383 = vmatpush1.bf16.msra.mxu1 %v5917_v60  ;;  %v5946_v15 = vld [vmem:[%s6722_s19 + $0xe0] ss:$16 sps:$4 sm:$0xff]   ;;  %v5947_v16 = vld [vmem:[%s6722_s19 + $0xe8] ss:$16 sps:$4 sm:$0xff]   ;;  %v5948_v17 = vld [vmem:[%s6722_s19 + $0x104] ss:$16 sps:$4 sm:$0xff]  }
  0x54   : > { %2946 = vmatprep.subr.bf16.mxu0 %v5918_v61  ;;  %3384 = vmatprep.subr.bf16.mxu1 %v5920_v62  ;;  %v5950_v18 = vld [vmem:[%s6722_s19 + $0x10c] ss:$16 sps:$4 sm:$0xff]   ;;  %v5952_v19 = vld [vmem:[%s6722_s19 + $0x100] ss:$16 sps:$4 sm:$0xff]   ;;  %v5953_v20 = vld [vmem:[%s6722_s19 + $0x108] ss:$16 sps:$4 sm:$0xff]  }
  0x55   : > { %v5954_v21 = vld [vmem:[%s6722_s19 + $0x124] ss:$16 sps:$4 sm:$0xff]   ;;  %v5956_v22 = vld [vmem:[%s6722_s19 + $0x12c] ss:$16 sps:$4 sm:$0xff]   ;;  %v5958_v23 = vld [vmem:[%s6722_s19 + $0x120] ss:$16 sps:$4 sm:$0xff]  }
  0x56   : > { %v5959_v24 = vld [vmem:[%s6722_s19 + $0x128] ss:$16 sps:$4 sm:$0xff]   ;;  %v5960_v25 = vld [vmem:[%s6722_s19 + $0x144] ss:$16 sps:$4 sm:$0xff]   ;;  %v5962_v26 = vld [vmem:[%s6722_s19 + $0x14c] ss:$16 sps:$4 sm:$0xff]  }
  0x57   : > { %2947 = vmatpush1.bf16.msra.mxu0 %v5922_v63  ;;  %3385 = vmatpush1.bf16.msra.mxu1 %v5923_v0  ;;  %v5964_v27 = vld [vmem:[%s6722_s19 + $0x140] ss:$16 sps:$4 sm:$0xff]   ;;  %v5965_v28 = vld [vmem:[%s6722_s19 + $0x148] ss:$16 sps:$4 sm:$0xff]   ;;  %v5966_v29 = vld [vmem:[%s6722_s19 + $0x164] ss:$16 sps:$4 sm:$0xff]  }
  0x58   : > { %2948 = vmatprep.subr.bf16.mxu0 %v5924_v1  ;;  %3386 = vmatprep.subr.bf16.mxu1 %v5926_v2  ;;  %v5968_v30 = vld [vmem:[%s6722_s19 + $0x16c] ss:$16 sps:$4 sm:$0xff]   ;;  %v5970_v31 = vld [vmem:[%s6722_s19 + $0x160] ss:$16 sps:$4 sm:$0xff]   ;;  %v5971_v32 = vld [vmem:[%s6722_s19 + $0x168] ss:$16 sps:$4 sm:$0xff]  }
  0x59   : > { %v5998_v33 = vld [vmem:[%s6724_s20 + $0x4] ss:$44 sps:$4 sm:$0xff]   ;;  %v5974_v35 = vld [vmem:[%s6722_s19 + $0x18c] ss:$16 sps:$4 sm:$0xff]   ;;  %v5977_v37 = vld [vmem:[%s6722_s19 + $0x188] ss:$16 sps:$4 sm:$0xff]  }
  0x5a   : > { %v5972_v34 = vld [vmem:[%s6722_s19 + $0x184] ss:$16 sps:$4 sm:$0xff]   ;;  %2972 = vmatprep.mubr.bf16.mxu0 %v5998_v33  ;;  %3410 = vmatprep.mubr.bf16.mxu1 %v5998_v33  ;;  %v5976_v36 = vld [vmem:[%s6722_s19 + $0x180] ss:$16 sps:$4 sm:$0xff]   ;;  %v5980_v39 = vld [vmem:[%s6722_s19 + $0x1ac] ss:$16 sps:$4 sm:$0xff]  }
  0x5b   : > { %2949 = vmatpush1.bf16.msra.mxu0 %v5928_v3  ;;  %3387 = vmatpush1.bf16.msra.mxu1 %v5929_v4  ;;  %v5978_v38 = vld [vmem:[%s6722_s19 + $0x1a4] ss:$16 sps:$4 sm:$0xff]   ;;  %v5982_v40 = vld [vmem:[%s6722_s19 + $0x1a0] ss:$16 sps:$4 sm:$0xff]   ;;  %v5983_v41 = vld [vmem:[%s6722_s19 + $0x1a8] ss:$16 sps:$4 sm:$0xff]  }
  0x5c   : > { %2950 = vmatprep.subr.bf16.mxu0 %v5930_v5  ;;  %3388 = vmatprep.subr.bf16.mxu1 %v5932_v6  ;;  %v5984_v42 = vld [vmem:[%s6722_s19 + $0x1c4] ss:$16 sps:$4 sm:$0xff]   ;;  %v5986_v43 = vld [vmem:[%s6722_s19 + $0x1cc] ss:$16 sps:$4 sm:$0xff]   ;;  %v5988_v44 = vld [vmem:[%s6722_s19 + $0x1c0] ss:$16 sps:$4 sm:$0xff]  }
  0x5d   : > { %v5989_v45 = vld [vmem:[%s6722_s19 + $0x1c8] ss:$16 sps:$4 sm:$0xff]   ;;  %v5990_v46 = vld [vmem:[%s6722_s19 + $0x1e4] ss:$16 sps:$4 sm:$0xff]   ;;  %v5992_v47 = vld [vmem:[%s6722_s19 + $0x1ec] ss:$16 sps:$4 sm:$0xff]  }
  0x5e   : > { %v5994_v48 = vld [vmem:[%s6722_s19 + $0x1e0] ss:$16 sps:$4 sm:$0xff]   ;;  %v5995_v49 = vld [vmem:[%s6722_s19 + $0x1e8] ss:$16 sps:$4 sm:$0xff]   ;;  %v6001_v50 = vld [vmem:[%s6722_s19 + $0x204] ss:$16 sps:$4 sm:$0xff]  }
  0x5f   : > { %2951 = vmatpush1.bf16.msra.mxu0 %v5934_v7  ;;  %3389 = vmatpush1.bf16.msra.mxu1 %v5935_v8  ;;  %v6004_v51 = vld [vmem:[%s6722_s19 + $0x20c] ss:$16 sps:$4 sm:$0xff]   ;;  %v5999_v53 = vld [vmem:[%s6722_s19 + $0x200] ss:$16 sps:$4 sm:$0xff]   ;;  %v6002_v54 = vld [vmem:[%s6722_s19 + $0x208] ss:$16 sps:$4 sm:$0xff]  }
  0x60   : > { %2952 = vmatprep.subr.bf16.mxu0 %v5936_v9  ;;  %3390 = vmatprep.subr.bf16.mxu1 %v5938_v10  ;;  %v5996_v52 = vld [vmem:[%s6724_s20] ss:$44 sps:$4 sm:$0xff]   ;;  %v6007_v55 = vld [vmem:[%s6722_s19 + $0x224] ss:$16 sps:$4 sm:$0xff]   ;;  %v6008_v58 = vld [vmem:[%s6722_s19 + $0x228] ss:$16 sps:$4 sm:$0xff]  }
  0x61   : > { %v6010_v56 = vld [vmem:[%s6722_s19 + $0x22c] ss:$16 sps:$4 sm:$0xff]   ;;  %v6005_v57 = vld [vmem:[%s6722_s19 + $0x220] ss:$16 sps:$4 sm:$0xff]   ;;  %v6013_v59 = vld [vmem:[%s6722_s19 + $0x244] ss:$16 sps:$4 sm:$0xff]  }
  0x62   : > { %v6016_v60 = vld [vmem:[%s6722_s19 + $0x24c] ss:$16 sps:$4 sm:$0xff]   ;;  %v6011_v61 = vld [vmem:[%s6722_s19 + $0x240] ss:$16 sps:$4 sm:$0xff]   ;;  %v6014_v63 = vld [vmem:[%s6722_s19 + $0x248] ss:$16 sps:$4 sm:$0xff]  }
  0x63   : > { %2953 = vmatpush1.bf16.msra.mxu0 %v5940_v11  ;;  %3391 = vmatpush1.bf16.msra.mxu1 %v5941_v12  ;;  %v6059_v62 = vld [vmem:[%s6724_s20 + $0x5c] ss:$44 sps:$4 sm:$0xff]   ;;  %v6019_v0 = vld [vmem:[%s6722_s19 + $0x264] ss:$16 sps:$4 sm:$0xff]   ;;  %v6017_v3 = vld [vmem:[%s6722_s19 + $0x260] ss:$16 sps:$4 sm:$0xff]  }
  0x64   : > { %2954 = vmatprep.subr.bf16.mxu0 %v5942_v13  ;;  %3392 = vmatprep.subr.bf16.mxu1 %v5944_v14  ;;  %v6022_v1 = vld [vmem:[%s6722_s19 + $0x26c] ss:$16 sps:$4 sm:$0xff]   ;;  %v6067_v2 = vld [vmem:[%s6724_s20 + $0x58] ss:$44 sps:$4 sm:$0xff]   ;;  %v6074_v7 = vld [vmem:[%s6724_s20 + $0xb4] ss:$44 sps:$4 sm:$0xff]  }
  0x65   : > { %v6020_v4 = vld [vmem:[%s6722_s19 + $0x268] ss:$16 sps:$4 sm:$0xff]   ;;  %v6025_v5 = vld [vmem:[%s6722_s19 + $0x284] ss:$16 sps:$4 sm:$0xff]   ;;  %v6028_v6 = vld [vmem:[%s6722_s19 + $0x28c] ss:$16 sps:$4 sm:$0xff]  }
  0x66   : > { %v6023_v8 = vld [vmem:[%s6722_s19 + $0x280] ss:$16 sps:$4 sm:$0xff]   ;;  %v6026_v9 = vld [vmem:[%s6722_s19 + $0x288] ss:$16 sps:$4 sm:$0xff]   ;;  %v6031_v10 = vld [vmem:[%s6722_s19 + $0x2a4] ss:$16 sps:$4 sm:$0xff]  }
  0x67   : > { %2955 = vmatpush1.bf16.msra.mxu0 %v5946_v15  ;;  %3393 = vmatpush1.bf16.msra.mxu1 %v5947_v16  ;;  %v6034_v11 = vld [vmem:[%s6722_s19 + $0x2ac] ss:$16 sps:$4 sm:$0xff]   ;;  %v6029_v12 = vld [vmem:[%s6722_s19 + $0x2a0] ss:$16 sps:$4 sm:$0xff]   ;;  %v6032_v14 = vld [vmem:[%s6722_s19 + $0x2a8] ss:$16 sps:$4 sm:$0xff]  }
  0x68   : > { %2956 = vmatprep.subr.bf16.mxu0 %v5948_v17  ;;  %3394 = vmatprep.subr.bf16.mxu1 %v5950_v18  ;;  %v6082_v13 = vld [vmem:[%s6724_s20 + $0xb0] ss:$44 sps:$4 sm:$0xff]   ;;  %v6037_v15 = vld [vmem:[%s6722_s19 + $0x2c4] ss:$16 sps:$4 sm:$0xff]   ;;  %v6089_v16 = vld [vmem:[%s6724_s20 + $0x10c] ss:$44 sps:$4 sm:$0xff]  }
  0x69   : > { %v6040_v17 = vld [vmem:[%s6722_s19 + $0x2cc] ss:$16 sps:$4 sm:$0xff]   ;;  %v6035_v18 = vld [vmem:[%s6722_s19 + $0x2c0] ss:$16 sps:$4 sm:$0xff]   ;;  %v6056_v33 = vld [vmem:[%s6722_s19 + $0x328] ss:$16 sps:$4 sm:$0xff]  }
  0x6a   : > { %p5336_p11 = scmp.ne.s32.totalorder %s6524_s23, 3 }
  0x6b   : > { %2957 = vmatpush1.bf16.msra.mxu0 %v5952_v19  ;;  %3395 = vmatpush1.bf16.msra.mxu1 %v5953_v20  ;;  %v6038_v19 = vld [vmem:[%s6722_s19 + $0x2c8] ss:$16 sps:$4 sm:$0xff]   ;;  %v6043_v20 = vld [vmem:[%s6722_s19 + $0x2e4] ss:$16 sps:$4 sm:$0xff]   ;;  %vm4244_vm0 = vcmask (!%p5336_p11), 523264   ;;  %s6536_s8 = smov (!%p5336_p11), 64  }
  0x6c   : > { %2958 = vmatprep.subr.bf16.mxu0 %v5954_v21  ;;  %3396 = vmatprep.subr.bf16.mxu1 %v5956_v22  ;;  %v6046_v21 = vld [vmem:[%s6722_s19 + $0x2ec] ss:$16 sps:$4 sm:$0xff]   ;;  %v6041_v22 = vld [vmem:[%s6722_s19 + $0x2e0] ss:$16 sps:$4 sm:$0xff]  }
  0x6f   : > { %2959 = vmatpush1.bf16.msra.mxu0 %v5958_v23  ;;  %3397 = vmatpush1.bf16.msra.mxu1 %v5959_v24  ;;  %v6097_v23 = vld [vmem:[%s6724_s20 + $0x108] ss:$44 sps:$4 sm:$0xff]  }
  0x70   : > { %2960 = vmatprep.subr.bf16.mxu0 %v5960_v25  ;;  %3398 = vmatprep.subr.bf16.mxu1 %v5962_v26  ;;  %v6044_v24 = vld [vmem:[%s6722_s19 + $0x2e8] ss:$16 sps:$4 sm:$0xff]   ;;  %v6049_v26 = vld [vmem:[%s6722_s19 + $0x304] ss:$16 sps:$4 sm:$0xff]  }
  0x71   : > { %v6106_v25 = vld [vmem:[%s6724_s20 + $0xc] ss:$44 sps:$4 sm:$0xff]  }
  0x73   : > { %2961 = vmatpush1.bf16.msra.mxu0 %v5964_v27  ;;  %3399 = vmatpush1.bf16.msra.mxu1 %v5965_v28  ;;  %v6052_v27 = vld [vmem:[%s6722_s19 + $0x30c] ss:$16 sps:$4 sm:$0xff]   ;;  %v6047_v28 = vld [vmem:[%s6722_s19 + $0x300] ss:$16 sps:$4 sm:$0xff]  }
  0x74   : > { %2962 = vmatprep.subr.bf16.mxu0 %v5966_v29  ;;  %3400 = vmatprep.subr.bf16.mxu1 %v5968_v30  ;;  %v6050_v29 = vld [vmem:[%s6722_s19 + $0x308] ss:$16 sps:$4 sm:$0xff]   ;;  %v6055_v30 = vld [vmem:[%s6722_s19 + $0x324] ss:$16 sps:$4 sm:$0xff]  }
  0x77   : > { %2963 = vmatpush1.bf16.msra.mxu0 %v5970_v31  ;;  %3401 = vmatpush1.bf16.msra.mxu1 %v5971_v32  ;;  %v6058_v31 = vld [vmem:[%s6722_s19 + $0x32c] ss:$16 sps:$4 sm:$0xff]   ;;  %v6053_v32 = vld [vmem:[%s6722_s19 + $0x320] ss:$16 sps:$4 sm:$0xff]  }
  0x78   : > { %2964 = vmatprep.subr.bf16.mxu0 %v5972_v34  ;;  %3402 = vmatprep.subr.bf16.mxu1 %v5974_v35  ;;  %v6063_v34 = vld [vmem:[%s6722_s19 + $0x344] ss:$16 sps:$4 sm:$0xff]   ;;  %v6066_v35 = vld [vmem:[%s6722_s19 + $0x34c] ss:$16 sps:$4 sm:$0xff]  }
  0x7b   : > { %2965 = vmatpush1.bf16.msra.mxu0 %v5976_v36  ;;  %3403 = vmatpush1.bf16.msra.mxu1 %v5977_v37  ;;  %v6061_v36 = vld [vmem:[%s6722_s19 + $0x340] ss:$16 sps:$4 sm:$0xff]   ;;  %v6064_v37 = vld [vmem:[%s6722_s19 + $0x348] ss:$16 sps:$4 sm:$0xff]  }
  0x7c   : > { %2966 = vmatprep.subr.bf16.mxu0 %v5978_v38  ;;  %3404 = vmatprep.subr.bf16.mxu1 %v5980_v39  ;;  %v6070_v38 = vld [vmem:[%s6722_s19 + $0x364] ss:$16 sps:$4 sm:$0xff]   ;;  %v6073_v39 = vld [vmem:[%s6722_s19 + $0x36c] ss:$16 sps:$4 sm:$0xff]  }
  0x7f   : > { %2967 = vmatpush1.bf16.msra.mxu0 %v5982_v40  ;;  %3405 = vmatpush1.bf16.msra.mxu1 %v5983_v41  ;;  %v6068_v40 = vld [vmem:[%s6722_s19 + $0x360] ss:$16 sps:$4 sm:$0xff]   ;;  %v6071_v41 = vld [vmem:[%s6722_s19 + $0x368] ss:$16 sps:$4 sm:$0xff]  }
  0x80   : > { %2968 = vmatprep.subr.bf16.mxu0 %v5984_v42  ;;  %3406 = vmatprep.subr.bf16.mxu1 %v5986_v43  ;;  %v6078_v42 = vld [vmem:[%s6722_s19 + $0x384] ss:$16 sps:$4 sm:$0xff]   ;;  %v6081_v43 = vld [vmem:[%s6722_s19 + $0x38c] ss:$16 sps:$4 sm:$0xff]  }
  0x83   : > { %2969 = vmatpush1.bf16.msra.mxu0 %v5988_v44  ;;  %3407 = vmatpush1.bf16.msra.mxu1 %v5989_v45  ;;  %v6076_v44 = vld [vmem:[%s6722_s19 + $0x380] ss:$16 sps:$4 sm:$0xff]   ;;  %v6079_v45 = vld [vmem:[%s6722_s19 + $0x388] ss:$16 sps:$4 sm:$0xff]  }
  0x84   : > { %2970 = vmatprep.subr.bf16.mxu0 %v5990_v46  ;;  %3408 = vmatprep.subr.bf16.mxu1 %v5992_v47  ;;  %v6085_v46 = vld [vmem:[%s6722_s19 + $0x3a4] ss:$16 sps:$4 sm:$0xff]   ;;  %v6088_v47 = vld [vmem:[%s6722_s19 + $0x3ac] ss:$16 sps:$4 sm:$0xff]  }
  0x87   : > { %2971 = vmatpush1.bf16.msra.mxu0 %v5994_v48  ;;  %3409 = vmatpush1.bf16.msra.mxu1 %v5995_v49  ;;  %v6083_v48 = vld [vmem:[%s6722_s19 + $0x3a0] ss:$16 sps:$4 sm:$0xff]   ;;  %v6086_v49 = vld [vmem:[%s6722_s19 + $0x3a8] ss:$16 sps:$4 sm:$0xff]  }
  0x88   : > { %3013 = vmatprep.subr.bf16.mxu0 %v6001_v50  ;;  %3451 = vmatprep.subr.bf16.mxu1 %v6004_v51  ;;  %v6093_v50 = vld [vmem:[%s6722_s19 + $0x3c4] ss:$16 sps:$4 sm:$0xff]   ;;  %v6096_v51 = vld [vmem:[%s6722_s19 + $0x3cc] ss:$16 sps:$4 sm:$0xff]  }
  0x8a   : > { %2973 = vmatmul.mubr.bf16.vlgmr.msra.gmra.mrb[0].mxu0 %v5996_v52  ;;  %3411 = vmatmul.mubr.bf16.vlgmr.msra.gmra.mrb[0].mxu1 %v5996_v52  ;;  %v6091_v52 = vld [vmem:[%s6722_s19 + $0x3c0] ss:$16 sps:$4 sm:$0xff]  }
  0x8b   : > { %3014 = vmatpush1.bf16.msra.mxu0 %v5999_v53  ;;  %3452 = vmatpush1.bf16.msra.mxu1 %v6002_v54  ;;  %v6094_v53 = vld [vmem:[%s6722_s19 + $0x3c8] ss:$16 sps:$4 sm:$0xff]   ;;  %v6100_v54 = vld [vmem:[%s6722_s19 + $0x3e4] ss:$16 sps:$4 sm:$0xff]  }
  0x8c   : > { %3015 = vmatprep.subr.bf16.mxu0 %v6007_v55  ;;  %3453 = vmatprep.subr.bf16.mxu1 %v6010_v56  ;;  %v6103_v55 = vld [vmem:[%s6722_s19 + $0x3ec] ss:$16 sps:$4 sm:$0xff]   ;;  %v6098_v56 = vld [vmem:[%s6722_s19 + $0x3e0] ss:$16 sps:$4 sm:$0xff]  }
  0x8d   : > { %2982 = vmatprep.mubr.bf16.mxu0 %v6059_v62  ;;  %3420 = vmatprep.mubr.bf16.mxu1 %v6059_v62  ;;  %v6110_v62 = vld [vmem:[%s6722_s19 + $0x408] ss:$16 sps:$4 sm:$0xff]  }
  0x8f   : > { %3016 = vmatpush1.bf16.msra.mxu0 %v6005_v57  ;;  %3454 = vmatpush1.bf16.msra.mxu1 %v6008_v58  ;;  %v6101_v57 = vld [vmem:[%s6722_s19 + $0x3e8] ss:$16 sps:$4 sm:$0xff]   ;;  %v6109_v58 = vld [vmem:[%s6722_s19 + $0x404] ss:$16 sps:$4 sm:$0xff]  }
  0x90   : > { %3017 = vmatprep.subr.bf16.mxu0 %v6013_v59  ;;  %3455 = vmatprep.subr.bf16.mxu1 %v6016_v60  ;;  %v6112_v59 = vld [vmem:[%s6722_s19 + $0x40c] ss:$16 sps:$4 sm:$0xff]   ;;  %v6104_v60 = vld [vmem:[%s6724_s20 + $0x8] ss:$44 sps:$4 sm:$0xff]  }
  0x92   : > { %2983 = vmatmul.mubr.bf16.gmra.mrb[4].mxu0 %v6067_v2  ;;  %3421 = vmatmul.mubr.bf16.gmra.mrb[4].mxu1 %v6067_v2  ;;  %v6113_v2 = vld [vmem:[%s6722_s19 + $0x420] ss:$16 sps:$4 sm:$0xff]  }
  0x93   : > { %3018 = vmatpush1.bf16.msra.mxu0 %v6011_v61  ;;  %3456 = vmatpush1.bf16.msra.mxu1 %v6014_v63  ;;  %v6107_v61 = vld [vmem:[%s6722_s19 + $0x400] ss:$16 sps:$4 sm:$0xff]   ;;  %v6115_v63 = vld [vmem:[%s6722_s19 + $0x424] ss:$16 sps:$4 sm:$0xff]  }
  0x94   : > { %3019 = vmatprep.subr.bf16.mxu0 %v6019_v0  ;;  %3457 = vmatprep.subr.bf16.mxu1 %v6022_v1  ;;  %v6118_v0 = vld [vmem:[%s6722_s19 + $0x42c] ss:$16 sps:$4 sm:$0xff]   ;;  %v6167_v1 = vld [vmem:[%s6724_s20 + $0x64] ss:$44 sps:$4 sm:$0xff]  }
  0x95   : > { %2992 = vmatprep.mubr.bf16.mxu0 %v6074_v7  ;;  %3430 = vmatprep.mubr.bf16.mxu1 %v6074_v7  ;;  %v6122_v7 = vld [vmem:[%s6722_s19 + $0x448] ss:$16 sps:$4 sm:$0xff]  }
  0x97   : > { %3020 = vmatpush1.bf16.msra.mxu0 %v6017_v3  ;;  %3458 = vmatpush1.bf16.msra.mxu1 %v6020_v4  ;;  %v6116_v3 = vld [vmem:[%s6722_s19 + $0x428] ss:$16 sps:$4 sm:$0xff]   ;;  %v6121_v4 = vld [vmem:[%s6722_s19 + $0x444] ss:$16 sps:$4 sm:$0xff]  }
  0x98   : > { %3021 = vmatprep.subr.bf16.mxu0 %v6025_v5  ;;  %3459 = vmatprep.subr.bf16.mxu1 %v6028_v6  ;;  %v6124_v5 = vld [vmem:[%s6722_s19 + $0x44c] ss:$16 sps:$4 sm:$0xff]   ;;  %v6119_v6 = vld [vmem:[%s6722_s19 + $0x440] ss:$16 sps:$4 sm:$0xff]  }
  0x9a   : > { %2993 = vmatmul.mubr.bf16.gmra.mrb[8].mxu0 %v6082_v13  ;;  %3431 = vmatmul.mubr.bf16.gmra.mrb[8].mxu1 %v6082_v13  ;;  %v6128_v13 = vld [vmem:[%s6722_s19 + $0x468] ss:$16 sps:$4 sm:$0xff]  }
  0x9b   : > { %3022 = vmatpush1.bf16.msra.mxu0 %v6023_v8  ;;  %3460 = vmatpush1.bf16.msra.mxu1 %v6026_v9  ;;  %v6175_v8 = vld [vmem:[%s6724_s20 + $0x60] ss:$44 sps:$4 sm:$0xff]   ;;  %v6127_v9 = vld [vmem:[%s6722_s19 + $0x464] ss:$16 sps:$4 sm:$0xff]  }
  0x9c   : > { %3023 = vmatprep.subr.bf16.mxu0 %v6031_v10  ;;  %3461 = vmatprep.subr.bf16.mxu1 %v6034_v11  ;;  %v6130_v10 = vld [vmem:[%s6722_s19 + $0x46c] ss:$16 sps:$4 sm:$0xff]  }
  0x9d   : > { %3002 = vmatprep.mubr.bf16.mxu0 %v6089_v16  ;;  %3440 = vmatprep.mubr.bf16.mxu1 %v6089_v16  ;;  %v6182_v11 = vld [vmem:[%s6724_s20 + $0xbc] ss:$44 sps:$4 sm:$0xff]   ;;  %v6131_v16 = vld [vmem:[%s6722_s19 + $0x480] ss:$16 sps:$4 sm:$0xff]  }
  0x9f   : > { %3024 = vmatpush1.bf16.msra.mxu0 %v6029_v12  ;;  %3462 = vmatpush1.bf16.msra.mxu1 %v6032_v14  ;;  %v6125_v12 = vld [vmem:[%s6722_s19 + $0x460] ss:$16 sps:$4 sm:$0xff]   ;;  %v6133_v14 = vld [vmem:[%s6722_s19 + $0x484] ss:$16 sps:$4 sm:$0xff]  }
  0xa0   : > { %3025 = vmatprep.subr.bf16.mxu0 %v6037_v15  ;;  %3463 = vmatprep.subr.bf16.mxu1 %v6040_v17  ;;  %v6136_v15 = vld [vmem:[%s6722_s19 + $0x48c] ss:$16 sps:$4 sm:$0xff]   ;;  %v6134_v17 = vld [vmem:[%s6722_s19 + $0x488] ss:$16 sps:$4 sm:$0xff]  }
  0xa2   : > { %3003 = vmatmul.mubr.bf16.gmra.mrb[12].mxu0 %v6097_v23  ;;  %3441 = vmatmul.mubr.bf16.gmra.mrb[12].mxu1 %v6097_v23  ;;  %v6140_v23 = vld [vmem:[%s6722_s19 + $0x4a8] ss:$16 sps:$4 sm:$0xff]  }
  0xa3   : > { %3026 = vmatpush1.bf16.msra.mxu0 %v6035_v18  ;;  %3464 = vmatpush1.bf16.msra.mxu1 %v6038_v19  ;;  %v6190_v18 = vld [vmem:[%s6724_s20 + $0xb8] ss:$44 sps:$4 sm:$0xff]  }
  0xa4   : > { %3027 = vmatprep.subr.bf16.mxu0 %v6043_v20  ;;  %3465 = vmatprep.subr.bf16.mxu1 %v6046_v21  ;;  %v6139_v19 = vld [vmem:[%s6722_s19 + $0x4a4] ss:$16 sps:$4 sm:$0xff]   ;;  %v6142_v20 = vld [vmem:[%s6722_s19 + $0x4ac] ss:$16 sps:$4 sm:$0xff]  }
  0xa5   : > { %3045 = vmatprep.mubr.bf16.mxu0 %v6106_v25  ;;  %3483 = vmatprep.mubr.bf16.mxu1 %v6106_v25  ;;  %v6197_v21 = vld [vmem:[%s6724_s20 + $0x114] ss:$44 sps:$4 sm:$0xff]   ;;  %v6148_v25 = vld [vmem:[%s6722_s19 + $0x4cc] ss:$16 sps:$4 sm:$0xff]  }
  0xa7   : > { %3028 = vmatpush1.bf16.msra.mxu0 %v6041_v22  ;;  %3466 = vmatpush1.bf16.msra.mxu1 %v6044_v24  ;;  %v6137_v22 = vld [vmem:[%s6722_s19 + $0x4a0] ss:$16 sps:$4 sm:$0xff]   ;;  %v6145_v24 = vld [vmem:[%s6722_s19 + $0x4c4] ss:$16 sps:$4 sm:$0xff]  }
  0xa8   : > { %3029 = vmatprep.subr.bf16.mxu0 %v6049_v26  ;;  %3467 = vmatprep.subr.bf16.mxu1 %v6052_v27  ;;  %v6143_v26 = vld [vmem:[%s6722_s19 + $0x4c0] ss:$16 sps:$4 sm:$0xff]   ;;  %v6146_v27 = vld [vmem:[%s6722_s19 + $0x4c8] ss:$16 sps:$4 sm:$0xff]  }
  0xab   : > { %3030 = vmatpush1.bf16.msra.mxu0 %v6047_v28  ;;  %3468 = vmatpush1.bf16.msra.mxu1 %v6050_v29  ;;  %v6205_v28 = vld [vmem:[%s6724_s20 + $0x110] ss:$44 sps:$4 sm:$0xff]   ;;  %v6151_v29 = vld [vmem:[%s6722_s19 + $0x4e4] ss:$16 sps:$4 sm:$0xff]  }
  0xac   : > { %3031 = vmatprep.subr.bf16.mxu0 %v6055_v30  ;;  %3469 = vmatprep.subr.bf16.mxu1 %v6058_v31  ;;  %v6154_v30 = vld [vmem:[%s6722_s19 + $0x4ec] ss:$16 sps:$4 sm:$0xff]   ;;  %v6214_v31 = vld [vmem:[%s6724_s20 + $0x14] ss:$44 sps:$4 sm:$0xff]  }
  0xaf   : > { %3032 = vmatpush1.bf16.msra.mxu0 %v6053_v32  ;;  %3470 = vmatpush1.bf16.msra.mxu1 %v6056_v33  ;;  %v6149_v32 = vld [vmem:[%s6722_s19 + $0x4e0] ss:$16 sps:$4 sm:$0xff]   ;;  %v6152_v33 = vld [vmem:[%s6722_s19 + $0x4e8] ss:$16 sps:$4 sm:$0xff]  }
  0xb0   : > { %3033 = vmatprep.subr.bf16.mxu0 %v6063_v34  ;;  %3471 = vmatprep.subr.bf16.mxu1 %v6066_v35  ;;  %v6157_v34 = vld [vmem:[%s6722_s19 + $0x504] ss:$16 sps:$4 sm:$0xff]   ;;  %v6160_v35 = vld [vmem:[%s6722_s19 + $0x50c] ss:$16 sps:$4 sm:$0xff]  }
  0xb3   : > { %3034 = vmatpush1.bf16.msra.mxu0 %v6061_v36  ;;  %3472 = vmatpush1.bf16.msra.mxu1 %v6064_v37  ;;  %v6155_v36 = vld [vmem:[%s6722_s19 + $0x500] ss:$16 sps:$4 sm:$0xff]   ;;  %v6158_v37 = vld [vmem:[%s6722_s19 + $0x508] ss:$16 sps:$4 sm:$0xff]  }
  0xb4   : > { %3035 = vmatprep.subr.bf16.mxu0 %v6070_v38  ;;  %3473 = vmatprep.subr.bf16.mxu1 %v6073_v39  ;;  %v6163_v38 = vld [vmem:[%s6722_s19 + $0x524] ss:$16 sps:$4 sm:$0xff]   ;;  %v6166_v39 = vld [vmem:[%s6722_s19 + $0x52c] ss:$16 sps:$4 sm:$0xff]  }
  0xb7   : > { %3036 = vmatpush1.bf16.msra.mxu0 %v6068_v40  ;;  %3474 = vmatpush1.bf16.msra.mxu1 %v6071_v41  ;;  %v6161_v40 = vld [vmem:[%s6722_s19 + $0x520] ss:$16 sps:$4 sm:$0xff]   ;;  %v6164_v41 = vld [vmem:[%s6722_s19 + $0x528] ss:$16 sps:$4 sm:$0xff]  }
  0xb8   : > { %3037 = vmatprep.subr.bf16.mxu0 %v6078_v42  ;;  %3475 = vmatprep.subr.bf16.mxu1 %v6081_v43  ;;  %v6171_v42 = vld [vmem:[%s6722_s19 + $0x544] ss:$16 sps:$4 sm:$0xff]   ;;  %v6174_v43 = vld [vmem:[%s6722_s19 + $0x54c] ss:$16 sps:$4 sm:$0xff]  }
  0xbb   : > { %3038 = vmatpush1.bf16.msra.mxu0 %v6076_v44  ;;  %3476 = vmatpush1.bf16.msra.mxu1 %v6079_v45  ;;  %v6169_v44 = vld [vmem:[%s6722_s19 + $0x540] ss:$16 sps:$4 sm:$0xff]   ;;  %v6172_v45 = vld [vmem:[%s6722_s19 + $0x548] ss:$16 sps:$4 sm:$0xff]  }
  0xbc   : > { %3039 = vmatprep.subr.bf16.mxu0 %v6085_v46  ;;  %3477 = vmatprep.subr.bf16.mxu1 %v6088_v47  ;;  %v6178_v46 = vld [vmem:[%s6722_s19 + $0x564] ss:$16 sps:$4 sm:$0xff]   ;;  %v6181_v47 = vld [vmem:[%s6722_s19 + $0x56c] ss:$16 sps:$4 sm:$0xff]  }
  0xbf   : > { %3040 = vmatpush1.bf16.msra.mxu0 %v6083_v48  ;;  %3478 = vmatpush1.bf16.msra.mxu1 %v6086_v49  ;;  %v6176_v48 = vld [vmem:[%s6722_s19 + $0x560] ss:$16 sps:$4 sm:$0xff]   ;;  %v6179_v49 = vld [vmem:[%s6722_s19 + $0x568] ss:$16 sps:$4 sm:$0xff]  }
  0xc0   : > { %3041 = vmatprep.subr.bf16.mxu0 %v6093_v50  ;;  %3479 = vmatprep.subr.bf16.mxu1 %v6096_v51  ;;  %v6186_v50 = vld [vmem:[%s6722_s19 + $0x584] ss:$16 sps:$4 sm:$0xff]   ;;  %v6189_v51 = vld [vmem:[%s6722_s19 + $0x58c] ss:$16 sps:$4 sm:$0xff]  }
  0xc3   : > { %3042 = vmatpush1.bf16.msra.mxu0 %v6091_v52  ;;  %3480 = vmatpush1.bf16.msra.mxu1 %v6094_v53  ;;  %v6184_v52 = vld [vmem:[%s6722_s19 + $0x580] ss:$16 sps:$4 sm:$0xff]   ;;  %v6187_v53 = vld [vmem:[%s6722_s19 + $0x588] ss:$16 sps:$4 sm:$0xff]  }
  0xc4   : > { %3043 = vmatprep.subr.bf16.mxu0 %v6100_v54  ;;  %3481 = vmatprep.subr.bf16.mxu1 %v6103_v55  ;;  %v6193_v54 = vld [vmem:[%s6722_s19 + $0x5a4] ss:$16 sps:$4 sm:$0xff]   ;;  %v6196_v55 = vld [vmem:[%s6722_s19 + $0x5ac] ss:$16 sps:$4 sm:$0xff]  }
  0xc7   : > { %3044 = vmatpush1.bf16.msra.mxu0 %v6098_v56  ;;  %3482 = vmatpush1.bf16.msra.mxu1 %v6101_v57  ;;  %v6191_v56 = vld [vmem:[%s6722_s19 + $0x5a0] ss:$16 sps:$4 sm:$0xff]   ;;  %v6194_v57 = vld [vmem:[%s6722_s19 + $0x5a8] ss:$16 sps:$4 sm:$0xff]  }
  0xc8   : > { %3086 = vmatprep.subr.bf16.mxu0 %v6109_v58  ;;  %3524 = vmatprep.subr.bf16.mxu1 %v6112_v59  ;;  %v6201_v58 = vld [vmem:[%s6722_s19 + $0x5c4] ss:$16 sps:$4 sm:$0xff]   ;;  %v6204_v59 = vld [vmem:[%s6722_s19 + $0x5cc] ss:$16 sps:$4 sm:$0xff]  }
  0xca   : > { %3046 = vmatmul.mubr.bf16.vlgmr.msra.gmra.mrb[0].mxu0 %v6104_v60  ;;  %3484 = vmatmul.mubr.bf16.vlgmr.msra.gmra.mrb[0].mxu1 %v6104_v60  ;;  %v6199_v60 = vld [vmem:[%s6722_s19 + $0x5c0] ss:$16 sps:$4 sm:$0xff]  }
  0xcb   : > { %3087 = vmatpush1.bf16.msra.mxu0 %v6107_v61  ;;  %3525 = vmatpush1.bf16.msra.mxu1 %v6110_v62  ;;  %v6202_v61 = vld [vmem:[%s6722_s19 + $0x5c8] ss:$16 sps:$4 sm:$0xff]   ;;  %v6208_v62 = vld [vmem:[%s6722_s19 + $0x5e4] ss:$16 sps:$4 sm:$0xff]  }
  0xcc   : > { %3088 = vmatprep.subr.bf16.mxu0 %v6115_v63  ;;  %3526 = vmatprep.subr.bf16.mxu1 %v6118_v0  ;;  %v6211_v63 = vld [vmem:[%s6722_s19 + $0x5ec] ss:$16 sps:$4 sm:$0xff]   ;;  %v6206_v0 = vld [vmem:[%s6722_s19 + $0x5e0] ss:$16 sps:$4 sm:$0xff]  }
  0xcd   : > { %3055 = vmatprep.mubr.bf16.mxu0 %v6167_v1  ;;  %3493 = vmatprep.mubr.bf16.mxu1 %v6167_v1  ;;  %v6209_v1 = vld [vmem:[%s6722_s19 + $0x5e8] ss:$16 sps:$4 sm:$0xff]  }
  0xcf   : > { %3089 = vmatpush1.bf16.msra.mxu0 %v6113_v2  ;;  %3527 = vmatpush1.bf16.msra.mxu1 %v6116_v3  ;;  %v6217_v2 = vld [vmem:[%s6722_s19 + $0x604] ss:$16 sps:$4 sm:$0xff]   ;;  %v6220_v3 = vld [vmem:[%s6722_s19 + $0x60c] ss:$16 sps:$4 sm:$0xff]  }
  0xd0   : > { %3090 = vmatprep.subr.bf16.mxu0 %v6121_v4  ;;  %3528 = vmatprep.subr.bf16.mxu1 %v6124_v5  ;;  %v6212_v4 = vld [vmem:[%s6724_s20 + $0x10] ss:$44 sps:$4 sm:$0xff]  }
  0xd1   : > { %v6215_v5 = vld [vmem:[%s6722_s19 + $0x600] ss:$16 sps:$4 sm:$0xff]  }
  0xd2   : > { %3056 = vmatmul.mubr.bf16.gmra.mrb[4].mxu0 %v6175_v8  ;;  %3494 = vmatmul.mubr.bf16.gmra.mrb[4].mxu1 %v6175_v8  ;;  %v6226_v8 = vld [vmem:[%s6722_s19 + $0x62c] ss:$16 sps:$4 sm:$0xff]  }
  0xd3   : > { %3091 = vmatpush1.bf16.msra.mxu0 %v6119_v6  ;;  %3529 = vmatpush1.bf16.msra.mxu1 %v6122_v7  ;;  %v6218_v6 = vld [vmem:[%s6722_s19 + $0x608] ss:$16 sps:$4 sm:$0xff]   ;;  %v6223_v7 = vld [vmem:[%s6722_s19 + $0x624] ss:$16 sps:$4 sm:$0xff]  }
  0xd4   : > { %3092 = vmatprep.subr.bf16.mxu0 %v6127_v9  ;;  %3530 = vmatprep.subr.bf16.mxu1 %v6130_v10  ;;  %v6275_v9 = vld [vmem:[%s6724_s20 + $0x6c] ss:$44 sps:$4 sm:$0xff]   ;;  %v6221_v10 = vld [vmem:[%s6722_s19 + $0x620] ss:$16 sps:$4 sm:$0xff]  }
  0xd5   : > { %3065 = vmatprep.mubr.bf16.mxu0 %v6182_v11  ;;  %3503 = vmatprep.mubr.bf16.mxu1 %v6182_v11  ;;  %v6224_v11 = vld [vmem:[%s6722_s19 + $0x628] ss:$16 sps:$4 sm:$0xff]  }
  0xd7   : > { %3093 = vmatpush1.bf16.msra.mxu0 %v6125_v12  ;;  %3531 = vmatpush1.bf16.msra.mxu1 %v6128_v13  ;;  %v6229_v12 = vld [vmem:[%s6722_s19 + $0x644] ss:$16 sps:$4 sm:$0xff]   ;;  %v6232_v13 = vld [vmem:[%s6722_s19 + $0x64c] ss:$16 sps:$4 sm:$0xff]  }
  0xd8   : > { %3094 = vmatprep.subr.bf16.mxu0 %v6133_v14  ;;  %3532 = vmatprep.subr.bf16.mxu1 %v6136_v15  ;;  %v6227_v14 = vld [vmem:[%s6722_s19 + $0x640] ss:$16 sps:$4 sm:$0xff]   ;;  %v6230_v15 = vld [vmem:[%s6722_s19 + $0x648] ss:$16 sps:$4 sm:$0xff]  }
  0xda   : > { %3066 = vmatmul.mubr.bf16.gmra.mrb[8].mxu0 %v6190_v18  ;;  %3504 = vmatmul.mubr.bf16.gmra.mrb[8].mxu1 %v6190_v18  ;;  %v6238_v18 = vld [vmem:[%s6722_s19 + $0x66c] ss:$16 sps:$4 sm:$0xff]  }
  0xdb   : > { %3095 = vmatpush1.bf16.msra.mxu0 %v6131_v16  ;;  %3533 = vmatpush1.bf16.msra.mxu1 %v6134_v17  ;;  %v6283_v16 = vld [vmem:[%s6724_s20 + $0x68] ss:$44 sps:$4 sm:$0xff]  }
  0xdc   : > { %3096 = vmatprep.subr.bf16.mxu0 %v6139_v19  ;;  %3534 = vmatprep.subr.bf16.mxu1 %v6142_v20  ;;  %v6235_v17 = vld [vmem:[%s6722_s19 + $0x664] ss:$16 sps:$4 sm:$0xff]   ;;  %v6233_v20 = vld [vmem:[%s6722_s19 + $0x660] ss:$16 sps:$4 sm:$0xff]  }
  0xdd   : > { %3075 = vmatprep.mubr.bf16.mxu0 %v6197_v21  ;;  %3513 = vmatprep.mubr.bf16.mxu1 %v6197_v21  ;;  %v6290_v19 = vld [vmem:[%s6724_s20 + $0xc4] ss:$44 sps:$4 sm:$0xff]   ;;  %v6236_v21 = vld [vmem:[%s6722_s19 + $0x668] ss:$16 sps:$4 sm:$0xff]  }
  0xdf   : > { %3097 = vmatpush1.bf16.msra.mxu0 %v6137_v22  ;;  %3535 = vmatpush1.bf16.msra.mxu1 %v6140_v23  ;;  %v6241_v22 = vld [vmem:[%s6722_s19 + $0x684] ss:$16 sps:$4 sm:$0xff]   ;;  %v6244_v23 = vld [vmem:[%s6722_s19 + $0x68c] ss:$16 sps:$4 sm:$0xff]  }
  0xe0   : > { %3098 = vmatprep.subr.bf16.mxu0 %v6145_v24  ;;  %3536 = vmatprep.subr.bf16.mxu1 %v6148_v25  ;;  %v6239_v24 = vld [vmem:[%s6722_s19 + $0x680] ss:$16 sps:$4 sm:$0xff]   ;;  %v6242_v25 = vld [vmem:[%s6722_s19 + $0x688] ss:$16 sps:$4 sm:$0xff]  }
  0xe2   : > { %3076 = vmatmul.mubr.bf16.gmra.mrb[12].mxu0 %v6205_v28  ;;  %3514 = vmatmul.mubr.bf16.gmra.mrb[12].mxu1 %v6205_v28  ;;  %v6250_v28 = vld [vmem:[%s6722_s19 + $0x6ac] ss:$16 sps:$4 sm:$0xff]  }
  0xe3   : > { %3099 = vmatpush1.bf16.msra.mxu0 %v6143_v26  ;;  %3537 = vmatpush1.bf16.msra.mxu1 %v6146_v27  ;;  %v6298_v26 = vld [vmem:[%s6724_s20 + $0xc0] ss:$44 sps:$4 sm:$0xff]   ;;  %v6247_v27 = vld [vmem:[%s6722_s19 + $0x6a4] ss:$16 sps:$4 sm:$0xff]  }
  0xe4   : > { %3100 = vmatprep.subr.bf16.mxu0 %v6151_v29  ;;  %3538 = vmatprep.subr.bf16.mxu1 %v6154_v30  ;;  %v6305_v29 = vld [vmem:[%s6724_s20 + $0x11c] ss:$44 sps:$4 sm:$0xff]   ;;  %v6245_v30 = vld [vmem:[%s6722_s19 + $0x6a0] ss:$16 sps:$4 sm:$0xff]  }
  0xe5   : > { %3118 = vmatprep.mubr.bf16.mxu0 %v6214_v31  ;;  %3556 = vmatprep.mubr.bf16.mxu1 %v6214_v31  ;;  %v6248_v31 = vld [vmem:[%s6722_s19 + $0x6a8] ss:$16 sps:$4 sm:$0xff]  }
  0xe7   : > { %3101 = vmatpush1.bf16.msra.mxu0 %v6149_v32  ;;  %3539 = vmatpush1.bf16.msra.mxu1 %v6152_v33  ;;  %v6253_v32 = vld [vmem:[%s6722_s19 + $0x6c4] ss:$16 sps:$4 sm:$0xff]   ;;  %v6256_v33 = vld [vmem:[%s6722_s19 + $0x6cc] ss:$16 sps:$4 sm:$0xff]  }
  0xe8   : > { %3102 = vmatprep.subr.bf16.mxu0 %v6157_v34  ;;  %3540 = vmatprep.subr.bf16.mxu1 %v6160_v35  ;;  %v6251_v34 = vld [vmem:[%s6722_s19 + $0x6c0] ss:$16 sps:$4 sm:$0xff]   ;;  %v6254_v35 = vld [vmem:[%s6722_s19 + $0x6c8] ss:$16 sps:$4 sm:$0xff]  }
  0xeb   : > { %3103 = vmatpush1.bf16.msra.mxu0 %v6155_v36  ;;  %3541 = vmatpush1.bf16.msra.mxu1 %v6158_v37  ;;  %v6313_v36 = vld [vmem:[%s6724_s20 + $0x118] ss:$44 sps:$4 sm:$0xff]  }
  0xec   : > { %3104 = vmatprep.subr.bf16.mxu0 %v6163_v38  ;;  %3542 = vmatprep.subr.bf16.mxu1 %v6166_v39  ;;  %v6259_v37 = vld [vmem:[%s6722_s19 + $0x6e4] ss:$16 sps:$4 sm:$0xff]   ;;  %v6262_v38 = vld [vmem:[%s6722_s19 + $0x6ec] ss:$16 sps:$4 sm:$0xff]  }
  0xed   : > { %v6322_v39 = vld [vmem:[%s6724_s20 + $0x1c] ss:$44 sps:$4 sm:$0xff]  }
  0xef   : > { %3105 = vmatpush1.bf16.msra.mxu0 %v6161_v40  ;;  %3543 = vmatpush1.bf16.msra.mxu1 %v6164_v41  ;;  %v6257_v40 = vld [vmem:[%s6722_s19 + $0x6e0] ss:$16 sps:$4 sm:$0xff]   ;;  %v6260_v41 = vld [vmem:[%s6722_s19 + $0x6e8] ss:$16 sps:$4 sm:$0xff]  }
  0xf0   : > { %3106 = vmatprep.subr.bf16.mxu0 %v6171_v42  ;;  %3544 = vmatprep.subr.bf16.mxu1 %v6174_v43  ;;  %v6265_v42 = vld [vmem:[%s6722_s19 + $0x704] ss:$16 sps:$4 sm:$0xff]   ;;  %v6268_v43 = vld [vmem:[%s6722_s19 + $0x70c] ss:$16 sps:$4 sm:$0xff]  }
  0xf3   : > { %3107 = vmatpush1.bf16.msra.mxu0 %v6169_v44  ;;  %3545 = vmatpush1.bf16.msra.mxu1 %v6172_v45  ;;  %v6263_v44 = vld [vmem:[%s6722_s19 + $0x700] ss:$16 sps:$4 sm:$0xff]   ;;  %v6266_v45 = vld [vmem:[%s6722_s19 + $0x708] ss:$16 sps:$4 sm:$0xff]  }
  0xf4   : > { %3108 = vmatprep.subr.bf16.mxu0 %v6178_v46  ;;  %3546 = vmatprep.subr.bf16.mxu1 %v6181_v47  ;;  %v6271_v46 = vld [vmem:[%s6722_s19 + $0x724] ss:$16 sps:$4 sm:$0xff]   ;;  %v6274_v47 = vld [vmem:[%s6722_s19 + $0x72c] ss:$16 sps:$4 sm:$0xff]  }
  0xf7   : > { %3109 = vmatpush1.bf16.msra.mxu0 %v6176_v48  ;;  %3547 = vmatpush1.bf16.msra.mxu1 %v6179_v49  ;;  %v6269_v48 = vld [vmem:[%s6722_s19 + $0x720] ss:$16 sps:$4 sm:$0xff]   ;;  %v6272_v49 = vld [vmem:[%s6722_s19 + $0x728] ss:$16 sps:$4 sm:$0xff]  }
  0xf8   : > { %3110 = vmatprep.subr.bf16.mxu0 %v6186_v50  ;;  %3548 = vmatprep.subr.bf16.mxu1 %v6189_v51  ;;  %v6279_v50 = vld [vmem:[%s6722_s19 + $0x744] ss:$16 sps:$4 sm:$0xff]   ;;  %v6282_v51 = vld [vmem:[%s6722_s19 + $0x74c] ss:$16 sps:$4 sm:$0xff]  }
  0xfb   : > { %3111 = vmatpush1.bf16.msra.mxu0 %v6184_v52  ;;  %3549 = vmatpush1.bf16.msra.mxu1 %v6187_v53  ;;  %v6277_v52 = vld [vmem:[%s6722_s19 + $0x740] ss:$16 sps:$4 sm:$0xff]   ;;  %v6280_v53 = vld [vmem:[%s6722_s19 + $0x748] ss:$16 sps:$4 sm:$0xff]  }
  0xfc   : > { %3112 = vmatprep.subr.bf16.mxu0 %v6193_v54  ;;  %3550 = vmatprep.subr.bf16.mxu1 %v6196_v55  ;;  %v6286_v54 = vld [vmem:[%s6722_s19 + $0x764] ss:$16 sps:$4 sm:$0xff]   ;;  %v6289_v55 = vld [vmem:[%s6722_s19 + $0x76c] ss:$16 sps:$4 sm:$0xff]  }
  0xff   : > { %3113 = vmatpush1.bf16.msra.mxu0 %v6191_v56  ;;  %3551 = vmatpush1.bf16.msra.mxu1 %v6194_v57  ;;  %v6284_v56 = vld [vmem:[%s6722_s19 + $0x760] ss:$16 sps:$4 sm:$0xff]   ;;  %v6287_v57 = vld [vmem:[%s6722_s19 + $0x768] ss:$16 sps:$4 sm:$0xff]  }
 0x100   : > { %3114 = vmatprep.subr.bf16.mxu0 %v6201_v58  ;;  %3552 = vmatprep.subr.bf16.mxu1 %v6204_v59  ;;  %v6294_v58 = vld [vmem:[%s6722_s19 + $0x784] ss:$16 sps:$4 sm:$0xff]   ;;  %v6297_v59 = vld [vmem:[%s6722_s19 + $0x78c] ss:$16 sps:$4 sm:$0xff]  }
 0x103   : > { %3115 = vmatpush1.bf16.msra.mxu0 %v6199_v60  ;;  %3553 = vmatpush1.bf16.msra.mxu1 %v6202_v61  ;;  %v6292_v60 = vld [vmem:[%s6722_s19 + $0x780] ss:$16 sps:$4 sm:$0xff]   ;;  %v6295_v61 = vld [vmem:[%s6722_s19 + $0x788] ss:$16 sps:$4 sm:$0xff]  }
 0x104   : > { %3116 = vmatprep.subr.bf16.mxu0 %v6208_v62  ;;  %3554 = vmatprep.subr.bf16.mxu1 %v6211_v63  ;;  %v6301_v62 = vld [vmem:[%s6722_s19 + $0x7a4] ss:$16 sps:$4 sm:$0xff]   ;;  %v6304_v63 = vld [vmem:[%s6722_s19 + $0x7ac] ss:$16 sps:$4 sm:$0xff]  }
 0x107   : > { %3117 = vmatpush1.bf16.msra.mxu0 %v6206_v0  ;;  %3555 = vmatpush1.bf16.msra.mxu1 %v6209_v1  ;;  %v6299_v0 = vld [vmem:[%s6722_s19 + $0x7a0] ss:$16 sps:$4 sm:$0xff]   ;;  %v6302_v1 = vld [vmem:[%s6722_s19 + $0x7a8] ss:$16 sps:$4 sm:$0xff]  }
 0x108   : > { %3159 = vmatprep.subr.bf16.mxu0 %v6217_v2  ;;  %3597 = vmatprep.subr.bf16.mxu1 %v6220_v3  ;;  %v6309_v2 = vld [vmem:[%s6722_s19 + $0x7c4] ss:$16 sps:$4 sm:$0xff]   ;;  %v6312_v3 = vld [vmem:[%s6722_s19 + $0x7cc] ss:$16 sps:$4 sm:$0xff]  }
 0x10a   : > { %3119 = vmatmul.mubr.bf16.vlgmr.msra.gmra.mrb[0].mxu0 %v6212_v4  ;;  %3557 = vmatmul.mubr.bf16.vlgmr.msra.gmra.mrb[0].mxu1 %v6212_v4  ;;  %v6307_v4 = vld [vmem:[%s6722_s19 + $0x7c0] ss:$16 sps:$4 sm:$0xff]  }
 0x10b   : > { %3160 = vmatpush1.bf16.msra.mxu0 %v6215_v5  ;;  %3598 = vmatpush1.bf16.msra.mxu1 %v6218_v6  ;;  %v6310_v5 = vld [vmem:[%s6722_s19 + $0x7c8] ss:$16 sps:$4 sm:$0xff]   ;;  %v6316_v6 = vld [vmem:[%s6722_s19 + $0x7e4] ss:$16 sps:$4 sm:$0xff]  }
 0x10c   : > { %3161 = vmatprep.subr.bf16.mxu0 %v6223_v7  ;;  %3599 = vmatprep.subr.bf16.mxu1 %v6226_v8  ;;  %v6319_v7 = vld [vmem:[%s6722_s19 + $0x7ec] ss:$16 sps:$4 sm:$0xff]   ;;  %v6314_v8 = vld [vmem:[%s6722_s19 + $0x7e0] ss:$16 sps:$4 sm:$0xff]  }
 0x10d   : > { %3128 = vmatprep.mubr.bf16.mxu0 %v6275_v9  ;;  %3566 = vmatprep.mubr.bf16.mxu1 %v6275_v9  ;;  %v6317_v9 = vld [vmem:[%s6722_s19 + $0x7e8] ss:$16 sps:$4 sm:$0xff]  }
 0x10f   : > { %3162 = vmatpush1.bf16.msra.mxu0 %v6221_v10  ;;  %3600 = vmatpush1.bf16.msra.mxu1 %v6224_v11  ;;  %v6325_v10 = vld [vmem:[%s6722_s19 + $0x804] ss:$16 sps:$4 sm:$0xff]   ;;  %v6328_v11 = vld [vmem:[%s6722_s19 + $0x80c] ss:$16 sps:$4 sm:$0xff]  }
 0x110   : > { %3163 = vmatprep.subr.bf16.mxu0 %v6229_v12  ;;  %3601 = vmatprep.subr.bf16.mxu1 %v6232_v13  ;;  %v6320_v12 = vld [vmem:[%s6724_s20 + $0x18] ss:$44 sps:$4 sm:$0xff]   ;;  %v6323_v13 = vld [vmem:[%s6722_s19 + $0x800] ss:$16 sps:$4 sm:$0xff]  }
 0x112   : > { %3129 = vmatmul.mubr.bf16.gmra.mrb[4].mxu0 %v6283_v16  ;;  %3567 = vmatmul.mubr.bf16.gmra.mrb[4].mxu1 %v6283_v16  ;;  %v6334_v16 = vld [vmem:[%s6722_s19 + $0x82c] ss:$16 sps:$4 sm:$0xff]  }
 0x113   : > { %3164 = vmatpush1.bf16.msra.mxu0 %v6227_v14  ;;  %3602 = vmatpush1.bf16.msra.mxu1 %v6230_v15  ;;  %v6326_v14 = vld [vmem:[%s6722_s19 + $0x808] ss:$16 sps:$4 sm:$0xff]   ;;  %v6331_v15 = vld [vmem:[%s6722_s19 + $0x824] ss:$16 sps:$4 sm:$0xff]  }
 0x114   : > { %3165 = vmatprep.subr.bf16.mxu0 %v6235_v17  ;;  %3603 = vmatprep.subr.bf16.mxu1 %v6238_v18  ;;  %v6383_v17 = vld [vmem:[%s6724_s20 + $0x74] ss:$44 sps:$4 sm:$0xff]  }
 0x115   : > { %3138 = vmatprep.mubr.bf16.mxu0 %v6290_v19  ;;  %3576 = vmatprep.mubr.bf16.mxu1 %v6290_v19  ;;  %v6329_v18 = vld [vmem:[%s6722_s19 + $0x820] ss:$16 sps:$4 sm:$0xff]   ;;  %v6332_v19 = vld [vmem:[%s6722_s19 + $0x828] ss:$16 sps:$4 sm:$0xff]  }
 0x117   : > { %3166 = vmatpush1.bf16.msra.mxu0 %v6233_v20  ;;  %3604 = vmatpush1.bf16.msra.mxu1 %v6236_v21  ;;  %v6337_v20 = vld [vmem:[%s6722_s19 + $0x844] ss:$16 sps:$4 sm:$0xff]   ;;  %v6340_v21 = vld [vmem:[%s6722_s19 + $0x84c] ss:$16 sps:$4 sm:$0xff]  }
 0x118   : > { %3167 = vmatprep.subr.bf16.mxu0 %v6241_v22  ;;  %3605 = vmatprep.subr.bf16.mxu1 %v6244_v23  ;;  %v6335_v22 = vld [vmem:[%s6722_s19 + $0x840] ss:$16 sps:$4 sm:$0xff]  }
 0x119   : > { %v6385_v23 = vld [vmem:[%s6724_s20 + $0x70] ss:$44 sps:$4 sm:$0xff]  }
 0x11a   : > { %3139 = vmatmul.mubr.bf16.gmra.mrb[8].mxu0 %v6298_v26  ;;  %3577 = vmatmul.mubr.bf16.gmra.mrb[8].mxu1 %v6298_v26  ;;  %v6346_v26 = vld [vmem:[%s6722_s19 + $0x86c] ss:$16 sps:$4 sm:$0xff]  }
 0x11b   : > { %3168 = vmatpush1.bf16.msra.mxu0 %v6239_v24  ;;  %3606 = vmatpush1.bf16.msra.mxu1 %v6242_v25  ;;  %v6338_v24 = vld [vmem:[%s6722_s19 + $0x848] ss:$16 sps:$4 sm:$0xff]   ;;  %v6343_v25 = vld [vmem:[%s6722_s19 + $0x864] ss:$16 sps:$4 sm:$0xff]  }
 0x11c   : > { %3169 = vmatprep.subr.bf16.mxu0 %v6247_v27  ;;  %3607 = vmatprep.subr.bf16.mxu1 %v6250_v28  ;;  %v6398_v27 = vld [vmem:[%s6724_s20 + $0xcc] ss:$44 sps:$4 sm:$0xff]   ;;  %v6341_v28 = vld [vmem:[%s6722_s19 + $0x860] ss:$16 sps:$4 sm:$0xff]  }
 0x11d   : > { %3148 = vmatprep.mubr.bf16.mxu0 %v6305_v29  ;;  %3586 = vmatprep.mubr.bf16.mxu1 %v6305_v29  ;;  %v6344_v29 = vld [vmem:[%s6722_s19 + $0x868] ss:$16 sps:$4 sm:$0xff]  }
 0x11f   : > { %3170 = vmatpush1.bf16.msra.mxu0 %v6245_v30  ;;  %3608 = vmatpush1.bf16.msra.mxu1 %v6248_v31  ;;  %v6349_v30 = vld [vmem:[%s6722_s19 + $0x884] ss:$16 sps:$4 sm:$0xff]   ;;  %v6352_v31 = vld [vmem:[%s6722_s19 + $0x88c] ss:$16 sps:$4 sm:$0xff]  }
 0x120   : > { %3171 = vmatprep.subr.bf16.mxu0 %v6253_v32  ;;  %3609 = vmatprep.subr.bf16.mxu1 %v6256_v33  ;;  %v6400_v32 = vld [vmem:[%s6724_s20 + $0xc8] ss:$44 sps:$4 sm:$0xff]   ;;  %v6347_v33 = vld [vmem:[%s6722_s19 + $0x880] ss:$16 sps:$4 sm:$0xff]  }
 0x122   : > { %3149 = vmatmul.mubr.bf16.gmra.mrb[12].mxu0 %v6313_v36  ;;  %3587 = vmatmul.mubr.bf16.gmra.mrb[12].mxu1 %v6313_v36  ;;  %v6358_v36 = vld [vmem:[%s6722_s19 + $0x8ac] ss:$16 sps:$4 sm:$0xff]  }
 0x123   : > { %3172 = vmatpush1.bf16.msra.mxu0 %v6251_v34  ;;  %3610 = vmatpush1.bf16.msra.mxu1 %v6254_v35  ;;  %v6350_v34 = vld [vmem:[%s6722_s19 + $0x888] ss:$16 sps:$4 sm:$0xff]   ;;  %v6355_v35 = vld [vmem:[%s6722_s19 + $0x8a4] ss:$16 sps:$4 sm:$0xff]  }
 0x124   : > { %3173 = vmatprep.subr.bf16.mxu0 %v6259_v37  ;;  %3611 = vmatprep.subr.bf16.mxu1 %v6262_v38  ;;  %v6413_v37 = vld [vmem:[%s6724_s20 + $0x124] ss:$44 sps:$4 sm:$0xff]  }
 0x125   : > { %3191 = vmatprep.mubr.bf16.mxu0 %v6322_v39  ;;  %3629 = vmatprep.mubr.bf16.mxu1 %v6322_v39  ;;  %v6353_v38 = vld [vmem:[%s6722_s19 + $0x8a0] ss:$16 sps:$4 sm:$0xff]   ;;  %v6356_v39 = vld [vmem:[%s6722_s19 + $0x8a8] ss:$16 sps:$4 sm:$0xff]  }
 0x127   : > { %3174 = vmatpush1.bf16.msra.mxu0 %v6257_v40  ;;  %3612 = vmatpush1.bf16.msra.mxu1 %v6260_v41  ;;  %v6361_v40 = vld [vmem:[%s6722_s19 + $0x8c4] ss:$16 sps:$4 sm:$0xff]   ;;  %v6364_v41 = vld [vmem:[%s6722_s19 + $0x8cc] ss:$16 sps:$4 sm:$0xff]  }
 0x128   : > { %3175 = vmatprep.subr.bf16.mxu0 %v6265_v42  ;;  %3613 = vmatprep.subr.bf16.mxu1 %v6268_v43  ;;  %v6415_v42 = vld [vmem:[%s6724_s20 + $0x120] ss:$44 sps:$4 sm:$0xff]  }
 0x129   : > { %v6359_v43 = vld [vmem:[%s6722_s19 + $0x8c0] ss:$16 sps:$4 sm:$0xff]  }
 0x12b   : > { %3176 = vmatpush1.bf16.msra.mxu0 %v6263_v44  ;;  %3614 = vmatpush1.bf16.msra.mxu1 %v6266_v45  ;;  %v6362_v44 = vld [vmem:[%s6722_s19 + $0x8c8] ss:$16 sps:$4 sm:$0xff]   ;;  %v6367_v45 = vld [vmem:[%s6722_s19 + $0x8e4] ss:$16 sps:$4 sm:$0xff]  }
 0x12c   : > { %3177 = vmatprep.subr.bf16.mxu0 %v6271_v46  ;;  %3615 = vmatprep.subr.bf16.mxu1 %v6274_v47  ;;  %v6370_v46 = vld [vmem:[%s6722_s19 + $0x8ec] ss:$16 sps:$4 sm:$0xff]   ;;  %v6430_v47 = vld [vmem:[%s6724_s20 + $0x24] ss:$44 sps:$4 sm:$0xff]  }
 0x12f   : > { %3178 = vmatpush1.bf16.msra.mxu0 %v6269_v48  ;;  %3616 = vmatpush1.bf16.msra.mxu1 %v6272_v49  ;;  %v6365_v48 = vld [vmem:[%s6722_s19 + $0x8e0] ss:$16 sps:$4 sm:$0xff]   ;;  %v6368_v49 = vld [vmem:[%s6722_s19 + $0x8e8] ss:$16 sps:$4 sm:$0xff]  }
 0x130   : > { %3179 = vmatprep.subr.bf16.mxu0 %v6279_v50  ;;  %3617 = vmatprep.subr.bf16.mxu1 %v6282_v51  ;;  %v6373_v50 = vld [vmem:[%s6722_s19 + $0x904] ss:$16 sps:$4 sm:$0xff]   ;;  %v6376_v51 = vld [vmem:[%s6722_s19 + $0x90c] ss:$16 sps:$4 sm:$0xff]  }
 0x133   : > { %3180 = vmatpush1.bf16.msra.mxu0 %v6277_v52  ;;  %3618 = vmatpush1.bf16.msra.mxu1 %v6280_v53  ;;  %v6371_v52 = vld [vmem:[%s6722_s19 + $0x900] ss:$16 sps:$4 sm:$0xff]   ;;  %v6374_v53 = vld [vmem:[%s6722_s19 + $0x908] ss:$16 sps:$4 sm:$0xff]  }
 0x134   : > { %3181 = vmatprep.subr.bf16.mxu0 %v6286_v54  ;;  %3619 = vmatprep.subr.bf16.mxu1 %v6289_v55  ;;  %v6379_v54 = vld [vmem:[%s6722_s19 + $0x924] ss:$16 sps:$4 sm:$0xff]   ;;  %v6382_v55 = vld [vmem:[%s6722_s19 + $0x92c] ss:$16 sps:$4 sm:$0xff]  }
 0x137   : > { %3182 = vmatpush1.bf16.msra.mxu0 %v6284_v56  ;;  %3620 = vmatpush1.bf16.msra.mxu1 %v6287_v57  ;;  %v6377_v56 = vld [vmem:[%s6722_s19 + $0x920] ss:$16 sps:$4 sm:$0xff]   ;;  %v6380_v57 = vld [vmem:[%s6722_s19 + $0x928] ss:$16 sps:$4 sm:$0xff]  }
 0x138   : > { %3183 = vmatprep.subr.bf16.mxu0 %v6294_v58  ;;  %3621 = vmatprep.subr.bf16.mxu1 %v6297_v59  ;;  %v6388_v58 = vld [vmem:[%s6722_s19 + $0x944] ss:$16 sps:$4 sm:$0xff]   ;;  %v6391_v59 = vld [vmem:[%s6722_s19 + $0x94c] ss:$16 sps:$4 sm:$0xff]  }
 0x13b   : > { %3184 = vmatpush1.bf16.msra.mxu0 %v6292_v60  ;;  %3622 = vmatpush1.bf16.msra.mxu1 %v6295_v61  ;;  %v6386_v60 = vld [vmem:[%s6722_s19 + $0x940] ss:$16 sps:$4 sm:$0xff]   ;;  %v6389_v61 = vld [vmem:[%s6722_s19 + $0x948] ss:$16 sps:$4 sm:$0xff]  }
 0x13c   : > { %3185 = vmatprep.subr.bf16.mxu0 %v6301_v62  ;;  %3623 = vmatprep.subr.bf16.mxu1 %v6304_v63  ;;  %v6394_v62 = vld [vmem:[%s6722_s19 + $0x964] ss:$16 sps:$4 sm:$0xff]   ;;  %v6397_v63 = vld [vmem:[%s6722_s19 + $0x96c] ss:$16 sps:$4 sm:$0xff]  }
 0x13f   : > { %3186 = vmatpush1.bf16.msra.mxu0 %v6299_v0  ;;  %3624 = vmatpush1.bf16.msra.mxu1 %v6302_v1  ;;  %v6392_v0 = vld [vmem:[%s6722_s19 + $0x960] ss:$16 sps:$4 sm:$0xff]   ;;  %v6395_v1 = vld [vmem:[%s6722_s19 + $0x968] ss:$16 sps:$4 sm:$0xff]  }
 0x140   : > { %3187 = vmatprep.subr.bf16.mxu0 %v6309_v2  ;;  %3625 = vmatprep.subr.bf16.mxu1 %v6312_v3  ;;  %v6403_v2 = vld [vmem:[%s6722_s19 + $0x984] ss:$16 sps:$4 sm:$0xff]   ;;  %v6406_v3 = vld [vmem:[%s6722_s19 + $0x98c] ss:$16 sps:$4 sm:$0xff]  }
 0x143   : > { %3188 = vmatpush1.bf16.msra.mxu0 %v6307_v4  ;;  %3626 = vmatpush1.bf16.msra.mxu1 %v6310_v5  ;;  %v6401_v4 = vld [vmem:[%s6722_s19 + $0x980] ss:$16 sps:$4 sm:$0xff]   ;;  %v6404_v5 = vld [vmem:[%s6722_s19 + $0x988] ss:$16 sps:$4 sm:$0xff]  }
 0x144   : > { %3189 = vmatprep.subr.bf16.mxu0 %v6316_v6  ;;  %3627 = vmatprep.subr.bf16.mxu1 %v6319_v7  ;;  %v6409_v6 = vld [vmem:[%s6722_s19 + $0x9a4] ss:$16 sps:$4 sm:$0xff]   ;;  %v6412_v7 = vld [vmem:[%s6722_s19 + $0x9ac] ss:$16 sps:$4 sm:$0xff]  }
 0x147   : > { %3190 = vmatpush1.bf16.msra.mxu0 %v6314_v8  ;;  %3628 = vmatpush1.bf16.msra.mxu1 %v6317_v9  ;;  %v6407_v8 = vld [vmem:[%s6722_s19 + $0x9a0] ss:$16 sps:$4 sm:$0xff]   ;;  %v6410_v9 = vld [vmem:[%s6722_s19 + $0x9a8] ss:$16 sps:$4 sm:$0xff]  }
 0x148   : > { %3232 = vmatprep.subr.bf16.mxu0 %v6325_v10  ;;  %3670 = vmatprep.subr.bf16.mxu1 %v6328_v11  ;;  %v6418_v10 = vld [vmem:[%s6722_s19 + $0x9c4] ss:$16 sps:$4 sm:$0xff]   ;;  %v6421_v11 = vld [vmem:[%s6722_s19 + $0x9cc] ss:$16 sps:$4 sm:$0xff]  }
 0x14a   : > { %3192 = vmatmul.mubr.bf16.vlgmr.msra.gmra.mrb[0].mxu0 %v6320_v12  ;;  %3630 = vmatmul.mubr.bf16.vlgmr.msra.gmra.mrb[0].mxu1 %v6320_v12  ;;  %v6416_v12 = vld [vmem:[%s6722_s19 + $0x9c0] ss:$16 sps:$4 sm:$0xff]  }
 0x14b   : > { %3233 = vmatpush1.bf16.msra.mxu0 %v6323_v13  ;;  %3671 = vmatpush1.bf16.msra.mxu1 %v6326_v14  ;;  %v6419_v13 = vld [vmem:[%s6722_s19 + $0x9c8] ss:$16 sps:$4 sm:$0xff]   ;;  %v6424_v14 = vld [vmem:[%s6722_s19 + $0x9e4] ss:$16 sps:$4 sm:$0xff]  }
 0x14c   : > { %3234 = vmatprep.subr.bf16.mxu0 %v6331_v15  ;;  %3672 = vmatprep.subr.bf16.mxu1 %v6334_v16  ;;  %v6427_v15 = vld [vmem:[%s6722_s19 + $0x9ec] ss:$16 sps:$4 sm:$0xff]   ;;  %v6422_v16 = vld [vmem:[%s6722_s19 + $0x9e0] ss:$16 sps:$4 sm:$0xff]  }
 0x14d   : > { %3201 = vmatprep.mubr.bf16.mxu0 %v6383_v17  ;;  %3639 = vmatprep.mubr.bf16.mxu1 %v6383_v17  ;;  %v6425_v17 = vld [vmem:[%s6722_s19 + $0x9e8] ss:$16 sps:$4 sm:$0xff]  }
 0x14f   : > { %3235 = vmatpush1.bf16.msra.mxu0 %v6329_v18  ;;  %3673 = vmatpush1.bf16.msra.mxu1 %v6332_v19  ;;  %v6433_v18 = vld [vmem:[%s6722_s19 + $0xa04] ss:$16 sps:$4 sm:$0xff]   ;;  %v6436_v19 = vld [vmem:[%s6722_s19 + $0xa0c] ss:$16 sps:$4 sm:$0xff]  }
 0x150   : > { %3236 = vmatprep.subr.bf16.mxu0 %v6337_v20  ;;  %3674 = vmatprep.subr.bf16.mxu1 %v6340_v21  ;;  %v6428_v20 = vld [vmem:[%s6724_s20 + $0x20] ss:$44 sps:$4 sm:$0xff]  }
 0x151   : > { %v6431_v21 = vld [vmem:[%s6722_s19 + $0xa00] ss:$16 sps:$4 sm:$0xff]  }
 0x152   : > { %3202 = vmatmul.mubr.bf16.gmra.mrb[4].mxu0 %v6385_v23  ;;  %3640 = vmatmul.mubr.bf16.gmra.mrb[4].mxu1 %v6385_v23  ;;  %v6439_v23 = vld [vmem:[%s6722_s19 + $0xa24] ss:$16 sps:$4 sm:$0xff]  }
 0x153   : > { %3237 = vmatpush1.bf16.msra.mxu0 %v6335_v22  ;;  %3675 = vmatpush1.bf16.msra.mxu1 %v6338_v24  ;;  %v6434_v22 = vld [vmem:[%s6722_s19 + $0xa08] ss:$16 sps:$4 sm:$0xff]   ;;  %v6442_v24 = vld [vmem:[%s6722_s19 + $0xa2c] ss:$16 sps:$4 sm:$0xff]  }
 0x154   : > { %3238 = vmatprep.subr.bf16.mxu0 %v6343_v25  ;;  %3676 = vmatprep.subr.bf16.mxu1 %v6346_v26  ;;  %v6443_v25 = vld [vmem:[%s6724_s20 + $0x7c] ss:$44 sps:$4 sm:$0xff]   ;;  %v6437_v26 = vld [vmem:[%s6722_s19 + $0xa20] ss:$16 sps:$4 sm:$0xff]  }
 0x155   : > { %3211 = vmatprep.mubr.bf16.mxu0 %v6398_v27  ;;  %3649 = vmatprep.mubr.bf16.mxu1 %v6398_v27  ;;  %v6440_v27 = vld [vmem:[%s6722_s19 + $0xa28] ss:$16 sps:$4 sm:$0xff]  }
 0x157   : > { %3239 = vmatpush1.bf16.msra.mxu0 %v6341_v28  ;;  %3677 = vmatpush1.bf16.msra.mxu1 %v6344_v29  ;;  %v6448_v28 = vld [vmem:[%s6722_s19 + $0xa44] ss:$16 sps:$4 sm:$0xff]   ;;  %v6451_v29 = vld [vmem:[%s6722_s19 + $0xa4c] ss:$16 sps:$4 sm:$0xff]  }
 0x158   : > { %3240 = vmatprep.subr.bf16.mxu0 %v6349_v30  ;;  %3678 = vmatprep.subr.bf16.mxu1 %v6352_v31  ;;  %v6445_v30 = vld [vmem:[%s6724_s20 + $0x78] ss:$44 sps:$4 sm:$0xff]   ;;  %v6446_v31 = vld [vmem:[%s6722_s19 + $0xa40] ss:$16 sps:$4 sm:$0xff]  }
 0x15a   : > { %3212 = vmatmul.mubr.bf16.gmra.mrb[8].mxu0 %v6400_v32  ;;  %3650 = vmatmul.mubr.bf16.gmra.mrb[8].mxu1 %v6400_v32  ;;  %v6449_v32 = vld [vmem:[%s6722_s19 + $0xa48] ss:$16 sps:$4 sm:$0xff]  }
 0x15b   : > { %3241 = vmatpush1.bf16.msra.mxu0 %v6347_v33  ;;  %3679 = vmatpush1.bf16.msra.mxu1 %v6350_v34  ;;  %v6454_v33 = vld [vmem:[%s6722_s19 + $0xa64] ss:$16 sps:$4 sm:$0xff]   ;;  %v6457_v34 = vld [vmem:[%s6722_s19 + $0xa6c] ss:$16 sps:$4 sm:$0xff]  }
 0x15c   : > { %3242 = vmatprep.subr.bf16.mxu0 %v6355_v35  ;;  %3680 = vmatprep.subr.bf16.mxu1 %v6358_v36  ;;  %v6458_v35 = vld [vmem:[%s6724_s20 + $0xd4] ss:$44 sps:$4 sm:$0xff]  }
 0x15d   : > { %3221 = vmatprep.mubr.bf16.mxu0 %v6413_v37  ;;  %3659 = vmatprep.mubr.bf16.mxu1 %v6413_v37  ;;  %v6452_v36 = vld [vmem:[%s6722_s19 + $0xa60] ss:$16 sps:$4 sm:$0xff]   ;;  %v6455_v37 = vld [vmem:[%s6722_s19 + $0xa68] ss:$16 sps:$4 sm:$0xff]  }
 0x15f   : > { %3243 = vmatpush1.bf16.msra.mxu0 %v6353_v38  ;;  %3681 = vmatpush1.bf16.msra.mxu1 %v6356_v39  ;;  %v6463_v38 = vld [vmem:[%s6722_s19 + $0xa84] ss:$16 sps:$4 sm:$0xff]   ;;  %v6466_v39 = vld [vmem:[%s6722_s19 + $0xa8c] ss:$16 sps:$4 sm:$0xff]  }
 0x160   : > { %3244 = vmatprep.subr.bf16.mxu0 %v6361_v40  ;;  %3682 = vmatprep.subr.bf16.mxu1 %v6364_v41  ;;  %v6460_v40 = vld [vmem:[%s6724_s20 + $0xd0] ss:$44 sps:$4 sm:$0xff]  }
 0x161   : > { %v6461_v41 = vld [vmem:[%s6722_s19 + $0xa80] ss:$16 sps:$4 sm:$0xff]  }
 0x162   : > { %3222 = vmatmul.mubr.bf16.gmra.mrb[12].mxu0 %v6415_v42  ;;  %3660 = vmatmul.mubr.bf16.gmra.mrb[12].mxu1 %v6415_v42  ;;  %v6464_v42 = vld [vmem:[%s6722_s19 + $0xa88] ss:$16 sps:$4 sm:$0xff]  }
 0x163   : > { %3245 = vmatpush1.bf16.msra.mxu0 %v6359_v43  ;;  %3683 = vmatpush1.bf16.msra.mxu1 %v6362_v44  ;;  %v6469_v43 = vld [vmem:[%s6722_s19 + $0xaa4] ss:$16 sps:$4 sm:$0xff]   ;;  %v6472_v44 = vld [vmem:[%s6722_s19 + $0xaac] ss:$16 sps:$4 sm:$0xff]  }
 0x164   : > { %3246 = vmatprep.subr.bf16.mxu0 %v6367_v45  ;;  %3684 = vmatprep.subr.bf16.mxu1 %v6370_v46  ;;  %v6473_v45 = vld [vmem:[%s6724_s20 + $0x12c] ss:$44 sps:$4 sm:$0xff]   ;;  %v6467_v46 = vld [vmem:[%s6722_s19 + $0xaa0] ss:$16 sps:$4 sm:$0xff]  }
 0x165   : > { %3264 = vmatprep.mubr.bf16.mxu0 %v6430_v47  ;;  %3702 = vmatprep.mubr.bf16.mxu1 %v6430_v47  ;;  %v6470_v47 = vld [vmem:[%s6722_s19 + $0xaa8] ss:$16 sps:$4 sm:$0xff]  }
 0x167   : > { %3247 = vmatpush1.bf16.msra.mxu0 %v6365_v48  ;;  %3685 = vmatpush1.bf16.msra.mxu1 %v6368_v49  ;;  %v6478_v48 = vld [vmem:[%s6722_s19 + $0xac4] ss:$16 sps:$4 sm:$0xff]   ;;  %v6481_v49 = vld [vmem:[%s6722_s19 + $0xacc] ss:$16 sps:$4 sm:$0xff]  }
 0x168   : > { %3248 = vmatprep.subr.bf16.mxu0 %v6373_v50  ;;  %3686 = vmatprep.subr.bf16.mxu1 %v6376_v51  ;;  %v6475_v50 = vld [vmem:[%s6724_s20 + $0x128] ss:$44 sps:$4 sm:$0xff]   ;;  %v6476_v51 = vld [vmem:[%s6722_s19 + $0xac0] ss:$16 sps:$4 sm:$0xff]  }
 0x16b   : > { %3249 = vmatpush1.bf16.msra.mxu0 %v6371_v52  ;;  %3687 = vmatpush1.bf16.msra.mxu1 %v6374_v53  ;;  %v6479_v52 = vld [vmem:[%s6722_s19 + $0xac8] ss:$16 sps:$4 sm:$0xff]   ;;  %v6484_v53 = vld [vmem:[%s6722_s19 + $0xae4] ss:$16 sps:$4 sm:$0xff]  }
 0x16c   : > { %3250 = vmatprep.subr.bf16.mxu0 %v6379_v54  ;;  %3688 = vmatprep.subr.bf16.mxu1 %v6382_v55  ;;  %v6487_v54 = vld [vmem:[%s6722_s19 + $0xaec] ss:$16 sps:$4 sm:$0xff]   ;;  %v6482_v55 = vld [vmem:[%s6722_s19 + $0xae0] ss:$16 sps:$4 sm:$0xff]  }
 0x16f   : > { %3251 = vmatpush1.bf16.msra.mxu0 %v6377_v56  ;;  %3689 = vmatpush1.bf16.msra.mxu1 %v6380_v57  ;;  %v6485_v56 = vld [vmem:[%s6722_s19 + $0xae8] ss:$16 sps:$4 sm:$0xff]   ;;  %v6535_v57 = vmov 0  }
 0x170   : > { %3252 = vmatprep.subr.bf16.mxu0 %v6388_v58  ;;  %3690 = vmatprep.subr.bf16.mxu1 %v6391_v59  ;;  %v6488_v58 = vld [vmem:[%s6724_s20 + $0x28] ss:$44 sps:$4 sm:$0xff]   ;;  %v6489_v59 = vld [vmem:[%s6724_s20 + $0x80] ss:$44 sps:$4 sm:$0xff]  }
 0x173   : > { %3253 = vmatpush1.bf16.msra.mxu0 %v6386_v60  ;;  %3691 = vmatpush1.bf16.msra.mxu1 %v6389_v61  ;;  %v6490_v60 = vld [vmem:[%s6724_s20 + $0xd8] ss:$44 sps:$4 sm:$0xff]   ;;  %v6491_v61 = vld [vmem:[%s6724_s20 + $0x130] ss:$44 sps:$4 sm:$0xff]  }
 0x174   : > { %3254 = vmatprep.subr.bf16.mxu0 %v6394_v62  ;;  %3692 = vmatprep.subr.bf16.mxu1 %v6397_v63  ;;  %v524_v62 = vld [vmem:[%s8474_s6] sm:$0xff]  ;;  %v526_v63 = vld [vmem:[%s8474_s6 + $0x10] sm:$0xff] }
 0x177   : > { %3255 = vmatpush1.bf16.msra.mxu0 %v6392_v0  ;;  %3693 = vmatpush1.bf16.msra.mxu1 %v6395_v1  ;;  %v525_v0 = vld [vmem:[%s8474_s6 + $0x8] sm:$0xff]  ;;  %v527_v1 = vld [vmem:[%s8474_s6 + $0x18] sm:$0xff] }
 0x178   : > { %3256 = vmatprep.subr.bf16.mxu0 %v6403_v2  ;;  %3694 = vmatprep.subr.bf16.mxu1 %v6406_v3 }
 0x17b   : > { %3257 = vmatpush1.bf16.msra.mxu0 %v6401_v4  ;;  %3695 = vmatpush1.bf16.msra.mxu1 %v6404_v5  ;;  %v528_v4 = vld [vmem:[%s8474_s6 + $0x20] sm:$0xff]  ;;  %v530_v5 = vld [vmem:[%s8474_s6 + $0x30] sm:$0xff] }
 0x17c   : > { %3258 = vmatprep.subr.bf16.mxu0 %v6409_v6  ;;  %3696 = vmatprep.subr.bf16.mxu1 %v6412_v7 }
 0x17f   : > { %3259 = vmatpush1.bf16.msra.mxu0 %v6407_v8  ;;  %3697 = vmatpush1.bf16.msra.mxu1 %v6410_v9 }
 0x180   : > { %3260 = vmatprep.subr.bf16.mxu0 %v6418_v10  ;;  %3698 = vmatprep.subr.bf16.mxu1 %v6421_v11  ;;  %v529_v10 = vld [vmem:[%s8474_s6 + $0x28] sm:$0xff]  ;;  %v531_v11 = vld [vmem:[%s8474_s6 + $0x38] sm:$0xff] }
 0x183   : > { %3261 = vmatpush1.bf16.msra.mxu0 %v6416_v12  ;;  %3699 = vmatpush1.bf16.msra.mxu1 %v6419_v13 }
 0x184   : > { %3262 = vmatprep.subr.bf16.mxu0 %v6424_v14  ;;  %3700 = vmatprep.subr.bf16.mxu1 %v6427_v15 }
 0x187   : > { %3263 = vmatpush1.bf16.msra.mxu0 %v6422_v16  ;;  %3701 = vmatpush1.bf16.msra.mxu1 %v6425_v17 }
 0x188   : > { %3305 = vmatprep.subr.bf16.mxu0 %v6433_v18  ;;  %3743 = vmatprep.subr.bf16.mxu1 %v6436_v19 }
 0x18a   : > { %3265 = vmatmul.mubr.bf16.vlgmr.msra.gmra.mrb[0].mxu0 %v6428_v20  ;;  %3703 = vmatmul.mubr.bf16.vlgmr.msra.gmra.mrb[0].mxu1 %v6428_v20 }
 0x18b   : > { %3306 = vmatpush1.bf16.msra.mxu0 %v6431_v21  ;;  %3744 = vmatpush1.bf16.msra.mxu1 %v6434_v22  ;;  %v532_v22 = vld [vmem:[%s8474_s6 + $0x40] sm:$0xff] }
 0x18c   : > { %3307 = vmatprep.subr.bf16.mxu0 %v6439_v23  ;;  %3745 = vmatprep.subr.bf16.mxu1 %v6442_v24  ;;  %v534_v23 = vld [vmem:[%s8474_s6 + $0x50] sm:$0xff]  ;;  %v533_v24 = vld [vmem:[%s8474_s6 + $0x48] sm:$0xff] }
 0x18d   : > { %3274 = vmatprep.mubr.bf16.mxu0 %v6443_v25  ;;  %3712 = vmatprep.mubr.bf16.mxu1 %v6443_v25  ;;  %v535_v25 = vld [vmem:[%s8474_s6 + $0x58] sm:$0xff] }
 0x18f   : > { %3308 = vmatpush1.bf16.msra.mxu0 %v6437_v26  ;;  %3746 = vmatpush1.bf16.msra.mxu1 %v6440_v27 }
 0x190   : > { %3309 = vmatprep.subr.bf16.mxu0 %v6448_v28  ;;  %3747 = vmatprep.subr.bf16.mxu1 %v6451_v29  ;;  %v536_v28 = vld [vmem:[%s8474_s6 + $0x60] sm:$0xff]  ;;  %v538_v29 = vld [vmem:[%s8474_s6 + $0x70] sm:$0xff] }
 0x192   : > { %3275 = vmatmul.mubr.bf16.gmra.mrb[4].mxu0 %v6445_v30  ;;  %3713 = vmatmul.mubr.bf16.gmra.mrb[4].mxu1 %v6445_v30 }
 0x193   : > { %3310 = vmatpush1.bf16.msra.mxu0 %v6446_v31  ;;  %3748 = vmatpush1.bf16.msra.mxu1 %v6449_v32 }
 0x194   : > { %3311 = vmatprep.subr.bf16.mxu0 %v6454_v33  ;;  %3749 = vmatprep.subr.bf16.mxu1 %v6457_v34  ;;  %v537_v34 = vld [vmem:[%s8474_s6 + $0x68] sm:$0xff] }
 0x195   : > { %3284 = vmatprep.mubr.bf16.mxu0 %v6458_v35  ;;  %3722 = vmatprep.mubr.bf16.mxu1 %v6458_v35  ;;  %v539_v35 = vld [vmem:[%s8474_s6 + $0x78] sm:$0xff] }
 0x197   : > { %3312 = vmatpush1.bf16.msra.mxu0 %v6452_v36  ;;  %3750 = vmatpush1.bf16.msra.mxu1 %v6455_v37 }
 0x198   : > { %3313 = vmatprep.subr.bf16.mxu0 %v6463_v38  ;;  %3751 = vmatprep.subr.bf16.mxu1 %v6466_v39 }
 0x19a   : > { %3285 = vmatmul.mubr.bf16.gmra.mrb[8].mxu0 %v6460_v40  ;;  %3723 = vmatmul.mubr.bf16.gmra.mrb[8].mxu1 %v6460_v40 }
 0x19b   : > { %3314 = vmatpush1.bf16.msra.mxu0 %v6461_v41  ;;  %3752 = vmatpush1.bf16.msra.mxu1 %v6464_v42 }
 0x19c   : > { %3315 = vmatprep.subr.bf16.mxu0 %v6469_v43  ;;  %3753 = vmatprep.subr.bf16.mxu1 %v6472_v44 }
 0x19d   : > { %3294 = vmatprep.mubr.bf16.mxu0 %v6473_v45  ;;  %3732 = vmatprep.mubr.bf16.mxu1 %v6473_v45 }
 0x19f   : > { %3316 = vmatpush1.bf16.msra.mxu0 %v6467_v46  ;;  %3754 = vmatpush1.bf16.msra.mxu1 %v6470_v47  ;;  %v540_v46 = vld [vmem:[%s8474_s6 + $0x80] sm:$0xff]  ;;  %v542_v47 = vld [vmem:[%s8474_s6 + $0x90] sm:$0xff] }
 0x1a0   : > { %3317 = vmatprep.subr.bf16.mxu0 %v6478_v48  ;;  %3755 = vmatprep.subr.bf16.mxu1 %v6481_v49  ;;  %v541_v48 = vld [vmem:[%s8474_s6 + $0x88] sm:$0xff]  ;;  %v543_v49 = vld [vmem:[%s8474_s6 + $0x98] sm:$0xff] }
 0x1a2   : > { %3295 = vmatmul.mubr.bf16.gmra.mrb[12].mxu0 %v6475_v50  ;;  %3733 = vmatmul.mubr.bf16.gmra.mrb[12].mxu1 %v6475_v50 }
 0x1a3   : > { %3318 = vmatpush1.bf16.msra.mxu0 %v6476_v51  ;;  %3756 = vmatpush1.bf16.msra.mxu1 %v6479_v52  ;;  %v544_v52 = vld [vmem:[%s8474_s6 + $0xa0] sm:$0xff] }
 0x1a4   : > { %3319 = vmatprep.subr.bf16.mxu0 %v6484_v53  ;;  %3757 = vmatprep.subr.bf16.mxu1 %v6487_v54  ;;  %v546_v53 = vld [vmem:[%s8474_s6 + $0xb0] sm:$0xff] }
 0x1a5   : > { %3337 = vmatprep.mubr.bf16.mxu0 %v6535_v57  ;;  %3775 = vmatprep.mubr.bf16.mxu1 %v6535_v57 }
 0x1a7   : > { %3320 = vmatpush1.bf16.msra.mxu0 %v6482_v55  ;;  %3758 = vmatpush1.bf16.msra.mxu1 %v6485_v56 }
 0x1aa   : > { %3338 = vmatmul.mubr.bf16.vlgmr.msra.gmra.mrb[0].mxu0 %v6488_v58  ;;  %3776 = vmatmul.mubr.bf16.vlgmr.msra.gmra.mrb[0].mxu1 %v6488_v58  ;;  %v545_v58 = vld [vmem:[%s8474_s6 + $0xa8] sm:$0xff] }
 0x1ab   : > { %3347 = vmatprep.mubr.bf16.mxu0 %v6535_v57  ;;  %3785 = vmatprep.mubr.bf16.mxu1 %v6535_v57 }
 0x1b2   : > { %3348 = vmatmul.mubr.bf16.gmra.mrb[4].mxu0 %v6489_v59  ;;  %3786 = vmatmul.mubr.bf16.gmra.mrb[4].mxu1 %v6489_v59  ;;  %v547_v59 = vld [vmem:[%s8474_s6 + $0xb8] sm:$0xff] }
 0x1b3   : > { %3357 = vmatprep.mubr.bf16.mxu0 %v6535_v57  ;;  %3795 = vmatprep.mubr.bf16.mxu1 %v6535_v57 }
 0x1ba   : > { %3358 = vmatmul.mubr.bf16.gmra.mrb[8].mxu0 %v6490_v60  ;;  %3796 = vmatmul.mubr.bf16.gmra.mrb[8].mxu1 %v6490_v60 }
 0x1bb   : > { %3367 = vmatprep.mubr.bf16.mxu0 %v6535_v57  ;;  %3805 = vmatprep.mubr.bf16.mxu1 %v6535_v57 }
 0x1c2   : > { %3368 = vmatmul.mubr.bf16.gmra.mrb[12].mxu0 %v6491_v61  ;;  %3806 = vmatmul.mubr.bf16.gmra.mrb[12].mxu1 %v6491_v61 }
 0x27d   : > { %v3339_v2 = vpop.f32.mrb[0].mxu0  ;;  %v3777_v3 = vpop.f32.mrb[0].mxu1 }
 0x27e   : > { %v3816_v6 = vadd.f32 %v3339_v2, %v524_v62  ;;  %v3818_v7 = vadd.f32 %v3777_v3, %v526_v63  ;;  %v3341_v8 = vpop.f32.mrb[1].mxu0  ;;  %v3779_v9 = vpop.f32.mrb[1].mxu1 }
 0x27f   : > { %v3817_v12 = vadd.f32 %v3341_v8, %v525_v0  ;;  %v3819_v13 = vadd.f32 %v3779_v9, %v527_v1  ;;  %v3343_v14 = vpop.f32.mrb[2].mxu0  ;;  %v3781_v15 = vpop.f32.mrb[2].mxu1  ;;  %v549_v8 = vld [vmem:[%s8474_s6 + $0xc8] sm:$0xff]  ;;  %v551_v9 = vld [vmem:[%s8474_s6 + $0xd8] sm:$0xff] }
 0x280   : > { %3848 = vst [vmem:[%s8474_s6] sm:$0xff] %v3816_v6  ;;  %3850 = vst [vmem:[%s8474_s6 + $0x10] sm:$0xff] %v3818_v7  ;;  %v3820_v16 = vadd.f32 %v3343_v14, %v528_v4  ;;  %v3822_v17 = vadd.f32 %v3781_v15, %v530_v5  ;;  %v3345_v18 = vpop.f32.mrb[3].mxu0  ;;  %v3783_v19 = vpop.f32.mrb[3].mxu1  ;;  %v548_v6 = vld [vmem:[%s8474_s6 + $0xc0] sm:$0xff]  ;;  %v550_v7 = vld [vmem:[%s8474_s6 + $0xd0] sm:$0xff] }
 0x281   : > { %3849 = vst [vmem:[%s8474_s6 + $0x8] sm:$0xff] %v3817_v12  ;;  %3851 = vst [vmem:[%s8474_s6 + $0x18] sm:$0xff] %v3819_v13  ;;  %v3821_v20 = vadd.f32 %v3345_v18, %v529_v10  ;;  %v3823_v21 = vadd.f32 %v3783_v19, %v531_v11  ;;  %v552_v12 = vld [vmem:[%s8474_s6 + $0xe0] sm:$0xff]  ;;  %v554_v13 = vld [vmem:[%s8474_s6 + $0xf0] sm:$0xff] }
 0x282   : > { %3852 = vst [vmem:[%s8474_s6 + $0x20] sm:$0xff] %v3820_v16  ;;  %3854 = vst [vmem:[%s8474_s6 + $0x30] sm:$0xff] %v3822_v17  ;;  %v553_v18 = vld [vmem:[%s8474_s6 + $0xe8] sm:$0xff]  ;;  %v555_v19 = vld [vmem:[%s8474_s6 + $0xf8] sm:$0xff] }
 0x283   : > { %3853 = vst [vmem:[%s8474_s6 + $0x28] sm:$0xff] %v3821_v20  ;;  %3855 = vst [vmem:[%s8474_s6 + $0x38] sm:$0xff] %v3823_v21 }
 0x285   : > { %v3349_v26 = vpop.f32.mrb[4].mxu0  ;;  %v3787_v27 = vpop.f32.mrb[4].mxu1 }
 0x286   : > { %v3824_v30 = vadd.f32 %v3349_v26, %v532_v22  ;;  %v3826_v31 = vadd.f32 %v3787_v27, %v534_v23  ;;  %v3351_v32 = vpop.f32.mrb[5].mxu0  ;;  %v3789_v33 = vpop.f32.mrb[5].mxu1 }
 0x287   : > { %v3825_v36 = vadd.f32 %v3351_v32, %v533_v24  ;;  %v3827_v37 = vadd.f32 %v3789_v33, %v535_v25  ;;  %v3353_v38 = vpop.f32.mrb[6].mxu0  ;;  %v3791_v39 = vpop.f32.mrb[6].mxu1  ;;  %v4018_v32 = vld [vmem:[%s8473_s5 + $0x180] sm:$0xff] (!%p5336_p11) }
 0x288   : > { %3856 = vst [vmem:[%s8474_s6 + $0x40] sm:$0xff] %v3824_v30  ;;  %3858 = vst [vmem:[%s8474_s6 + $0x50] sm:$0xff] %v3826_v31  ;;  %v3828_v40 = vadd.f32 %v3353_v38, %v536_v28  ;;  %v3830_v41 = vadd.f32 %v3791_v39, %v538_v29  ;;  %v3355_v42 = vpop.f32.mrb[7].mxu0  ;;  %v3793_v43 = vpop.f32.mrb[7].mxu1  ;;  %v3986_v30 = vld [vmem:[%s8473_s5 + $0x80] sm:$0xff] (!%p5336_p11)  ;;  %v3987_v31 = vld [vmem:[%s8473_s5 + $0x88] sm:$0xff] (!%p5336_p11) }
 0x289   : > { %3857 = vst [vmem:[%s8474_s6 + $0x48] sm:$0xff] %v3825_v36  ;;  %3859 = vst [vmem:[%s8474_s6 + $0x58] sm:$0xff] %v3827_v37  ;;  %v3829_v44 = vadd.f32 %v3355_v42, %v537_v34  ;;  %v3831_v45 = vadd.f32 %v3793_v43, %v539_v35  ;;  %v7421_v33 = vpack.c.bf16 (!%p5336_p11), %v3987_v31, %v3986_v30  ;;  %v4019_v34 = vld [vmem:[%s8473_s5 + $0x188] sm:$0xff] (!%p5336_p11)  ;;  %v3970_v35 = vld [vmem:[%s8473_s5] sm:$0xff] (!%p5336_p11) }
 0x28a   : > { %3860 = vst [vmem:[%s8474_s6 + $0x60] sm:$0xff] %v3828_v40  ;;  %3862 = vst [vmem:[%s8474_s6 + $0x70] sm:$0xff] %v3830_v41  ;;  %v3971_v36 = vld [vmem:[%s8473_s5 + $0x8] sm:$0xff] (!%p5336_p11)  ;;  %v7432_v37 = vpack.c.bf16 (!%p5336_p11), %v4019_v34, %v4018_v32  ;;  %v4002_v39 = vld [vmem:[%s8473_s5 + $0x100] sm:$0xff] (!%p5336_p11) }
 0x28b   : > { %3861 = vst [vmem:[%s8474_s6 + $0x68] sm:$0xff] %v3829_v44  ;;  %3863 = vst [vmem:[%s8474_s6 + $0x78] sm:$0xff] %v3831_v45  ;;  %v7434_v38 = vpack.c.bf16 (!%p5336_p11), %v3971_v36, %v3970_v35  ;;  %v4003_v40 = vld [vmem:[%s8473_s5 + $0x108] sm:$0xff] (!%p5336_p11)  ;;  %v3988_v41 = vld [vmem:[%s8473_s5 + $0x90] sm:$0xff] (!%p5336_p11)  ;;  %5568 = vmatprep.subr.bf16.mxu0 (!%p5336_p11), %v7421_v33 }
 0x28c   : > { %v7446_v42 = vpack.c.bf16 (!%p5336_p11), %v4003_v40, %v4002_v39  ;;  %v3989_v43 = vld [vmem:[%s8473_s5 + $0x98] sm:$0xff] (!%p5336_p11)  ;;  %v4020_v44 = vld [vmem:[%s8473_s5 + $0x190] sm:$0xff] (!%p5336_p11)  ;;  %5600 = vmatprep.subr.bf16.mxu1 (!%p5336_p11), %v7432_v37 }
 0x28d   : > { %v3359_v50 = vpop.f32.mrb[8].mxu0  ;;  %v3797_v51 = vpop.f32.mrb[8].mxu1  ;;  %v4021_v45 = vld [vmem:[%s8473_s5 + $0x198] sm:$0xff] (!%p5336_p11)  ;;  %5570 = vmatpush3.bf16.msra.mxu0 (!%p5336_p11), %v7434_v38  ;;  %v3980_v34 = vld [vmem:[%s8473_s5 + $0x50] sm:$0xff] (!%p5336_p11) }
 0x28e   : > { %v3832_v54 = vadd.f32 %v3359_v50, %v540_v46  ;;  %v3834_v55 = vadd.f32 %v3797_v51, %v542_v47  ;;  %v3361_v56 = vpop.f32.mrb[9].mxu0  ;;  %v3799_v57 = vpop.f32.mrb[9].mxu1  ;;  %v7459_v46 = vpack.c.bf16 (!%p5336_p11), %v3989_v43, %v3988_v41  ;;  %v7461_v47 = vpack.c.bf16 (!%p5336_p11), %v4021_v45, %v4020_v44  ;;  %v4004_v50 = vld [vmem:[%s8473_s5 + $0x110] sm:$0xff] (!%p5336_p11)  ;;  %5602 = vmatpush3.bf16.msra.mxu1 (!%p5336_p11), %v7446_v42  ;;  %v3981_v35 = vld [vmem:[%s8473_s5 + $0x58] sm:$0xff] (!%p5336_p11)  ;;  %v3998_v41 = vld [vmem:[%s8473_s5 + $0xe0] sm:$0xff] (!%p5336_p11) }
 0x28f   : > { %v3833_v60 = vadd.f32 %v3361_v56, %v541_v48  ;;  %v3835_v61 = vadd.f32 %v3799_v57, %v543_v49  ;;  %v3363_v62 = vpop.f32.mrb[10].mxu0  ;;  %v3801_v63 = vpop.f32.mrb[10].mxu1  ;;  %v3972_v48 = vld [vmem:[%s8473_s5 + $0x10] sm:$0xff] (!%p5336_p11)  ;;  %v3973_v49 = vld [vmem:[%s8473_s5 + $0x18] sm:$0xff] (!%p5336_p11)  ;;  %v4022_v57 = vld [vmem:[%s8473_s5 + $0x1a0] sm:$0xff] (!%p5336_p11) }
 0x290   : > { %3864 = vst [vmem:[%s8474_s6 + $0x80] sm:$0xff] %v3832_v54  ;;  %3866 = vst [vmem:[%s8474_s6 + $0x90] sm:$0xff] %v3834_v55  ;;  %v3836_v0 = vadd.f32 %v3363_v62, %v544_v52  ;;  %v3838_v1 = vadd.f32 %v3801_v63, %v546_v53  ;;  %v3365_v2 = vpop.f32.mrb[11].mxu0  ;;  %v3803_v3 = vpop.f32.mrb[11].mxu1  ;;  %v7473_v51 = vpack.c.bf16 (!%p5336_p11), %v3973_v49, %v3972_v48  ;;  %v4005_v52 = vld [vmem:[%s8473_s5 + $0x118] sm:$0xff] (!%p5336_p11)  ;;  %v3990_v53 = vld [vmem:[%s8473_s5 + $0xa0] sm:$0xff] (!%p5336_p11)  ;;  %5572 = vmatprep.subr.bf16.mxu0 (!%p5336_p11), %v7459_v46 }
 0x291   : > { %3865 = vst [vmem:[%s8474_s6 + $0x88] sm:$0xff] %v3833_v60  ;;  %3867 = vst [vmem:[%s8474_s6 + $0x98] sm:$0xff] %v3835_v61  ;;  %v3837_v4 = vadd.f32 %v3365_v2, %v545_v58  ;;  %v3839_v5 = vadd.f32 %v3803_v3, %v547_v59  ;;  %v3991_v54 = vld [vmem:[%s8473_s5 + $0xa8] sm:$0xff] (!%p5336_p11)  ;;  %5604 = vmatprep.subr.bf16.mxu1 (!%p5336_p11), %v7461_v47  ;;  %v7486_v55 = vpack.c.bf16 (!%p5336_p11), %v4005_v52, %v4004_v50  ;;  %v3974_v59 = vld [vmem:[%s8473_s5 + $0x20] sm:$0xff] (!%p5336_p11) }
 0x292   : > { %3868 = vst [vmem:[%s8474_s6 + $0xa0] sm:$0xff] %v3836_v0  ;;  %3870 = vst [vmem:[%s8474_s6 + $0xb0] sm:$0xff] %v3838_v1  ;;  %v7488_v56 = vpack.c.bf16 (!%p5336_p11), %v3991_v54, %v3990_v53  ;;  %v4023_v58 = vld [vmem:[%s8473_s5 + $0x1a8] sm:$0xff] (!%p5336_p11)  ;;  %v4006_v62 = vld [vmem:[%s8473_s5 + $0x120] sm:$0xff] (!%p5336_p11)  ;;  %5574 = vmatpush3.bf16.msra.mxu0 (!%p5336_p11), %v7473_v51  ;;  %v7635_v50 = vpack.c.bf16 (!%p5336_p11), %v3981_v35, %v3980_v34 }
 0x293   : > { %3869 = vst [vmem:[%s8474_s6 + $0xa8] sm:$0xff] %v3837_v4  ;;  %3871 = vst [vmem:[%s8474_s6 + $0xb8] sm:$0xff] %v3839_v5  ;;  %v7499_v60 = vpack.c.bf16 (!%p5336_p11), %v4023_v58, %v4022_v57  ;;  %v3975_v61 = vld [vmem:[%s8473_s5 + $0x28] sm:$0xff] (!%p5336_p11)  ;;  %v3992_v1 = vld [vmem:[%s8473_s5 + $0xb0] sm:$0xff] (!%p5336_p11)  ;;  %5606 = vmatpush3.bf16.msra.mxu1 (!%p5336_p11), %v7486_v55 }
 0x294   : > { %v4007_v63 = vld [vmem:[%s8473_s5 + $0x128] sm:$0xff] (!%p5336_p11)  ;;  %v7511_v0 = vpack.c.bf16 (!%p5336_p11), %v3975_v61, %v3974_v59  ;;  %v3993_v2 = vld [vmem:[%s8473_s5 + $0xb8] sm:$0xff] (!%p5336_p11)  ;;  %v4024_v3 = vld [vmem:[%s8473_s5 + $0x1b0] sm:$0xff] (!%p5336_p11)  ;;  %5576 = vmatprep.subr.bf16.mxu0 (!%p5336_p11), %v7488_v56 }
 0x295   : > { %v3369_v10 = vpop.f32.mrb[12].mxu0  ;;  %v3807_v11 = vpop.f32.mrb[12].mxu1  ;;  %3883 = sbr.rel (%p5336_p11) target bundleno = 1506 (0x5e2), region = 78  ;;  %v7524_v4 = vpack.c.bf16 (!%p5336_p11), %v4007_v63, %v4006_v62  ;;  %v7526_v5 = vpack.c.bf16 (!%p5336_p11), %v3993_v2, %v3992_v1  ;;  %5608 = vmatprep.subr.bf16.mxu1 (!%p5336_p11), %v7499_v60  ;;  %v4012_v36 = vld [vmem:[%s8473_s5 + $0x150] sm:$0xff] (!%p5336_p11)  ;;  %v4013_v40 = vld [vmem:[%s8473_s5 + $0x158] sm:$0xff] (!%p5336_p11)  ;;  %v3999_v43 = vld [vmem:[%s8473_s5 + $0xe8] sm:$0xff] (!%p5336_p11) }
 0x296   : > { %v3840_v14 = vadd.f32 %v3369_v10, %v548_v6  ;;  %v3842_v15 = vadd.f32 %v3807_v11, %v550_v7  ;;  %v3371_v16 = vpop.f32.mrb[13].mxu0  ;;  %v3809_v17 = vpop.f32.mrb[13].mxu1  ;;  %v4025_v6 = vld [vmem:[%s8473_s5 + $0x1b8] sm:$0xff] (!%p5336_p11)  ;;  %v3976_v7 = vld [vmem:[%s8473_s5 + $0x30] sm:$0xff] (!%p5336_p11)  ;;  %5578 = vmatpush3.bf16.msra.mxu0 (!%p5336_p11), %v7511_v0  ;;  %v4030_v48 = vld [vmem:[%s8473_s5 + $0x1e0] sm:$0xff] (!%p5336_p11)  ;;  %v7648_v57 = vpack.c.bf16 (!%p5336_p11), %v4013_v40, %v4012_v36  ;;  %v7650_v58 = vpack.c.bf16 (!%p5336_p11), %v3999_v43, %v3998_v41 }
 0x297   : > { %v3841_v20 = vadd.f32 %v3371_v16, %v549_v8  ;;  %v3843_v21 = vadd.f32 %v3809_v17, %v551_v9  ;;  %v3373_v22 = vpop.f32.mrb[14].mxu0  ;;  %v3811_v23 = vpop.f32.mrb[14].mxu1  ;;  %v3977_v8 = vld [vmem:[%s8473_s5 + $0x38] sm:$0xff] (!%p5336_p11)  ;;  %v7538_v9 = vpack.c.bf16 (!%p5336_p11), %v4025_v6, %v4024_v3  ;;  %v4008_v10 = vld [vmem:[%s8473_s5 + $0x130] sm:$0xff] (!%p5336_p11)  ;;  %v4027_v16 = vld [vmem:[%s8473_s5 + $0x1c8] sm:$0xff] (!%p5336_p11)  ;;  %5610 = vmatpush3.bf16.msra.mxu1 (!%p5336_p11), %v7524_v4  ;;  %5580 = vmatprep.subr.bf16.mxu0 (!%p5336_p11), %v7526_v5 }
 0x298   : > { %3872 = vst [vmem:[%s8474_s6 + $0xc0] sm:$0xff] %v3840_v14  ;;  %3874 = vst [vmem:[%s8474_s6 + $0xd0] sm:$0xff] %v3842_v15  ;;  %v3844_v24 = vadd.f32 %v3373_v22, %v552_v12  ;;  %v3846_v25 = vadd.f32 %v3811_v23, %v554_v13  ;;  %v3375_v26 = vpop.f32.mrb[15].mxu0  ;;  %v3813_v27 = vpop.f32.mrb[15].mxu1  ;;  %v4009_v11 = vld [vmem:[%s8473_s5 + $0x138] sm:$0xff] (!%p5336_p11)  ;;  %v3994_v12 = vld [vmem:[%s8473_s5 + $0xc0] sm:$0xff] (!%p5336_p11)  ;;  %v3918_v13 = vlaneseq (!%p5336_p11)  ;;  %v7559_v17 = vpack.c.bf16 (!%p5336_p11), %v3977_v8, %v3976_v7 }
 0x299   : > { %3873 = vst [vmem:[%s8474_s6 + $0xc8] sm:$0xff] %v3841_v20  ;;  %3875 = vst [vmem:[%s8474_s6 + $0xd8] sm:$0xff] %v3843_v21  ;;  %v3845_v28 = vadd.f32 %v3375_v26, %v553_v18  ;;  %v3847_v29 = vadd.f32 %v3813_v27, %v555_v19  ;;  %v3995_v14 = vld [vmem:[%s8473_s5 + $0xc8] sm:$0xff] (!%p5336_p11)  ;;  %v4026_v15 = vld [vmem:[%s8473_s5 + $0x1c0] sm:$0xff] (!%p5336_p11)  ;;  %v7563_v18 = vpack.c.bf16 (!%p5336_p11), %v4009_v11, %v4008_v10  ;;  %5612 = vmatprep.subr.bf16.mxu1 (!%p5336_p11), %v7538_v9 }
 0x29a   : > { %3876 = vst [vmem:[%s8474_s6 + $0xe0] sm:$0xff] %v3844_v24  ;;  %3878 = vst [vmem:[%s8474_s6 + $0xf0] sm:$0xff] %v3846_v25  ;;  %v7565_v19 = vpack.c.bf16 (!%p5336_p11), %v3995_v14, %v3994_v12  ;;  %v3978_v20 = vld [vmem:[%s8473_s5 + $0x40] sm:$0xff] (!%p5336_p11)  ;;  %v3979_v21 = vld [vmem:[%s8473_s5 + $0x48] sm:$0xff] (!%p5336_p11)  ;;  %v7577_v23 = vpack.c.bf16 (!%p5336_p11), %v4027_v16, %v4026_v15  ;;  %v3919_v27 = vshrl.u32 (!%p5336_p11), %v3918_v13, 7  ;;  %5582 = vmatpush3.bf16.msra.mxu0 (!%p5336_p11), %v7559_v17 }
 0x29b   : > { %3877 = vst [vmem:[%s8474_s6 + $0xe8] sm:$0xff] %v3845_v28  ;;  %3879 = vst [vmem:[%s8474_s6 + $0xf8] sm:$0xff] %v3847_v29  ;;  %v4010_v22 = vld [vmem:[%s8473_s5 + $0x140] sm:$0xff] (!%p5336_p11)  ;;  %v4011_v24 = vld [vmem:[%s8473_s5 + $0x148] sm:$0xff] (!%p5336_p11)  ;;  %v7595_v30 = vpack.c.bf16 (!%p5336_p11), %v3979_v21, %v3978_v20  ;;  %5614 = vmatpush3.bf16.msra.mxu1 (!%p5336_p11), %v7563_v18 }
 0x29c   : > { %v3996_v25 = vld [vmem:[%s8473_s5 + $0xd0] sm:$0xff]  ;;  %v3997_v26 = vld [vmem:[%s8473_s5 + $0xd8] sm:$0xff]  ;;  %5584 = vmatprep.subr.bf16.mxu0 %v7565_v19  ;;  %v7599_v31 = vpack.c.bf16 %v4011_v24, %v4010_v22  ;;  %5616 = vmatprep.subr.bf16.mxu1 %v7577_v23  ;;  %v7624_v44 = vsub.s32 1, %v3919_v27  ;;  %v7626_v45 = vsub.s32 3, %v3919_v27  ;;  %v4031_v49 = vld [vmem:[%s8473_s5 + $0x1e8] sm:$0xff]  ;;  %v7685_v11 = vsub.s32 0, %v3919_v27 }
 0x29d   : > { %v4028_v28 = vld [vmem:[%s8473_s5 + $0x1d0] sm:$0xff]  ;;  %v4029_v29 = vld [vmem:[%s8473_s5 + $0x1d8] sm:$0xff]  ;;  %v7601_v32 = vpack.c.bf16 %v3997_v26, %v3996_v25  ;;  %v3982_v52 = vld [vmem:[%s8473_s5 + $0x60] sm:$0xff]  ;;  %v7662_v63 = vpack.c.bf16 %v4031_v49, %v4030_v48  ;;  %v7696_v15 = vsub.s32 2, %v3919_v27 }
 0x29e   : > { %v7613_v39 = vpack.c.bf16 %v4029_v29, %v4028_v28  ;;  %5586 = vmatpush3.bf16.msra.mxu0 %v7595_v30  ;;  %v3983_v53 = vld [vmem:[%s8473_s5 + $0x68] sm:$0xff]  ;;  %v4014_v54 = vld [vmem:[%s8473_s5 + $0x160] sm:$0xff]  ;;  %v4000_v1 = vld [vmem:[%s8473_s5 + $0xf0] sm:$0xff] }
 0x29f   : > { %5618 = vmatpush3.bf16.msra.mxu1 %v7599_v31  ;;  %5588 = vmatprep.subr.bf16.mxu0 %v7601_v32  ;;  %v4015_v59 = vld [vmem:[%s8473_s5 + $0x168] sm:$0xff]  ;;  %v3916_v62 = vld [vmem:[%s8470_s2] sm:$0xf]  ;;  %v4001_v2 = vld [vmem:[%s8473_s5 + $0xf8] sm:$0xff]  ;;  %v7688_v12 = vpack.c.bf16 %v3983_v53, %v3982_v52 }
 0x2a0   : > { %v3885_v61 = vld [vmem:[%s8474_s6 + $0x8] sm:$0xff]  ;;  %5620 = vmatprep.subr.bf16.mxu1 %v7613_v39  ;;  %v7671_v3 = vrot.slane %v3916_v62, %v7624_v44  ;;  %v3887_v6 = vld [vmem:[%s8474_s6 + $0x18] sm:$0xff]  ;;  %v7677_v7 = vrot.slane %v3916_v62, %v7626_v45  ;;  %v4032_v8 = vld [vmem:[%s8473_s5 + $0x1f0] sm:$0xff]  ;;  %v7700_v16 = vpack.c.bf16 %v4015_v59, %v4014_v54  ;;  %v7702_v20 = vpack.c.bf16 %v4001_v2, %v4000_v1 }
 0x2a1   : > { %v4033_v10 = vld [vmem:[%s8473_s5 + $0x1f8] sm:$0xff]  ;;  %v3984_v21 = vld [vmem:[%s8473_s5 + $0x70] sm:$0xff]  ;;  %v7722_v27 = vrot.slane %v3916_v62, %v7685_v11  ;;  %v3884_v29 = vld [vmem:[%s8474_s6] sm:$0xff]  ;;  %v7731_v34 = vrot.slane %v3916_v62, %v7696_v15 }
 0x2a2   : > { %5590 = vmatpush3.bf16.msra.mxu0 %v7635_v50  ;;  %v7691_v13 = vadd.f32 %v7671_v3, %v3885_v61  ;;  %v7694_v14 = vadd.f32 %v7677_v7, %v3887_v6  ;;  %v3985_v22 = vld [vmem:[%s8473_s5 + $0x78] sm:$0xff]  ;;  %v7711_v24 = vpack.c.bf16 %v4033_v10, %v4032_v8  ;;  %v4016_v25 = vld [vmem:[%s8473_s5 + $0x170] sm:$0xff]  ;;  %v3889_v40 = vld [vmem:[%s8474_s6 + $0x28] sm:$0xff] }
 0x2a3   : > { %5622 = vmatpush3.bf16.msra.mxu1 %v7648_v57  ;;  %5592 = vmatprep.subr.bf16.mxu0 %v7650_v58  ;;  %v4017_v26 = vld [vmem:[%s8473_s5 + $0x178] sm:$0xff]  ;;  %v7725_v28 = vpack.c.bf16 %v3985_v22, %v3984_v21  ;;  %v3886_v36 = vld [vmem:[%s8474_s6 + $0x10] sm:$0xff]  ;;  %v7748_v43 = vadd.f32 %v7722_v27, %v3884_v29  ;;  %v7755_v49 = vadd.f32 %v7671_v3, %v3889_v40  ;;  %v3888_v52 = vld [vmem:[%s8474_s6 + $0x20] sm:$0xff] }
 0x2a4   : > { %5624 = vmatprep.subr.bf16.mxu1 %v7662_v63  ;;  %4098 = vmatprep.mubr.f32.mxu0 %v7691_v13  ;;  %v7735_v35 = vpack.c.bf16 %v4017_v26, %v4016_v25  ;;  %v3891_v41 = vld [vmem:[%s8474_s6 + $0x38] sm:$0xff]  ;;  %v7752_v48 = vadd.f32 %v7731_v34, %v3886_v36  ;;  %v3890_v54 = vld [vmem:[%s8474_s6 + $0x30] sm:$0xff]  ;;  %v3893_v59 = vld [vmem:[%s8474_s6 + $0x48] sm:$0xff]  ;;  %v7777_v62 = vadd.f32 %v7722_v27, %v3888_v52 }
 0x2a5   : > { %4203 = vmatprep.mubr.f32.mxu1 %v7694_v14  ;;  %v7762_v53 = vadd.f32 %v7677_v7, %v3891_v41  ;;  %v3895_v61 = vld [vmem:[%s8474_s6 + $0x58] sm:$0xff]  ;;  %v7782_v1 = vadd.f32 %v7731_v34, %v3890_v54  ;;  %v7785_v2 = vadd.f32 %v7671_v3, %v3893_v59  ;;  %v3894_v6 = vld [vmem:[%s8474_s6 + $0x50] sm:$0xff]  ;;  %v3897_v8 = vld [vmem:[%s8474_s6 + $0x68] sm:$0xff] }
 0x2a6   : > { %5594 = vmatpush3.bf16.msra.mxu0 %v7688_v12  ;;  %v3899_v10 = vld [vmem:[%s8474_s6 + $0x78] sm:$0xff]  ;;  %v7817_v22 = vadd.f32 %v7671_v3, %v3897_v8  ;;  %v3901_v25 = vld [vmem:[%s8474_s6 + $0x88] sm:$0xff] }
 0x2a7   : > { %5626 = vmatpush3.bf16.msra.mxu1 %v7700_v16  ;;  %5596 = vmatprep.subr.bf16.mxu0 %v7702_v20  ;;  %v3903_v26 = vld [vmem:[%s8474_s6 + $0x98] sm:$0xff]  ;;  %v7849_v36 = vadd.f32 %v7671_v3, %v3901_v25  ;;  %v3905_v40 = vld [vmem:[%s8474_s6 + $0xa8] sm:$0xff] }
 0x2a8   : > { %5628 = vmatprep.subr.bf16.mxu1 %v7711_v24  ;;  %v3907_v41 = vld [vmem:[%s8474_s6 + $0xb8] sm:$0xff]  ;;  %v7881_v54 = vadd.f32 %v7671_v3, %v3905_v40  ;;  %v3909_v59 = vld [vmem:[%s8474_s6 + $0xc8] sm:$0xff] }
 0x2a9   : > { %v3913_v8 = vld [vmem:[%s8474_s6 + $0xe8] sm:$0xff] }
 0x2aa   : > { %5598 = vmatpush3.bf16.msra.mxu0 %v7725_v28 }
 0x2ab   : > { %5630 = vmatpush3.bf16.msra.mxu1 %v7735_v35  ;;  %5632 = vmatprep.subr.bf16.mxu0 %v7421_v33  ;;  %v3892_v33 = vld [vmem:[%s8474_s6 + $0x40] sm:$0xff] }
 0x2ac   : > { %5664 = vmatprep.subr.bf16.mxu1 %v7432_v37  ;;  %v7792_v37 = vadd.f32 %v7677_v7, %v3895_v61  ;;  %v7808_v21 = vadd.f32 %v7722_v27, %v3892_v33  ;;  %v3911_v61 = vld [vmem:[%s8474_s6 + $0xd8] sm:$0xff] }
 0x2ad   : > { %4099 = vmatmul.mubr.f32.vlgmr.msra.gmra.mrb[0].mxu0 %v7748_v43 }
 0x2ae   : > { %4204 = vmatmul.mubr.f32.vlgmr.msra.gmra.mrb[0].mxu1 %v7752_v48  ;;  %4103 = vmatprep.mubr.f32.mxu0 %v7755_v49 }
 0x2af   : > { %4208 = vmatprep.mubr.f32.mxu1 %v7762_v53  ;;  %5634 = vmatpush3.bf16.msra.mxu0 %v7434_v38  ;;  %v7814_v38 = vadd.f32 %v7731_v34, %v3894_v6  ;;  %v7913_v6 = vadd.f32 %v7671_v3, %v3909_v59 }
 0x2b0   : > { %5666 = vmatpush3.bf16.msra.mxu1 %v7446_v42  ;;  %5636 = vmatprep.subr.bf16.mxu0 %v7459_v46  ;;  %v3896_v42 = vld [vmem:[%s8474_s6 + $0x60] sm:$0xff]  ;;  %v7824_v46 = vadd.f32 %v7677_v7, %v3899_v10  ;;  %v3915_v10 = vld [vmem:[%s8474_s6 + $0xf8] sm:$0xff] }
 0x2b1   : > { %4104 = vmatmul.mubr.f32.gmra.mrb[2].mxu0 %v7777_v62  ;;  %5668 = vmatprep.subr.bf16.mxu1 %v7461_v47  ;;  %v3898_v47 = vld [vmem:[%s8474_s6 + $0x70] sm:$0xff]  ;;  %v7840_v29 = vadd.f32 %v7722_v27, %v3896_v42 }
 0x2b2   : > { %4209 = vmatmul.mubr.f32.gmra.mrb[2].mxu1 %v7782_v1  ;;  %4108 = vmatprep.mubr.f32.mxu0 %v7785_v2 }
 0x2b3   : > { %4213 = vmatprep.mubr.f32.mxu1 %v7792_v37  ;;  %5638 = vmatpush3.bf16.msra.mxu0 %v7473_v51  ;;  %v7846_v51 = vadd.f32 %v7731_v34, %v3898_v47  ;;  %v7945_v47 = vadd.f32 %v7671_v3, %v3913_v8 }
 0x2b4   : > { %5670 = vmatpush3.bf16.msra.mxu1 %v7486_v55  ;;  %5640 = vmatprep.subr.bf16.mxu0 %v7488_v56  ;;  %v3900_v55 = vld [vmem:[%s8474_s6 + $0x80] sm:$0xff]  ;;  %v7856_v56 = vadd.f32 %v7677_v7, %v3903_v26 }
 0x2b5   : > { %4109 = vmatmul.mubr.f32.gmra.mrb[4].mxu0 %v7808_v21  ;;  %5672 = vmatprep.subr.bf16.mxu1 %v7499_v60  ;;  %v3902_v60 = vld [vmem:[%s8474_s6 + $0x90] sm:$0xff]  ;;  %v7872_v52 = vadd.f32 %v7722_v27, %v3900_v55 }
 0x2b6   : > { %4214 = vmatmul.mubr.f32.gmra.mrb[4].mxu1 %v7814_v38  ;;  %4113 = vmatprep.mubr.f32.mxu0 %v7817_v22 }
 0x2b7   : > { %4218 = vmatprep.mubr.f32.mxu1 %v7824_v46  ;;  %5642 = vmatpush3.bf16.msra.mxu0 %v7511_v0  ;;  %v7878_v0 = vadd.f32 %v7731_v34, %v3902_v60 }
 0x2b8   : > { %5674 = vmatpush3.bf16.msra.mxu1 %v7524_v4  ;;  %5644 = vmatprep.subr.bf16.mxu0 %v7526_v5  ;;  %v3904_v4 = vld [vmem:[%s8474_s6 + $0xa0] sm:$0xff]  ;;  %v7888_v5 = vadd.f32 %v7677_v7, %v3907_v41 }
 0x2b9   : > { %4114 = vmatmul.mubr.f32.gmra.mrb[6].mxu0 %v7840_v29  ;;  %5676 = vmatprep.subr.bf16.mxu1 %v7538_v9  ;;  %v3906_v9 = vld [vmem:[%s8474_s6 + $0xb0] sm:$0xff]  ;;  %v7904_v33 = vadd.f32 %v7722_v27, %v3904_v4 }
 0x2ba   : > { %4219 = vmatmul.mubr.f32.gmra.mrb[6].mxu1 %v7846_v51  ;;  %4118 = vmatprep.mubr.f32.mxu0 %v7849_v36 }
 0x2bb   : > { %4223 = vmatprep.mubr.f32.mxu1 %v7856_v56  ;;  %5646 = vmatpush3.bf16.msra.mxu0 %v7559_v17  ;;  %v7910_v17 = vadd.f32 %v7731_v34, %v3906_v9 }
 0x2bc   : > { %5678 = vmatpush3.bf16.msra.mxu1 %v7563_v18  ;;  %5648 = vmatprep.subr.bf16.mxu0 %v7565_v19  ;;  %v3908_v18 = vld [vmem:[%s8474_s6 + $0xc0] sm:$0xff]  ;;  %v7920_v19 = vadd.f32 %v7677_v7, %v3911_v61 }
 0x2bd   : > { %4119 = vmatmul.mubr.f32.gmra.mrb[8].mxu0 %v7872_v52  ;;  %5680 = vmatprep.subr.bf16.mxu1 %v7577_v23  ;;  %v3910_v23 = vld [vmem:[%s8474_s6 + $0xd0] sm:$0xff]  ;;  %v7936_v42 = vadd.f32 %v7722_v27, %v3908_v18 }
 0x2be   : > { %4224 = vmatmul.mubr.f32.gmra.mrb[8].mxu1 %v7878_v0  ;;  %4123 = vmatprep.mubr.f32.mxu0 %v7881_v54 }
 0x2bf   : > { %4228 = vmatprep.mubr.f32.mxu1 %v7888_v5  ;;  %5650 = vmatpush3.bf16.msra.mxu0 %v7595_v30  ;;  %v7942_v30 = vadd.f32 %v7731_v34, %v3910_v23 }
 0x2c0   : > { %5682 = vmatpush3.bf16.msra.mxu1 %v7599_v31  ;;  %5652 = vmatprep.subr.bf16.mxu0 %v7601_v32  ;;  %v3912_v31 = vld [vmem:[%s8474_s6 + $0xe0] sm:$0xff]  ;;  %v7952_v32 = vadd.f32 %v7677_v7, %v3915_v10 }
 0x2c1   : > { %4124 = vmatmul.mubr.f32.gmra.mrb[10].mxu0 %v7904_v33  ;;  %5684 = vmatprep.subr.bf16.mxu1 %v7613_v39  ;;  %v3914_v39 = vld [vmem:[%s8474_s6 + $0xf0] sm:$0xff]  ;;  %v7962_v3 = vadd.f32 %v7722_v27, %v3912_v31 }
 0x2c2   : > { %4229 = vmatmul.mubr.f32.gmra.mrb[10].mxu1 %v7910_v17  ;;  %4128 = vmatprep.mubr.f32.mxu0 %v7913_v6  ;;  %v7968_v7 = vadd.f32 %v7731_v34, %v3914_v39 }
 0x2c3   : > { %4233 = vmatprep.mubr.f32.mxu1 %v7920_v19  ;;  %5654 = vmatpush3.bf16.msra.mxu0 %v7635_v50 }
 0x2c4   : > { %5686 = vmatpush3.bf16.msra.mxu1 %v7648_v57  ;;  %5656 = vmatprep.subr.bf16.mxu0 %v7650_v58 }
 0x2c5   : > { %4129 = vmatmul.mubr.f32.gmra.mrb[12].mxu0 %v7936_v42  ;;  %5688 = vmatprep.subr.bf16.mxu1 %v7662_v63 }
 0x2c6   : > { %4234 = vmatmul.mubr.f32.gmra.mrb[12].mxu1 %v7942_v30  ;;  %4133 = vmatprep.mubr.f32.mxu0 %v7945_v47 }
 0x2c7   : > { %4238 = vmatprep.mubr.f32.mxu1 %v7952_v32  ;;  %5658 = vmatpush3.bf16.msra.mxu0 %v7688_v12 }
 0x2c8   : > { %5690 = vmatpush3.bf16.msra.mxu1 %v7700_v16  ;;  %5660 = vmatprep.subr.bf16.mxu0 %v7702_v20 }
 0x2c9   : > { %4134 = vmatmul.mubr.f32.gmra.mrb[14].mxu0 %v7962_v3  ;;  %5692 = vmatprep.subr.bf16.mxu1 %v7711_v24 }
 0x2ca   : > { %4239 = vmatmul.mubr.f32.gmra.mrb[14].mxu1 %v7968_v7 }
 0x2cb   : > { %5662 = vmatpush3.bf16.msra.mxu0 %v7725_v28 }
 0x2cc   : > { %5694 = vmatpush3.bf16.msra.mxu1 %v7735_v35 }
 0x380   : > { %v5375_v50 = vpop.f32.mrb[0].mxu0 }
 0x381   : > { %v5431_v57 = vpop.f32.mrb[0].mxu1  ;;  %v5376_v58 = vpop.f32.mrb[1].mxu0 }
 0x382   : > { %v5377_v63 = vadd.f32 %v5376_v58, %v5375_v50  ;;  %v5432_v27 = vpop.f32.mrb[1].mxu1 }
 0x383   : > { %v5433_v12 = vadd.f32 %v5432_v27, %v5431_v57 }
 0x384   : > { %v5378_v34 = vpop.f32.mrb[2].mxu0 }
 0x385   : > { %v4206_v16 = vadd.f32 %v5433_v12, %v5377_v63  ;;  %v5434_v25 = vpop.f32.mrb[2].mxu1  ;;  %v5379_v20 = vpop.f32.mrb[3].mxu0 }
 0x386   : > { %v5380_v26 = vadd.f32 %v5379_v20, %v5378_v34  ;;  %v5435_v55 = vpop.f32.mrb[3].mxu1 }
 0x387   : > { %v5436_v60 = vadd.f32 %v5435_v55, %v5434_v25  ;;  %v4245_v9 = vsel %vm4244_vm0, %v4206_v16, 0.0 }
 0x388   : > { %v5381_v24 = vpop.f32.mrb[4].mxu0 }
 0x389   : > { %v4211_v40 = vadd.f32 %v5436_v60, %v5380_v26  ;;  %v5437_v41 = vpop.f32.mrb[4].mxu1  ;;  %v5382_v28 = vpop.f32.mrb[5].mxu0 }
 0x38a   : > { %v5383_v4 = vadd.f32 %v5382_v28, %v5381_v24  ;;  %v5438_v35 = vpop.f32.mrb[5].mxu1 }
 0x38b   : > { %v4246_v59 = vsel %vm4244_vm0, %v4211_v40, 0.0  ;;  %v5439_v61 = vadd.f32 %v5438_v35, %v5437_v41 }
 0x38c   : > { %v4247_v18 = vadd.f32 %v4246_v59, %v4245_v9  ;;  %v5384_v23 = vpop.f32.mrb[6].mxu0 }
 0x38d   : > { %v4216_v8 = vadd.f32 %v5439_v61, %v5383_v4  ;;  %v5440_v10 = vpop.f32.mrb[6].mxu1  ;;  %v5385_v31 = vpop.f32.mrb[7].mxu0 }
 0x38e   : > { %v5386_v39 = vadd.f32 %v5385_v31, %v5384_v23  ;;  %v5441_v50 = vpop.f32.mrb[7].mxu1 }
 0x38f   : > { %v4248_v57 = vsel %vm4244_vm0, %v4216_v8, 0.0  ;;  %v5442_v58 = vadd.f32 %v5441_v50, %v5440_v10 }
 0x390   : > { %v4249_v63 = vadd.f32 %v4248_v57, %v4247_v18  ;;  %v5387_v27 = vpop.f32.mrb[8].mxu0 }
 0x391   : > { %v4221_v12 = vadd.f32 %v5442_v58, %v5386_v39  ;;  %v5443_v34 = vpop.f32.mrb[8].mxu1  ;;  %v5388_v25 = vpop.f32.mrb[9].mxu0 }
 0x392   : > { %v5389_v20 = vadd.f32 %v5388_v25, %v5387_v27  ;;  %v5444_v16 = vpop.f32.mrb[9].mxu1 }
 0x393   : > { %v4250_v26 = vsel %vm4244_vm0, %v4221_v12, 0.0  ;;  %v5445_v55 = vadd.f32 %v5444_v16, %v5443_v34 }
 0x394   : > { %v4251_v60 = vadd.f32 %v4250_v26, %v4249_v63  ;;  %v5390_v24 = vpop.f32.mrb[10].mxu0 }
 0x395   : > { %v4226_v40 = vadd.f32 %v5445_v55, %v5389_v20  ;;  %v5446_v41 = vpop.f32.mrb[10].mxu1  ;;  %v5391_v28 = vpop.f32.mrb[11].mxu0 }
 0x396   : > { %v5392_v4 = vadd.f32 %v5391_v28, %v5390_v24  ;;  %v5447_v35 = vpop.f32.mrb[11].mxu1 }
 0x397   : > { %v4252_v9 = vsel %vm4244_vm0, %v4226_v40, 0.0  ;;  %v5448_v59 = vadd.f32 %v5447_v35, %v5446_v41 }
 0x398   : > { %v4253_v61 = vadd.f32 %v4252_v9, %v4251_v60  ;;  %v5393_v18 = vpop.f32.mrb[12].mxu0 }
 0x399   : > { %v4231_v23 = vadd.f32 %v5448_v59, %v5392_v4  ;;  %v5449_v8 = vpop.f32.mrb[12].mxu1  ;;  %v5394_v10 = vpop.f32.mrb[13].mxu0 }
 0x39a   : > { %v5395_v31 = vadd.f32 %v5394_v10, %v5393_v18  ;;  %v5450_v39 = vpop.f32.mrb[13].mxu1 }
 0x39b   : > { %v4254_v50 = vsel %vm4244_vm0, %v4231_v23, 0.0  ;;  %v5451_v57 = vadd.f32 %v5450_v39, %v5449_v8 }
 0x39c   : > { %v4255_v58 = vadd.f32 %v4254_v50, %v4253_v61  ;;  %v5396_v63 = vpop.f32.mrb[14].mxu0 }
 0x39d   : > { %v4236_v27 = vadd.f32 %v5451_v57, %v5395_v31  ;;  %v5452_v12 = vpop.f32.mrb[14].mxu1  ;;  %v5397_v34 = vpop.f32.mrb[15].mxu0 }
 0x39e   : > { %v5398_v25 = vadd.f32 %v5397_v34, %v5396_v63  ;;  %v5453_v20 = vpop.f32.mrb[15].mxu1 }
 0x39f   : > { %v4256_v16 = vsel %vm4244_vm0, %v4236_v27, 0.0  ;;  %v5454_v26 = vadd.f32 %v5453_v20, %v5452_v12 }
 0x3a0   : > { %v4257_v55 = vadd.f32 %v4256_v16, %v4255_v58 }
 0x3a1   : > { %v4241_v60 = vadd.f32 %v5454_v26, %v5398_v25 }
 0x3a3   : > { %v4258_v24 = vsel %vm4244_vm0, %v4241_v60, 0.0 }
 0x3a4   : > { %v4259_v40 = vadd.f32 %v4258_v24, %v4257_v55 }
 0x3a6   : > { %v4260_v41 = vrot.slane %v4259_v40, 4 }
 0x3a8   : > { %v4261_v28 = vadd.f32 %v4260_v41, %v4259_v40 }
 0x3aa   : > { %v4262_v4 = vrot.slane %v4261_v28, 2 }
 0x3ac   : > { %v4263_v35 = vadd.f32 %v4262_v4, %v4261_v28 }
 0x3ae   : > { %v4264_v9 = vrot.slane %v4263_v35, 1 }
 0x3b0   : > { %v4265_v59 = vadd.f32 %v4264_v9, %v4263_v35 }
 0x3b2   : > { %v4266_v61 = vmul.f32 0.001953125, %v4265_v59 }
 0x3b4   : > { %4268 = vrot.lane.b32.xlu0 %v4266_v61, %s6536_s8 }
 0x426   : > { %v4269_v18 = vpop.permute.xlu0 %4268 }
 0x427   : > { %v4271_v23 = vsel %vm4244_vm0, %v4266_v61, %v4269_v18 }
 0x428   : > { %v7990_v8 = vrot.slane %v4271_v23, %v7685_v11 }
 0x42a   : > { %v7994_v10 = vsub.f32 %v7748_v43, %v7990_v8  ;;  %v7998_v31 = vsub.f32 %v7691_v13, %v7990_v8  ;;  %v8002_v39 = vsub.f32 %v7752_v48, %v7990_v8  ;;  %v8006_v50 = vsub.f32 %v7694_v14, %v7990_v8 }
 0x42b   : > { %v8010_v57 = vsub.f32 %v7755_v49, %v7990_v8  ;;  %v8014_v43 = vsub.f32 %v7762_v53, %v7990_v8  ;;  %v8028_v63 = vsub.f32 %v7777_v62, %v7990_v8  ;;  %v8032_v53 = vsub.f32 %v7782_v1, %v7990_v8 }
 0x42c   : > { %v4308_v13 = vmul.f32 %v7994_v10, %v7994_v10  ;;  %v4310_v58 = vmul.f32 %v8002_v39, %v8002_v39  ;;  %v4309_v48 = vmul.f32 %v7998_v31, %v7998_v31  ;;  %v4311_v14 = vmul.f32 %v8006_v50, %v8006_v50 }
 0x42d   : > { %v4313_v49 = vmul.f32 %v8010_v57, %v8010_v57  ;;  %v4315_v27 = vmul.f32 %v8014_v43, %v8014_v43  ;;  %v8038_v12 = vsub.f32 %v7785_v2, %v7990_v8  ;;  %v8042_v34 = vsub.f32 %v7792_v37, %v7990_v8 }
 0x42e   : > { %4404 = vmatprep.mubr.f32.mxu0 %v4309_v48  ;;  %4509 = vmatprep.mubr.f32.mxu1 %v4311_v14  ;;  %v4312_v62 = vmul.f32 %v8028_v63, %v8028_v63  ;;  %v4314_v1 = vmul.f32 %v8032_v53, %v8032_v53  ;;  %v8050_v25 = vsub.f32 %v7808_v21, %v7990_v8 }
 0x42f   : > { %4405 = vmatmul.mubr.f32.vlgmr.msra.gmra.mrb[16].mxu0 %v4308_v13  ;;  %4510 = vmatmul.mubr.f32.vlgmr.msra.gmra.mrb[16].mxu1 %v4310_v58  ;;  %v8054_v2 = vsub.f32 %v7814_v38, %v7990_v8  ;;  %v4317_v37 = vmul.f32 %v8038_v12, %v8038_v12  ;;  %v4319_v20 = vmul.f32 %v8042_v34, %v8042_v34 }
 0x430   : > { %4409 = vmatprep.mubr.f32.mxu0 %v4313_v49  ;;  %4514 = vmatprep.mubr.f32.mxu1 %v4315_v27  ;;  %v8062_v16 = vsub.f32 %v7817_v22, %v7990_v8  ;;  %v8066_v26 = vsub.f32 %v7824_v46, %v7990_v8  ;;  %v4316_v21 = vmul.f32 %v8050_v25, %v8050_v25 }
 0x431   : > { %v4318_v38 = vmul.f32 %v8054_v2, %v8054_v2  ;;  %v8074_v55 = vsub.f32 %v7840_v29, %v7990_v8  ;;  %v8078_v22 = vsub.f32 %v7846_v51, %v7990_v8  ;;  %v8086_v24 = vsub.f32 %v7849_v36, %v7990_v8 }
 0x432   : > { %v4321_v46 = vmul.f32 %v8062_v16, %v8062_v16  ;;  %v4323_v60 = vmul.f32 %v8066_v26, %v8066_v26  ;;  %v8090_v40 = vsub.f32 %v7856_v56, %v7990_v8  ;;  %v8098_v41 = vsub.f32 %v7872_v52, %v7990_v8 }
 0x433   : > { %4410 = vmatmul.mubr.f32.gmra.mrb[18].mxu0 %v4312_v62  ;;  %4515 = vmatmul.mubr.f32.gmra.mrb[18].mxu1 %v4314_v1  ;;  %v4320_v29 = vmul.f32 %v8074_v55, %v8074_v55  ;;  %v4322_v51 = vmul.f32 %v8078_v22, %v8078_v22  ;;  %v8102_v36 = vsub.f32 %v7878_v0, %v7990_v8 }
 0x434   : > { %4414 = vmatprep.mubr.f32.mxu0 %v4317_v37  ;;  %4519 = vmatprep.mubr.f32.mxu1 %v4319_v20  ;;  %v4325_v56 = vmul.f32 %v8086_v24, %v8086_v24  ;;  %v4327_v28 = vmul.f32 %v8090_v40, %v8090_v40  ;;  %v8110_v4 = vsub.f32 %v7881_v54, %v7990_v8 }
 0x435   : > { %v8114_v35 = vsub.f32 %v7888_v5, %v7990_v8  ;;  %v4324_v52 = vmul.f32 %v8098_v41, %v8098_v41  ;;  %v4326_v0 = vmul.f32 %v8102_v36, %v8102_v36  ;;  %v8122_v9 = vsub.f32 %v7904_v33, %v7990_v8 }
 0x436   : > { %v8126_v54 = vsub.f32 %v7910_v17, %v7990_v8  ;;  %v4329_v5 = vmul.f32 %v8110_v4, %v8110_v4  ;;  %v8134_v61 = vsub.f32 %v7913_v6, %v7990_v8  ;;  %v8138_v18 = vsub.f32 %v7920_v19, %v7990_v8 }
 0x437   : > { %4415 = vmatmul.mubr.f32.gmra.mrb[20].mxu0 %v4316_v21  ;;  %4520 = vmatmul.mubr.f32.gmra.mrb[20].mxu1 %v4318_v38  ;;  %v4331_v59 = vmul.f32 %v8114_v35, %v8114_v35  ;;  %v4328_v33 = vmul.f32 %v8122_v9, %v8122_v9  ;;  %v8146_v23 = vsub.f32 %v7936_v42, %v7990_v8 }
 0x438   : > { %4419 = vmatprep.mubr.f32.mxu0 %v4321_v46  ;;  %4524 = vmatprep.mubr.f32.mxu1 %v4323_v60  ;;  %v4330_v17 = vmul.f32 %v8126_v54, %v8126_v54  ;;  %v8150_v6 = vsub.f32 %v7942_v30, %v7990_v8  ;;  %v4333_v19 = vmul.f32 %v8134_v61, %v8134_v61 }
 0x439   : > { %v4335_v13 = vmul.f32 %v8138_v18, %v8138_v18  ;;  %v8158_v58 = vsub.f32 %v7945_v47, %v7990_v8  ;;  %v8162_v48 = vsub.f32 %v7952_v32, %v7990_v8  ;;  %v4332_v42 = vmul.f32 %v8146_v23, %v8146_v23 }
 0x43a   : > { %v4334_v30 = vmul.f32 %v8150_v6, %v8150_v6  ;;  %v8170_v14 = vsub.f32 %v7962_v3, %v7990_v8  ;;  %v8174_v47 = vsub.f32 %v7968_v7, %v7990_v8 }
 0x43b   : > { %4420 = vmatmul.mubr.f32.gmra.mrb[22].mxu0 %v4320_v29  ;;  %4525 = vmatmul.mubr.f32.gmra.mrb[22].mxu1 %v4322_v51  ;;  %v4337_v32 = vmul.f32 %v8158_v58, %v8158_v58  ;;  %v4339_v49 = vmul.f32 %v8162_v48, %v8162_v48 }
 0x43c   : > { %4424 = vmatprep.mubr.f32.mxu0 %v4325_v56  ;;  %4529 = vmatprep.mubr.f32.mxu1 %v4327_v28  ;;  %v4336_v27 = vmul.f32 %v8170_v14, %v8170_v14  ;;  %v4338_v3 = vmul.f32 %v8174_v47, %v8174_v47 }
 0x43f   : > { %4425 = vmatmul.mubr.f32.gmra.mrb[24].mxu0 %v4324_v52  ;;  %4530 = vmatmul.mubr.f32.gmra.mrb[24].mxu1 %v4326_v0 }
 0x440   : > { %4429 = vmatprep.mubr.f32.mxu0 %v4329_v5  ;;  %4534 = vmatprep.mubr.f32.mxu1 %v4331_v59 }
 0x443   : > { %4430 = vmatmul.mubr.f32.gmra.mrb[26].mxu0 %v4328_v33  ;;  %4535 = vmatmul.mubr.f32.gmra.mrb[26].mxu1 %v4330_v17 }
 0x444   : > { %4434 = vmatprep.mubr.f32.mxu0 %v4333_v19  ;;  %4539 = vmatprep.mubr.f32.mxu1 %v4335_v13 }
 0x447   : > { %4435 = vmatmul.mubr.f32.gmra.mrb[28].mxu0 %v4332_v42  ;;  %4540 = vmatmul.mubr.f32.gmra.mrb[28].mxu1 %v4334_v30 }
 0x448   : > { %4439 = vmatprep.mubr.f32.mxu0 %v4337_v32  ;;  %4544 = vmatprep.mubr.f32.mxu1 %v4339_v49 }
 0x44b   : > { %4440 = vmatmul.mubr.f32.gmra.mrb[30].mxu0 %v4336_v27  ;;  %4545 = vmatmul.mubr.f32.gmra.mrb[30].mxu1 %v4338_v3 }
 0x502   : > { %v5487_v7 = vpop.f32.mrb[16].mxu0  ;;  %v5543_v8 = vpop.f32.mrb[16].mxu1 }
 0x503   : > { %v5488_v62 = vpop.f32.mrb[17].mxu0  ;;  %v5544_v1 = vpop.f32.mrb[17].mxu1 }
 0x504   : > { %v5489_v37 = vadd.f32 %v5488_v62, %v5487_v7  ;;  %v5545_v20 = vadd.f32 %v5544_v1, %v5543_v8 }
 0x506   : > { %v4512_v21 = vadd.f32 %v5545_v20, %v5489_v37  ;;  %v5490_v38 = vpop.f32.mrb[18].mxu0  ;;  %v5546_v46 = vpop.f32.mrb[18].mxu1 }
 0x507   : > { %v5491_v60 = vpop.f32.mrb[19].mxu0  ;;  %v5547_v29 = vpop.f32.mrb[19].mxu1 }
 0x508   : > { %v5492_v51 = vadd.f32 %v5491_v60, %v5490_v38  ;;  %v5548_v56 = vadd.f32 %v5547_v29, %v5546_v46  ;;  %v4550_v33 = vsel %vm4244_vm0, %v4512_v21, 0.0 }
 0x50a   : > { %v4517_v28 = vadd.f32 %v5548_v56, %v5492_v51  ;;  %v5493_v52 = vpop.f32.mrb[20].mxu0  ;;  %v5549_v0 = vpop.f32.mrb[20].mxu1 }
 0x50b   : > { %v5494_v5 = vpop.f32.mrb[21].mxu0  ;;  %v5550_v59 = vpop.f32.mrb[21].mxu1 }
 0x50c   : > { %v4551_v17 = vsel %vm4244_vm0, %v4517_v28, 0.0  ;;  %v5495_v19 = vadd.f32 %v5494_v5, %v5493_v52  ;;  %v5551_v13 = vadd.f32 %v5550_v59, %v5549_v0 }
 0x50d   : > { %v4552_v42 = vadd.f32 %v4551_v17, %v4550_v33 }
 0x50e   : > { %v4522_v30 = vadd.f32 %v5551_v13, %v5495_v19  ;;  %v5496_v32 = vpop.f32.mrb[22].mxu0  ;;  %v5552_v49 = vpop.f32.mrb[22].mxu1 }
 0x50f   : > { %v5497_v27 = vpop.f32.mrb[23].mxu0  ;;  %v5553_v3 = vpop.f32.mrb[23].mxu1 }
 0x510   : > { %v4553_v7 = vsel %vm4244_vm0, %v4522_v30, 0.0  ;;  %v5498_v8 = vadd.f32 %v5497_v27, %v5496_v32  ;;  %v5554_v62 = vadd.f32 %v5553_v3, %v5552_v49 }
 0x511   : > { %v4554_v1 = vadd.f32 %v4553_v7, %v4552_v42 }
 0x512   : > { %v4527_v37 = vadd.f32 %v5554_v62, %v5498_v8  ;;  %v5499_v20 = vpop.f32.mrb[24].mxu0  ;;  %v5555_v38 = vpop.f32.mrb[24].mxu1 }
 0x513   : > { %v5500_v46 = vpop.f32.mrb[25].mxu0  ;;  %v5556_v21 = vpop.f32.mrb[25].mxu1 }
 0x514   : > { %v4555_v60 = vsel %vm4244_vm0, %v4527_v37, 0.0  ;;  %v5501_v29 = vadd.f32 %v5500_v46, %v5499_v20  ;;  %v5557_v51 = vadd.f32 %v5556_v21, %v5555_v38 }
 0x515   : > { %v4556_v56 = vadd.f32 %v4555_v60, %v4554_v1 }
 0x516   : > { %v4532_v28 = vadd.f32 %v5557_v51, %v5501_v29  ;;  %v5502_v52 = vpop.f32.mrb[26].mxu0  ;;  %v5558_v0 = vpop.f32.mrb[26].mxu1 }
 0x517   : > { %v5503_v5 = vpop.f32.mrb[27].mxu0  ;;  %v5559_v59 = vpop.f32.mrb[27].mxu1 }
 0x518   : > { %v4557_v33 = vsel %vm4244_vm0, %v4532_v28, 0.0  ;;  %v5504_v17 = vadd.f32 %v5503_v5, %v5502_v52  ;;  %v5560_v19 = vadd.f32 %v5559_v59, %v5558_v0 }
 0x519   : > { %v4558_v13 = vadd.f32 %v4557_v33, %v4556_v56 }
 0x51a   : > { %v4537_v42 = vadd.f32 %v5560_v19, %v5504_v17  ;;  %v5505_v30 = vpop.f32.mrb[28].mxu0  ;;  %v5561_v32 = vpop.f32.mrb[28].mxu1 }
 0x51b   : > { %v5506_v49 = vpop.f32.mrb[29].mxu0  ;;  %v5562_v27 = vpop.f32.mrb[29].mxu1 }
 0x51c   : > { %v4559_v3 = vsel %vm4244_vm0, %v4537_v42, 0.0  ;;  %v5507_v7 = vadd.f32 %v5506_v49, %v5505_v30  ;;  %v5563_v8 = vadd.f32 %v5562_v27, %v5561_v32  ;;  %v4615_v49 = vld [vmem:[%s8471_s3] sm:$0xf] }
 0x51d   : > { %v4560_v62 = vadd.f32 %v4559_v3, %v4558_v13  ;;  %v4669_v27 = vld [vmem:[%s8472_s4] sm:$0xf] }
 0x51e   : > { %v4542_v1 = vadd.f32 %v5563_v8, %v5507_v7  ;;  %v5508_v37 = vpop.f32.mrb[30].mxu0  ;;  %v5564_v20 = vpop.f32.mrb[30].mxu1  ;;  %v8201_v7 = vrot.slane %v4615_v49, %v7624_v44  ;;  %v8204_v8 = vrot.slane %v4669_v27, %v7624_v44  ;;  %v8223_v44 = vrot.slane %v4669_v27, %v7696_v15 }
 0x51f   : > { %v5509_v38 = vpop.f32.mrb[31].mxu0  ;;  %v5565_v46 = vpop.f32.mrb[31].mxu1 }
 0x520   : > { %v4561_v21 = vsel %vm4244_vm0, %v4542_v1, 0.0  ;;  %v5510_v60 = vadd.f32 %v5509_v38, %v5508_v37  ;;  %v5566_v29 = vadd.f32 %v5565_v46, %v5564_v20  ;;  %v8210_v1 = vrot.slane %v4669_v27, %v7626_v45 }
 0x521   : > { %v4562_v51 = vadd.f32 %v4561_v21, %v4560_v62  ;;  %v8207_v62 = vrot.slane %v4615_v49, %v7626_v45  ;;  %v8214_v20 = vrot.slane %v4615_v49, %v7685_v11  ;;  %v8217_v38 = vrot.slane %v4669_v27, %v7685_v11 }
 0x522   : > { %v4547_v56 = vadd.f32 %v5566_v29, %v5510_v60  ;;  %v8220_v46 = vrot.slane %v4615_v49, %v7696_v15 }
 0x524   : > { %v4563_v28 = vsel %vm4244_vm0, %v4547_v56, 0.0 }
 0x525   : > { %v4564_v52 = vadd.f32 %v4563_v28, %v4562_v51 }
 0x527   : > { %v4565_v0 = vrot.slane %v4564_v52, 4 }
 0x529   : > { %v4566_v5 = vadd.f32 %v4565_v0, %v4564_v52 }
 0x52b   : > { %v4567_v59 = vrot.slane %v4566_v5, 2 }
 0x52d   : > { %v4568_v33 = vadd.f32 %v4567_v59, %v4566_v5 }
 0x52f   : > { %v4569_v17 = vrot.slane %v4568_v33, 1 }
 0x531   : > { %v4570_v19 = vadd.f32 %v4569_v17, %v4568_v33 }
 0x533   : > { %v4571_v13 = vmul.f32 0.001953125, %v4570_v19 }
 0x535   : > { %4573 = vrot.lane.b32.xlu0 %v4571_v13, %s6536_s8 }
 0x5a7   : > { %v4574_v42 = vpop.permute.xlu0 %4573 }
 0x5a8   : > { %v4576_v30 = vsel %vm4244_vm0, %v4571_v13, %v4574_v42 }
 0x5a9   : > { %v4577_v32 = vadd.f32 1e-05, %v4576_v30 }
 0x5ab   : > { %6492 = vrsqrt.f32 %v4577_v32 }
 0x5b5   : > { %v6493_v3 = vpop.eup %6492 }
 0x5b6   : > { %v4582_v37 = vrot.slane %v6493_v3, %v7685_v11 }
 0x5b8   : > { %v4583_v21 = vmul.f32 %v4582_v37, %v7994_v10  ;;  %v4584_v60 = vmul.f32 %v4582_v37, %v7998_v31  ;;  %v4585_v45 = vmul.f32 %v4582_v37, %v8002_v39  ;;  %v4586_v29 = vmul.f32 %v4582_v37, %v8006_v50 }
 0x5b9   : > { %v4587_v51 = vmul.f32 %v4582_v37, %v8028_v63  ;;  %v4588_v56 = vmul.f32 %v4582_v37, %v8010_v57  ;;  %v4589_v11 = vmul.f32 %v4582_v37, %v8032_v53  ;;  %v4590_v28 = vmul.f32 %v4582_v37, %v8014_v43 }
 0x5ba   : > { %v4591_v52 = vmul.f32 %v4582_v37, %v8050_v25  ;;  %v4592_v15 = vmul.f32 %v4582_v37, %v8038_v12  ;;  %v4593_v10 = vmul.f32 %v4582_v37, %v8054_v2  ;;  %v4594_v31 = vmul.f32 %v4582_v37, %v8042_v34 }
 0x5bb   : > { %v4595_v39 = vmul.f32 %v4582_v37, %v8074_v55  ;;  %v4596_v50 = vmul.f32 %v4582_v37, %v8062_v16  ;;  %v4597_v63 = vmul.f32 %v4582_v37, %v8078_v22  ;;  %v4598_v57 = vmul.f32 %v4582_v37, %v8066_v26 }
 0x5bc   : > { %v4599_v53 = vmul.f32 %v4582_v37, %v8098_v41  ;;  %v4600_v43 = vmul.f32 %v4582_v37, %v8086_v24  ;;  %v4601_v25 = vmul.f32 %v4582_v37, %v8102_v36  ;;  %v4602_v12 = vmul.f32 %v4582_v37, %v8090_v40 }
 0x5bd   : > { %v4603_v2 = vmul.f32 %v4582_v37, %v8122_v9  ;;  %v4604_v34 = vmul.f32 %v4582_v37, %v8110_v4  ;;  %v4605_v55 = vmul.f32 %v4582_v37, %v8126_v54  ;;  %v4606_v16 = vmul.f32 %v4582_v37, %v8114_v35 }
 0x5be   : > { %v4607_v22 = vmul.f32 %v4582_v37, %v8146_v23  ;;  %v4608_v26 = vmul.f32 %v4582_v37, %v8134_v61  ;;  %v4609_v41 = vmul.f32 %v4582_v37, %v8150_v6  ;;  %v4610_v24 = vmul.f32 %v4582_v37, %v8138_v18 }
 0x5bf   : > { %v4611_v36 = vmul.f32 %v4582_v37, %v8170_v14  ;;  %v4612_v40 = vmul.f32 %v4582_v37, %v8158_v58  ;;  %v4613_v9 = vmul.f32 %v4582_v37, %v8174_v47  ;;  %v4614_v4 = vmul.f32 %v4582_v37, %v8162_v48 }
 0x5c0   : > { %v4637_v54 = vmul.f32 %v8214_v20, %v4583_v21  ;;  %v4638_v35 = vmul.f32 %v8201_v7, %v4584_v60  ;;  %v4639_v23 = vmul.f32 %v8220_v46, %v4585_v45  ;;  %v4640_v61 = vmul.f32 %v8207_v62, %v4586_v29 }
 0x5c1   : > { %v4641_v6 = vmul.f32 %v8214_v20, %v4587_v51  ;;  %v4642_v18 = vmul.f32 %v8201_v7, %v4588_v56  ;;  %v4643_v14 = vmul.f32 %v8220_v46, %v4589_v11  ;;  %v4644_v58 = vmul.f32 %v8207_v62, %v4590_v28 }
 0x5c2   : > { %v4645_v47 = vmul.f32 %v8214_v20, %v4591_v52  ;;  %v4646_v48 = vmul.f32 %v8201_v7, %v4592_v15  ;;  %v4647_v0 = vmul.f32 %v8220_v46, %v4593_v10  ;;  %v4648_v5 = vmul.f32 %v8207_v62, %v4594_v31 }
 0x5c3   : > { %v4649_v59 = vmul.f32 %v8214_v20, %v4595_v39  ;;  %v4650_v33 = vmul.f32 %v8201_v7, %v4596_v50  ;;  %v4651_v17 = vmul.f32 %v8220_v46, %v4597_v63  ;;  %v4652_v19 = vmul.f32 %v8207_v62, %v4598_v57 }
 0x5c4   : > { %v4653_v13 = vmul.f32 %v8214_v20, %v4599_v53  ;;  %v4654_v42 = vmul.f32 %v8201_v7, %v4600_v43  ;;  %v4655_v30 = vmul.f32 %v8220_v46, %v4601_v25  ;;  %v4656_v32 = vmul.f32 %v8207_v62, %v4602_v12 }
 0x5c5   : > { %v4657_v49 = vmul.f32 %v8214_v20, %v4603_v2  ;;  %v4658_v27 = vmul.f32 %v8201_v7, %v4604_v34  ;;  %v4659_v3 = vmul.f32 %v8220_v46, %v4605_v55  ;;  %v4660_v37 = vmul.f32 %v8207_v62, %v4606_v16 }
 0x5c6   : > { %v4661_v21 = vmul.f32 %v8214_v20, %v4607_v22  ;;  %v4662_v60 = vmul.f32 %v8201_v7, %v4608_v26  ;;  %v4663_v45 = vmul.f32 %v8220_v46, %v4609_v41  ;;  %v4664_v29 = vmul.f32 %v8207_v62, %v4610_v24 }
 0x5c7   : > { %v4665_v51 = vmul.f32 %v8214_v20, %v4611_v36  ;;  %v4666_v56 = vmul.f32 %v8201_v7, %v4612_v40  ;;  %v4667_v11 = vmul.f32 %v8220_v46, %v4613_v9  ;;  %v4668_v28 = vmul.f32 %v8207_v62, %v4614_v4 }
 0x5c8   : > { %v4691_v52 = vadd.f32 %v8217_v38, %v4637_v54  ;;  %v4692_v15 = vadd.f32 %v8204_v8, %v4638_v35  ;;  %v4693_v10 = vadd.f32 %v8223_v44, %v4639_v23  ;;  %v4694_v31 = vadd.f32 %v8210_v1, %v4640_v61 }
 0x5c9   : > { %v4695_v39 = vadd.f32 %v8217_v38, %v4641_v6  ;;  %v4696_v50 = vadd.f32 %v8204_v8, %v4642_v18  ;;  %v4697_v20 = vadd.f32 %v8223_v44, %v4643_v14  ;;  %v4698_v7 = vadd.f32 %v8210_v1, %v4644_v58 }
 0x5ca   : > { %v4699_v46 = vadd.f32 %v8217_v38, %v4645_v47  ;;  %v4700_v62 = vadd.f32 %v8204_v8, %v4646_v48  ;;  %v4701_v63 = vadd.f32 %v8223_v44, %v4647_v0  ;;  %v4702_v57 = vadd.f32 %v8210_v1, %v4648_v5 }
 0x5cb   : > { %v4703_v53 = vadd.f32 %v8217_v38, %v4649_v59  ;;  %v4704_v43 = vadd.f32 %v8204_v8, %v4650_v33  ;;  %v4705_v25 = vadd.f32 %v8223_v44, %v4651_v17  ;;  %v4706_v12 = vadd.f32 %v8210_v1, %v4652_v19 }
 0x5cc   : > { %v4707_v2 = vadd.f32 %v8217_v38, %v4653_v13  ;;  %v4708_v34 = vadd.f32 %v8204_v8, %v4654_v42  ;;  %v4709_v55 = vadd.f32 %v8223_v44, %v4655_v30  ;;  %v4710_v16 = vadd.f32 %v8210_v1, %v4656_v32 }
 0x5cd   : > { %v8310_v22 = vadd.f32 %v8217_v38, %v4657_v49  ;;  %v8313_v26 = vadd.f32 %v8204_v8, %v4658_v27  ;;  %v8316_v41 = vadd.f32 %v8223_v44, %v4659_v3  ;;  %v8319_v24 = vadd.f32 %v8210_v1, %v4660_v37 }
 0x5ce   : > { %v8322_v36 = vadd.f32 %v8217_v38, %v4661_v21  ;;  %v8325_v40 = vadd.f32 %v8204_v8, %v4662_v60  ;;  %v8328_v9 = vadd.f32 %v8223_v44, %v4663_v45  ;;  %v8331_v4 = vadd.f32 %v8210_v1, %v4664_v29 }
 0x5cf   : > { %v8334_v54 = vadd.f32 %v8217_v38, %v4665_v51  ;;  %v8337_v35 = vadd.f32 %v8204_v8, %v4666_v56  ;;  %v8340_v23 = vadd.f32 %v8223_v44, %v4667_v11  ;;  %v8343_v61 = vadd.f32 %v8210_v1, %v4668_v28 }
 0x5d0   : > { %v4723_v6 = vmax.f32 %v4691_v52, 0.0  ;;  %v4724_v18 = vmax.f32 %v4692_v15, 0.0  ;;  %v4725_v14 = vmax.f32 %v4693_v10, 0.0  ;;  %v4726_v58 = vmax.f32 %v4694_v31, 0.0 }
 0x5d1   : > { %v4727_v47 = vmax.f32 %v4695_v39, 0.0  ;;  %v4728_v48 = vmax.f32 %v4696_v50, 0.0  ;;  %v4729_v0 = vmax.f32 %v4697_v20, 0.0  ;;  %v4730_v5 = vmax.f32 %v4698_v7, 0.0 }
 0x5d2   : > { %v4731_v59 = vmax.f32 %v4699_v46, 0.0  ;;  %v4732_v38 = vmax.f32 %v4700_v62, 0.0  ;;  %v4733_v33 = vmax.f32 %v4701_v63, 0.0  ;;  %v4734_v17 = vmax.f32 %v4702_v57, 0.0  ;;  %4755 = vst [vmem:[%s8474_s6] sm:$0xff] %v4723_v6  ;;  %4756 = vst [vmem:[%s8474_s6 + $0x8] sm:$0xff] %v4724_v18 }
 0x5d3   : > { %4757 = vst [vmem:[%s8474_s6 + $0x10] sm:$0xff] %v4725_v14  ;;  %4758 = vst [vmem:[%s8474_s6 + $0x18] sm:$0xff] %v4726_v58  ;;  %v4735_v8 = vmax.f32 %v4703_v53, 0.0  ;;  %v4736_v1 = vmax.f32 %v4704_v43, 0.0  ;;  %v4737_v44 = vmax.f32 %v4705_v25, 0.0  ;;  %v4738_v19 = vmax.f32 %v4706_v12, 0.0 }
 0x5d4   : > { %4759 = vst [vmem:[%s8474_s6 + $0x20] sm:$0xff] %v4727_v47  ;;  %4760 = vst [vmem:[%s8474_s6 + $0x28] sm:$0xff] %v4728_v48  ;;  %v4739_v13 = vmax.f32 %v4707_v2, 0.0  ;;  %v4740_v42 = vmax.f32 %v4708_v34, 0.0  ;;  %v4741_v30 = vmax.f32 %v4709_v55, 0.0  ;;  %v4742_v32 = vmax.f32 %v4710_v16, 0.0 }
 0x5d5   : > { %4761 = vst [vmem:[%s8474_s6 + $0x30] sm:$0xff] %v4729_v0  ;;  %4762 = vst [vmem:[%s8474_s6 + $0x38] sm:$0xff] %v4730_v5  ;;  %v4743_v49 = vmax.f32 %v8310_v22, 0.0  ;;  %v4744_v27 = vmax.f32 %v8313_v26, 0.0  ;;  %v4745_v3 = vmax.f32 %v8316_v41, 0.0  ;;  %v4746_v37 = vmax.f32 %v8319_v24, 0.0 }
 0x5d6   : > { %4763 = vst [vmem:[%s8474_s6 + $0x40] sm:$0xff] %v4731_v59  ;;  %4764 = vst [vmem:[%s8474_s6 + $0x48] sm:$0xff] %v4732_v38  ;;  %v4747_v21 = vmax.f32 %v8322_v36, 0.0  ;;  %v4748_v60 = vmax.f32 %v8325_v40, 0.0  ;;  %v4749_v45 = vmax.f32 %v8328_v9, 0.0  ;;  %v4750_v29 = vmax.f32 %v8331_v4, 0.0 }
 0x5d7   : > { %4765 = vst [vmem:[%s8474_s6 + $0x50] sm:$0xff] %v4733_v33  ;;  %4766 = vst [vmem:[%s8474_s6 + $0x58] sm:$0xff] %v4734_v17  ;;  %v4751_v51 = vmax.f32 %v8334_v54, 0.0  ;;  %v4752_v56 = vmax.f32 %v8337_v35, 0.0  ;;  %v4753_v11 = vmax.f32 %v8340_v23, 0.0  ;;  %v4754_v28 = vmax.f32 %v8343_v61, 0.0 }
 0x5d8   : > { %4767 = vst [vmem:[%s8474_s6 + $0x60] sm:$0xff] %v4735_v8  ;;  %4768 = vst [vmem:[%s8474_s6 + $0x68] sm:$0xff] %v4736_v1 }
 0x5d9   : > { %4769 = vst [vmem:[%s8474_s6 + $0x70] sm:$0xff] %v4737_v44  ;;  %4770 = vst [vmem:[%s8474_s6 + $0x78] sm:$0xff] %v4738_v19 }
 0x5da   : > { %4771 = vst [vmem:[%s8474_s6 + $0x80] sm:$0xff] %v4739_v13  ;;  %4772 = vst [vmem:[%s8474_s6 + $0x88] sm:$0xff] %v4740_v42 }
 0x5db   : > { %4773 = vst [vmem:[%s8474_s6 + $0x90] sm:$0xff] %v4741_v30  ;;  %4774 = vst [vmem:[%s8474_s6 + $0x98] sm:$0xff] %v4742_v32 }
 0x5dc   : > { %4775 = vst [vmem:[%s8474_s6 + $0xa0] sm:$0xff] %v4743_v49  ;;  %4776 = vst [vmem:[%s8474_s6 + $0xa8] sm:$0xff] %v4744_v27 }
 0x5dd   : > { %4777 = vst [vmem:[%s8474_s6 + $0xb0] sm:$0xff] %v4745_v3  ;;  %4778 = vst [vmem:[%s8474_s6 + $0xb8] sm:$0xff] %v4746_v37 }
 0x5de   : > { %4779 = vst [vmem:[%s8474_s6 + $0xc0] sm:$0xff] %v4747_v21  ;;  %4780 = vst [vmem:[%s8474_s6 + $0xc8] sm:$0xff] %v4748_v60 }
 0x5df   : > { %4781 = vst [vmem:[%s8474_s6 + $0xd0] sm:$0xff] %v4749_v45  ;;  %4782 = vst [vmem:[%s8474_s6 + $0xd8] sm:$0xff] %v4750_v29 }
 0x5e0   : > { %4783 = vst [vmem:[%s8474_s6 + $0xe0] sm:$0xff] %v4751_v51  ;;  %4784 = vst [vmem:[%s8474_s6 + $0xe8] sm:$0xff] %v4752_v56 }
 0x5e1   : > { %4785 = vst [vmem:[%s8474_s6 + $0xf0] sm:$0xff] %v4753_v11  ;;  %4786 = vst [vmem:[%s8474_s6 + $0xf8] sm:$0xff] %v4754_v28 }
 0x5e2 PF: > { %s16_s25 = sadd.s32 1, %s6532_s25   ;;  %s8475_s21 = smov %s6520_s22 }
 0x5e3   : > { %p13_p12 = scmp.ge.s32.totalorder %s16_s25, 6   ;;  %s8476_s22 = smov %s6607_s29 }
 0x5e4   : > { %s8477_s23 = smov %s6528_s24  ;;  %s8478_s24 = smov %s8480_s26 }
 0x5e5   :  { %15 = sbr.rel (!%p13_p12) target bundleno = 3 (0x3), region = 131 }

// kernel: generator_forward.7
= control target key start
LH: loop header
LB: loop body
LE: loop exit
PB: predicated region body
PF: predicated region fallthrough
CT: control target
= control target key end

     0   :  { %s1693_s12 = smov 0   ;;  %s1695_s13 = smov 0   ;;  %s1890_s0 = inlined_call_operand.vmem [shape: bf16[16,5120], index: 0, kind: input, shape index: {}]   ;;  %s1891_s1 = inlined_call_operand.vmem [shape: bf16[5120,128], index: 1, kind: input, shape index: {}]   ;;  %s1892_s2 = inlined_call_operand.vmem [shape: f32[16,1], index: 2, kind: input, shape index: {}]   ;;  %s1893_s3 = inlined_call_operand.vmem [shape: f32[16,128], index: 3, kind: output, shape index: {}]  }
   0x1   :  { %s1697_s14 = smov 0   ;;  %s1699_s15 = smov 0  }
   0x2   :  { %s1701_s16 = smov 0  }
   0x3 LB: > { %s22_s17 = sadd.s32 1, %s1665_s15  ;;  %p39_p1 = scmp.ne.s32.totalorder %s1657_s13, %s1653_s12  ;;  %s1669_s16 = sphi %s1701_s16, %s13_s16   ;;  %s1665_s15 = sphi %s1699_s15, %s1897_s15   ;;  %s1661_s14 = sphi %s1697_s14, %s1896_s14   ;;  %s1657_s13 = sphi %s1695_s13, %s1895_s13   ;;  %s1653_s12 = sphi %s1693_s12, %s1894_s12  }
   0x4   : > { %p23_p0 = scmp.ge.s32.totalorder %s22_s17, 4  ;;  %p40_p2 = scmp.eq.s32.totalorder %s1669_s16, 0 }
   0x5   : > { %s32_s19 = sadd.s32 1, %s1657_s13  ;;  %p1277_p5 = scmp.ge.s32.totalorder %s1669_s16, 4 }
   0x6   : > { %s1899_s17 = smov (%p23_p0, %s22_s17), 0  ;;  %p41_p3 = por %p40_p2, %p39_p1 }
   0x7   : > { %s29_s18 = ssub.s32 %s1665_s15, %s1899_s17  ;;  %143 = sbr.rel (%p1277_p5) target bundleno = 24 (0x18), region = 20 }
   0x8   : > { %p30_p4 = scmp.eq.s32.totalorder %s29_s18, 0 }
   0xa   : > { %s1728_s20 = scalar_select %p30_p4, %s1657_s13, %s32_s19  }
   0xe   : > { %146 = sbr.rel (!%p41_p3) target bundleno = 24 (0x18), region = 24  ;;  %s148_s21 = sand.u32 (%p41_p3), 1, %s1657_s13  }
   0xf   : > { %s1376_s22 = smul.u32 (%p41_p3), 40, %s1665_s15 }
  0x10   : > { %s1487_s23 = smul.u32 (%p41_p3), 80, %s148_s21 }
  0x11   : > { %s153_s26 = scalar_lea.vmem (%p41_p3), %s1890_s0, %s1376_s22 }
  0x12   : > { %v166_v0 = vld [vmem:[%s153_s26] sm:$0xff] (%p41_p3)  ;;  %v168_v1 = vld [vmem:[%s153_s26 + $0x8] sm:$0xff] (%p41_p3)  ;;  %v170_v2 = vld [vmem:[%s153_s26 + $0x10] sm:$0xff] (%p41_p3)  ;;  %s150_s27 = scalar_lea.vmem (%p41_p3), [#allocation2], %s1487_s23 }
  0x13   : > { %167 = vst [vmem:[%s150_s27] sm:$0xff] (%p41_p3), %v166_v0  ;;  %169 = vst [vmem:[%s150_s27 + $0x8] sm:$0xff] (%p41_p3), %v168_v1  ;;  %v172_v3 = vld [vmem:[%s153_s26 + $0x18] sm:$0xff] (%p41_p3)  ;;  %v174_v4 = vld [vmem:[%s153_s26 + $0x20] sm:$0xff] (%p41_p3) }
  0x14   : > { %171 = vst [vmem:[%s150_s27 + $0x10] sm:$0xff] (%p41_p3), %v170_v2  ;;  %v176_v5 = vld [vmem:[%s153_s26 + $0xa0] sm:$0xff] (%p41_p3)  ;;  %173 = vst [vmem:[%s150_s27 + $0x18] sm:$0xff] (%p41_p3), %v172_v3  ;;  %v178_v6 = vld [vmem:[%s153_s26 + $0xa8] sm:$0xff] (%p41_p3) }
  0x15   : > { %175 = vst [vmem:[%s150_s27 + $0x20] sm:$0xff] %v174_v4  ;;  %177 = vst [vmem:[%s150_s27 + $0x28] sm:$0xff] %v176_v5  ;;  %v180_v7 = vld [vmem:[%s153_s26 + $0xb0] sm:$0xff]  ;;  %v182_v8 = vld [vmem:[%s153_s26 + $0xb8] sm:$0xff] }
  0x16   : > { %179 = vst [vmem:[%s150_s27 + $0x30] sm:$0xff] %v178_v6  ;;  %181 = vst [vmem:[%s150_s27 + $0x38] sm:$0xff] %v180_v7  ;;  %v184_v9 = vld [vmem:[%s153_s26 + $0xc0] sm:$0xff] }
  0x17   : > { %183 = vst [vmem:[%s150_s27 + $0x40] sm:$0xff] %v182_v8  ;;  %185 = vst [vmem:[%s150_s27 + $0x48] sm:$0xff] %v184_v9 }
  0x18 PF: > { %p1279_p6 = scmp.ge.s32.totalorder %s1669_s16, 1  ;;  %p202_p7 = scmp.lt.s32.totalorder %s1669_s16, 5 }
  0x1a   : > { %p203_p8 = pnand %p1279_p6, %p202_p7 }
  0x1b   : > { %s209_s28 = sand.u32 (!%p203_p8), 1, %s1653_s12   ;;  %s240_s29 = smul.u32 (!%p203_p8), 160, %s1661_s14 }
  0x1c   : > { %206 = sbr.rel (%p203_p8) target bundleno = 383 (0x17f), region = 51  ;;  %p1281_p10 = scmp.ne.s32.totalorder (!%p203_p8), %s1661_s14, 0 }
  0x1d   : > { %s1488_s30 = smul.u32 (!%p203_p8), 80, %s209_s28  ;;  %p241_p9 = scmp.lt.s32.totalorder (!%p203_p8), %s240_s29, 639 }
  0x1f   : > { %s1745_s8 = scalar_lea.vmem (!%p203_p8), [#allocation2], %s1488_s30 }
  0x23   : > { %s1901_s29 = smov (!%p241_p9, %s240_s29), 639  ;;  %257 = sbr.rel (%p1281_p10) target bundleno = 42 (0x2a), region = 59 }
  0x24   : > { %s1280_s4 = sshll.u32 %s1901_s29, 2  ;;  %v1671_v10 = vmov (!%p1281_p10), 0.0  }
  0x25   : > { %s1743_s7 = scalar_lea.vmem %s1891_s1, %s1280_s4  ;;  %258 = vst [vmem:[%s1893_s3] sm:$0xff] (!%p1281_p10), %v1671_v10  ;;  %259 = vst [vmem:[%s1893_s3 + $0x8] sm:$0xff] (!%p1281_p10), %v1671_v10 }
  0x2a PF: > { %v1531_v11 = vld [vmem:[%s1743_s7 + $0x40] sm:$0xff]   ;;  %v1535_v15 = vld [vmem:[%s1743_s7 + $0x48] sm:$0xff]   ;;  %v1539_v19 = vld [vmem:[%s1743_s7 + $0x50] sm:$0xff]   ;;  %p1372_p11 = scmp.ne.s32.totalorder %s1661_s14, 3 }
  0x2b   : > { %v1532_v12 = vld [vmem:[%s1743_s7 + $0xc0] sm:$0xff]   ;;  %1377 = vmatprep.subr.bf16.mxu0 %v1531_v11  ;;  %v1536_v16 = vld [vmem:[%s1743_s7 + $0xc8] sm:$0xff]   ;;  %v1540_v20 = vld [vmem:[%s1743_s7 + $0xd0] sm:$0xff]  }
  0x2c   : > { %v1533_v13 = vld [vmem:[%s1743_s7] sm:$0xff]   ;;  %1399 = vmatprep.subr.bf16.mxu1 %v1532_v12  ;;  %v1537_v17 = vld [vmem:[%s1743_s7 + $0x8] sm:$0xff]   ;;  %v1541_v21 = vld [vmem:[%s1743_s7 + $0x10] sm:$0xff]  }
  0x2d   : > { %v1534_v14 = vld [vmem:[%s1743_s7 + $0x80] sm:$0xff]   ;;  %1378 = vmatpush3.bf16.msra.mxu0 %v1533_v13  ;;  %v1538_v18 = vld [vmem:[%s1743_s7 + $0x88] sm:$0xff]   ;;  %v1542_v22 = vld [vmem:[%s1743_s7 + $0x90] sm:$0xff]  }
  0x2e   : > { %1400 = vmatpush3.bf16.msra.mxu1 %v1534_v14  ;;  %1379 = vmatprep.subr.bf16.mxu0 %v1535_v15  ;;  %v1543_v23 = vld [vmem:[%s1743_s7 + $0x58] sm:$0xff]   ;;  %v1547_v27 = vld [vmem:[%s1743_s7 + $0x60] sm:$0xff]   ;;  %v1551_v31 = vld [vmem:[%s1743_s7 + $0x68] sm:$0xff]  }
  0x2f   : > { %1401 = vmatprep.subr.bf16.mxu1 %v1536_v16  ;;  %v1544_v24 = vld [vmem:[%s1743_s7 + $0xd8] sm:$0xff]   ;;  %v1548_v28 = vld [vmem:[%s1743_s7 + $0xe0] sm:$0xff]   ;;  %v1552_v32 = vld [vmem:[%s1743_s7 + $0xe8] sm:$0xff]  }
  0x30   : > { %v1545_v25 = vld [vmem:[%s1743_s7 + $0x18] sm:$0xff]   ;;  %v1549_v29 = vld [vmem:[%s1743_s7 + $0x20] sm:$0xff]   ;;  %v1553_v33 = vld [vmem:[%s1743_s7 + $0x28] sm:$0xff]  }
  0x31   : > { %1380 = vmatpush3.bf16.msra.mxu0 %v1537_v17  ;;  %v1546_v26 = vld [vmem:[%s1743_s7 + $0x98] sm:$0xff]   ;;  %v1550_v30 = vld [vmem:[%s1743_s7 + $0xa0] sm:$0xff]   ;;  %v1554_v34 = vld [vmem:[%s1743_s7 + $0xa8] sm:$0xff]  }
  0x32   : > { %1402 = vmatpush3.bf16.msra.mxu1 %v1538_v18  ;;  %1381 = vmatprep.subr.bf16.mxu0 %v1539_v19  ;;  %v1555_v35 = vld [vmem:[%s1743_s7 + $0x70] sm:$0xff]   ;;  %v1559_v39 = vld [vmem:[%s1743_s7 + $0x78] sm:$0xff]   ;;  %v1569_v47 = vld [vmem:[%s1743_s7 + $0x140] sm:$0xff]  }
  0x33   : > { %1403 = vmatprep.subr.bf16.mxu1 %v1540_v20  ;;  %v1556_v36 = vld [vmem:[%s1743_s7 + $0xf0] sm:$0xff]   ;;  %v1560_v40 = vld [vmem:[%s1743_s7 + $0xf8] sm:$0xff]   ;;  %v1570_v48 = vld [vmem:[%s1743_s7 + $0x100] sm:$0xff]  }
  0x34   : > { %v1557_v37 = vld [vmem:[%s1743_s7 + $0x30] sm:$0xff]   ;;  %v1561_v41 = vld [vmem:[%s1743_s7 + $0x38] sm:$0xff]   ;;  %v1571_v49 = vld [vmem:[%s1743_s7 + $0x1c0] sm:$0xff]  }
  0x35   : > { %1382 = vmatpush3.bf16.msra.mxu0 %v1541_v21  ;;  %v1558_v38 = vld [vmem:[%s1743_s7 + $0xb0] sm:$0xff]   ;;  %v1562_v42 = vld [vmem:[%s1743_s7 + $0xb8] sm:$0xff]   ;;  %v1572_v50 = vld [vmem:[%s1743_s7 + $0x180] sm:$0xff]  }
  0x36   : > { %1404 = vmatpush3.bf16.msra.mxu1 %v1542_v22  ;;  %1383 = vmatprep.subr.bf16.mxu0 %v1543_v23  ;;  %v1563_v43 = vld [vmem:[%s1745_s8] ss:$40 sps:$4 sm:$0xff]   ;;  %v1565_v44 = vld [vmem:[%s1745_s8 + $0x4] ss:$40 sps:$4 sm:$0xff]   ;;  %v1600_v14 = vld [vmem:[%s1745_s8 + $0x10] ss:$40 sps:$4 sm:$0xff]  }
  0x37   : > { %1405 = vmatprep.subr.bf16.mxu1 %v1544_v24  ;;  %v1566_v45 = vld [vmem:[%s1745_s8 + $0x8] ss:$40 sps:$4 sm:$0xff]   ;;  %v1568_v46 = vld [vmem:[%s1745_s8 + $0xc] ss:$40 sps:$4 sm:$0xff]   ;;  %994 = vmatprep.mubr.bf16.mxu0 %v1565_v44  ;;  %v1605_v18 = vld [vmem:[%s1745_s8 + $0x18] ss:$40 sps:$4 sm:$0xff]  }
  0x38   : > { %1035 = vmatprep.mubr.bf16.mxu1 %v1568_v46  ;;  %v1573_v51 = vld [vmem:[%s1743_s7 + $0x148] sm:$0xff]   ;;  %v1577_v55 = vld [vmem:[%s1743_s7 + $0x150] sm:$0xff]   ;;  %v1581_v59 = vld [vmem:[%s1743_s7 + $0x158] sm:$0xff]  }
  0x39   : > { %1384 = vmatpush3.bf16.msra.mxu0 %v1545_v25  ;;  %v1574_v52 = vld [vmem:[%s1743_s7 + $0x108] sm:$0xff]   ;;  %v1578_v56 = vld [vmem:[%s1743_s7 + $0x110] sm:$0xff]   ;;  %v1582_v60 = vld [vmem:[%s1743_s7 + $0x118] sm:$0xff]  }
  0x3a   : > { %1406 = vmatpush3.bf16.msra.mxu1 %v1546_v26  ;;  %1385 = vmatprep.subr.bf16.mxu0 %v1547_v27  ;;  %v1575_v53 = vld [vmem:[%s1743_s7 + $0x1c8] sm:$0xff]   ;;  %v1579_v57 = vld [vmem:[%s1743_s7 + $0x1d0] sm:$0xff]   ;;  %v1583_v61 = vld [vmem:[%s1743_s7 + $0x1d8] sm:$0xff]  }
  0x3b   : > { %1407 = vmatprep.subr.bf16.mxu1 %v1548_v28  ;;  %v1576_v54 = vld [vmem:[%s1743_s7 + $0x188] sm:$0xff]   ;;  %v1580_v58 = vld [vmem:[%s1743_s7 + $0x190] sm:$0xff]   ;;  %v1584_v62 = vld [vmem:[%s1743_s7 + $0x198] sm:$0xff]  }
  0x3c   : > { %v1585_v63 = vld [vmem:[%s1743_s7 + $0x160] sm:$0xff]   ;;  %v1589_v3 = vld [vmem:[%s1743_s7 + $0x168] sm:$0xff]   ;;  %v1593_v7 = vld [vmem:[%s1743_s7 + $0x170] sm:$0xff]  }
  0x3d   : > { %1386 = vmatpush3.bf16.msra.mxu0 %v1549_v29  ;;  %v1586_v0 = vld [vmem:[%s1743_s7 + $0x120] sm:$0xff]   ;;  %v1590_v4 = vld [vmem:[%s1743_s7 + $0x128] sm:$0xff]   ;;  %v1594_v8 = vld [vmem:[%s1743_s7 + $0x130] sm:$0xff]  }
  0x3e   : > { %1408 = vmatpush3.bf16.msra.mxu1 %v1550_v30  ;;  %1387 = vmatprep.subr.bf16.mxu0 %v1551_v31  ;;  %v1587_v1 = vld [vmem:[%s1743_s7 + $0x1e0] sm:$0xff]   ;;  %v1591_v5 = vld [vmem:[%s1743_s7 + $0x1e8] sm:$0xff]   ;;  %v1595_v9 = vld [vmem:[%s1743_s7 + $0x1f0] sm:$0xff]  }
  0x3f   : > { %1409 = vmatprep.subr.bf16.mxu1 %v1552_v32  ;;  %v1588_v2 = vld [vmem:[%s1743_s7 + $0x1a0] sm:$0xff]   ;;  %v1592_v6 = vld [vmem:[%s1743_s7 + $0x1a8] sm:$0xff]   ;;  %v1596_v10 = vld [vmem:[%s1743_s7 + $0x1b0] sm:$0xff]  }
  0x40   : > { %v1597_v11 = vld [vmem:[%s1743_s7 + $0x178] sm:$0xff]   ;;  %v1604_v17 = vld [vmem:[%s1743_s7 + $0x240] sm:$0xff]   ;;  %v1609_v21 = vld [vmem:[%s1743_s7 + $0x248] sm:$0xff]  }
  0x41   : > { %1388 = vmatpush3.bf16.msra.mxu0 %v1553_v33  ;;  %v1598_v12 = vld [vmem:[%s1743_s7 + $0x138] sm:$0xff]   ;;  %v1608_v20 = vld [vmem:[%s1743_s7 + $0x200] sm:$0xff]   ;;  %v1610_v22 = vld [vmem:[%s1743_s7 + $0x208] sm:$0xff]  }
  0x42   : > { %1410 = vmatpush3.bf16.msra.mxu1 %v1554_v34  ;;  %1389 = vmatprep.subr.bf16.mxu0 %v1555_v35  ;;  %v1599_v13 = vld [vmem:[%s1743_s7 + $0x1f8] sm:$0xff]   ;;  %v1611_v23 = vld [vmem:[%s1743_s7 + $0x250] sm:$0xff]   ;;  %v1615_v27 = vld [vmem:[%s1743_s7 + $0x260] sm:$0xff]  }
  0x43   : > { %1411 = vmatprep.subr.bf16.mxu1 %v1556_v36  ;;  %v1602_v15 = vld [vmem:[%s1745_s8 + $0x14] ss:$40 sps:$4 sm:$0xff]   ;;  %v1625_v30 = vld [vmem:[%s1745_s8 + $0x24] ss:$40 sps:$4 sm:$0xff]   ;;  %v1623_v36 = vld [vmem:[%s1745_s8 + $0x20] ss:$40 sps:$4 sm:$0xff]  }
  0x44   : > { %v1603_v16 = vld [vmem:[%s1743_s7 + $0x1b8] sm:$0xff]   ;;  %v1612_v24 = vld [vmem:[%s1743_s7 + $0x210] sm:$0xff]   ;;  %v1616_v28 = vld [vmem:[%s1743_s7 + $0x220] sm:$0xff]  }
  0x45   : > { %1390 = vmatpush3.bf16.msra.mxu0 %v1557_v37  ;;  %v1607_v19 = vld [vmem:[%s1745_s8 + $0x1c] ss:$40 sps:$4 sm:$0xff]  }
  0x46   : > { %1412 = vmatpush3.bf16.msra.mxu1 %v1558_v38  ;;  %1391 = vmatprep.subr.bf16.mxu0 %v1559_v39  ;;  %v1613_v25 = vld [vmem:[%s1743_s7 + $0x258] sm:$0xff]   ;;  %v1617_v29 = vld [vmem:[%s1743_s7 + $0x268] sm:$0xff]   ;;  %v1619_v32 = vld [vmem:[%s1743_s7 + $0x270] sm:$0xff]  }
  0x47   : > { %1413 = vmatprep.subr.bf16.mxu1 %v1560_v40  ;;  %v1614_v26 = vld [vmem:[%s1743_s7 + $0x218] sm:$0xff]   ;;  %v1618_v31 = vld [vmem:[%s1743_s7 + $0x228] sm:$0xff]   ;;  %v1620_v33 = vld [vmem:[%s1743_s7 + $0x230] sm:$0xff]  }
  0x48   : > { %v1621_v34 = vld [vmem:[%s1743_s7 + $0x278] sm:$0xff]  }
  0x49   : > { %1392 = vmatpush3.bf16.msra.mxu0 %v1561_v41  ;;  %v1622_v35 = vld [vmem:[%s1743_s7 + $0x238] sm:$0xff]  }
  0x4a   : > { %1414 = vmatpush3.bf16.msra.mxu1 %v1562_v42  ;;  %1421 = vmatprep.subr.bf16.mxu0 %v1569_v47 }
  0x4b   : > { %1443 = vmatprep.subr.bf16.mxu1 %v1571_v49 }
  0x4c   : > { %995 = vmatmul.mubr.bf16.vlgmr.msra.gmra.mrb[0].mxu0 %v1563_v43 }
  0x4d   : > { %1036 = vmatmul.mubr.bf16.vlgmr.msra.gmra.mrb[0].mxu1 %v1566_v45  ;;  %1422 = vmatpush3.bf16.msra.mxu0 %v1570_v48 }
  0x4e   : > { %1444 = vmatpush3.bf16.msra.mxu1 %v1572_v50  ;;  %1423 = vmatprep.subr.bf16.mxu0 %v1573_v51 }
  0x4f   : > { %1445 = vmatprep.subr.bf16.mxu1 %v1575_v53  ;;  %1076 = vmatprep.mubr.bf16.mxu0 %v1602_v15  ;;  %v1177_v15 = vld [vmem:[%s1892_s2] sm:$0xff] (!%p1372_p11) }
  0x50   : > { %1117 = vmatprep.mubr.bf16.mxu1 %v1607_v19 }
  0x51   : > { %1424 = vmatpush3.bf16.msra.mxu0 %v1574_v52 }
  0x52   : > { %1446 = vmatpush3.bf16.msra.mxu1 %v1576_v54  ;;  %1425 = vmatprep.subr.bf16.mxu0 %v1577_v55 }
  0x53   : > { %1447 = vmatprep.subr.bf16.mxu1 %v1579_v57 }
  0x55   : > { %1426 = vmatpush3.bf16.msra.mxu0 %v1578_v56 }
  0x56   : > { %1448 = vmatpush3.bf16.msra.mxu1 %v1580_v58  ;;  %1427 = vmatprep.subr.bf16.mxu0 %v1581_v59 }
  0x57   : > { %1449 = vmatprep.subr.bf16.mxu1 %v1583_v61 }
  0x59   : > { %1428 = vmatpush3.bf16.msra.mxu0 %v1582_v60 }
  0x5a   : > { %1450 = vmatpush3.bf16.msra.mxu1 %v1584_v62  ;;  %1429 = vmatprep.subr.bf16.mxu0 %v1585_v63 }
  0x5b   : > { %1451 = vmatprep.subr.bf16.mxu1 %v1587_v1 }
  0x5d   : > { %1430 = vmatpush3.bf16.msra.mxu0 %v1586_v0 }
  0x5e   : > { %1452 = vmatpush3.bf16.msra.mxu1 %v1588_v2  ;;  %1431 = vmatprep.subr.bf16.mxu0 %v1589_v3 }
  0x5f   : > { %1453 = vmatprep.subr.bf16.mxu1 %v1591_v5 }
  0x61   : > { %1432 = vmatpush3.bf16.msra.mxu0 %v1590_v4 }
  0x62   : > { %1454 = vmatpush3.bf16.msra.mxu1 %v1592_v6  ;;  %1433 = vmatprep.subr.bf16.mxu0 %v1593_v7  ;;  %v260_v7 = vld [vmem:[%s1893_s3] sm:$0xff] }
  0x63   : > { %1455 = vmatprep.subr.bf16.mxu1 %v1595_v9 }
  0x65   : > { %1434 = vmatpush3.bf16.msra.mxu0 %v1594_v8 }
  0x66   : > { %1456 = vmatpush3.bf16.msra.mxu1 %v1596_v10  ;;  %1435 = vmatprep.subr.bf16.mxu0 %v1597_v11  ;;  %v261_v11 = vld [vmem:[%s1893_s3 + $0x8] sm:$0xff] }
  0x67   : > { %1457 = vmatprep.subr.bf16.mxu1 %v1599_v13 }
  0x69   : > { %1436 = vmatpush3.bf16.msra.mxu0 %v1598_v12 }
  0x6a   : > { %1458 = vmatpush3.bf16.msra.mxu1 %v1603_v16  ;;  %1465 = vmatprep.subr.bf16.mxu0 %v1604_v17  ;;  %v1672_v16 = vmov (!%p1372_p11), 0   ;;  %v1178_v17 = vld [vmem:[%s1892_s2 + $0x8] sm:$0xff] (!%p1372_p11) }
  0x6b   : > { %1626 = vset.pattern.permute.xlu0 (!%p1372_p11), %v1672_v16 }
  0x6c   : > { %1077 = vmatmul.mubr.bf16.vlgmr.msra.gmra.mrb[4].mxu0 %v1600_v14  ;;  %1181 = vperm.xlu0 (!%p1372_p11), %1626, %v1177_v15  }
  0x6d   : > { %1466 = vmatpush3.bf16.msra.mxu0 %v1608_v20  ;;  %1118 = vmatmul.mubr.bf16.vlgmr.msra.gmra.mrb[4].mxu1 %v1605_v18 }
  0x6e   : > { %1467 = vmatprep.subr.bf16.mxu0 %v1609_v21  ;;  %1158 = vmatprep.mubr.bf16.mxu0 %v1625_v30 }
  0x70   : > { %1186 = vperm.xlu0 (!%p1372_p11), %1626, %v1178_v17  }
  0x71   : > { %1468 = vmatpush3.bf16.msra.mxu0 %v1610_v22 }
  0x72   : > { %1469 = vmatprep.subr.bf16.mxu0 %v1611_v23 }
  0x75   : > { %1470 = vmatpush3.bf16.msra.mxu0 %v1612_v24 }
  0x76   : > { %1471 = vmatprep.subr.bf16.mxu0 %v1613_v25 }
  0x79   : > { %1472 = vmatpush3.bf16.msra.mxu0 %v1614_v26 }
  0x7a   : > { %1473 = vmatprep.subr.bf16.mxu0 %v1615_v27 }
  0x7d   : > { %1474 = vmatpush3.bf16.msra.mxu0 %v1616_v28 }
  0x7e   : > { %1475 = vmatprep.subr.bf16.mxu0 %v1617_v29 }
  0x81   : > { %1476 = vmatpush3.bf16.msra.mxu0 %v1618_v31 }
  0x82   : > { %1477 = vmatprep.subr.bf16.mxu0 %v1619_v32 }
  0x85   : > { %1478 = vmatpush3.bf16.msra.mxu0 %v1620_v33 }
  0x86   : > { %1479 = vmatprep.subr.bf16.mxu0 %v1621_v34 }
  0x89   : > { %1480 = vmatpush3.bf16.msra.mxu0 %v1622_v35 }
  0x8c   : > { %1159 = vmatmul.mubr.bf16.vlgmr.msra.gmra.mrb[8].mxu0 %v1623_v36 }
  0xeb   : > { %v1182_v19 = vpop.permute.xlu0 (!%p1372_p11), %1181 }
  0xef   : > { %v1187_v22 = vpop.permute.xlu0 (!%p1372_p11), %1186 }
 0x11f   : > { %v1393_v37 = vpop.f32.mrb[0].mxu0 }
 0x120   : > { %v1415_v38 = vpop.f32.mrb[0].mxu1  ;;  %v1394_v39 = vpop.f32.mrb[1].mxu0 }
 0x121   : > { %v1395_v40 = vadd.f32 %v1394_v39, %v1393_v37  ;;  %v1416_v41 = vpop.f32.mrb[1].mxu1  ;;  %v1396_v42 = vpop.f32.mrb[2].mxu0 }
 0x122   : > { %v1417_v43 = vadd.f32 %v1416_v41, %v1415_v38  ;;  %v1418_v44 = vpop.f32.mrb[2].mxu1  ;;  %v1397_v45 = vpop.f32.mrb[3].mxu0 }
 0x123   : > { %v1398_v46 = vadd.f32 %v1397_v45, %v1396_v42  ;;  %v1419_v47 = vpop.f32.mrb[3].mxu1 }
 0x124   : > { %v1038_v48 = vadd.f32 %v1417_v43, %v1395_v40  ;;  %v1420_v49 = vadd.f32 %v1419_v47, %v1418_v44 }
 0x126   : > { %v1041_v50 = vadd.f32 %v1420_v49, %v1398_v46 }
 0x13f   : > { %v1437_v51 = vpop.f32.mrb[4].mxu0 }
 0x140   : > { %v1438_v52 = vpop.f32.mrb[5].mxu0  ;;  %v1459_v57 = vpop.f32.mrb[4].mxu1 }
 0x141   : > { %v1439_v53 = vadd.f32 %v1438_v52, %v1437_v51  ;;  %v1440_v54 = vpop.f32.mrb[6].mxu0  ;;  %v1460_v59 = vpop.f32.mrb[5].mxu1 }
 0x142   : > { %v1441_v55 = vpop.f32.mrb[7].mxu0  ;;  %v1461_v61 = vadd.f32 %v1460_v59, %v1459_v57  ;;  %v1462_v62 = vpop.f32.mrb[6].mxu1 }
 0x143   : > { %v1079_v56 = vadd.f32 %v1439_v53, %v1038_v48  ;;  %v1442_v58 = vadd.f32 %v1441_v55, %v1440_v54  ;;  %v1463_v63 = vpop.f32.mrb[7].mxu1 }
 0x144   : > { %v1464_v1 = vadd.f32 %v1463_v63, %v1462_v62 }
 0x145   : > { %v1082_v60 = vadd.f32 %v1442_v58, %v1041_v50  ;;  %v1120_v0 = vadd.f32 %v1461_v61, %v1079_v56 }
 0x147   : > { %v1123_v2 = vadd.f32 %v1464_v1, %v1082_v60 }
 0x15f   : > { %v1481_v3 = vpop.f32.mrb[8].mxu0 }
 0x160   : > { %v1482_v4 = vpop.f32.mrb[9].mxu0 }
 0x161   : > { %v1483_v5 = vadd.f32 %v1482_v4, %v1481_v3  ;;  %v1484_v6 = vpop.f32.mrb[10].mxu0 }
 0x162   : > { %v1485_v8 = vpop.f32.mrb[11].mxu0 }
 0x163   : > { %v1161_v9 = vadd.f32 %v1483_v5, %v1120_v0  ;;  %v1486_v10 = vadd.f32 %v1485_v8, %v1484_v6  ;;  %1174 = sbr.rel (%p1372_p11) target bundleno = 383 (0x17f), region = 63 }
 0x165   : > { %v1167_v12 = vadd.f32 %v1161_v9, %v260_v7  ;;  %v1164_v13 = vadd.f32 %v1486_v10, %v1123_v2 }
 0x167   : > { %1169 = vst [vmem:[%s1893_s3] sm:$0xff] %v1167_v12  ;;  %v1168_v14 = vadd.f32 %v1164_v13, %v261_v11 }
 0x169   : > { %1170 = vst [vmem:[%s1893_s3 + $0x8] sm:$0xff] %v1168_v14 }
 0x16e   : > { %v1175_v18 = vld [vmem:[%s1893_s3] sm:$0xff] }
 0x16f   : > { %v1189_v20 = vadd.f32 %v1182_v19, %v1175_v18 }
 0x170   : > { %v1176_v21 = vld [vmem:[%s1893_s3 + $0x8] sm:$0xff] }
 0x171   : > { %1627 = vtanh.f32 %v1189_v20  ;;  %v1190_v23 = vadd.f32 %v1187_v22, %v1176_v21 }
 0x173   : > { %1629 = vtanh.f32 %v1190_v23 }
 0x17b   : > { %v1628_v24 = vpop.eup %1627 }
 0x17c   : > { %1193 = vst [vmem:[%s1893_s3] sm:$0xff] %v1628_v24 }
 0x17d   : > { %v1630_v25 = vpop.eup %1629 }
 0x17e   : > { %1194 = vst [vmem:[%s1893_s3 + $0x8] sm:$0xff] %v1630_v25 }
 0x17f PF: > { %s13_s16 = sadd.s32 1, %s1669_s16   ;;  %s1894_s12 = smov %s1657_s13 }
 0x180   : > { %p10_p12 = scmp.ge.s32.totalorder %s13_s16, 6   ;;  %s1895_s13 = smov %s1728_s20 }
 0x181   : > { %s1896_s14 = smov %s1665_s15  ;;  %s1897_s15 = smov %s1899_s17 }
 0x182   :  { %12 = sbr.rel (!%p10_p12) target bundleno = 3 (0x3), region = 101 }

</bundles_post_ra>
